<compile_context>
chip_gen: v7x
topology: tpu7x:2x2x1
jax: 0.10.0
libtpu: 0.0.40
codegen_flags: <defaults>
</compile_context>

<pallas_src>
import functools

import jax
import jax.numpy as jnp
from jax.experimental import pallas as pl
from jax.experimental.pallas import tpu as pltpu


# ----------------------------- config (small GPT-J-like attention) -----------------------------
class Config:
    hidden_size = 256
    num_attention_heads = 2          # head_size = 128 -> lane-dense per-head tiles
    rotary_dim = 32


# ----------------------------- shared rope helper (rotate-half on pre-permuted columns) -------
def _rope_half(x, cos_f, sin_f, rd2):
    # Rotate-half rope on the (pre-permuted) first 2*rd2 columns, full-lane-width math:
    #   partner[:, j] = -x[:, j+rd2]  for j <  rd2
    #                    x[:, j-rd2]  for rd2 <= j < 2*rd2
    #                    don't-care   for j >= 2*rd2   (sin_f == 0 there, cos_f == 1)
    hs = x.shape[-1]
    lane = jax.lax.broadcasted_iota(jnp.int32, x.shape, 1)
    fwd = pltpu.roll(x, shift=rd2, axis=1)        # fwd[:, j] = x[:, (j - rd2) mod hs]
    bwd = pltpu.roll(x, shift=hs - rd2, axis=1)   # bwd[:, j] = x[:, (j + rd2) mod hs]
    partner = jnp.where(lane < rd2, -bwd, fwd)
    return x * cos_f + partner * sin_f


# ----------------------------- QKV projection with fused rope epilogue ------------------------
def _qkv_rope_matmul_kernel(x_ref, w_ref, cos_ref, sin_ref, o_ref, acc_ref, *, hs, rd2, H, tn):
    j = pl.program_id(1)

    @pl.when(pl.program_id(2) == 0)
    def _init():
        acc_ref[...] = jnp.zeros_like(acc_ref)

    x = x_ref[...]
    if x.dtype != jnp.bfloat16:                       # trace-time check; inputs are bf16 here
        x = x.astype(jnp.bfloat16)
    acc_ref[...] += jnp.dot(x, w_ref[...], preferred_element_type=jnp.float32)

    @pl.when(pl.program_id(2) == pl.num_programs(2) - 1)
    def _finalize():
        acc = acc_ref[...]                            # f32 [tm, tn]
        col0 = j * tn                                 # column layout is [k | v | q]
        needs_rope = jnp.logical_or(col0 + tn <= H, col0 >= 2 * H)   # k or q region

        @pl.when(needs_rope)
        def _rope_out():
            cos_f = cos_ref[...]
            sin_f = sin_ref[...]
            for hh in range(tn // hs):                # head-aligned sub-tiles (tn % hs == 0)
                c0 = hh * hs
                o_ref[:, c0:c0 + hs] = _rope_half(acc[:, c0:c0 + hs], cos_f, sin_f, rd2
                                                  ).astype(o_ref.dtype)

        @pl.when(jnp.logical_not(needs_rope))
        def _plain_out():
            o_ref[...] = acc.astype(o_ref.dtype)


def pallas_qkv_rope_proj(x, w_t, cos_f, sin_f, *, nh, hs, rd, tm=128, tn=256, tk=256):
    """x: [T, K] bf16; w_t: [K, 3H] bf16 in [k|v|q] row order with rotary columns pre-permuted
       and the softmax scale folded into q; cos_f/sin_f: [T, hs] f32 widened tables.
       Returns bf16 [T, 3H] with rope already applied to the k and q regions."""
    M, K = x.shape
    Kw, N = w_t.shape
    H = nh * hs
    assert K == Kw and N == 3 * H
    tm, tn, tk = min(tm, M), min(tn, N), min(tk, K)
    assert M % tm == 0 and N % tn == 0 and K % tk == 0
    assert tn % hs == 0 and H % tn == 0, "each N tile must be head-aligned and within k/v/q"
    kernel = functools.partial(_qkv_rope_matmul_kernel, hs=hs, rd2=rd // 2, H=H, tn=tn)
    return pl.pallas_call(
        kernel,
        out_shape=jax.ShapeDtypeStruct((M, N), jnp.bfloat16),
        grid_spec=pltpu.PrefetchScalarGridSpec(
            num_scalar_prefetch=0,
            grid=(M // tm, N // tn, K // tk),
            in_specs=[pl.BlockSpec((tm, tk), lambda i, j, k: (i, k)),
                      pl.BlockSpec((tk, tn), lambda i, j, k: (k, j)),
                      pl.BlockSpec((tm, hs), lambda i, j, k: (i, 0)),   # revisit: DMA'd once per i
                      pl.BlockSpec((tm, hs), lambda i, j, k: (i, 0))],
            out_specs=pl.BlockSpec((tm, tn), lambda i, j, k: (i, j)),
            scratch_shapes=[pltpu.VMEM((tm, tn), jnp.float32)]),
        compiler_params=pltpu.CompilerParams(
            dimension_semantics=("parallel", "parallel", "arbitrary")),
    )(x, w_t, cos_f, sin_f)


# ----------------------------- generic tiled linear (out_proj) --------------------------------
def _matmul_kernel(x_ref, w_ref, o_ref, acc_ref):
    @pl.when(pl.program_id(2) == 0)
    def _init():
        acc_ref[...] = jnp.zeros_like(acc_ref)

    x = x_ref[...]
    if x.dtype != jnp.bfloat16:
        x = x.astype(jnp.bfloat16)
    acc_ref[...] += jnp.dot(x, w_ref[...], preferred_element_type=jnp.float32)

    @pl.when(pl.program_id(2) == pl.num_programs(2) - 1)
    def _finalize():
        o_ref[...] = acc_ref[...].astype(o_ref.dtype)


def pallas_linear(x, w_t, *, out_dtype=jnp.float32, tm=128, tn=256, tk=256):
    """x: [M, K] bf16; w_t: [K, N] bf16 pre-transposed weight; no bias (GPT-J attention)."""
    M, K = x.shape
    Kw, N = w_t.shape
    assert K == Kw
    tm, tn, tk = min(tm, M), min(tn, N), min(tk, K)
    assert M % tm == 0 and N % tn == 0 and K % tk == 0
    return pl.pallas_call(
        _matmul_kernel,
        out_shape=jax.ShapeDtypeStruct((M, N), out_dtype),
        grid_spec=pltpu.PrefetchScalarGridSpec(
            num_scalar_prefetch=0,
            grid=(M // tm, N // tn, K // tk),
            in_specs=[pl.BlockSpec((tm, tk), lambda i, j, k: (i, k)),
                      pl.BlockSpec((tk, tn), lambda i, j, k: (k, j))],
            out_specs=pl.BlockSpec((tm, tn), lambda i, j, k: (i, j)),
            scratch_shapes=[pltpu.VMEM((tm, tn), jnp.float32)]),
        compiler_params=pltpu.CompilerParams(
            dimension_semantics=("parallel", "parallel", "arbitrary")),
    )(x, w_t)


# ----------------------------- flash attention (causal, lower-triangular grid) ----------------
_MASK_VALUE = -1e30   # diagonal tile only; every row keeps its diagonal column unmasked


def _flash_attn_kernel(qi_ref, ki_ref, kv_ref, q_ref, o_ref, m_sc, l_sc, acc_sc, *, nh, hs):
    t = pl.program_id(0)
    qi = qi_ref[t]
    ki = ki_ref[t]
    is_diag = ki == qi

    tq = q_ref.shape[0]
    tkv = kv_ref.shape[0]
    H = nh * hs

    @pl.when(ki == 0)
    def _init():
        m_sc[...] = jnp.full(m_sc.shape, -jnp.inf, dtype=m_sc.dtype)
        l_sc[...] = jnp.zeros(l_sc.shape, dtype=l_sc.dtype)
        acc_sc[...] = jnp.zeros(acc_sc.shape, dtype=acc_sc.dtype)

    def _body(masked):
        if masked:
            # diagonal tile: local causal mask (qi*tq == ki*tkv since tq == tkv)
            rows = jax.lax.broadcasted_iota(jnp.int32, (tq, tkv), 0)
            cols = jax.lax.broadcasted_iota(jnp.int32, (tq, tkv), 1)
            causal = cols <= rows
        # TODO(synk): at production head counts replace this static unroll with a grid axis
        #             or lax.fori_loop + pl.ds to bound code size / vreg live ranges.
        for h in range(nh):
            c0 = h * hs
            qh = q_ref[:, c0:c0 + hs]                 # bf16, pre-roped, softmax scale folded in
            kh = kv_ref[:, c0:c0 + hs]                # bf16, pre-roped
            s = jax.lax.dot_general(qh, kh, (((1,), (1,)), ((), ())),
                                    preferred_element_type=jnp.float32)   # f32 [tq, tkv]
            if masked:
                s = jnp.where(causal, s, _MASK_VALUE)
            m_prev = m_sc[h]                          # [tq, 1] f32
            m_new = jnp.maximum(m_prev, jnp.max(s, axis=-1, keepdims=True))
            alpha = jnp.exp(m_prev - m_new)
            p = jnp.exp(s - m_new)                    # f32 softmax math (v5e-safe)
            l_sc[h] = alpha * l_sc[h] + jnp.sum(p, axis=-1, keepdims=True)
            vh = kv_ref[:, H + c0:H + c0 + hs]        # bf16
            pv = jnp.dot(p.astype(jnp.bfloat16), vh, preferred_element_type=jnp.float32)
            acc_sc[:, c0:c0 + hs] = alpha * acc_sc[:, c0:c0 + hs] + pv
            m_sc[h] = m_new

    # Off-diagonal tiles (majority): no mask, no iota/compare/select.
    @pl.when(jnp.logical_not(is_diag))
    def _fast():
        _body(masked=False)

    # Diagonal tile: masked path, then finalize (it is always the last ki of this qi group).
    @pl.when(is_diag)
    def _diag_and_finalize():
        _body(masked=True)
        for h in range(nh):
            c0 = h * hs
            inv_l = pl.reciprocal(l_sc[h], approx=False)
            o_ref[:, c0:c0 + hs] = (acc_sc[:, c0:c0 + hs] * inv_l).astype(o_ref.dtype)


def pallas_flash_attention(qkv, *, nh, hs, tq=128, tkv=128):
    """qkv: [T, 3*nh*hs] bf16 fused projection output in [k|v|q] column order, rope already
       applied and softmax scale folded into q.  Returns lane-dense bf16 [T, nh*hs]."""
    T = qkv.shape[0]
    H = nh * hs
    assert qkv.shape[1] == 3 * H
    assert hs % 128 == 0
    tq, tkv = min(tq, T), min(tkv, T)
    assert T % tq == 0 and tq == tkv

    # Flat lower-triangular grid: only tiles with ki <= qi are ever scheduled (no DMA / step
    # overhead for fully-masked tiles).  SMEM tables map flat step -> (qi, ki).
    nq = T // tq
    qi_list, ki_list = [], []
    for qi in range(nq):
        for ki in range(qi + 1):
            qi_list.append(qi)
            ki_list.append(ki)
    qi_map = jnp.asarray(qi_list, dtype=jnp.int32)
    ki_map = jnp.asarray(ki_list, dtype=jnp.int32)
    n_flat = len(qi_list)

    kernel = functools.partial(_flash_attn_kernel, nh=nh, hs=hs)
    return pl.pallas_call(
        kernel,
        out_shape=jax.ShapeDtypeStruct((T, H), jnp.bfloat16),
        grid_spec=pltpu.PrefetchScalarGridSpec(
            num_scalar_prefetch=2,
            grid=(n_flat,),
            in_specs=[
                # K and V fetched as one (tkv, 2H) block (column block 0 of [k|v|q]).
                pl.BlockSpec((tkv, 2 * H), lambda t, qi_m, ki_m: (ki_m[t], 0)),
                # Q is column block 2; its block index is constant within a qi group so the
                # tile stays resident (no re-DMA, no re-rope/cast — rope was done upstream).
                pl.BlockSpec((tq, H), lambda t, qi_m, ki_m: (qi_m[t], 2)),
            ],
            out_specs=pl.BlockSpec((tq, H), lambda t, qi_m, ki_m: (qi_m[t], 0)),
            scratch_shapes=[
                pltpu.VMEM((nh, tq, 1), jnp.float32),   # running row max m
                pltpu.VMEM((nh, tq, 1), jnp.float32),   # running denominator l
                pltpu.VMEM((tq, H), jnp.float32),       # f32 output accumulator
            ]),
        compiler_params=pltpu.CompilerParams(
            dimension_semantics=("arbitrary",)),
    )(qi_map, ki_map, qkv, qkv)


# ----------------------------- module forward -----------------------------
def flash_gptj_attention_forward(params, hidden_states, cos, sin, cfg):
    nh = cfg.num_attention_heads
    hs = cfg.hidden_size // nh
    rd = cfg.rotary_dim
    T = hidden_states.shape[0]

    x = hidden_states.astype(jnp.bfloat16)            # single cast; kernels are bf16-in
    # Widen cos/sin once to full head width (identical for every head; lane-dense blocks).
    cos_f = jnp.concatenate([cos, cos, jnp.ones((T, hs - rd), jnp.float32)], axis=-1)
    sin_f = jnp.concatenate([sin, sin, jnp.zeros((T, hs - rd), jnp.float32)], axis=-1)

    qkv = pallas_qkv_rope_proj(x, params["wqkv_t"], cos_f, sin_f, nh=nh, hs=hs, rd=rd)
    # TODO(synk): kv_cache.store(key, value, slots, kv_scales) + paged decode path omitted.
    attn = pallas_flash_attention(qkv, nh=nh, hs=hs)                    # [T, H] bf16
    return pallas_linear(attn, params["wo_t"], out_dtype=jnp.float32)   # out_proj, no bias


# ----------------------------- params / rotary helpers -----------------------------
def get_cos_sin(position_ids, rotary_dim, base=10000.0):
    inv_freq = 1.0 / (base ** (jnp.arange(0, rotary_dim, 2, dtype=jnp.float32) / rotary_dim))
    freqs = position_ids.astype(jnp.float32)[:, None] * inv_freq[None, :]
    return jnp.cos(freqs), jnp.sin(freqs)            # [T, rotary_dim // 2]


def _rotary_perm(nh, hs, rd):
    # Per-head permutation: interleaved rotary dims -> [evens | odds | passthrough].
    head = jnp.concatenate([jnp.arange(0, rd, 2), jnp.arange(1, rd, 2), jnp.arange(rd, hs)])
    return jnp.concatenate([h * hs + head for h in range(nh)])


def init_params(key, cfg):
    H = cfg.hidden_size
    nh = cfg.num_attention_heads
    hs = H // nh
    rd = cfg.rotary_dim
    k1, k2 = jax.random.split(key)
    # torch.nn.Linear convention: weight [out_features, in_features]; GPT-J attn has no bias.
    # Weights are materialized in bf16 precision (rounded once) — the f32 copies kept for the
    # reference hold the identical values, so the check isolates kernel numerics.
    wqkv = (0.02 * jax.random.normal(k1, (3 * H, H), jnp.float32)
            ).astype(jnp.bfloat16).astype(jnp.float32)
    wo = (0.02 * jax.random.normal(k2, (H, H), jnp.float32)
          ).astype(jnp.bfloat16).astype(jnp.float32)
    # Kernel-side weight prep (all done once at init, nothing inside jit):
    #   * rows reordered to [k | v | q] so K/V stream as one block in the attention kernel,
    #   * q/k rotary output rows pre-permuted (interleaved -> [evens|odds]) for rotate-half rope,
    #   * softmax scale folded into the q rows,
    #   * pre-transposed to [in, out] and pre-cast to bf16 (halves weight DMA traffic).
    perm = _rotary_perm(nh, hs, rd)
    wq, wk, wv = wqkv[:H], wqkv[H:2 * H], wqkv[2 * H:]
    scale = float(hs) ** -0.5
    wqkv_kernel = jnp.concatenate([wk[perm], wv, (wq * scale)[perm]], axis=0)
    return {
        "wqkv": wqkv, "wo": wo,                                    # f32 originals (reference)
        "wqkv_t": wqkv_kernel.T.astype(jnp.bfloat16),              # [H, 3H] bf16, [k|v|q]
        "wo_t": wo.T.astype(jnp.bfloat16),                         # [H, H]  bf16
    }


# ----------------------------- pure-JAX reference (torch semantics, f32) -----------------------------
def _gptj_interleaved_rotary(x, cos, sin, rd):
    T, nh, hs = x.shape
    xr = x[..., :rd].reshape(T, nh, rd // 2, 2)
    x1, x2 = xr[..., 0], xr[..., 1]
    c, s = cos[:, None, :], sin[:, None, :]
    o1 = x1 * c - x2 * s
    o2 = x2 * c + x1 * s
    rot = jnp.stack([o1, o2], axis=-1).reshape(T, nh, rd)
    return jnp.concatenate([rot, x[..., rd:]], axis=-1)


def reference_forward(params, hidden, cos, sin, cfg):
    H, nh = cfg.hidden_size, cfg.num_attention_heads
    hs, rd = H // nh, cfg.rotary_dim
    T = hidden.shape[0]
    qkv = jnp.dot(hidden, params["wqkv"].T, precision="highest")
    q, k, v = jnp.split(qkv, 3, axis=1)
    q = _gptj_interleaved_rotary(q.reshape(T, nh, hs), cos, sin, rd)
    k = _gptj_interleaved_rotary(k.reshape(T, nh, hs), cos, sin, rd)
    v = v.reshape(T, nh, hs)
    s = jnp.einsum("qhd,khd->hqk", q, k, precision="highest") * (float(hs) ** -0.5)
    mask = jnp.tril(jnp.ones((T, T), dtype=bool))
    s = jnp.where(mask[None], s, -jnp.inf)
    p = jax.nn.softmax(s, axis=-1)
    o = jnp.einsum("hqk,khd->qhd", p, v, precision="highest").reshape(T, H)
    return jnp.dot(o, params["wo"].T, precision="highest")


# ----------------------------- main -----------------------------
if __name__ == "__main__":
    cfg = Config()
    root = jax.random.PRNGKey(0)
    pkey, hkey = jax.random.split(root)
    params = init_params(pkey, cfg)

    T = 256
    hidden_states = jax.random.normal(hkey, (T, cfg.hidden_size), dtype=jnp.float32)
    hidden_states = hidden_states.astype(jnp.bfloat16).astype(jnp.float32)  # bf16-representable
    position_ids = jnp.arange(T, dtype=jnp.int32)
    cos, sin = get_cos_sin(position_ids, cfg.rotary_dim)

    fwd = jax.jit(functools.partial(flash_gptj_attention_forward, cfg=cfg))
    out = fwd(params, hidden_states, cos, sin)
    jax.block_until_ready(out)

    ref = reference_forward(params, hidden_states, cos, sin, cfg)
    err = float(jnp.max(jnp.abs(out - ref)))
    tol = 2e-3 + 3e-2 * float(jnp.max(jnp.abs(ref)))   # bf16 activations/MXU vs f32 reference
    assert out.shape == (T, cfg.hidden_size)
    assert bool(jnp.all(jnp.isfinite(out)))
    assert err <= tol, f"max abs err {err} > tol {tol}"
    print("KERNEL_OK")
</pallas_src>

<mosaic_0001>
module attributes {stable_mosaic.version = 11 : i64} {
  func.func @_qkv_rope_matmul_kernel(%arg0: i32, %arg1: i32, %arg2: i32, %arg3: memref<128x256xbf16, #tpu.memory_space<vmem>>, %arg4: memref<256x256xbf16, #tpu.memory_space<vmem>>, %arg5: memref<128x128xf32, #tpu.memory_space<vmem>>, %arg6: memref<128x128xf32, #tpu.memory_space<vmem>>, %arg7: memref<128x256xbf16, #tpu.memory_space<vmem>>, %arg8: memref<128x256xf32, #tpu.memory_space<vmem>>) attributes {dimension_semantics = [#tpu.dimension_semantics<parallel>, #tpu.dimension_semantics<parallel>, #tpu.dimension_semantics<arbitrary>], iteration_bounds = array<i64: 2, 3, 1>, scalar_prefetch = 0 : i64, scratch_operands = 1 : i64, tpu.core_type = #tpu.core_type<tc>, window_params = [{transform_indices = @transform_0, window_bounds = array<i64: 128, 256>}, {transform_indices = @transform_1, window_bounds = array<i64: 256, 256>}, {transform_indices = @transform_2, window_bounds = array<i64: 128, 128>}, {transform_indices = @transform_3, window_bounds = array<i64: 128, 128>}, {transform_indices = @transform_4, window_bounds = array<i64: 128, 256>}]} {
    %c0_i32 = arith.constant 0 : i32
    %0 = arith.cmpi eq, %arg2, %c0_i32 : i32
    %1 = arith.extui %0 : i1 to i32
    %c0_i32_0 = arith.constant 0 : i32
    %2 = arith.cmpi ne, %1, %c0_i32_0 : i32
    scf.if %2 {
      %cst_10 = arith.constant 0.000000e+00 : f32
      %12 = vector.broadcast %cst_10 : f32 to vector<128x256xf32>
      %c0_11 = arith.constant 0 : index
      %c0_12 = arith.constant 0 : index
      %13 = vector.load %arg8[%c0_11, %c0_12] : memref<128x256xf32, #tpu.memory_space<vmem>>, vector<128x256xf32>
      tpu.vector_store %arg8[%c0_11, %c0_12], %12 {strides = array<i32>} : memref<128x256xf32, #tpu.memory_space<vmem>>, vector<128x256xf32>,
    } else {
    }
    %c0 = arith.constant 0 : index
    %c0_1 = arith.constant 0 : index
    %3 = vector.load %arg3[%c0, %c0_1] : memref<128x256xbf16, #tpu.memory_space<vmem>>, vector<128x256xbf16>
    %c0_2 = arith.constant 0 : index
    %c0_3 = arith.constant 0 : index
    %4 = vector.load %arg8[%c0_2, %c0_3] : memref<128x256xf32, #tpu.memory_space<vmem>>, vector<128x256xf32>
    %c0_4 = arith.constant 0 : index
    %c0_5 = arith.constant 0 : index
    %5 = vector.load %arg4[%c0_4, %c0_5] : memref<256x256xbf16, #tpu.memory_space<vmem>>, vector<256x256xbf16>
    %cst = arith.constant dense<0.000000e+00> : vector<128x256xf32>
    %6 = tpu.matmul %3, %5, %cst {dimension_numbers = #tpu.dot_dimension_numbers<[1], [0], [0], [1], [0, 0, 1, 1], [], []>} : vector<128x256xbf16>, vector<256x256xbf16>, vector<128x256xf32> -> vector<128x256xf32>
    %7 = arith.addf %4, %6 : vector<128x256xf32>
    %c0_6 = arith.constant 0 : index
    %c0_7 = arith.constant 0 : index
    %8 = vector.load %arg8[%c0_6, %c0_7] : memref<128x256xf32, #tpu.memory_space<vmem>>, vector<128x256xf32>
    tpu.vector_store %arg8[%c0_6, %c0_7], %7 {strides = array<i32>} : memref<128x256xf32, #tpu.memory_space<vmem>>, vector<128x256xf32>,
    %c0_i32_8 = arith.constant 0 : i32
    %9 = arith.cmpi eq, %arg2, %c0_i32_8 : i32
    %10 = arith.extui %9 : i1 to i32
    %c0_i32_9 = arith.constant 0 : i32
    %11 = arith.cmpi ne, %10, %c0_i32_9 : i32
    scf.if %11 {
      %c0_10 = arith.constant 0 : index
      %c0_11 = arith.constant 0 : index
      %12 = vector.load %arg8[%c0_10, %c0_11] : memref<128x256xf32, #tpu.memory_space<vmem>>, vector<128x256xf32>
      %c256_i32 = arith.constant 256 : i32
      %13 = arith.muli %arg1, %c256_i32 : i32
      %c256_i32_12 = arith.constant 256 : i32
      %14 = arith.addi %13, %c256_i32_12 : i32
      %c256_i32_13 = arith.constant 256 : i32
      %15 = arith.cmpi sle, %14, %c256_i32_13 : i32
      %c512_i32 = arith.constant 512 : i32
      %16 = arith.cmpi sge, %13, %c512_i32 : i32
      %17 = arith.ori %15, %16 : i1
      %18 = arith.extui %17 : i1 to i32
      %c0_i32_14 = arith.constant 0 : i32
      %19 = arith.cmpi ne, %18, %c0_i32_14 : i32
      scf.if %19 {
        %c0_16 = arith.constant 0 : index
        %c0_17 = arith.constant 0 : index
        %23 = vector.load %arg5[%c0_16, %c0_17] : memref<128x128xf32, #tpu.memory_space<vmem>>, vector<128x128xf32>
        %c0_18 = arith.constant 0 : index
        %c0_19 = arith.constant 0 : index
        %24 = vector.load %arg6[%c0_18, %c0_19] : memref<128x128xf32, #tpu.memory_space<vmem>>, vector<128x128xf32>
        %25 = vector.extract_strided_slice %12 {offsets = [0, 0], sizes = [128, 128], strides = [1, 1]} : vector<128x256xf32> to vector<128x128xf32>
        %26 = tpu.iota {dimensions = array<i32: 1>} : vector<128x128xi32>
        %c16_i32 = arith.constant 16 : i32
        %27 = tpu.dynamic_rotate %25 by %c16_i32 dim 1 : vector<128x128xf32>, i32 -> vector<128x128xf32>
        %c112_i32 = arith.constant 112 : i32
        %28 = tpu.dynamic_rotate %25 by %c112_i32 dim 1 : vector<128x128xf32>, i32 -> vector<128x128xf32>
        %c16_i32_20 = arith.constant 16 : i32
        %29 = vector.broadcast %c16_i32_20 : i32 to vector<128x128xi32>
        %30 = arith.cmpi slt, %26, %29 : vector<128x128xi32>
        %cst_21 = arith.constant 0.000000e+00 : f32
        %31 = vector.broadcast %cst_21 : f32 to vector<128x128xf32>
        %32 = arith.subf %31, %28 : vector<128x128xf32>
        %33 = arith.select %30, %32, %27 : vector<128x128xi1>, vector<128x128xf32>
        %34 = arith.mulf %25, %23 : vector<128x128xf32>
        %35 = arith.mulf %33, %24 : vector<128x128xf32>
        %36 = arith.addf %34, %35 : vector<128x128xf32>
        %37 = arith.truncf %36 : vector<128x128xf32> to vector<128x128xbf16>
        %c0_22 = arith.constant 0 : index
        %c0_23 = arith.constant 0 : index
        %38 = vector.load %arg7[%c0_22, %c0_23] : memref<128x256xbf16, #tpu.memory_space<vmem>>, vector<128x128xbf16>
        tpu.vector_store %arg7[%c0_22, %c0_23], %37 {strides = array<i32>} : memref<128x256xbf16, #tpu.memory_space<vmem>>, vector<128x128xbf16>,
        %39 = vector.extract_strided_slice %12 {offsets = [0, 128], sizes = [128, 128], strides = [1, 1]} : vector<128x256xf32> to vector<128x128xf32>
        %40 = tpu.iota {dimensions = array<i32: 1>} : vector<128x128xi32>
        %c16_i32_24 = arith.constant 16 : i32
        %41 = tpu.dynamic_rotate %39 by %c16_i32_24 dim 1 : vector<128x128xf32>, i32 -> vector<128x128xf32>
        %c112_i32_25 = arith.constant 112 : i32
        %42 = tpu.dynamic_rotate %39 by %c112_i32_25 dim 1 : vector<128x128xf32>, i32 -> vector<128x128xf32>
        %c16_i32_26 = arith.constant 16 : i32
        %43 = vector.broadcast %c16_i32_26 : i32 to vector<128x128xi32>
        %44 = arith.cmpi slt, %40, %43 : vector<128x128xi32>
        %cst_27 = arith.constant 0.000000e+00 : f32
        %45 = vector.broadcast %cst_27 : f32 to vector<128x128xf32>
        %46 = arith.subf %45, %42 : vector<128x128xf32>
        %47 = arith.select %44, %46, %41 : vector<128x128xi1>, vector<128x128xf32>
        %48 = arith.mulf %39, %23 : vector<128x128xf32>
        %49 = arith.mulf %47, %24 : vector<128x128xf32>
        %50 = arith.addf %48, %49 : vector<128x128xf32>
        %51 = arith.truncf %50 : vector<128x128xf32> to vector<128x128xbf16>
        %c0_28 = arith.constant 0 : index
        %c128 = arith.constant 128 : index
        %52 = vector.load %arg7[%c0_28, %c128] : memref<128x256xbf16, #tpu.memory_space<vmem>>, vector<128x128xbf16>
        tpu.vector_store %arg7[%c0_28, %c128], %51 {strides = array<i32>} : memref<128x256xbf16, #tpu.memory_space<vmem>>, vector<128x128xbf16>,
      } else {
      }
      %true = arith.constant true
      %20 = arith.xori %17, %true : i1
      %21 = arith.extui %20 : i1 to i32
      %c0_i32_15 = arith.constant 0 : i32
      %22 = arith.cmpi ne, %21, %c0_i32_15 : i32
      scf.if %22 {
        %23 = arith.truncf %12 : vector<128x256xf32> to vector<128x256xbf16>
        %c0_16 = arith.constant 0 : index
        %c0_17 = arith.constant 0 : index
        %24 = vector.load %arg7[%c0_16, %c0_17] : memref<128x256xbf16, #tpu.memory_space<vmem>>, vector<128x256xbf16>
        tpu.vector_store %arg7[%c0_16, %c0_17], %23 {strides = array<i32>} : memref<128x256xbf16, #tpu.memory_space<vmem>>, vector<128x256xbf16>,
      } else {
      }
    } else {
    }
    return
  }
  func.func @transform_0(%arg0: i32, %arg1: i32, %arg2: i32) -> (i32, i32) {
    %c0_i32 = arith.constant 0 : i32
    return %arg0, %arg2 : i32, i32
  }
  func.func @transform_1(%arg0: i32, %arg1: i32, %arg2: i32) -> (i32, i32) {
    %c0_i32 = arith.constant 0 : i32
    return %arg2, %arg1 : i32, i32
  }
  func.func @transform_2(%arg0: i32, %arg1: i32, %arg2: i32) -> (i32, i32) {
    %c0_i32 = arith.constant 0 : i32
    %c0_i32_0 = arith.constant 0 : i32
    return %arg0, %c0_i32 : i32, i32
  }
  func.func @transform_3(%arg0: i32, %arg1: i32, %arg2: i32) -> (i32, i32) {
    %c0_i32 = arith.constant 0 : i32
    %c0_i32_0 = arith.constant 0 : i32
    return %arg0, %c0_i32 : i32, i32
  }
  func.func @transform_4(%arg0: i32, %arg1: i32, %arg2: i32) -> (i32, i32) {
    %c0_i32 = arith.constant 0 : i32
    return %arg0, %arg1 : i32, i32
  }
}

module attributes {stable_mosaic.version = 11 : i64} {
  func.func @_flash_attn_kernel(%arg0: i32, %arg1: memref<3xi32, #tpu.memory_space<smem>>, %arg2: memref<3xi32, #tpu.memory_space<smem>>, %arg3: memref<128x512xbf16, #tpu.memory_space<vmem>>, %arg4: memref<128x256xbf16, #tpu.memory_space<vmem>>, %arg5: memref<128x256xbf16, #tpu.memory_space<vmem>>, %arg6: memref<2x128x1xf32, #tpu.memory_space<vmem>>, %arg7: memref<2x128x1xf32, #tpu.memory_space<vmem>>, %arg8: memref<128x256xf32, #tpu.memory_space<vmem>>) attributes {dimension_semantics = [#tpu.dimension_semantics<arbitrary>], iteration_bounds = array<i64: 3>, scalar_prefetch = 2 : i64, scratch_operands = 3 : i64, tpu.core_type = #tpu.core_type<tc>, window_params = [{transform_indices = @transform_0, window_bounds = array<i64: 128, 512>}, {transform_indices = @transform_1, window_bounds = array<i64: 128, 256>}, {transform_indices = @transform_2, window_bounds = array<i64: 128, 256>}]} {
    %0 = arith.index_cast %arg0 : i32 to index
    %1 = memref.load %arg1[%0] : memref<3xi32, #tpu.memory_space<smem>>
    %2 = arith.index_cast %arg0 : i32 to index
    %3 = memref.load %arg2[%2] : memref<3xi32, #tpu.memory_space<smem>>
    %4 = arith.cmpi eq, %3, %1 : i32
    %c0_i32 = arith.constant 0 : i32
    %5 = arith.cmpi eq, %3, %c0_i32 : i32
    %6 = arith.extui %5 : i1 to i32
    %c0_i32_0 = arith.constant 0 : i32
    %7 = arith.cmpi ne, %6, %c0_i32_0 : i32
    scf.if %7 {
      %cst = arith.constant 0xFF800000 : f32
      %13 = vector.broadcast %cst : f32 to vector<2x128x1xf32>
      %c0 = arith.constant 0 : index
      %c0_3 = arith.constant 0 : index
      %c0_4 = arith.constant 0 : index
      %14 = vector.load %arg6[%c0, %c0_3, %c0_4] : memref<2x128x1xf32, #tpu.memory_space<vmem>>, vector<2x128x1xf32>
      tpu.vector_store %arg6[%c0, %c0_3, %c0_4], %13 {strides = array<i32>} : memref<2x128x1xf32, #tpu.memory_space<vmem>>, vector<2x128x1xf32>,
      %cst_5 = arith.constant 0.000000e+00 : f32
      %15 = vector.broadcast %cst_5 : f32 to vector<2x128x1xf32>
      %c0_6 = arith.constant 0 : index
      %c0_7 = arith.constant 0 : index
      %c0_8 = arith.constant 0 : index
      %16 = vector.load %arg7[%c0_6, %c0_7, %c0_8] : memref<2x128x1xf32, #tpu.memory_space<vmem>>, vector<2x128x1xf32>
      tpu.vector_store %arg7[%c0_6, %c0_7, %c0_8], %15 {strides = array<i32>} : memref<2x128x1xf32, #tpu.memory_space<vmem>>, vector<2x128x1xf32>,
      %cst_9 = arith.constant 0.000000e+00 : f32
      %17 = vector.broadcast %cst_9 : f32 to vector<128x256xf32>
      %c0_10 = arith.constant 0 : index
      %c0_11 = arith.constant 0 : index
      %18 = vector.load %arg8[%c0_10, %c0_11] : memref<128x256xf32, #tpu.memory_space<vmem>>, vector<128x256xf32>
      tpu.vector_store %arg8[%c0_10, %c0_11], %17 {strides = array<i32>} : memref<128x256xf32, #tpu.memory_space<vmem>>, vector<128x256xf32>,
    } else {
    }
    %true = arith.constant true
    %8 = arith.xori %4, %true : i1
    %9 = arith.extui %8 : i1 to i32
    %c0_i32_1 = arith.constant 0 : i32
    %10 = arith.cmpi ne, %9, %c0_i32_1 : i32
    scf.if %10 {
      %c0 = arith.constant 0 : index
      %c0_3 = arith.constant 0 : index
      %13 = vector.load %arg4[%c0, %c0_3] : memref<128x256xbf16, #tpu.memory_space<vmem>>, vector<128x128xbf16>
      %c0_4 = arith.constant 0 : index
      %c0_5 = arith.constant 0 : index
      %14 = vector.load %arg3[%c0_4, %c0_5] : memref<128x512xbf16, #tpu.memory_space<vmem>>, vector<128x128xbf16>
      %cst = arith.constant dense<0.000000e+00> : vector<128x128xf32>
      %15 = tpu.matmul %13, %14, %cst {dimension_numbers = #tpu.dot_dimension_numbers<[1], [1], [0], [0], [0, 0, 1, 0], [], []>} : vector<128x128xbf16>, vector<128x128xbf16>, vector<128x128xf32> -> vector<128x128xf32>
      %c0_6 = arith.constant 0 : index
      %c0_7 = arith.constant 0 : index
      %c0_8 = arith.constant 0 : index
      %16 = vector.load %arg6[%c0_6, %c0_7, %c0_8] : memref<2x128x1xf32, #tpu.memory_space<vmem>>, vector<1x128x1xf32>
      %17 = vector.shape_cast %16 : vector<1x128x1xf32> to vector<128x1xf32>
      %cst_9 = arith.constant dense<0xFF800000> : vector<128xf32>
      %18 = vector.multi_reduction <maximumf>, %15, %cst_9 [1] : vector<128x128xf32> to vector<128xf32>
      %19 = vector.shape_cast %18 : vector<128xf32> to vector<128x1xf32>
      %20 = arith.maximumf %17, %19 : vector<128x1xf32>
      %21 = arith.subf %17, %20 : vector<128x1xf32>
      %22 = math.exp %21 : vector<128x1xf32>
      %23 = vector.broadcast %20 : vector<128x1xf32> to vector<128x128xf32>
      %24 = arith.subf %15, %23 : vector<128x128xf32>
      %25 = math.exp %24 : vector<128x128xf32>
      %c0_10 = arith.constant 0 : index
      %c0_11 = arith.constant 0 : index
      %c0_12 = arith.constant 0 : index
      %26 = vector.load %arg7[%c0_10, %c0_11, %c0_12] : memref<2x128x1xf32, #tpu.memory_space<vmem>>, vector<1x128x1xf32>
      %27 = vector.shape_cast %26 : vector<1x128x1xf32> to vector<128x1xf32>
      %28 = arith.mulf %22, %27 : vector<128x1xf32>
      %cst_13 = arith.constant dense<0.000000e+00> : vector<128xf32>
      %29 = vector.multi_reduction <add>, %25, %cst_13 [1] : vector<128x128xf32> to vector<128xf32>
      %30 = vector.shape_cast %29 : vector<128xf32> to vector<128x1xf32>
      %31 = arith.addf %28, %30 : vector<128x1xf32>
      %c0_14 = arith.constant 0 : index
      %c0_15 = arith.constant 0 : index
      %c0_16 = arith.constant 0 : index
      %32 = vector.load %arg7[%c0_14, %c0_15, %c0_16] : memref<2x128x1xf32, #tpu.memory_space<vmem>>, vector<1x128x1xf32>
      %33 = vector.shape_cast %32 : vector<1x128x1xf32> to vector<128x1xf32>
      %34 = vector.shape_cast %31 : vector<128x1xf32> to vector<1x128x1xf32>
      tpu.vector_store %arg7[%c0_14, %c0_15, %c0_16], %34 {strides = array<i32>} : memref<2x128x1xf32, #tpu.memory_space<vmem>>, vector<1x128x1xf32>,
      %c0_17 = arith.constant 0 : index
      %c256 = arith.constant 256 : index
      %35 = vector.load %arg3[%c0_17, %c256] : memref<128x512xbf16, #tpu.memory_space<vmem>>, vector<128x128xbf16>
      %36 = arith.truncf %25 : vector<128x128xf32> to vector<128x128xbf16>
      %cst_18 = arith.constant dense<0.000000e+00> : vector<128x128xf32>
      %37 = tpu.matmul %36, %35, %cst_18 {dimension_numbers = #tpu.dot_dimension_numbers<[1], [0], [0], [1], [0, 0, 1, 1], [], []>} : vector<128x128xbf16>, vector<128x128xbf16>, vector<128x128xf32> -> vector<128x128xf32>
      %c0_19 = arith.constant 0 : index
      %c0_20 = arith.constant 0 : index
      %38 = vector.load %arg8[%c0_19, %c0_20] : memref<128x256xf32, #tpu.memory_space<vmem>>, vector<128x128xf32>
      %39 = vector.broadcast %22 : vector<128x1xf32> to vector<128x128xf32>
      %40 = arith.mulf %39, %38 : vector<128x128xf32>
      %41 = arith.addf %40, %37 : vector<128x128xf32>
      %c0_21 = arith.constant 0 : index
      %c0_22 = arith.constant 0 : index
      %42 = vector.load %arg8[%c0_21, %c0_22] : memref<128x256xf32, #tpu.memory_space<vmem>>, vector<128x128xf32>
      tpu.vector_store %arg8[%c0_21, %c0_22], %41 {strides = array<i32>} : memref<128x256xf32, #tpu.memory_space<vmem>>, vector<128x128xf32>,
      %c0_23 = arith.constant 0 : index
      %c0_24 = arith.constant 0 : index
      %c0_25 = arith.constant 0 : index
      %43 = vector.load %arg6[%c0_23, %c0_24, %c0_25] : memref<2x128x1xf32, #tpu.memory_space<vmem>>, vector<1x128x1xf32>
      %44 = vector.shape_cast %43 : vector<1x128x1xf32> to vector<128x1xf32>
      %45 = vector.shape_cast %20 : vector<128x1xf32> to vector<1x128x1xf32>
      tpu.vector_store %arg6[%c0_23, %c0_24, %c0_25], %45 {strides = array<i32>} : memref<2x128x1xf32, #tpu.memory_space<vmem>>, vector<1x128x1xf32>,
      %c0_26 = arith.constant 0 : index
      %c128 = arith.constant 128 : index
      %46 = vector.load %arg4[%c0_26, %c128] : memref<128x256xbf16, #tpu.memory_space<vmem>>, vector<128x128xbf16>
      %c0_27 = arith.constant 0 : index
      %c128_28 = arith.constant 128 : index
      %47 = vector.load %arg3[%c0_27, %c128_28] : memref<128x512xbf16, #tpu.memory_space<vmem>>, vector<128x128xbf16>
      %cst_29 = arith.constant dense<0.000000e+00> : vector<128x128xf32>
      %48 = tpu.matmul %46, %47, %cst_29 {dimension_numbers = #tpu.dot_dimension_numbers<[1], [1], [0], [0], [0, 0, 1, 0], [], []>} : vector<128x128xbf16>, vector<128x128xbf16>, vector<128x128xf32> -> vector<128x128xf32>
      %c1 = arith.constant 1 : index
      %c0_30 = arith.constant 0 : index
      %c0_31 = arith.constant 0 : index
      %49 = vector.load %arg6[%c1, %c0_30, %c0_31] : memref<2x128x1xf32, #tpu.memory_space<vmem>>, vector<1x128x1xf32>
      %50 = vector.shape_cast %49 : vector<1x128x1xf32> to vector<128x1xf32>
      %cst_32 = arith.constant dense<0xFF800000> : vector<128xf32>
      %51 = vector.multi_reduction <maximumf>, %48, %cst_32 [1] : vector<128x128xf32> to vector<128xf32>
      %52 = vector.shape_cast %51 : vector<128xf32> to vector<128x1xf32>
      %53 = arith.maximumf %50, %52 : vector<128x1xf32>
      %54 = arith.subf %50, %53 : vector<128x1xf32>
      %55 = math.exp %54 : vector<128x1xf32>
      %56 = vector.broadcast %53 : vector<128x1xf32> to vector<128x128xf32>
      %57 = arith.subf %48, %56 : vector<128x128xf32>
      %58 = math.exp %57 : vector<128x128xf32>
      %c1_33 = arith.constant 1 : index
      %c0_34 = arith.constant 0 : index
      %c0_35 = arith.constant 0 : index
      %59 = vector.load %arg7[%c1_33, %c0_34, %c0_35] : memref<2x128x1xf32, #tpu.memory_space<vmem>>, vector<1x128x1xf32>
      %60 = vector.shape_cast %59 : vector<1x128x1xf32> to vector<128x1xf32>
      %61 = arith.mulf %55, %60 : vector<128x1xf32>
      %cst_36 = arith.constant dense<0.000000e+00> : vector<128xf32>
      %62 = vector.multi_reduction <add>, %58, %cst_36 [1] : vector<128x128xf32> to vector<128xf32>
      %63 = vector.shape_cast %62 : vector<128xf32> to vector<128x1xf32>
      %64 = arith.addf %61, %63 : vector<128x1xf32>
      %c1_37 = arith.constant 1 : index
      %c0_38 = arith.constant 0 : index
      %c0_39 = arith.constant 0 : index
      %65 = vector.load %arg7[%c1_37, %c0_38, %c0_39] : memref<2x128x1xf32, #tpu.memory_space<vmem>>, vector<1x128x1xf32>
      %66 = vector.shape_cast %65 : vector<1x128x1xf32> to vector<128x1xf32>
      %67 = vector.shape_cast %64 : vector<128x1xf32> to vector<1x128x1xf32>
      tpu.vector_store %arg7[%c1_37, %c0_38, %c0_39], %67 {strides = array<i32>} : memref<2x128x1xf32, #tpu.memory_space<vmem>>, vector<1x128x1xf32>,
      %c0_40 = arith.constant 0 : index
      %c384 = arith.constant 384 : index
      %68 = vector.load %arg3[%c0_40, %c384] : memref<128x512xbf16, #tpu.memory_space<vmem>>, vector<128x128xbf16>
      %69 = arith.truncf %58 : vector<128x128xf32> to vector<128x128xbf16>
      %cst_41 = arith.constant dense<0.000000e+00> : vector<128x128xf32>
      %70 = tpu.matmul %69, %68, %cst_41 {dimension_numbers = #tpu.dot_dimension_numbers<[1], [0], [0], [1], [0, 0, 1, 1], [], []>} : vector<128x128xbf16>, vector<128x128xbf16>, vector<128x128xf32> -> vector<128x128xf32>
      %c0_42 = arith.constant 0 : index
      %c128_43 = arith.constant 128 : index
      %71 = vector.load %arg8[%c0_42, %c128_43] : memref<128x256xf32, #tpu.memory_space<vmem>>, vector<128x128xf32>
      %72 = vector.broadcast %55 : vector<128x1xf32> to vector<128x128xf32>
      %73 = arith.mulf %72, %71 : vector<128x128xf32>
      %74 = arith.addf %73, %70 : vector<128x128xf32>
      %c0_44 = arith.constant 0 : index
      %c128_45 = arith.constant 128 : index
      %75 = vector.load %arg8[%c0_44, %c128_45] : memref<128x256xf32, #tpu.memory_space<vmem>>, vector<128x128xf32>
      tpu.vector_store %arg8[%c0_44, %c128_45], %74 {strides = array<i32>} : memref<128x256xf32, #tpu.memory_space<vmem>>, vector<128x128xf32>,
      %c1_46 = arith.constant 1 : index
      %c0_47 = arith.constant 0 : index
      %c0_48 = arith.constant 0 : index
      %76 = vector.load %arg6[%c1_46, %c0_47, %c0_48] : memref<2x128x1xf32, #tpu.memory_space<vmem>>, vector<1x128x1xf32>
      %77 = vector.shape_cast %76 : vector<1x128x1xf32> to vector<128x1xf32>
      %78 = vector.shape_cast %53 : vector<128x1xf32> to vector<1x128x1xf32>
      tpu.vector_store %arg6[%c1_46, %c0_47, %c0_48], %78 {strides = array<i32>} : memref<2x128x1xf32, #tpu.memory_space<vmem>>, vector<1x128x1xf32>,
    } else {
    }
    %11 = arith.extui %4 : i1 to i32
    %c0_i32_2 = arith.constant 0 : i32
    %12 = arith.cmpi ne, %11, %c0_i32_2 : i32
    scf.if %12 {
      %13 = tpu.iota {dimensions = array<i32: 0>} : vector<128x128xi32>
      %14 = tpu.iota {dimensions = array<i32: 1>} : vector<128x128xi32>
      %15 = arith.cmpi sle, %14, %13 : vector<128x128xi32>
      %c0 = arith.constant 0 : index
      %c0_3 = arith.constant 0 : index
      %16 = vector.load %arg4[%c0, %c0_3] : memref<128x256xbf16, #tpu.memory_space<vmem>>, vector<128x128xbf16>
      %c0_4 = arith.constant 0 : index
      %c0_5 = arith.constant 0 : index
      %17 = vector.load %arg3[%c0_4, %c0_5] : memref<128x512xbf16, #tpu.memory_space<vmem>>, vector<128x128xbf16>
      %cst = arith.constant dense<0.000000e+00> : vector<128x128xf32>
      %18 = tpu.matmul %16, %17, %cst {dimension_numbers = #tpu.dot_dimension_numbers<[1], [1], [0], [0], [0, 0, 1, 0], [], []>} : vector<128x128xbf16>, vector<128x128xbf16>, vector<128x128xf32> -> vector<128x128xf32>
      %cst_6 = arith.constant -1.000000e+30 : f32
      %19 = vector.broadcast %cst_6 : f32 to vector<128x128xf32>
      %20 = arith.select %15, %18, %19 : vector<128x128xi1>, vector<128x128xf32>
      %c0_7 = arith.constant 0 : index
      %c0_8 = arith.constant 0 : index
      %c0_9 = arith.constant 0 : index
      %21 = vector.load %arg6[%c0_7, %c0_8, %c0_9] : memref<2x128x1xf32, #tpu.memory_space<vmem>>, vector<1x128x1xf32>
      %22 = vector.shape_cast %21 : vector<1x128x1xf32> to vector<128x1xf32>
      %cst_10 = arith.constant dense<0xFF800000> : vector<128xf32>
      %23 = vector.multi_reduction <maximumf>, %20, %cst_10 [1] : vector<128x128xf32> to vector<128xf32>
      %24 = vector.shape_cast %23 : vector<128xf32> to vector<128x1xf32>
      %25 = arith.maximumf %22, %24 : vector<128x1xf32>
      %26 = arith.subf %22, %25 : vector<128x1xf32>
      %27 = math.exp %26 : vector<128x1xf32>
      %28 = vector.broadcast %25 : vector<128x1xf32> to vector<128x128xf32>
      %29 = arith.subf %20, %28 : vector<128x128xf32>
      %30 = math.exp %29 : vector<128x128xf32>
      %c0_11 = arith.constant 0 : index
      %c0_12 = arith.constant 0 : index
      %c0_13 = arith.constant 0 : index
      %31 = vector.load %arg7[%c0_11, %c0_12, %c0_13] : memref<2x128x1xf32, #tpu.memory_space<vmem>>, vector<1x128x1xf32>
      %32 = vector.shape_cast %31 : vector<1x128x1xf32> to vector<128x1xf32>
      %33 = arith.mulf %27, %32 : vector<128x1xf32>
      %cst_14 = arith.constant dense<0.000000e+00> : vector<128xf32>
      %34 = vector.multi_reduction <add>, %30, %cst_14 [1] : vector<128x128xf32> to vector<128xf32>
      %35 = vector.shape_cast %34 : vector<128xf32> to vector<128x1xf32>
      %36 = arith.addf %33, %35 : vector<128x1xf32>
      %c0_15 = arith.constant 0 : index
      %c0_16 = arith.constant 0 : index
      %c0_17 = arith.constant 0 : index
      %37 = vector.load %arg7[%c0_15, %c0_16, %c0_17] : memref<2x128x1xf32, #tpu.memory_space<vmem>>, vector<1x128x1xf32>
      %38 = vector.shape_cast %37 : vector<1x128x1xf32> to vector<128x1xf32>
      %39 = vector.shape_cast %36 : vector<128x1xf32> to vector<1x128x1xf32>
      tpu.vector_store %arg7[%c0_15, %c0_16, %c0_17], %39 {strides = array<i32>} : memref<2x128x1xf32, #tpu.memory_space<vmem>>, vector<1x128x1xf32>,
      %c0_18 = arith.constant 0 : index
      %c256 = arith.constant 256 : index
      %40 = vector.load %arg3[%c0_18, %c256] : memref<128x512xbf16, #tpu.memory_space<vmem>>, vector<128x128xbf16>
      %41 = arith.truncf %30 : vector<128x128xf32> to vector<128x128xbf16>
      %cst_19 = arith.constant dense<0.000000e+00> : vector<128x128xf32>
      %42 = tpu.matmul %41, %40, %cst_19 {dimension_numbers = #tpu.dot_dimension_numbers<[1], [0], [0], [1], [0, 0, 1, 1], [], []>} : vector<128x128xbf16>, vector<128x128xbf16>, vector<128x128xf32> -> vector<128x128xf32>
      %c0_20 = arith.constant 0 : index
      %c0_21 = arith.constant 0 : index
      %43 = vector.load %arg8[%c0_20, %c0_21] : memref<128x256xf32, #tpu.memory_space<vmem>>, vector<128x128xf32>
      %44 = vector.broadcast %27 : vector<128x1xf32> to vector<128x128xf32>
      %45 = arith.mulf %44, %43 : vector<128x128xf32>
      %46 = arith.addf %45, %42 : vector<128x128xf32>
      %c0_22 = arith.constant 0 : index
      %c0_23 = arith.constant 0 : index
      %47 = vector.load %arg8[%c0_22, %c0_23] : memref<128x256xf32, #tpu.memory_space<vmem>>, vector<128x128xf32>
      tpu.vector_store %arg8[%c0_22, %c0_23], %46 {strides = array<i32>} : memref<128x256xf32, #tpu.memory_space<vmem>>, vector<128x128xf32>,
      %c0_24 = arith.constant 0 : index
      %c0_25 = arith.constant 0 : index
      %c0_26 = arith.constant 0 : index
      %48 = vector.load %arg6[%c0_24, %c0_25, %c0_26] : memref<2x128x1xf32, #tpu.memory_space<vmem>>, vector<1x128x1xf32>
      %49 = vector.shape_cast %48 : vector<1x128x1xf32> to vector<128x1xf32>
      %50 = vector.shape_cast %25 : vector<128x1xf32> to vector<1x128x1xf32>
      tpu.vector_store %arg6[%c0_24, %c0_25, %c0_26], %50 {strides = array<i32>} : memref<2x128x1xf32, #tpu.memory_space<vmem>>, vector<1x128x1xf32>,
      %c0_27 = arith.constant 0 : index
      %c128 = arith.constant 128 : index
      %51 = vector.load %arg4[%c0_27, %c128] : memref<128x256xbf16, #tpu.memory_space<vmem>>, vector<128x128xbf16>
      %c0_28 = arith.constant 0 : index
      %c128_29 = arith.constant 128 : index
      %52 = vector.load %arg3[%c0_28, %c128_29] : memref<128x512xbf16, #tpu.memory_space<vmem>>, vector<128x128xbf16>
      %cst_30 = arith.constant dense<0.000000e+00> : vector<128x128xf32>
      %53 = tpu.matmul %51, %52, %cst_30 {dimension_numbers = #tpu.dot_dimension_numbers<[1], [1], [0], [0], [0, 0, 1, 0], [], []>} : vector<128x128xbf16>, vector<128x128xbf16>, vector<128x128xf32> -> vector<128x128xf32>
      %cst_31 = arith.constant -1.000000e+30 : f32
      %54 = vector.broadcast %cst_31 : f32 to vector<128x128xf32>
      %55 = arith.select %15, %53, %54 : vector<128x128xi1>, vector<128x128xf32>
      %c1 = arith.constant 1 : index
      %c0_32 = arith.constant 0 : index
      %c0_33 = arith.constant 0 : index
      %56 = vector.load %arg6[%c1, %c0_32, %c0_33] : memref<2x128x1xf32, #tpu.memory_space<vmem>>, vector<1x128x1xf32>
      %57 = vector.shape_cast %56 : vector<1x128x1xf32> to vector<128x1xf32>
      %cst_34 = arith.constant dense<0xFF800000> : vector<128xf32>
      %58 = vector.multi_reduction <maximumf>, %55, %cst_34 [1] : vector<128x128xf32> to vector<128xf32>
      %59 = vector.shape_cast %58 : vector<128xf32> to vector<128x1xf32>
      %60 = arith.maximumf %57, %59 : vector<128x1xf32>
      %61 = arith.subf %57, %60 : vector<128x1xf32>
      %62 = math.exp %61 : vector<128x1xf32>
      %63 = vector.broadcast %60 : vector<128x1xf32> to vector<128x128xf32>
      %64 = arith.subf %55, %63 : vector<128x128xf32>
      %65 = math.exp %64 : vector<128x128xf32>
      %c1_35 = arith.constant 1 : index
      %c0_36 = arith.constant 0 : index
      %c0_37 = arith.constant 0 : index
      %66 = vector.load %arg7[%c1_35, %c0_36, %c0_37] : memref<2x128x1xf32, #tpu.memory_space<vmem>>, vector<1x128x1xf32>
      %67 = vector.shape_cast %66 : vector<1x128x1xf32> to vector<128x1xf32>
      %68 = arith.mulf %62, %67 : vector<128x1xf32>
      %cst_38 = arith.constant dense<0.000000e+00> : vector<128xf32>
      %69 = vector.multi_reduction <add>, %65, %cst_38 [1] : vector<128x128xf32> to vector<128xf32>
      %70 = vector.shape_cast %69 : vector<128xf32> to vector<128x1xf32>
      %71 = arith.addf %68, %70 : vector<128x1xf32>
      %c1_39 = arith.constant 1 : index
      %c0_40 = arith.constant 0 : index
      %c0_41 = arith.constant 0 : index
      %72 = vector.load %arg7[%c1_39, %c0_40, %c0_41] : memref<2x128x1xf32, #tpu.memory_space<vmem>>, vector<1x128x1xf32>
      %73 = vector.shape_cast %72 : vector<1x128x1xf32> to vector<128x1xf32>
      %74 = vector.shape_cast %71 : vector<128x1xf32> to vector<1x128x1xf32>
      tpu.vector_store %arg7[%c1_39, %c0_40, %c0_41], %74 {strides = array<i32>} : memref<2x128x1xf32, #tpu.memory_space<vmem>>, vector<1x128x1xf32>,
      %c0_42 = arith.constant 0 : index
      %c384 = arith.constant 384 : index
      %75 = vector.load %arg3[%c0_42, %c384] : memref<128x512xbf16, #tpu.memory_space<vmem>>, vector<128x128xbf16>
      %76 = arith.truncf %65 : vector<128x128xf32> to vector<128x128xbf16>
      %cst_43 = arith.constant dense<0.000000e+00> : vector<128x128xf32>
      %77 = tpu.matmul %76, %75, %cst_43 {dimension_numbers = #tpu.dot_dimension_numbers<[1], [0], [0], [1], [0, 0, 1, 1], [], []>} : vector<128x128xbf16>, vector<128x128xbf16>, vector<128x128xf32> -> vector<128x128xf32>
      %c0_44 = arith.constant 0 : index
      %c128_45 = arith.constant 128 : index
      %78 = vector.load %arg8[%c0_44, %c128_45] : memref<128x256xf32, #tpu.memory_space<vmem>>, vector<128x128xf32>
      %79 = vector.broadcast %62 : vector<128x1xf32> to vector<128x128xf32>
      %80 = arith.mulf %79, %78 : vector<128x128xf32>
      %81 = arith.addf %80, %77 : vector<128x128xf32>
      %c0_46 = arith.constant 0 : index
      %c128_47 = arith.constant 128 : index
      %82 = vector.load %arg8[%c0_46, %c128_47] : memref<128x256xf32, #tpu.memory_space<vmem>>, vector<128x128xf32>
      tpu.vector_store %arg8[%c0_46, %c128_47], %81 {strides = array<i32>} : memref<128x256xf32, #tpu.memory_space<vmem>>, vector<128x128xf32>,
      %c1_48 = arith.constant 1 : index
      %c0_49 = arith.constant 0 : index
      %c0_50 = arith.constant 0 : index
      %83 = vector.load %arg6[%c1_48, %c0_49, %c0_50] : memref<2x128x1xf32, #tpu.memory_space<vmem>>, vector<1x128x1xf32>
      %84 = vector.shape_cast %83 : vector<1x128x1xf32> to vector<128x1xf32>
      %85 = vector.shape_cast %60 : vector<128x1xf32> to vector<1x128x1xf32>
      tpu.vector_store %arg6[%c1_48, %c0_49, %c0_50], %85 {strides = array<i32>} : memref<2x128x1xf32, #tpu.memory_space<vmem>>, vector<1x128x1xf32>,
      %c0_51 = arith.constant 0 : index
      %c0_52 = arith.constant 0 : index
      %c0_53 = arith.constant 0 : index
      %86 = vector.load %arg7[%c0_51, %c0_52, %c0_53] : memref<2x128x1xf32, #tpu.memory_space<vmem>>, vector<1x128x1xf32>
      %87 = vector.shape_cast %86 : vector<1x128x1xf32> to vector<128x1xf32>
      %88 = tpu.reciprocal %87 : vector<128x1xf32> -> vector<128x1xf32>
      %c0_54 = arith.constant 0 : index
      %c0_55 = arith.constant 0 : index
      %89 = vector.load %arg8[%c0_54, %c0_55] : memref<128x256xf32, #tpu.memory_space<vmem>>, vector<128x128xf32>
      %90 = vector.broadcast %88 : vector<128x1xf32> to vector<128x128xf32>
      %91 = arith.mulf %89, %90 : vector<128x128xf32>
      %92 = arith.truncf %91 : vector<128x128xf32> to vector<128x128xbf16>
      %c0_56 = arith.constant 0 : index
      %c0_57 = arith.constant 0 : index
      %93 = vector.load %arg5[%c0_56, %c0_57] : memref<128x256xbf16, #tpu.memory_space<vmem>>, vector<128x128xbf16>
      tpu.vector_store %arg5[%c0_56, %c0_57], %92 {strides = array<i32>} : memref<128x256xbf16, #tpu.memory_space<vmem>>, vector<128x128xbf16>,
      %c1_58 = arith.constant 1 : index
      %c0_59 = arith.constant 0 : index
      %c0_60 = arith.constant 0 : index
      %94 = vector.load %arg7[%c1_58, %c0_59, %c0_60] : memref<2x128x1xf32, #tpu.memory_space<vmem>>, vector<1x128x1xf32>
      %95 = vector.shape_cast %94 : vector<1x128x1xf32> to vector<128x1xf32>
      %96 = tpu.reciprocal %95 : vector<128x1xf32> -> vector<128x1xf32>
      %c0_61 = arith.constant 0 : index
      %c128_62 = arith.constant 128 : index
      %97 = vector.load %arg8[%c0_61, %c128_62] : memref<128x256xf32, #tpu.memory_space<vmem>>, vector<128x128xf32>
      %98 = vector.broadcast %96 : vector<128x1xf32> to vector<128x128xf32>
      %99 = arith.mulf %97, %98 : vector<128x128xf32>
      %100 = arith.truncf %99 : vector<128x128xf32> to vector<128x128xbf16>
      %c0_63 = arith.constant 0 : index
      %c128_64 = arith.constant 128 : index
      %101 = vector.load %arg5[%c0_63, %c128_64] : memref<128x256xbf16, #tpu.memory_space<vmem>>, vector<128x128xbf16>
      tpu.vector_store %arg5[%c0_63, %c128_64], %100 {strides = array<i32>} : memref<128x256xbf16, #tpu.memory_space<vmem>>, vector<128x128xbf16>,
    } else {
    }
    return
  }
  func.func @transform_0(%arg0: i32, %arg1: memref<3xi32, #tpu.memory_space<smem>>, %arg2: memref<3xi32, #tpu.memory_space<smem>>) -> (i32, i32) {
    %0 = arith.index_cast %arg0 : i32 to index
    %1 = memref.load %arg2[%0] : memref<3xi32, #tpu.memory_space<smem>>
    %c0_i32 = arith.constant 0 : i32
    %c0_i32_0 = arith.constant 0 : i32
    return %1, %c0_i32 : i32, i32
  }
  func.func @transform_1(%arg0: i32, %arg1: memref<3xi32, #tpu.memory_space<smem>>, %arg2: memref<3xi32, #tpu.memory_space<smem>>) -> (i32, i32) {
    %0 = arith.index_cast %arg0 : i32 to index
    %1 = memref.load %arg1[%0] : memref<3xi32, #tpu.memory_space<smem>>
    %c2_i32 = arith.constant 2 : i32
    %c0_i32 = arith.constant 0 : i32
    return %1, %c2_i32 : i32, i32
  }
  func.func @transform_2(%arg0: i32, %arg1: memref<3xi32, #tpu.memory_space<smem>>, %arg2: memref<3xi32, #tpu.memory_space<smem>>) -> (i32, i32) {
    %0 = arith.index_cast %arg0 : i32 to index
    %1 = memref.load %arg1[%0] : memref<3xi32, #tpu.memory_space<smem>>
    %c0_i32 = arith.constant 0 : i32
    %c0_i32_0 = arith.constant 0 : i32
    return %1, %c0_i32 : i32, i32
  }
}

module attributes {stable_mosaic.version = 11 : i64} {
  func.func @_matmul_kernel(%arg0: i32, %arg1: i32, %arg2: i32, %arg3: memref<128x256xbf16, #tpu.memory_space<vmem>>, %arg4: memref<256x256xbf16, #tpu.memory_space<vmem>>, %arg5: memref<128x256xf32, #tpu.memory_space<vmem>>, %arg6: memref<128x256xf32, #tpu.memory_space<vmem>>) attributes {dimension_semantics = [#tpu.dimension_semantics<parallel>, #tpu.dimension_semantics<parallel>, #tpu.dimension_semantics<arbitrary>], iteration_bounds = array<i64: 2, 1, 1>, scalar_prefetch = 0 : i64, scratch_operands = 1 : i64, tpu.core_type = #tpu.core_type<tc>, window_params = [{transform_indices = @transform_0, window_bounds = array<i64: 128, 256>}, {transform_indices = @transform_1, window_bounds = array<i64: 256, 256>}, {transform_indices = @transform_2, window_bounds = array<i64: 128, 256>}]} {
    %c0_i32 = arith.constant 0 : i32
    %0 = arith.cmpi eq, %arg2, %c0_i32 : i32
    %1 = arith.extui %0 : i1 to i32
    %c0_i32_0 = arith.constant 0 : i32
    %2 = arith.cmpi ne, %1, %c0_i32_0 : i32
    scf.if %2 {
      %cst_10 = arith.constant 0.000000e+00 : f32
      %12 = vector.broadcast %cst_10 : f32 to vector<128x256xf32>
      %c0_11 = arith.constant 0 : index
      %c0_12 = arith.constant 0 : index
      %13 = vector.load %arg6[%c0_11, %c0_12] : memref<128x256xf32, #tpu.memory_space<vmem>>, vector<128x256xf32>
      tpu.vector_store %arg6[%c0_11, %c0_12], %12 {strides = array<i32>} : memref<128x256xf32, #tpu.memory_space<vmem>>, vector<128x256xf32>,
    } else {
    }
    %c0 = arith.constant 0 : index
    %c0_1 = arith.constant 0 : index
    %3 = vector.load %arg3[%c0, %c0_1] : memref<128x256xbf16, #tpu.memory_space<vmem>>, vector<128x256xbf16>
    %c0_2 = arith.constant 0 : index
    %c0_3 = arith.constant 0 : index
    %4 = vector.load %arg6[%c0_2, %c0_3] : memref<128x256xf32, #tpu.memory_space<vmem>>, vector<128x256xf32>
    %c0_4 = arith.constant 0 : index
    %c0_5 = arith.constant 0 : index
    %5 = vector.load %arg4[%c0_4, %c0_5] : memref<256x256xbf16, #tpu.memory_space<vmem>>, vector<256x256xbf16>
    %cst = arith.constant dense<0.000000e+00> : vector<128x256xf32>
    %6 = tpu.matmul %3, %5, %cst {dimension_numbers = #tpu.dot_dimension_numbers<[1], [0], [0], [1], [0, 0, 1, 1], [], []>} : vector<128x256xbf16>, vector<256x256xbf16>, vector<128x256xf32> -> vector<128x256xf32>
    %7 = arith.addf %4, %6 : vector<128x256xf32>
    %c0_6 = arith.constant 0 : index
    %c0_7 = arith.constant 0 : index
    %8 = vector.load %arg6[%c0_6, %c0_7] : memref<128x256xf32, #tpu.memory_space<vmem>>, vector<128x256xf32>
    tpu.vector_store %arg6[%c0_6, %c0_7], %7 {strides = array<i32>} : memref<128x256xf32, #tpu.memory_space<vmem>>, vector<128x256xf32>,
    %c0_i32_8 = arith.constant 0 : i32
    %9 = arith.cmpi eq, %arg2, %c0_i32_8 : i32
    %10 = arith.extui %9 : i1 to i32
    %c0_i32_9 = arith.constant 0 : i32
    %11 = arith.cmpi ne, %10, %c0_i32_9 : i32
    scf.if %11 {
      %c0_10 = arith.constant 0 : index
      %c0_11 = arith.constant 0 : index
      %12 = vector.load %arg6[%c0_10, %c0_11] : memref<128x256xf32, #tpu.memory_space<vmem>>, vector<128x256xf32>
      %c0_12 = arith.constant 0 : index
      %c0_13 = arith.constant 0 : index
      %13 = vector.load %arg5[%c0_12, %c0_13] : memref<128x256xf32, #tpu.memory_space<vmem>>, vector<128x256xf32>
      tpu.vector_store %arg5[%c0_12, %c0_13], %12 {strides = array<i32>} : memref<128x256xf32, #tpu.memory_space<vmem>>, vector<128x256xf32>,
    } else {
    }
    return
  }
  func.func @transform_0(%arg0: i32, %arg1: i32, %arg2: i32) -> (i32, i32) {
    %c0_i32 = arith.constant 0 : i32
    return %arg0, %arg2 : i32, i32
  }
  func.func @transform_1(%arg0: i32, %arg1: i32, %arg2: i32) -> (i32, i32) {
    %c0_i32 = arith.constant 0 : i32
    return %arg2, %arg1 : i32, i32
  }
  func.func @transform_2(%arg0: i32, %arg1: i32, %arg2: i32) -> (i32, i32) {
    %c0_i32 = arith.constant 0 : i32
    return %arg0, %arg1 : i32, i32
  }
}

</mosaic_0001>

<bundles_post_ra>
// kernel: flash_gptj_attention_forward.5
= control target key start
LH: loop header
LB: loop body
LE: loop exit
PB: predicated region body
PF: predicated region fallthrough
CT: control target
= control target key end

     0   :  { %7 = vsyncpa [#allocation4], 0  ;;  %s1540_s0 = inlined_call_operand.vmem [shape: bf16[256,256], index: 0, kind: input, shape index: {}]   ;;  %s1541_s1 = inlined_call_operand.vmem [shape: bf16[256,256], index: 1, kind: input, shape index: {}]   ;;  %s1542_s2 = inlined_call_operand.hbm [shape: f32[256,256], index: 2, kind: output, shape index: {}]  }
   0x1   :  { %9 = vsyncpa [#allocation4 + $0x1], 0  ;;  %s1273_s9 = smov 0   ;;  %s1275_s10 = smov 0  }
   0x2   :  { %s1277_s11 = smov 0   ;;  %s1279_s12 = smov 0  }
   0x3   :  { %s1281_s13 = smov 0   ;;  %s1283_s14 = smov 0  }
   0x4 LB: > { %s947_s15 = sadd.s32 4294967295, %s1253_s14   ;;  %s948_s16 = sadd.s32 4294967294, %s1253_s14   ;;  %s1253_s14 = sphi %s1283_s14, %s15_s14   ;;  %s1249_s13 = sphi %s1281_s13, %s1549_s13   ;;  %s1245_s12 = sphi %s1279_s12, %s1548_s12   ;;  %s1241_s11 = sphi %s1277_s11, %s1547_s11   ;;  %s1237_s10 = sphi %s1275_s10, %s1546_s10   ;;  %s1233_s9 = sphi %s1273_s9, %s1545_s9  }
   0x5   : > { %s34_s17 = sadd.s32 1, %s1249_s13  ;;  %s99_s18 = sadd.s32 1, %s1241_s11 }
   0x6   : > { %p36_p0 = scmp.ge.s32.totalorder %s34_s17, 2  ;;  %p109_p1 = scmp.ne.s32.totalorder %s1241_s11, %s1237_s10 }
   0x7   : > { %p110_p2 = scmp.eq.s32.totalorder %s947_s15, 1  ;;  %p115_p3 = scmp.ne.s32.totalorder %s1237_s10, %s1233_s9 }
   0x8   : > { %s1551_s17 = smov (%p36_p0, %s34_s17), 0  ;;  %p116_p5 = scmp.eq.s32.totalorder %s948_s16, 1 }
   0x9   : > { %p1313_p4 = por %p110_p2, %p109_p1  ;;  %s94_s20 = ssub.s32 %s1249_s13, %s1551_s17 }
   0xa   : > { %p952_p6 = scmp.ge.s32.totalorder %s1253_s14, 1  ;;  %p97_p7 = scmp.eq.s32.totalorder %s94_s20, 0 }
   0xb   : > { %p1320_p8 = por %p116_p5, %p115_p3  ;;  %p164_p9 = scmp.lt.s32.totalorder %s1253_s14, 3 }
   0xc   : > { %s1326_s22 = scalar_select %p97_p7, %s1241_s11, %s99_s18  }
   0xd   : > { %p165_p10 = pnand %p952_p6, %p164_p9 }
   0xe   : > { %v1103_v0 = vld [vmem:[%s1541_s1 + $0x4] ss:$8 sps:$4 sm:$0xff] (!%p165_p10)   ;;  %v1105_v1 = vld [vmem:[%s1541_s1] ss:$8 sps:$4 sm:$0xff] (!%p165_p10)   ;;  %v1106_v2 = vld [vmem:[%s1541_s1 + $0x14] ss:$8 sps:$4 sm:$0xff] (!%p165_p10)  }
   0xf   : > { %168 = sbr.rel (%p165_p10) target bundleno = 333 (0x14d), region = 28  ;;  %583 = vmatprep.subr.bf16.mxu0 (!%p165_p10), %v1103_v0  ;;  %1014 = vmatprep.subr.bf16.mxu1 (!%p165_p10), %v1103_v0  ;;  %v1108_v3 = vld [vmem:[%s1541_s1 + $0x10] ss:$8 sps:$4 sm:$0xff] (!%p165_p10)   ;;  %v1109_v4 = vld [vmem:[%s1541_s1 + $0x24] ss:$8 sps:$4 sm:$0xff] (!%p165_p10)   ;;  %s954_s5 = sshll.u32 (!%p165_p10), %s1245_s12, 4 }
  0x10   : > { %584 = vmatpush1.bf16.msra.mxu0 (!%p165_p10), %v1105_v1  ;;  %1030 = vmatpush1.bf16.msra.mxu1 (!%p165_p10), %v1105_v1  ;;  %v1111_v5 = vld [vmem:[%s1541_s1 + $0x20] ss:$8 sps:$4 sm:$0xff] (!%p165_p10)   ;;  %v1112_v6 = vld [vmem:[%s1541_s1 + $0x34] ss:$8 sps:$4 sm:$0xff] (!%p165_p10)   ;;  %p203_p11 = scmp.lt.s32.totalorder (!%p165_p10), %s954_s5, 31  ;;  %s198_s20 = sand.u32 (!%p165_p10), 1, %s1237_s10  }
  0x11   : > { %585 = vmatprep.subr.bf16.mxu0 (!%p165_p10), %v1106_v2  ;;  %1015 = vmatprep.subr.bf16.mxu1 (!%p165_p10), %v1106_v2  ;;  %v1114_v7 = vld [vmem:[%s1541_s1 + $0x30] ss:$8 sps:$4 sm:$0xff] (!%p165_p10)   ;;  %v1115_v8 = vld [vmem:[%s1541_s1 + $0x44] ss:$8 sps:$4 sm:$0xff] (!%p165_p10)   ;;  %v1117_v9 = vld [vmem:[%s1541_s1 + $0x40] ss:$8 sps:$4 sm:$0xff] (!%p165_p10)  }
  0x12   : > { %v1118_v10 = vld [vmem:[%s1541_s1 + $0x54] ss:$8 sps:$4 sm:$0xff] (!%p165_p10)   ;;  %v1120_v11 = vld [vmem:[%s1541_s1 + $0x50] ss:$8 sps:$4 sm:$0xff] (!%p165_p10)   ;;  %v1121_v12 = vld [vmem:[%s1541_s1 + $0x64] ss:$8 sps:$4 sm:$0xff] (!%p165_p10)  }
  0x13   : > { %v1123_v14 = vld [vmem:[%s1541_s1 + $0x60] ss:$8 sps:$4 sm:$0xff] (!%p165_p10)   ;;  %v1124_v16 = vld [vmem:[%s1541_s1 + $0x74] ss:$8 sps:$4 sm:$0xff] (!%p165_p10)   ;;  %v1126_v17 = vld [vmem:[%s1541_s1 + $0x70] ss:$8 sps:$4 sm:$0xff] (!%p165_p10)  }
  0x14   : > { %586 = vmatpush1.bf16.msra.mxu0 (!%p165_p10), %v1108_v3  ;;  %1031 = vmatpush1.bf16.msra.mxu1 (!%p165_p10), %v1108_v3  ;;  %v1127_v18 = vld [vmem:[%s1541_s1 + $0x84] ss:$8 sps:$4 sm:$0xff] (!%p165_p10)   ;;  %v1129_v19 = vld [vmem:[%s1541_s1 + $0x80] ss:$8 sps:$4 sm:$0xff] (!%p165_p10)   ;;  %v1130_v20 = vld [vmem:[%s1541_s1 + $0x94] ss:$8 sps:$4 sm:$0xff] (!%p165_p10)  }
  0x15   : > { %587 = vmatprep.subr.bf16.mxu0 (!%p165_p10), %v1109_v4  ;;  %1016 = vmatprep.subr.bf16.mxu1 (!%p165_p10), %v1109_v4  ;;  %v1132_v21 = vld [vmem:[%s1541_s1 + $0x90] ss:$8 sps:$4 sm:$0xff] (!%p165_p10)   ;;  %v1133_v22 = vld [vmem:[%s1541_s1 + $0xa4] ss:$8 sps:$4 sm:$0xff] (!%p165_p10)   ;;  %v1135_v23 = vld [vmem:[%s1541_s1 + $0xa0] ss:$8 sps:$4 sm:$0xff] (!%p165_p10)  }
  0x16   : > { %s1553_s5 = smov (!%p203_p11, %s954_s5), 31  ;;  %v1136_v24 = vld [vmem:[%s1541_s1 + $0xb4] ss:$8 sps:$4 sm:$0xff]   ;;  %v1138_v25 = vld [vmem:[%s1541_s1 + $0xb0] ss:$8 sps:$4 sm:$0xff]   ;;  %s953_s23 = sshll.u32 %s198_s20, 8 }
  0x17   : > { %s1011_s28 = sshll.u32 %s1553_s5, 3  ;;  %v1139_v26 = vld [vmem:[%s1541_s1 + $0xc4] ss:$8 sps:$4 sm:$0xff]   ;;  %v1141_v27 = vld [vmem:[%s1541_s1 + $0xc0] ss:$8 sps:$4 sm:$0xff]   ;;  %s1449_s24 = scalar_lea.vmem [#allocation3], %s953_s23 }
  0x18   : > { %588 = vmatpush1.bf16.msra.mxu0 %v1111_v5  ;;  %1032 = vmatpush1.bf16.msra.mxu1 %v1111_v5  ;;  %s1368_s6 = scalar_lea.vmem %s1540_s0, %s1011_s28  ;;  %v1142_v28 = vld [vmem:[%s1541_s1 + $0xd4] ss:$8 sps:$4 sm:$0xff]   ;;  %v1144_v29 = vld [vmem:[%s1541_s1 + $0xd0] ss:$8 sps:$4 sm:$0xff]   ;;  %v1145_v30 = vld [vmem:[%s1541_s1 + $0xe4] ss:$8 sps:$4 sm:$0xff]  }
  0x19   : > { %589 = vmatprep.subr.bf16.mxu0 %v1112_v6  ;;  %1017 = vmatprep.subr.bf16.mxu1 %v1112_v6  ;;  %v1153_v13 = vld [vmem:[%s1368_s6 + $0x4] ss:$8 sps:$4 sm:$0xff]   ;;  %v1147_v31 = vld [vmem:[%s1541_s1 + $0xe0] ss:$8 sps:$4 sm:$0xff]   ;;  %v1148_v32 = vld [vmem:[%s1541_s1 + $0xf4] ss:$8 sps:$4 sm:$0xff]  }
  0x1a   : > { %v1156_v15 = vld [vmem:[%s1368_s6 + $0x44] ss:$8 sps:$4 sm:$0xff]   ;;  %615 = vmatprep.mubr.bf16.mxu0 %v1153_v13  ;;  %v1150_v33 = vld [vmem:[%s1541_s1 + $0xf0] ss:$8 sps:$4 sm:$0xff]   ;;  %v1151_v34 = vld [vmem:[%s1368_s6] ss:$8 sps:$4 sm:$0xff]  }
  0x1b   : > { %655 = vmatprep.mubr.bf16.mxu1 %v1156_v15  ;;  %v1154_v35 = vld [vmem:[%s1368_s6 + $0x40] ss:$8 sps:$4 sm:$0xff]   ;;  %v1157_v36 = vld [vmem:[%s1368_s6 + $0x14] ss:$8 sps:$4 sm:$0xff]   ;;  %v1161_v38 = vld [vmem:[%s1368_s6 + $0x10] ss:$8 sps:$4 sm:$0xff]  }
  0x1c   : > { %590 = vmatpush1.bf16.msra.mxu0 %v1114_v7  ;;  %1033 = vmatpush1.bf16.msra.mxu1 %v1114_v7  ;;  %v1159_v37 = vld [vmem:[%s1368_s6 + $0x54] ss:$8 sps:$4 sm:$0xff]   ;;  %v1162_v39 = vld [vmem:[%s1368_s6 + $0x50] ss:$8 sps:$4 sm:$0xff]   ;;  %v1163_v40 = vld [vmem:[%s1368_s6 + $0x24] ss:$8 sps:$4 sm:$0xff]  }
  0x1d   : > { %591 = vmatprep.subr.bf16.mxu0 %v1115_v8  ;;  %1018 = vmatprep.subr.bf16.mxu1 %v1115_v8  ;;  %v1165_v41 = vld [vmem:[%s1368_s6 + $0x64] ss:$8 sps:$4 sm:$0xff]   ;;  %v1167_v42 = vld [vmem:[%s1368_s6 + $0x20] ss:$8 sps:$4 sm:$0xff]   ;;  %v1169_v44 = vld [vmem:[%s1368_s6 + $0x34] ss:$8 sps:$4 sm:$0xff]  }
  0x1e   : > { %v1168_v43 = vld [vmem:[%s1368_s6 + $0x60] ss:$8 sps:$4 sm:$0xff]   ;;  %v1171_v45 = vld [vmem:[%s1368_s6 + $0x74] ss:$8 sps:$4 sm:$0xff]   ;;  %v1173_v46 = vld [vmem:[%s1368_s6 + $0x30] ss:$8 sps:$4 sm:$0xff]  }
  0x1f   : > { %v1174_v47 = vld [vmem:[%s1368_s6 + $0x70] ss:$8 sps:$4 sm:$0xff]   ;;  %s1013_s6 = sshll.u32 %s1245_s12, 12  ;;  %s844_s25 = sshll.u32 %s1449_s24, 4  ;;  %s1484_s25 = int_to_ptr.vmem [resolvable:$true] %s844_s25 }
  0x20   : > { %592 = vmatpush1.bf16.msra.mxu0 %v1117_v9  ;;  %1034 = vmatpush1.bf16.msra.mxu1 %v1117_v9  ;;  %s1482_s28 = scalar_lea.hbm %s1542_s2, %s1013_s6  ;;  %s1494_s12 = scalar_lea.sflag [#allocation4], %s198_s20 }
  0x21   : > { %593 = vmatprep.subr.bf16.mxu0 %v1118_v10  ;;  %1019 = vmatprep.subr.bf16.mxu1 %v1118_v10  ;;  %s1175_s29 = scalar_lea.vmem %s1484_s25, 4096  ;;  %s1255_s30 = smov [#allocation3]  }
  0x22   : > { %p1176_p12 = scmp.ne.s32.totalorder %s1484_s25, %s1175_s29  ;;  %s1179_s3 = sshll.u32 %s1255_s30, 4  ;;  %s1180_s3 = int_to_ptr.vmem [resolvable:$false] %s1179_s3 }
  0x23   : > { %s1181_s4 = scalar_lea.vmem %s1180_s3, 8192  ;;  %p1182_p1 = scmp.lt.s32.totalorder %s1484_s25, %s1180_s3 }
  0x24   : > { %594 = vmatpush1.bf16.msra.mxu0 %v1120_v11  ;;  %1035 = vmatpush1.bf16.msra.mxu1 %v1120_v11  ;;  %p1177_p13 = pnand %p1176_p12, %p1313_p4  ;;  %p1183_p2 = scmp.lt.s32.totalorder %s1181_s4, %s1175_s29 }
  0x25   : > { %595 = vmatprep.subr.bf16.mxu0 %v1121_v12  ;;  %1020 = vmatprep.subr.bf16.mxu1 %v1121_v12 }
  0x26   : > { %p1178_p0 = pneg %p1177_p13  ;;  %p1184_p3 = por %p1183_p2, %p1182_p1 }
  0x28   : > { %596 = vmatpush1.bf16.msra.mxu0 %v1123_v14  ;;  %1036 = vmatpush1.bf16.msra.mxu1 %v1123_v14  ;;  %p1185_p5 = pnand %p1184_p3, %p1178_p0 }
  0x29   : > { %597 = vmatprep.subr.bf16.mxu0 %v1124_v16  ;;  %1021 = vmatprep.subr.bf16.mxu1 %v1124_v16 }
  0x2c   : > { %598 = vmatpush1.bf16.msra.mxu0 %v1126_v17  ;;  %1037 = vmatpush1.bf16.msra.mxu1 %v1126_v17 }
  0x2d   : > { %599 = vmatprep.subr.bf16.mxu0 %v1127_v18  ;;  %1022 = vmatprep.subr.bf16.mxu1 %v1127_v18 }
  0x30   : > { %600 = vmatpush1.bf16.msra.mxu0 %v1129_v19  ;;  %1038 = vmatpush1.bf16.msra.mxu1 %v1129_v19 }
  0x31   : > { %601 = vmatprep.subr.bf16.mxu0 %v1130_v20  ;;  %1023 = vmatprep.subr.bf16.mxu1 %v1130_v20 }
  0x34   : > { %602 = vmatpush1.bf16.msra.mxu0 %v1132_v21  ;;  %1039 = vmatpush1.bf16.msra.mxu1 %v1132_v21 }
  0x35   : > { %603 = vmatprep.subr.bf16.mxu0 %v1133_v22  ;;  %1024 = vmatprep.subr.bf16.mxu1 %v1133_v22 }
  0x38   : > { %604 = vmatpush1.bf16.msra.mxu0 %v1135_v23  ;;  %1040 = vmatpush1.bf16.msra.mxu1 %v1135_v23 }
  0x39   : > { %605 = vmatprep.subr.bf16.mxu0 %v1136_v24  ;;  %1025 = vmatprep.subr.bf16.mxu1 %v1136_v24 }
  0x3c   : > { %606 = vmatpush1.bf16.msra.mxu0 %v1138_v25  ;;  %1041 = vmatpush1.bf16.msra.mxu1 %v1138_v25 }
  0x3d   : > { %607 = vmatprep.subr.bf16.mxu0 %v1139_v26  ;;  %1026 = vmatprep.subr.bf16.mxu1 %v1139_v26 }
  0x40   : > { %608 = vmatpush1.bf16.msra.mxu0 %v1141_v27  ;;  %1042 = vmatpush1.bf16.msra.mxu1 %v1141_v27 }
  0x41   : > { %609 = vmatprep.subr.bf16.mxu0 %v1142_v28  ;;  %1027 = vmatprep.subr.bf16.mxu1 %v1142_v28 }
  0x44   : > { %610 = vmatpush1.bf16.msra.mxu0 %v1144_v29  ;;  %1043 = vmatpush1.bf16.msra.mxu1 %v1144_v29 }
  0x45   : > { %611 = vmatprep.subr.bf16.mxu0 %v1145_v30  ;;  %1028 = vmatprep.subr.bf16.mxu1 %v1145_v30 }
  0x48   : > { %612 = vmatpush1.bf16.msra.mxu0 %v1147_v31  ;;  %1044 = vmatpush1.bf16.msra.mxu1 %v1147_v31 }
  0x49   : > { %613 = vmatprep.subr.bf16.mxu0 %v1148_v32  ;;  %1029 = vmatprep.subr.bf16.mxu1 %v1148_v32 }
  0x4c   : > { %614 = vmatpush1.bf16.msra.mxu0 %v1150_v33  ;;  %1045 = vmatpush1.bf16.msra.mxu1 %v1150_v33 }
  0x4f   : > { %616 = vmatmul.mubr.bf16.vlgmr.msra.gmra.mrb[0].mxu0 %v1151_v34  ;;  %656 = vmatmul.mubr.bf16.vlgmr.msra.gmra.mrb[0].mxu1 %v1154_v35 }
  0x50   : > { %625 = vmatprep.mubr.bf16.mxu0 %v1157_v36  ;;  %665 = vmatprep.mubr.bf16.mxu1 %v1159_v37 }
  0x57   : > { %626 = vmatmul.mubr.bf16.gmra.mrb[4].mxu0 %v1161_v38  ;;  %666 = vmatmul.mubr.bf16.gmra.mrb[4].mxu1 %v1162_v39 }
  0x58   : > { %635 = vmatprep.mubr.bf16.mxu0 %v1163_v40  ;;  %675 = vmatprep.mubr.bf16.mxu1 %v1165_v41 }
  0x5f   : > { %636 = vmatmul.mubr.bf16.gmra.mrb[8].mxu0 %v1167_v42  ;;  %676 = vmatmul.mubr.bf16.gmra.mrb[8].mxu1 %v1168_v43 }
  0x60   : > { %645 = vmatprep.mubr.bf16.mxu0 %v1169_v44  ;;  %685 = vmatprep.mubr.bf16.mxu1 %v1171_v45 }
  0x67   : > { %646 = vmatmul.mubr.bf16.gmra.mrb[12].mxu0 %v1173_v46  ;;  %686 = vmatmul.mubr.bf16.gmra.mrb[12].mxu1 %v1174_v47 }
 0x122   : > { %v617_v48 = vpop.f32.mrb[0].mxu0  ;;  %v657_v49 = vpop.f32.mrb[0].mxu1 }
 0x123   : > { %795 = vst [vmem:[%s1449_s24] sm:$0xff] %v617_v48  ;;  %811 = vst [vmem:[%s1449_s24 + $0x80] sm:$0xff] %v657_v49  ;;  %v619_v50 = vpop.f32.mrb[1].mxu0  ;;  %v659_v51 = vpop.f32.mrb[1].mxu1 }
 0x124   : > { %796 = vst [vmem:[%s1449_s24 + $0x8] sm:$0xff] %v619_v50  ;;  %812 = vst [vmem:[%s1449_s24 + $0x88] sm:$0xff] %v659_v51  ;;  %v621_v52 = vpop.f32.mrb[2].mxu0  ;;  %v661_v53 = vpop.f32.mrb[2].mxu1 }
 0x125   : > { %797 = vst [vmem:[%s1449_s24 + $0x10] sm:$0xff] %v621_v52  ;;  %813 = vst [vmem:[%s1449_s24 + $0x90] sm:$0xff] %v661_v53  ;;  %v623_v54 = vpop.f32.mrb[3].mxu0  ;;  %v663_v55 = vpop.f32.mrb[3].mxu1 }
 0x126   : > { %798 = vst [vmem:[%s1449_s24 + $0x18] sm:$0xff] %v623_v54  ;;  %814 = vst [vmem:[%s1449_s24 + $0x98] sm:$0xff] %v663_v55 }
 0x12a   : > { %v627_v56 = vpop.f32.mrb[4].mxu0  ;;  %v667_v57 = vpop.f32.mrb[4].mxu1 }
 0x12b   : > { %799 = vst [vmem:[%s1449_s24 + $0x20] sm:$0xff] %v627_v56  ;;  %815 = vst [vmem:[%s1449_s24 + $0xa0] sm:$0xff] %v667_v57  ;;  %v629_v58 = vpop.f32.mrb[5].mxu0  ;;  %v669_v59 = vpop.f32.mrb[5].mxu1 }
 0x12c   : > { %800 = vst [vmem:[%s1449_s24 + $0x28] sm:$0xff] %v629_v58  ;;  %816 = vst [vmem:[%s1449_s24 + $0xa8] sm:$0xff] %v669_v59  ;;  %v631_v60 = vpop.f32.mrb[6].mxu0  ;;  %v671_v61 = vpop.f32.mrb[6].mxu1 }
 0x12d   : > { %801 = vst [vmem:[%s1449_s24 + $0x30] sm:$0xff] %v631_v60  ;;  %817 = vst [vmem:[%s1449_s24 + $0xb0] sm:$0xff] %v671_v61  ;;  %v633_v62 = vpop.f32.mrb[7].mxu0  ;;  %v673_v63 = vpop.f32.mrb[7].mxu1 }
 0x12e   : > { %802 = vst [vmem:[%s1449_s24 + $0x38] sm:$0xff] %v633_v62  ;;  %818 = vst [vmem:[%s1449_s24 + $0xb8] sm:$0xff] %v673_v63 }
 0x132   : > { %v637_v0 = vpop.f32.mrb[8].mxu0  ;;  %v677_v1 = vpop.f32.mrb[8].mxu1 }
 0x133   : > { %803 = vst [vmem:[%s1449_s24 + $0x40] sm:$0xff] %v637_v0  ;;  %819 = vst [vmem:[%s1449_s24 + $0xc0] sm:$0xff] %v677_v1  ;;  %v639_v2 = vpop.f32.mrb[9].mxu0  ;;  %v679_v3 = vpop.f32.mrb[9].mxu1 }
 0x134   : > { %804 = vst [vmem:[%s1449_s24 + $0x48] sm:$0xff] %v639_v2  ;;  %820 = vst [vmem:[%s1449_s24 + $0xc8] sm:$0xff] %v679_v3  ;;  %v641_v4 = vpop.f32.mrb[10].mxu0  ;;  %v681_v5 = vpop.f32.mrb[10].mxu1 }
 0x135   : > { %805 = vst [vmem:[%s1449_s24 + $0x50] sm:$0xff] %v641_v4  ;;  %821 = vst [vmem:[%s1449_s24 + $0xd0] sm:$0xff] %v681_v5  ;;  %v643_v6 = vpop.f32.mrb[11].mxu0  ;;  %v683_v7 = vpop.f32.mrb[11].mxu1 }
 0x136   : > { %806 = vst [vmem:[%s1449_s24 + $0x58] sm:$0xff] %v643_v6  ;;  %822 = vst [vmem:[%s1449_s24 + $0xd8] sm:$0xff] %v683_v7 }
 0x13a   : > { %v647_v8 = vpop.f32.mrb[12].mxu0  ;;  %v687_v9 = vpop.f32.mrb[12].mxu1 }
 0x13b   : > { %807 = vst [vmem:[%s1449_s24 + $0x60] sm:$0xff] %v647_v8  ;;  %823 = vst [vmem:[%s1449_s24 + $0xe0] sm:$0xff] %v687_v9  ;;  %v649_v10 = vpop.f32.mrb[13].mxu0  ;;  %v689_v11 = vpop.f32.mrb[13].mxu1 }
 0x13c   : > { %808 = vst [vmem:[%s1449_s24 + $0x68] sm:$0xff] %v649_v10  ;;  %824 = vst [vmem:[%s1449_s24 + $0xe8] sm:$0xff] %v689_v11  ;;  %v651_v12 = vpop.f32.mrb[14].mxu0  ;;  %v691_v13 = vpop.f32.mrb[14].mxu1 }
 0x13d   : > { %809 = vst [vmem:[%s1449_s24 + $0x70] sm:$0xff] %v651_v12  ;;  %825 = vst [vmem:[%s1449_s24 + $0xf0] sm:$0xff] %v691_v13  ;;  %v653_v14 = vpop.f32.mrb[15].mxu0  ;;  %v693_v15 = vpop.f32.mrb[15].mxu1 }
 0x13e   : > { %810 = vst [vmem:[%s1449_s24 + $0x78] sm:$0xff] %v653_v14  ;;  %826 = vst [vmem:[%s1449_s24 + $0xf8] sm:$0xff] %v693_v15 }
 0x13f   : > { %1188 = shalt.err (!%p1185_p5)
}
 0x140   : > { %s1189_s7 = scalar_lea.hbm %s1482_s28, 4096  ;;  %s1193_s15 = scalar_lea.hbm %s1542_s2, 8192 }
 0x141   : > { %p1190_p6 = scmp.ne.s32.totalorder %s1482_s28, %s1189_s7  ;;  %p1194_p10 = scmp.lt.u32.totalorder %s1482_s28, %s1542_s2 }
 0x142   : > { %p1195_p11 = scmp.lt.u32.totalorder %s1193_s15, %s1189_s7  ;;  %p1197_p13 = scmp.lt.u32.totalorder %s1189_s7, %s1482_s28 }
 0x143   : > { %p1191_p7 = pnand %p1190_p6, %p1313_p4 }
 0x144   : > { %p1196_p12 = por %p1195_p11, %p1194_p10 }
 0x145   : > { %p1192_p9 = pneg %p1191_p7 }
 0x146   : > { %p1198_p0 = por %p1197_p13, %p1196_p12 }
 0x148   : > { %p1199_p1 = pnand %p1198_p0, %p1192_p9 }
 0x14a   : > { %1202 = shalt.err (!%p1199_p1)
}
 0x14b   : > { %s1256_s20 = smov 256   ;;  %s1257_s23 = smov 16  }
 0x14c   : > { %1046 = dma.vmem_to_hbm [thread:$0]  (%p1313_p4), %s1484_s25, 4096, %s1482_s28, %s1494_s12, %s1256_s20, %s1256_s20, %s1257_s23  }
 0x14d PF: > { %p1052_p2 = scmp.ge.s32.totalorder %s1253_s14, 2  ;;  %s859_s24 = sand.u32 1, %s1233_s9  }
 0x14e   : > { %s860_s6 = scalar_lea.sflag [#allocation4], %s859_s24 }
 0x14f   : > { %p1049_p3 = pnand %p1052_p2, %p1320_p8 }
 0x151   : > { %1228 = dma.done.wait (!%p1049_p3), %s860_s6, 4096  }
 0x152   : > { %1230 = vsyncadd (!%p1049_p3), %s860_s6, 4294963200  ;;  %s15_s14 = sadd.s32 1, %s1253_s14   ;;  %s1545_s9 = smov %s1237_s10 }
 0x153   : > { %p12_p5 = scmp.ge.s32.totalorder %s15_s14, 4   ;;  %s1546_s10 = smov %s1241_s11 }
 0x154   : > { %s1547_s11 = smov %s1326_s22  ;;  %s1548_s12 = smov %s1249_s13 }
 0x155   : > { %s1549_s13 = smov %s1551_s17  ;;  %14 = sbr.rel (!%p12_p5) target bundleno = 4 (0x4), region = 74 }
 0x15c   :  { %865 = vsyncpa [#allocation4], 1 }
 0x15d   :  { %867 = vsyncpa [#allocation4 + $0x1], 1 }

// kernel: flash_gptj_attention_forward.3
= control target key start
LH: loop header
LB: loop body
LE: loop exit
PB: predicated region body
PF: predicated region fallthrough
CT: control target
= control target key end

     0   :  { %s2313_s15 = smov 0   ;;  %s2315_s16 = smov 0   ;;  %s3186_s0 = inlined_call_operand.vmem [shape: bf16[256,256], index: 0, kind: input, shape index: {}]   ;;  %s3187_s1 = inlined_call_operand.vmem [shape: bf16[256,768], index: 1, kind: input, shape index: {}]   ;;  %s3188_s2 = inlined_call_operand.vmem [shape: f32[256,128], index: 2, kind: input, shape index: {}]   ;;  %s3189_s3 = inlined_call_operand.vmem [shape: f32[256,128], index: 3, kind: input, shape index: {}]   ;;  %s3190_s4 = inlined_call_operand.vmem [shape: bf16[256,768], index: 4, kind: output, shape index: {}]  }
   0x1   :  { %s2317_s17 = smov 0   ;;  %s2319_s18 = smov 0  }
   0x2   :  { %s2321_s19 = smov 0   ;;  %s2323_s20 = smov 0  }
   0x3   :  { %s2325_s21 = smov 0   ;;  %s2327_s22 = smov 0  }
   0x4   :  { %s2329_s23 = smov 0  }
   0x5 LB: > { %s1864_s24 = sadd.s32 4294967295, %s2284_s23   ;;  %s29_s25 = sadd.s32 1, %s2276_s21  ;;  %s2284_s23 = sphi %s2329_s23, %s14_s23   ;;  %s2280_s22 = sphi %s2327_s22, %s3293_s22   ;;  %s2276_s21 = sphi %s2325_s21, %s3292_s21   ;;  %s2272_s20 = sphi %s2323_s20, %s3291_s20   ;;  %s2268_s19 = sphi %s2321_s19, %s3290_s19   ;;  %s2264_s18 = sphi %s2319_s18, %s3289_s18   ;;  %s2260_s17 = sphi %s2317_s17, %s3288_s17   ;;  %s2256_s16 = sphi %s2315_s16, %s3287_s16   ;;  %s2252_s15 = sphi %s2313_s15, %s3286_s15  }
   0x6   : > { %p31_p0 = scmp.ge.s32.totalorder %s29_s25, 3  ;;  %s33_s26 = sadd.s32 1, %s2280_s22 }
   0x7   : > { %s70_s27 = sadd.s32 1, %s2264_s18  ;;  %p77_p1 = scmp.ne.s32.totalorder %s2264_s18, %s2260_s17 }
   0x8   : > { %s3295_s25 = smov (%p31_p0, %s29_s25), 0  ;;  %s3297_s26 = smov (!%p31_p0, %s33_s26), %s2280_s22 }
   0x9   : > { %s66_s28 = ssub.s32 %s2276_s21, %s3295_s25  ;;  %p78_p2 = scmp.eq.s32.totalorder %s2284_s23, 0 }
   0xa   : > { %p35_p3 = scmp.ge.s32.totalorder %s3297_s26, 2  ;;  %p68_p4 = scmp.eq.s32.totalorder %s66_s28, 0 }
   0xb   : > { %p79_p5 = por %p78_p2, %p77_p1  ;;  %s150_s29 = sadd.s32 1, %s2256_s16 }
   0xc   : > { %s3299_s26 = smov (%p35_p3, %s3297_s26), 0  ;;  %p160_p6 = scmp.ne.s32.totalorder %s2256_s16, %s2252_s15 }
   0xd   : > { %s2374_s30 = scalar_select %p68_p4, %s2264_s18, %s70_s27  }
   0xe   : > { %s145_s5 = ssub.s32 %s2280_s22, %s3299_s26  ;;  %p161_p7 = scmp.eq.s32.totalorder %s1864_s24, 5 }
   0xf   : > { %s147_s6 = sor.u32 %s145_s5, %s66_s28  ;;  %p1867_p10 = scmp.ge.s32.totalorder %s2284_s23, 6 }
  0x10   : > { %p148_p8 = scmp.eq.s32.totalorder %s147_s6, 0  ;;  %p2380_p9 = por %p161_p7, %p160_p6 }
  0x11   : > { %183 = sbr.rel (%p1867_p10) target bundleno = 44 (0x2c), region = 16 }
  0x12   : > { %s2385_s8 = scalar_select %p148_p8, %s2256_s16, %s150_s29  }
  0x18   : > { %201 = sbr.rel (!%p79_p5) target bundleno = 44 (0x2c), region = 24  ;;  %s203_s9 = sand.u32 (%p79_p5), 1, %s2264_s18  }
  0x19   : > { %s1985_s10 = sshll.u32 (%p79_p5), %s2276_s21, 3  ;;  %s1868_s11 = sshll.u32 (%p79_p5), %s203_s9, 8 }
  0x1a   : > { %s2393_s14 = scalar_lea.vmem (%p79_p5), %s3187_s1, %s1985_s10  ;;  %s2398_s24 = scalar_lea.vmem (%p79_p5), [#allocation3], %s1868_s11 }
  0x1b   : > { %v301_v0 = vld [vmem:[%s2393_s14] sm:$0xff] (%p79_p5)  ;;  %v303_v1 = vld [vmem:[%s2393_s14 + $0x18] sm:$0xff] (%p79_p5)  ;;  %v305_v2 = vld [vmem:[%s2393_s14 + $0x30] sm:$0xff] (%p79_p5) }
  0x1c   : > { %302 = vst [vmem:[%s2398_s24] sm:$0xff] (%p79_p5), %v301_v0  ;;  %304 = vst [vmem:[%s2398_s24 + $0x8] sm:$0xff] (%p79_p5), %v303_v1  ;;  %v307_v3 = vld [vmem:[%s2393_s14 + $0x48] sm:$0xff] (%p79_p5)  ;;  %v309_v4 = vld [vmem:[%s2393_s14 + $0x60] sm:$0xff] (%p79_p5) }
  0x1d   : > { %306 = vst [vmem:[%s2398_s24 + $0x10] sm:$0xff] (%p79_p5), %v305_v2  ;;  %v311_v5 = vld [vmem:[%s2393_s14 + $0x78] sm:$0xff] (%p79_p5)  ;;  %308 = vst [vmem:[%s2398_s24 + $0x18] sm:$0xff] (%p79_p5), %v307_v3  ;;  %v313_v6 = vld [vmem:[%s2393_s14 + $0x90] sm:$0xff] (%p79_p5) }
  0x1e   : > { %310 = vst [vmem:[%s2398_s24 + $0x20] sm:$0xff] (%p79_p5), %v309_v4  ;;  %312 = vst [vmem:[%s2398_s24 + $0x28] sm:$0xff] (%p79_p5), %v311_v5  ;;  %v315_v7 = vld [vmem:[%s2393_s14 + $0xa8] sm:$0xff] (%p79_p5)  ;;  %v317_v8 = vld [vmem:[%s2393_s14 + $0xc0] sm:$0xff] (%p79_p5) }
  0x1f   : > { %314 = vst [vmem:[%s2398_s24 + $0x30] sm:$0xff] %v313_v6  ;;  %316 = vst [vmem:[%s2398_s24 + $0x38] sm:$0xff] %v315_v7  ;;  %v319_v9 = vld [vmem:[%s2393_s14 + $0xd8] sm:$0xff]  ;;  %v321_v10 = vld [vmem:[%s2393_s14 + $0xf0] sm:$0xff] }
  0x20   : > { %318 = vst [vmem:[%s2398_s24 + $0x40] sm:$0xff] %v317_v8  ;;  %v323_v11 = vld [vmem:[%s2393_s14 + $0x108] sm:$0xff]  ;;  %320 = vst [vmem:[%s2398_s24 + $0x48] sm:$0xff] %v319_v9  ;;  %v325_v12 = vld [vmem:[%s2393_s14 + $0x120] sm:$0xff] }
  0x21   : > { %322 = vst [vmem:[%s2398_s24 + $0x50] sm:$0xff] %v321_v10  ;;  %324 = vst [vmem:[%s2398_s24 + $0x58] sm:$0xff] %v323_v11  ;;  %v327_v13 = vld [vmem:[%s2393_s14 + $0x138] sm:$0xff]  ;;  %v329_v14 = vld [vmem:[%s2393_s14 + $0x150] sm:$0xff] }
  0x22   : > { %326 = vst [vmem:[%s2398_s24 + $0x60] sm:$0xff] %v325_v12  ;;  %328 = vst [vmem:[%s2398_s24 + $0x68] sm:$0xff] %v327_v13  ;;  %v331_v15 = vld [vmem:[%s2393_s14 + $0x168] sm:$0xff]  ;;  %v333_v16 = vld [vmem:[%s2393_s14 + $0x180] sm:$0xff] }
  0x23   : > { %330 = vst [vmem:[%s2398_s24 + $0x70] sm:$0xff] %v329_v14  ;;  %v335_v17 = vld [vmem:[%s2393_s14 + $0x198] sm:$0xff]  ;;  %332 = vst [vmem:[%s2398_s24 + $0x78] sm:$0xff] %v331_v15  ;;  %v337_v18 = vld [vmem:[%s2393_s14 + $0x1b0] sm:$0xff] }
  0x24   : > { %334 = vst [vmem:[%s2398_s24 + $0x80] sm:$0xff] %v333_v16  ;;  %336 = vst [vmem:[%s2398_s24 + $0x88] sm:$0xff] %v335_v17  ;;  %v339_v19 = vld [vmem:[%s2393_s14 + $0x1c8] sm:$0xff]  ;;  %v341_v20 = vld [vmem:[%s2393_s14 + $0x1e0] sm:$0xff] }
  0x25   : > { %338 = vst [vmem:[%s2398_s24 + $0x90] sm:$0xff] %v337_v18  ;;  %340 = vst [vmem:[%s2398_s24 + $0x98] sm:$0xff] %v339_v19  ;;  %v343_v21 = vld [vmem:[%s2393_s14 + $0x1f8] sm:$0xff]  ;;  %v345_v22 = vld [vmem:[%s2393_s14 + $0x210] sm:$0xff] }
  0x26   : > { %342 = vst [vmem:[%s2398_s24 + $0xa0] sm:$0xff] %v341_v20  ;;  %v347_v23 = vld [vmem:[%s2393_s14 + $0x228] sm:$0xff]  ;;  %344 = vst [vmem:[%s2398_s24 + $0xa8] sm:$0xff] %v343_v21  ;;  %v349_v24 = vld [vmem:[%s2393_s14 + $0x240] sm:$0xff] }
  0x27   : > { %346 = vst [vmem:[%s2398_s24 + $0xb0] sm:$0xff] %v345_v22  ;;  %348 = vst [vmem:[%s2398_s24 + $0xb8] sm:$0xff] %v347_v23  ;;  %v351_v25 = vld [vmem:[%s2393_s14 + $0x258] sm:$0xff]  ;;  %v353_v26 = vld [vmem:[%s2393_s14 + $0x270] sm:$0xff] }
  0x28   : > { %350 = vst [vmem:[%s2398_s24 + $0xc0] sm:$0xff] %v349_v24  ;;  %352 = vst [vmem:[%s2398_s24 + $0xc8] sm:$0xff] %v351_v25  ;;  %v355_v27 = vld [vmem:[%s2393_s14 + $0x288] sm:$0xff]  ;;  %v357_v28 = vld [vmem:[%s2393_s14 + $0x2a0] sm:$0xff] }
  0x29   : > { %354 = vst [vmem:[%s2398_s24 + $0xd0] sm:$0xff] %v353_v26  ;;  %v359_v29 = vld [vmem:[%s2393_s14 + $0x2b8] sm:$0xff]  ;;  %356 = vst [vmem:[%s2398_s24 + $0xd8] sm:$0xff] %v355_v27  ;;  %v361_v30 = vld [vmem:[%s2393_s14 + $0x2d0] sm:$0xff] }
  0x2a   : > { %358 = vst [vmem:[%s2398_s24 + $0xe0] sm:$0xff] %v357_v28  ;;  %360 = vst [vmem:[%s2398_s24 + $0xe8] sm:$0xff] %v359_v29  ;;  %v363_v31 = vld [vmem:[%s2393_s14 + $0x2e8] sm:$0xff] }
  0x2b   : > { %362 = vst [vmem:[%s2398_s24 + $0xf0] sm:$0xff] %v361_v30  ;;  %364 = vst [vmem:[%s2398_s24 + $0xf8] sm:$0xff] %v363_v31 }
  0x2c PF: > { %p1871_p11 = scmp.ge.s32.totalorder %s2284_s23, 1  ;;  %p387_p12 = scmp.lt.s32.totalorder %s2284_s23, 7 }
  0x2e   : > { %p388_p13 = pnand %p1871_p11, %p387_p12 }
  0x30   : > { %391 = sbr.rel (%p388_p13) target bundleno = 638 (0x27e), region = 70 }
  0x37   : > { %s394_s27 = sand.u32 1, %s2260_s17   ;;  %s435_s28 = sand.u32 1, %s2252_s15  }
  0x38   : > { %s1872_s29 = sshll.u32 %s394_s27, 8  ;;  %s2465_s5 = sshll.u32 %s435_s28, 7 }
  0x39   : > { %s2467_s6 = scalar_lea.vmem [#allocation3], %s1872_s29  ;;  %s1874_s9 = sshll.u32 %s2272_s20, 4 }
  0x3a   : > { %v2142_v32 = vld [vmem:[%s2467_s6 + $0x4] ss:$8 sps:$4 sm:$0xff]   ;;  %v2144_v33 = vld [vmem:[%s2467_s6] ss:$8 sps:$4 sm:$0xff]   ;;  %p440_p0 = scmp.lt.s32.totalorder %s1874_s9, 31  ;;  %s1929_s29 = sshll.u32 %s2268_s19, 8 }
  0x3b   : > { %822 = vmatprep.subr.bf16.mxu0 %v2142_v32  ;;  %2035 = vmatprep.subr.bf16.mxu1 %v2142_v32  ;;  %v2145_v34 = vld [vmem:[%s2467_s6 + $0x14] ss:$8 sps:$4 sm:$0xff]   ;;  %v2147_v35 = vld [vmem:[%s2467_s6 + $0x10] ss:$8 sps:$4 sm:$0xff]   ;;  %v2148_v36 = vld [vmem:[%s2467_s6 + $0x24] ss:$8 sps:$4 sm:$0xff]  }
  0x3c   : > { %823 = vmatpush1.bf16.msra.mxu0 %v2144_v33  ;;  %2051 = vmatpush1.bf16.msra.mxu1 %v2144_v33  ;;  %s3301_s9 = smov (!%p440_p0, %s1874_s9), 31  ;;  %v2150_v37 = vld [vmem:[%s2467_s6 + $0x20] ss:$8 sps:$4 sm:$0xff]   ;;  %v2151_v38 = vld [vmem:[%s2467_s6 + $0x34] ss:$8 sps:$4 sm:$0xff]   ;;  %p1037_p2 = scmp.ge.s32.totalorder %s1929_s29, 512 }
  0x3d   : > { %824 = vmatprep.subr.bf16.mxu0 %v2145_v34  ;;  %2036 = vmatprep.subr.bf16.mxu1 %v2145_v34  ;;  %s1986_s15 = sshll.u32 %s3301_s9, 3  ;;  %v2153_v39 = vld [vmem:[%s2467_s6 + $0x30] ss:$8 sps:$4 sm:$0xff]   ;;  %v2154_v40 = vld [vmem:[%s2467_s6 + $0x44] ss:$8 sps:$4 sm:$0xff]  }
  0x3e   : > { %s2478_s11 = scalar_lea.vmem %s3188_s2, %s1986_s15  ;;  %s2484_s14 = scalar_lea.vmem %s3189_s3, %s1986_s15  ;;  %v2156_v41 = vld [vmem:[%s2467_s6 + $0x40] ss:$8 sps:$4 sm:$0xff]   ;;  %v2157_v42 = vld [vmem:[%s2467_s6 + $0x54] ss:$8 sps:$4 sm:$0xff]   ;;  %v2159_v43 = vld [vmem:[%s2467_s6 + $0x50] ss:$8 sps:$4 sm:$0xff]  }
  0x3f   : > { %s2495_s28 = scalar_lea.vmem %s3186_s0, %s1986_s15  ;;  %v2160_v44 = vld [vmem:[%s2467_s6 + $0x64] ss:$8 sps:$4 sm:$0xff]   ;;  %v2162_v46 = vld [vmem:[%s2467_s6 + $0x60] ss:$8 sps:$4 sm:$0xff]   ;;  %v2163_v48 = vld [vmem:[%s2467_s6 + $0x74] ss:$8 sps:$4 sm:$0xff]  }
  0x40   : > { %825 = vmatpush1.bf16.msra.mxu0 %v2147_v35  ;;  %2052 = vmatpush1.bf16.msra.mxu1 %v2147_v35  ;;  %v2192_v45 = vld [vmem:[%s2495_s28 + $0x4] ss:$8 sps:$4 sm:$0xff]   ;;  %v2165_v49 = vld [vmem:[%s2467_s6 + $0x70] ss:$8 sps:$4 sm:$0xff]   ;;  %v2168_v51 = vld [vmem:[%s2467_s6 + $0x80] ss:$8 sps:$4 sm:$0xff]  }
  0x41   : > { %826 = vmatprep.subr.bf16.mxu0 %v2148_v36  ;;  %2037 = vmatprep.subr.bf16.mxu1 %v2148_v36  ;;  %v2195_v47 = vld [vmem:[%s2495_s28 + $0x44] ss:$8 sps:$4 sm:$0xff]   ;;  %v2169_v52 = vld [vmem:[%s2467_s6 + $0x94] ss:$8 sps:$4 sm:$0xff]   ;;  %v2171_v53 = vld [vmem:[%s2467_s6 + $0x90] ss:$8 sps:$4 sm:$0xff]  }
  0x42   : > { %854 = vmatprep.mubr.bf16.mxu0 %v2192_v45  ;;  %894 = vmatprep.mubr.bf16.mxu1 %v2195_v47  ;;  %v2166_v50 = vld [vmem:[%s2467_s6 + $0x84] ss:$8 sps:$4 sm:$0xff]   ;;  %v2174_v55 = vld [vmem:[%s2467_s6 + $0xa0] ss:$8 sps:$4 sm:$0xff]   ;;  %v2175_v56 = vld [vmem:[%s2467_s6 + $0xb4] ss:$8 sps:$4 sm:$0xff]  }
  0x43   : > { %v2172_v54 = vld [vmem:[%s2467_s6 + $0xa4] ss:$8 sps:$4 sm:$0xff]   ;;  %v2177_v57 = vld [vmem:[%s2467_s6 + $0xb0] ss:$8 sps:$4 sm:$0xff]   ;;  %v2180_v59 = vld [vmem:[%s2467_s6 + $0xc0] ss:$8 sps:$4 sm:$0xff]  }
  0x44   : > { %827 = vmatpush1.bf16.msra.mxu0 %v2150_v37  ;;  %2053 = vmatpush1.bf16.msra.mxu1 %v2150_v37  ;;  %v2178_v58 = vld [vmem:[%s2467_s6 + $0xc4] ss:$8 sps:$4 sm:$0xff]   ;;  %v2181_v60 = vld [vmem:[%s2467_s6 + $0xd4] ss:$8 sps:$4 sm:$0xff]   ;;  %v2183_v61 = vld [vmem:[%s2467_s6 + $0xd0] ss:$8 sps:$4 sm:$0xff]  }
  0x45   : > { %828 = vmatprep.subr.bf16.mxu0 %v2151_v38  ;;  %2038 = vmatprep.subr.bf16.mxu1 %v2151_v38  ;;  %v2184_v62 = vld [vmem:[%s2467_s6 + $0xe4] ss:$8 sps:$4 sm:$0xff]   ;;  %v2186_v63 = vld [vmem:[%s2467_s6 + $0xe0] ss:$8 sps:$4 sm:$0xff]   ;;  %v2187_v0 = vld [vmem:[%s2467_s6 + $0xf4] ss:$8 sps:$4 sm:$0xff]  }
  0x46   : > { %v2189_v1 = vld [vmem:[%s2467_s6 + $0xf0] ss:$8 sps:$4 sm:$0xff]   ;;  %v2190_v2 = vld [vmem:[%s2495_s28] ss:$8 sps:$4 sm:$0xff]   ;;  %v2196_v4 = vld [vmem:[%s2495_s28 + $0x14] ss:$8 sps:$4 sm:$0xff]  }
  0x47   : > { %v2193_v3 = vld [vmem:[%s2495_s28 + $0x40] ss:$8 sps:$4 sm:$0xff]   ;;  %v2198_v5 = vld [vmem:[%s2495_s28 + $0x54] ss:$8 sps:$4 sm:$0xff]   ;;  %v2200_v6 = vld [vmem:[%s2495_s28 + $0x10] ss:$8 sps:$4 sm:$0xff]  }
  0x48   : > { %829 = vmatpush1.bf16.msra.mxu0 %v2153_v39  ;;  %2054 = vmatpush1.bf16.msra.mxu1 %v2153_v39  ;;  %v2201_v7 = vld [vmem:[%s2495_s28 + $0x50] ss:$8 sps:$4 sm:$0xff]   ;;  %v2202_v8 = vld [vmem:[%s2495_s28 + $0x24] ss:$8 sps:$4 sm:$0xff]   ;;  %v2206_v10 = vld [vmem:[%s2495_s28 + $0x20] ss:$8 sps:$4 sm:$0xff]  }
  0x49   : > { %830 = vmatprep.subr.bf16.mxu0 %v2154_v40  ;;  %2039 = vmatprep.subr.bf16.mxu1 %v2154_v40  ;;  %v2204_v9 = vld [vmem:[%s2495_s28 + $0x64] ss:$8 sps:$4 sm:$0xff]   ;;  %v2207_v11 = vld [vmem:[%s2495_s28 + $0x60] ss:$8 sps:$4 sm:$0xff]   ;;  %v2208_v12 = vld [vmem:[%s2495_s28 + $0x34] ss:$8 sps:$4 sm:$0xff]  }
  0x4a   : > { %v2210_v13 = vld [vmem:[%s2495_s28 + $0x74] ss:$8 sps:$4 sm:$0xff]   ;;  %v2212_v14 = vld [vmem:[%s2495_s28 + $0x30] ss:$8 sps:$4 sm:$0xff]   ;;  %s1035_s6 = sadd.s32 256, %s1929_s29  ;;  %s2603_s15 = scalar_lea.vmem [#allocation4], %s2465_s5 }
  0x4b   : > { %v2213_v15 = vld [vmem:[%s2495_s28 + $0x70] ss:$8 sps:$4 sm:$0xff]   ;;  %p1036_p1 = scmp.le.s32.totalorder %s1035_s6, 256 }
  0x4c   : > { %831 = vmatpush1.bf16.msra.mxu0 %v2156_v41  ;;  %2055 = vmatpush1.bf16.msra.mxu1 %v2156_v41 }
  0x4d   : > { %832 = vmatprep.subr.bf16.mxu0 %v2157_v42  ;;  %2040 = vmatprep.subr.bf16.mxu1 %v2157_v42  ;;  %p2534_p3 = por %p1037_p2, %p1036_p1 }
  0x50   : > { %833 = vmatpush1.bf16.msra.mxu0 %v2159_v43  ;;  %2056 = vmatpush1.bf16.msra.mxu1 %v2159_v43 }
  0x51   : > { %834 = vmatprep.subr.bf16.mxu0 %v2160_v44  ;;  %2041 = vmatprep.subr.bf16.mxu1 %v2160_v44 }
  0x54   : > { %835 = vmatpush1.bf16.msra.mxu0 %v2162_v46  ;;  %2057 = vmatpush1.bf16.msra.mxu1 %v2162_v46 }
  0x55   : > { %836 = vmatprep.subr.bf16.mxu0 %v2163_v48  ;;  %2042 = vmatprep.subr.bf16.mxu1 %v2163_v48 }
  0x58   : > { %837 = vmatpush1.bf16.msra.mxu0 %v2165_v49  ;;  %2058 = vmatpush1.bf16.msra.mxu1 %v2165_v49 }
  0x59   : > { %838 = vmatprep.subr.bf16.mxu0 %v2166_v50  ;;  %2043 = vmatprep.subr.bf16.mxu1 %v2166_v50 }
  0x5c   : > { %839 = vmatpush1.bf16.msra.mxu0 %v2168_v51  ;;  %2059 = vmatpush1.bf16.msra.mxu1 %v2168_v51 }
  0x5d   : > { %840 = vmatprep.subr.bf16.mxu0 %v2169_v52  ;;  %2044 = vmatprep.subr.bf16.mxu1 %v2169_v52 }
  0x60   : > { %841 = vmatpush1.bf16.msra.mxu0 %v2171_v53  ;;  %2060 = vmatpush1.bf16.msra.mxu1 %v2171_v53 }
  0x61   : > { %842 = vmatprep.subr.bf16.mxu0 %v2172_v54  ;;  %2045 = vmatprep.subr.bf16.mxu1 %v2172_v54 }
  0x64   : > { %843 = vmatpush1.bf16.msra.mxu0 %v2174_v55  ;;  %2061 = vmatpush1.bf16.msra.mxu1 %v2174_v55 }
  0x65   : > { %844 = vmatprep.subr.bf16.mxu0 %v2175_v56  ;;  %2046 = vmatprep.subr.bf16.mxu1 %v2175_v56 }
  0x68   : > { %845 = vmatpush1.bf16.msra.mxu0 %v2177_v57  ;;  %2062 = vmatpush1.bf16.msra.mxu1 %v2177_v57 }
  0x69   : > { %846 = vmatprep.subr.bf16.mxu0 %v2178_v58  ;;  %2047 = vmatprep.subr.bf16.mxu1 %v2178_v58 }
  0x6c   : > { %847 = vmatpush1.bf16.msra.mxu0 %v2180_v59  ;;  %2063 = vmatpush1.bf16.msra.mxu1 %v2180_v59 }
  0x6d   : > { %848 = vmatprep.subr.bf16.mxu0 %v2181_v60  ;;  %2048 = vmatprep.subr.bf16.mxu1 %v2181_v60 }
  0x70   : > { %849 = vmatpush1.bf16.msra.mxu0 %v2183_v61  ;;  %2064 = vmatpush1.bf16.msra.mxu1 %v2183_v61 }
  0x71   : > { %850 = vmatprep.subr.bf16.mxu0 %v2184_v62  ;;  %2049 = vmatprep.subr.bf16.mxu1 %v2184_v62 }
  0x74   : > { %851 = vmatpush1.bf16.msra.mxu0 %v2186_v63  ;;  %2065 = vmatpush1.bf16.msra.mxu1 %v2186_v63 }
  0x75   : > { %852 = vmatprep.subr.bf16.mxu0 %v2187_v0  ;;  %2050 = vmatprep.subr.bf16.mxu1 %v2187_v0 }
  0x78   : > { %853 = vmatpush1.bf16.msra.mxu0 %v2189_v1  ;;  %2066 = vmatpush1.bf16.msra.mxu1 %v2189_v1 }
  0x7b   : > { %855 = vmatmul.mubr.bf16.vlgmr.msra.gmra.mrb[0].mxu0 %v2190_v2  ;;  %895 = vmatmul.mubr.bf16.vlgmr.msra.gmra.mrb[0].mxu1 %v2193_v3 }
  0x7c   : > { %864 = vmatprep.mubr.bf16.mxu0 %v2196_v4  ;;  %904 = vmatprep.mubr.bf16.mxu1 %v2198_v5 }
  0x83   : > { %865 = vmatmul.mubr.bf16.gmra.mrb[4].mxu0 %v2200_v6  ;;  %905 = vmatmul.mubr.bf16.gmra.mrb[4].mxu1 %v2201_v7 }
  0x84   : > { %874 = vmatprep.mubr.bf16.mxu0 %v2202_v8  ;;  %914 = vmatprep.mubr.bf16.mxu1 %v2204_v9 }
  0x8b   : > { %875 = vmatmul.mubr.bf16.gmra.mrb[8].mxu0 %v2206_v10  ;;  %915 = vmatmul.mubr.bf16.gmra.mrb[8].mxu1 %v2207_v11 }
  0x8c   : > { %884 = vmatprep.mubr.bf16.mxu0 %v2208_v12  ;;  %924 = vmatprep.mubr.bf16.mxu1 %v2210_v13 }
  0x93   : > { %885 = vmatmul.mubr.bf16.gmra.mrb[12].mxu0 %v2212_v14  ;;  %925 = vmatmul.mubr.bf16.gmra.mrb[12].mxu1 %v2213_v15 }
 0x14e   : > { %v2538_v16 = vpop.f32.mrb[0].mxu0  ;;  %v2540_v17 = vpop.f32.mrb[0].mxu1 }
 0x14f   : > { %3221 = vst [vmem:[#allocation5_spill] sm:$0xff] %v2538_v16  ;;  %3222 = vst [vmem:[#allocation6_spill] sm:$0xff] %v2540_v17  ;;  %v2542_v18 = vpop.f32.mrb[1].mxu0  ;;  %v2544_v19 = vpop.f32.mrb[1].mxu1 }
 0x150   : > { %3223 = vst [vmem:[#allocation7_spill] sm:$0xff] %v2542_v18  ;;  %v2546_v20 = vpop.f32.mrb[2].mxu0  ;;  %v2548_v21 = vpop.f32.mrb[2].mxu1 }
 0x151   : > { %3224 = vst [vmem:[#allocation8_spill] sm:$0xff] %v2546_v20  ;;  %3225 = vst [vmem:[#allocation9_spill] sm:$0xff] %v2548_v21  ;;  %v2550_v22 = vpop.f32.mrb[3].mxu0  ;;  %v2552_v23 = vpop.f32.mrb[3].mxu1 }
 0x152   : > { %3226 = vst [vmem:[#allocation10_spill] sm:$0xff] %v2550_v22 }
 0x156   : > { %v2554_v24 = vpop.f32.mrb[4].mxu0  ;;  %v2556_v25 = vpop.f32.mrb[4].mxu1 }
 0x157   : > { %3227 = vst [vmem:[#allocation11_spill] sm:$0xff] %v2554_v24  ;;  %3228 = vst [vmem:[#allocation12_spill] sm:$0xff] %v2556_v25  ;;  %v2558_v26 = vpop.f32.mrb[5].mxu0  ;;  %v2560_v27 = vpop.f32.mrb[5].mxu1 }
 0x158   : > { %3229 = vst [vmem:[#allocation13_spill] sm:$0xff] %v2560_v27  ;;  %v2562_v28 = vpop.f32.mrb[6].mxu0  ;;  %v2564_v29 = vpop.f32.mrb[6].mxu1 }
 0x159   : > { %3230 = vst [vmem:[#allocation14_spill] sm:$0xff] %v2562_v28  ;;  %3231 = vst [vmem:[#allocation15_spill] sm:$0xff] %v2564_v29  ;;  %v2566_v30 = vpop.f32.mrb[7].mxu0  ;;  %v2568_v31 = vpop.f32.mrb[7].mxu1 }
 0x15e   : > { %v2570_v32 = vpop.f32.mrb[8].mxu0  ;;  %v2572_v33 = vpop.f32.mrb[8].mxu1 }
 0x15f   : > { %3232 = vst [vmem:[#allocation16_spill] sm:$0xff] %v2570_v32  ;;  %3233 = vst [vmem:[#allocation17_spill] sm:$0xff] %v2572_v33  ;;  %v2574_v34 = vpop.f32.mrb[9].mxu0  ;;  %v2576_v35 = vpop.f32.mrb[9].mxu1 }
 0x160   : > { %3234 = vst [vmem:[#allocation18_spill] sm:$0xff] %v2576_v35  ;;  %v2578_v36 = vpop.f32.mrb[10].mxu0  ;;  %v2580_v37 = vpop.f32.mrb[10].mxu1 }
 0x161   : > { %3235 = vst [vmem:[#allocation19_spill] sm:$0xff] %v2578_v36  ;;  %3236 = vst [vmem:[#allocation20_spill] sm:$0xff] %v2580_v37  ;;  %v2582_v38 = vpop.f32.mrb[11].mxu0  ;;  %v2584_v39 = vpop.f32.mrb[11].mxu1 }
 0x162   : > { %3237 = vst [vmem:[#allocation21_spill] sm:$0xff] %v2584_v39 }
 0x164   : > { %1041 = sbr.rel (!%p2534_p3) target bundleno = 611 (0x263), region = 86 }
 0x166   : > { %v2586_v40 = vpop.f32.mrb[12].mxu0  ;;  %v2588_v41 = vpop.f32.mrb[12].mxu1 }
 0x167   : > { %3238 = vst [vmem:[#allocation22_spill] sm:$0xff] %v2586_v40  ;;  %3239 = vst [vmem:[#allocation23_spill] sm:$0xff] %v2588_v41  ;;  %v2590_v42 = vpop.f32.mrb[13].mxu0  ;;  %v2592_v43 = vpop.f32.mrb[13].mxu1 }
 0x168   : > { %3240 = vst [vmem:[#allocation24_spill] sm:$0xff] %v2592_v43  ;;  %v2594_v44 = vpop.f32.mrb[14].mxu0  ;;  %v2596_v45 = vpop.f32.mrb[14].mxu1 }
 0x169   : > { %3241 = vst [vmem:[#allocation25_spill] sm:$0xff] %v2594_v44  ;;  %3242 = vst [vmem:[#allocation26_spill] sm:$0xff] %v2596_v45  ;;  %v2598_v46 = vpop.f32.mrb[15].mxu0  ;;  %v2600_v47 = vpop.f32.mrb[15].mxu1 }
 0x16a   : > { %3243 = vst [vmem:[#allocation27_spill] sm:$0xff] %v2600_v47 }
 0x16b   : > { %s2286_s17 = smov 16   ;;  %s2287_s5 = smov 112   ;;  %v1074_v62 = vlaneseq  ;;  %v2762_v2 = vld [vmem:[%s2478_s11 + $0x8] sm:$0xff]  ;;  %v2765_v3 = vld [vmem:[%s2478_s11] sm:$0xff]  ;;  %v2783_v14 = vld [vmem:[%s2478_s11 + $0x18] sm:$0xff] }
 0x16c   : > { %1080 = vrot.lane.b32.xlu1 %v2554_v24, %s2286_s17  ;;  %1076 = vrot.lane.b32.xlu0 %v2538_v16, %s2286_s17  ;;  %v2769_v8 = vld [vmem:[%s2484_s14 + $0x8] sm:$0xff]  ;;  %v2772_v9 = vld [vmem:[%s2484_s14] sm:$0xff]  ;;  %v1174_v10 = vmul.f32 %v2762_v2, %v2546_v20  ;;  %v1173_v11 = vmul.f32 %v2765_v3, %v2538_v16 }
 0x16d   : > { %v2759_v1 = vand.u32 127, %v1074_v62  ;;  %v2786_v15 = vld [vmem:[%s2478_s11 + $0x10] sm:$0xff] }
 0x16f   : > { %vm1140_vm0 = vcmp.lt.s32.totalorder %v2759_v1, 16 }
 0x170   : > { %1082 = vrot.lane.b32.xlu1 %v2562_v28, %s2286_s17  ;;  %1078 = vrot.lane.b32.xlu0 %v2546_v20, %s2286_s17 }
 0x174   : > { %1086 = vrot.lane.b32.xlu1 %v2578_v36, %s2286_s17  ;;  %1084 = vrot.lane.b32.xlu0 %v2570_v32, %s2286_s17 }
 0x178   : > { %1090 = vrot.lane.b32.xlu1 %v2594_v44, %s2286_s17  ;;  %1088 = vrot.lane.b32.xlu0 %v2586_v40, %s2286_s17 }
 0x17c   : > { %1094 = vrot.lane.b32.xlu1 %v2548_v21, %s2286_s17  ;;  %1092 = vrot.lane.b32.xlu0 %v2540_v17, %s2286_s17 }
 0x180   : > { %1098 = vrot.lane.b32.xlu1 %v2564_v29, %s2286_s17  ;;  %1096 = vrot.lane.b32.xlu0 %v2556_v25, %s2286_s17 }
 0x184   : > { %1102 = vrot.lane.b32.xlu1 %v2580_v37, %s2286_s17  ;;  %1100 = vrot.lane.b32.xlu0 %v2572_v33, %s2286_s17 }
 0x188   : > { %1106 = vrot.lane.b32.xlu1 %v2596_v45, %s2286_s17  ;;  %1104 = vrot.lane.b32.xlu0 %v2588_v41, %s2286_s17 }
 0x18c   : > { %1110 = vrot.lane.b32.xlu1 %v2546_v20, %s2287_s5  ;;  %1108 = vrot.lane.b32.xlu0 %v2538_v16, %s2287_s5 }
 0x190   : > { %1114 = vrot.lane.b32.xlu1 %v2562_v28, %s2287_s5  ;;  %1112 = vrot.lane.b32.xlu0 %v2554_v24, %s2287_s5 }
 0x194   : > { %1118 = vrot.lane.b32.xlu1 %v2578_v36, %s2287_s5  ;;  %1116 = vrot.lane.b32.xlu0 %v2570_v32, %s2287_s5 }
 0x198   : > { %1122 = vrot.lane.b32.xlu1 %v2594_v44, %s2287_s5  ;;  %1120 = vrot.lane.b32.xlu0 %v2586_v40, %s2287_s5 }
 0x19c   : > { %1126 = vrot.lane.b32.xlu1 %v2548_v21, %s2287_s5  ;;  %1124 = vrot.lane.b32.xlu0 %v2540_v17, %s2287_s5 }
 0x1a0   : > { %1130 = vrot.lane.b32.xlu1 %v2564_v29, %s2287_s5  ;;  %1128 = vrot.lane.b32.xlu0 %v2556_v25, %s2287_s5 }
 0x1a4   : > { %1134 = vrot.lane.b32.xlu1 %v2580_v37, %s2287_s5  ;;  %1132 = vrot.lane.b32.xlu0 %v2572_v33, %s2287_s5 }
 0x1a8   : > { %1138 = vrot.lane.b32.xlu1 %v2596_v45, %s2287_s5  ;;  %1136 = vrot.lane.b32.xlu0 %v2588_v41, %s2287_s5 }
 0x1ac   : > { %1335 = vrot.lane.b32.xlu1 %v2550_v22, %s2287_s5  ;;  %1333 = vrot.lane.b32.xlu0 %v2542_v18, %s2287_s5 }
 0x1b0   : > { %1339 = vrot.lane.b32.xlu1 %v2566_v30, %s2287_s5  ;;  %1337 = vrot.lane.b32.xlu0 %v2558_v26, %s2287_s5 }
 0x1b4   : > { %1343 = vrot.lane.b32.xlu1 %v2582_v38, %s2287_s5  ;;  %1341 = vrot.lane.b32.xlu0 %v2574_v34, %s2287_s5 }
 0x1b8   : > { %1347 = vrot.lane.b32.xlu1 %v2598_v46, %s2287_s5  ;;  %1345 = vrot.lane.b32.xlu0 %v2590_v42, %s2287_s5 }
 0x1bc   : > { %1351 = vrot.lane.b32.xlu1 %v2552_v23, %s2287_s5  ;;  %1349 = vrot.lane.b32.xlu0 %v2544_v19, %s2287_s5 }
 0x1c0   : > { %1355 = vrot.lane.b32.xlu1 %v2568_v31, %s2287_s5  ;;  %1353 = vrot.lane.b32.xlu0 %v2560_v27, %s2287_s5 }
 0x1c4   : > { %1359 = vrot.lane.b32.xlu1 %v2584_v39, %s2287_s5  ;;  %1357 = vrot.lane.b32.xlu0 %v2576_v35, %s2287_s5 }
 0x1c8   : > { %1363 = vrot.lane.b32.xlu1 %v2600_v47, %s2287_s5  ;;  %1361 = vrot.lane.b32.xlu0 %v2592_v43, %s2287_s5 }
 0x1cc   : > { %1303 = vrot.lane.b32.xlu1 %v2550_v22, %s2286_s17  ;;  %1301 = vrot.lane.b32.xlu0 %v2542_v18, %s2286_s17 }
 0x1d0   : > { %1307 = vrot.lane.b32.xlu1 %v2566_v30, %s2286_s17  ;;  %1305 = vrot.lane.b32.xlu0 %v2558_v26, %s2286_s17 }
 0x1d4   : > { %1311 = vrot.lane.b32.xlu1 %v2582_v38, %s2286_s17  ;;  %1309 = vrot.lane.b32.xlu0 %v2574_v34, %s2286_s17 }
 0x1d8   : > { %1315 = vrot.lane.b32.xlu1 %v2598_v46, %s2286_s17  ;;  %1313 = vrot.lane.b32.xlu0 %v2590_v42, %s2286_s17 }
 0x1dc   : > { %1319 = vrot.lane.b32.xlu1 %v2552_v23, %s2286_s17  ;;  %1317 = vrot.lane.b32.xlu0 %v2544_v19, %s2286_s17 }
 0x1de   : > { %v1081_v48 = vpop.permute.xlu1 %1080  ;;  %v1077_v49 = vpop.permute.xlu0 %1076 }
 0x1e0   : > { %1323 = vrot.lane.b32.xlu1 %v2568_v31, %s2286_s17  ;;  %1321 = vrot.lane.b32.xlu0 %v2560_v27, %s2286_s17 }
 0x1e2   : > { %v1083_v50 = vpop.permute.xlu1 %1082  ;;  %v1079_v51 = vpop.permute.xlu0 %1078 }
 0x1e4   : > { %1327 = vrot.lane.b32.xlu1 %v2584_v39, %s2286_s17  ;;  %1325 = vrot.lane.b32.xlu0 %v2576_v35, %s2286_s17  ;;  %v1175_v35 = vmul.f32 %v2786_v15, %v2554_v24 }
 0x1e6   : > { %v2731_v52 = vpop.permute.xlu1 %1086  ;;  %v2733_v53 = vpop.permute.xlu0 %1084 }
 0x1e8   : > { %1331 = vrot.lane.b32.xlu1 %v2600_v47, %s2286_s17  ;;  %1329 = vrot.lane.b32.xlu0 %v2592_v43, %s2286_s17  ;;  %v2791_v47 = vld [vmem:[%s2484_s14 + $0x18] sm:$0xff] }
 0x1ea   : > { %v2739_v54 = vpop.permute.xlu1 %1090  ;;  %v2741_v55 = vpop.permute.xlu0 %1088 }
 0x1ee   : > { %v2743_v56 = vpop.permute.xlu1 %1094  ;;  %v2745_v57 = vpop.permute.xlu0 %1092 }
 0x1f2   : > { %v2747_v58 = vpop.permute.xlu1 %1098  ;;  %v2749_v59 = vpop.permute.xlu0 %1096 }
 0x1f6   : > { %v2751_v60 = vpop.permute.xlu1 %1102  ;;  %v2753_v61 = vpop.permute.xlu0 %1100 }
 0x1fa   : > { %v2755_v63 = vpop.permute.xlu1 %1106  ;;  %v2757_v0 = vpop.permute.xlu0 %1104 }
 0x1fe   : > { %v1111_v4 = vpop.permute.xlu1 %1110  ;;  %v1109_v5 = vpop.permute.xlu0 %1108 }
 0x1ff   : > { %v1142_v6 = vsub.f32 0.0, %v1111_v4  ;;  %v1141_v7 = vsub.f32 0.0, %v1109_v5 }
 0x201   : > { %v1158_v12 = vsel %vm1140_vm0, %v1142_v6, %v1079_v51  ;;  %v1157_v13 = vsel %vm1140_vm0, %v1141_v7, %v1077_v49  ;;  %v2794_v51 = vld [vmem:[%s2484_s14 + $0x10] sm:$0xff]  ;;  %v1176_v7 = vmul.f32 %v2783_v14, %v2562_v28 }
 0x202   : > { %v1115_v62 = vpop.permute.xlu1 %1114  ;;  %v1113_v4 = vpop.permute.xlu0 %1112  ;;  %v1190_v5 = vmul.f32 %v1158_v12, %v2769_v8  ;;  %v1189_v20 = vmul.f32 %v1157_v13, %v2772_v9 }
 0x203   : > { %v1144_v43 = vsub.f32 0.0, %v1115_v62  ;;  %v1143_v16 = vsub.f32 0.0, %v1113_v4  ;;  %v2805_v62 = vld [vmem:[%s2478_s11 + $0x28] sm:$0xff] }
 0x204   : > { %v1206_v6 = vadd.f32 %v1190_v5, %v1174_v10  ;;  %v1205_v49 = vadd.f32 %v1189_v20, %v1173_v11  ;;  %v2808_v10 = vld [vmem:[%s2478_s11 + $0x20] sm:$0xff] }
 0x205   : > { %v1160_v12 = vsel %vm1140_vm0, %v1144_v43, %v1083_v50  ;;  %v1159_v13 = vsel %vm1140_vm0, %v1143_v16, %v1081_v48  ;;  %v2813_v43 = vld [vmem:[%s2484_s14 + $0x28] sm:$0xff]  ;;  %v2816_v50 = vld [vmem:[%s2484_s14 + $0x20] sm:$0xff] }
 0x206   : > { %v1119_v20 = vpop.permute.xlu1 %1118  ;;  %v1117_v11 = vpop.permute.xlu0 %1116  ;;  %v1988_v4 = vpack.c.bf16 %v1206_v6, %v1206_v6  ;;  %v1987_v5 = vpack.c.bf16 %v1205_v49, %v1205_v49  ;;  %v1192_v28 = vmul.f32 %v1160_v12, %v2791_v47  ;;  %v1191_v24 = vmul.f32 %v1159_v13, %v2794_v51 }
 0x207   : > { %v1146_v39 = vsub.f32 0.0, %v1119_v20  ;;  %v1145_v27 = vsub.f32 0.0, %v1117_v11  ;;  %v1178_v6 = vmul.f32 %v2805_v62, %v2578_v36  ;;  %v1177_v49 = vmul.f32 %v2808_v10, %v2570_v32  ;;  %v2842_v32 = vld [vmem:[%s2484_s14 + $0x30] sm:$0xff] }
 0x208   : > { %1286 = vst [vmem:[%s2603_s15 + $0x8] sm:$0xf] %v1988_v4  ;;  %1285 = vst [vmem:[%s2603_s15] sm:$0xf] %v1987_v5  ;;  %v1208_v16 = vadd.f32 %v1192_v28, %v1176_v7  ;;  %v1207_v48 = vadd.f32 %v1191_v24, %v1175_v35  ;;  %v2831_v28 = vld [vmem:[%s2478_s11 + $0x38] sm:$0xff]  ;;  %v2834_v24 = vld [vmem:[%s2478_s11 + $0x30] sm:$0xff] }
 0x209   : > { %v1162_v12 = vsel %vm1140_vm0, %v1146_v39, %v2731_v52  ;;  %v1161_v13 = vsel %vm1140_vm0, %v1145_v27, %v2733_v53  ;;  %v2839_v52 = vld [vmem:[%s2484_s14 + $0x38] sm:$0xff] }
 0x20a   : > { %v1123_v35 = vpop.permute.xlu1 %1122  ;;  %v1121_v7 = vpop.permute.xlu0 %1120  ;;  %v1990_v20 = vpack.c.bf16 %v1208_v16, %v1208_v16  ;;  %v1989_v11 = vpack.c.bf16 %v1207_v48, %v1207_v48  ;;  %v1194_v4 = vmul.f32 %v1162_v12, %v2813_v43  ;;  %v1193_v5 = vmul.f32 %v1161_v13, %v2816_v50 }
 0x20b   : > { %v1148_v36 = vsub.f32 0.0, %v1123_v35  ;;  %v1147_v39 = vsub.f32 0.0, %v1121_v7  ;;  %v1180_v16 = vmul.f32 %v2831_v28, %v2594_v44  ;;  %v1179_v48 = vmul.f32 %v2834_v24, %v2586_v40  ;;  %v2868_v40 = vld [vmem:[%s2484_s14 + $0x40] sm:$0xff] }
 0x20c   : > { %1288 = vst [vmem:[%s2603_s15 + $0x18] sm:$0xf] %v1990_v20  ;;  %1287 = vst [vmem:[%s2603_s15 + $0x10] sm:$0xf] %v1989_v11  ;;  %v1210_v27 = vadd.f32 %v1194_v4, %v1178_v6  ;;  %v1209_v53 = vadd.f32 %v1193_v5, %v1177_v49  ;;  %v2857_v6 = vld [vmem:[%s2478_s11 + $0x48] sm:$0xff]  ;;  %v2860_v49 = vld [vmem:[%s2478_s11 + $0x40] sm:$0xff] }
 0x20d   : > { %v1164_v12 = vsel %vm1140_vm0, %v1148_v36, %v2739_v54  ;;  %v1163_v13 = vsel %vm1140_vm0, %v1147_v39, %v2741_v55  ;;  %v2865_v54 = vld [vmem:[%s2484_s14 + $0x48] sm:$0xff] }
 0x20e   : > { %v1127_v35 = vpop.permute.xlu1 %1126  ;;  %v1125_v7 = vpop.permute.xlu0 %1124  ;;  %v1992_v20 = vpack.c.bf16 %v1210_v27, %v1210_v27  ;;  %v1991_v11 = vpack.c.bf16 %v1209_v53, %v1209_v53  ;;  %v1196_v4 = vmul.f32 %v1164_v12, %v2839_v52  ;;  %v1195_v5 = vmul.f32 %v1163_v13, %v2842_v32 }
 0x20f   : > { %v1150_v44 = vsub.f32 0.0, %v1127_v35  ;;  %v1149_v36 = vsub.f32 0.0, %v1125_v7  ;;  %v1182_v27 = vmul.f32 %v2857_v6, %v2548_v21  ;;  %v1181_v53 = vmul.f32 %v2860_v49, %v2540_v17  ;;  %v2894_v17 = vld [vmem:[%s2484_s14 + $0x50] sm:$0xff] }
 0x210   : > { %1290 = vst [vmem:[%s2603_s15 + $0x28] sm:$0xf] %v1992_v20  ;;  %1289 = vst [vmem:[%s2603_s15 + $0x20] sm:$0xf] %v1991_v11  ;;  %v1212_v55 = vadd.f32 %v1196_v4, %v1180_v16  ;;  %v1211_v39 = vadd.f32 %v1195_v5, %v1179_v48  ;;  %v2883_v16 = vld [vmem:[%s2478_s11 + $0x58] sm:$0xff]  ;;  %v2886_v48 = vld [vmem:[%s2478_s11 + $0x50] sm:$0xff] }
 0x211   : > { %v1166_v12 = vsel %vm1140_vm0, %v1150_v44, %v2743_v56  ;;  %v1165_v13 = vsel %vm1140_vm0, %v1149_v36, %v2745_v57  ;;  %v2891_v56 = vld [vmem:[%s2484_s14 + $0x58] sm:$0xff] }
 0x212   : > { %v1131_v35 = vpop.permute.xlu1 %1130  ;;  %v1129_v7 = vpop.permute.xlu0 %1128  ;;  %v1994_v20 = vpack.c.bf16 %v1212_v55, %v1212_v55  ;;  %v1993_v11 = vpack.c.bf16 %v1211_v39, %v1211_v39  ;;  %v1198_v4 = vmul.f32 %v1166_v12, %v2865_v54  ;;  %v1197_v5 = vmul.f32 %v1165_v13, %v2868_v40 }
 0x213   : > { %v1152_v21 = vsub.f32 0.0, %v1131_v35  ;;  %v1151_v44 = vsub.f32 0.0, %v1129_v7  ;;  %v1184_v55 = vmul.f32 %v2883_v16, %v2564_v29  ;;  %v1183_v39 = vmul.f32 %v2886_v48, %v2556_v25  ;;  %v2920_v25 = vld [vmem:[%s2484_s14 + $0x60] sm:$0xff] }
 0x214   : > { %1292 = vst [vmem:[%s2603_s15 + $0x38] sm:$0xf] %v1994_v20  ;;  %1291 = vst [vmem:[%s2603_s15 + $0x30] sm:$0xf] %v1993_v11  ;;  %v1214_v57 = vadd.f32 %v1198_v4, %v1182_v27  ;;  %v1213_v36 = vadd.f32 %v1197_v5, %v1181_v53  ;;  %v2909_v27 = vld [vmem:[%s2478_s11 + $0x68] sm:$0xff]  ;;  %v2912_v53 = vld [vmem:[%s2478_s11 + $0x60] sm:$0xff] }
 0x215   : > { %v1168_v12 = vsel %vm1140_vm0, %v1152_v21, %v2747_v58  ;;  %v1167_v13 = vsel %vm1140_vm0, %v1151_v44, %v2749_v59  ;;  %3244 = vst [vmem:[#allocation28_spill] sm:$0xff] %v2912_v53  ;;  %v2917_v58 = vld [vmem:[%s2484_s14 + $0x68] sm:$0xff] }
 0x216   : > { %v1135_v35 = vpop.permute.xlu1 %1134  ;;  %v1133_v7 = vpop.permute.xlu0 %1132  ;;  %v1996_v20 = vpack.c.bf16 %v1214_v57, %v1214_v57  ;;  %v1995_v11 = vpack.c.bf16 %v1213_v36, %v1213_v36  ;;  %v1200_v4 = vmul.f32 %v1168_v12, %v2891_v56  ;;  %v1199_v5 = vmul.f32 %v1167_v13, %v2894_v17 }
 0x217   : > { %v1154_v29 = vsub.f32 0.0, %v1135_v35  ;;  %v1153_v21 = vsub.f32 0.0, %v1133_v7  ;;  %v1186_v57 = vmul.f32 %v2909_v27, %v2580_v37  ;;  %v1185_v36 = vmul.f32 %v2912_v53, %v2572_v33  ;;  %v2943_v53 = vld [vmem:[%s2484_s14 + $0x78] sm:$0xff] }
 0x218   : > { %1294 = vst [vmem:[%s2603_s15 + $0x48] sm:$0xf] %v1996_v20  ;;  %1293 = vst [vmem:[%s2603_s15 + $0x40] sm:$0xf] %v1995_v11  ;;  %v1216_v59 = vadd.f32 %v1200_v4, %v1184_v55  ;;  %v1215_v44 = vadd.f32 %v1199_v5, %v1183_v39  ;;  %v2935_v55 = vld [vmem:[%s2478_s11 + $0x78] sm:$0xff]  ;;  %v2938_v39 = vld [vmem:[%s2478_s11 + $0x70] sm:$0xff] }
 0x219   : > { %v1170_v12 = vsel %vm1140_vm0, %v1154_v29, %v2751_v60  ;;  %v1169_v13 = vsel %vm1140_vm0, %v1153_v21, %v2753_v61  ;;  %3245 = vst [vmem:[#allocation29_spill] sm:$0xff] %v2935_v55  ;;  %3246 = vst [vmem:[#allocation30_spill] sm:$0xff] %v2938_v39  ;;  %v2946_v29 = vld [vmem:[%s2484_s14 + $0x70] sm:$0xff]  ;;  %v1188_v21 = vmul.f32 %v2935_v55, %v2596_v45 }
 0x21a   : > { %v1139_v35 = vpop.permute.xlu1 %1138  ;;  %v1137_v7 = vpop.permute.xlu0 %1136  ;;  %v1998_v20 = vpack.c.bf16 %v1216_v59, %v1216_v59  ;;  %v1997_v11 = vpack.c.bf16 %v1215_v44, %v1215_v44  ;;  %v1202_v4 = vmul.f32 %v1170_v12, %v2917_v58  ;;  %v1201_v5 = vmul.f32 %v1169_v13, %v2920_v25  ;;  %3247 = vst [vmem:[#allocation31_spill] sm:$0xff] %v2943_v53 }
 0x21b   : > { %v1156_v37 = vsub.f32 0.0, %v1139_v35  ;;  %v1155_v33 = vsub.f32 0.0, %v1137_v7  ;;  %3248 = vst [vmem:[#allocation32_spill] sm:$0xff] %v2946_v29  ;;  %v1187_v59 = vmul.f32 %v2938_v39, %v2588_v41 }
 0x21c   : > { %1296 = vst [vmem:[%s2603_s15 + $0x58] sm:$0xf] %v1998_v20  ;;  %1295 = vst [vmem:[%s2603_s15 + $0x50] sm:$0xf] %v1997_v11  ;;  %v1218_v60 = vadd.f32 %v1202_v4, %v1186_v57  ;;  %v1217_v61 = vadd.f32 %v1201_v5, %v1185_v36 }
 0x21d   : > { %v1172_v44 = vsel %vm1140_vm0, %v1156_v37, %v2755_v63  ;;  %v1171_v12 = vsel %vm1140_vm0, %v1155_v33, %v2757_v0 }
 0x21e   : > { %v1336_v13 = vpop.permute.xlu1 %1335  ;;  %v1334_v35 = vpop.permute.xlu0 %1333  ;;  %v2000_v57 = vpack.c.bf16 %v1218_v60, %v1218_v60  ;;  %v1999_v36 = vpack.c.bf16 %v1217_v61, %v1217_v61  ;;  %v1204_v7 = vmul.f32 %v1172_v44, %v2943_v53  ;;  %v1203_v20 = vmul.f32 %v1171_v12, %v2946_v29 }
 0x220   : > { %1298 = vst [vmem:[%s2603_s15 + $0x68] sm:$0xf] %v2000_v57  ;;  %1297 = vst [vmem:[%s2603_s15 + $0x60] sm:$0xf] %v1999_v36  ;;  %v1220_v11 = vadd.f32 %v1204_v7, %v1188_v21  ;;  %v1219_v4 = vadd.f32 %v1203_v20, %v1187_v59  ;;  %v1365_v7 = vsub.f32 0.0, %v1334_v35 }
 0x222   : > { %v1340_v5 = vpop.permute.xlu1 %1339  ;;  %v1338_v37 = vpop.permute.xlu0 %1337  ;;  %v2002_v63 = vpack.c.bf16 %v1220_v11, %v1220_v11  ;;  %v2001_v45 = vpack.c.bf16 %v1219_v4, %v1219_v4  ;;  %v1398_v11 = vmul.f32 %v2762_v2, %v2550_v22 }
 0x223   : > { %v1367_v35 = vsub.f32 0.0, %v1338_v37 }
 0x224   : > { %1300 = vst [vmem:[%s2603_s15 + $0x78] sm:$0xf] %v2002_v63  ;;  %1299 = vst [vmem:[%s2603_s15 + $0x70] sm:$0xf] %v2001_v45  ;;  %v1366_v45 = vsub.f32 0.0, %v1336_v13  ;;  %v1397_v63 = vmul.f32 %v2765_v3, %v2542_v18  ;;  %v1368_v13 = vsub.f32 0.0, %v1340_v5  ;;  %v1400_v3 = vmul.f32 %v2783_v14, %v2566_v30 }
 0x226   : > { %v1344_v33 = vpop.permute.xlu1 %1343  ;;  %v1342_v0 = vpop.permute.xlu0 %1341 }
 0x227   : > { %v1370_v5 = vsub.f32 0.0, %v1344_v33  ;;  %v1369_v37 = vsub.f32 0.0, %v1342_v0 }
 0x22a   : > { %v1348_v41 = vpop.permute.xlu1 %1347  ;;  %v1346_v39 = vpop.permute.xlu0 %1345 }
 0x22e   : > { %v2966_v60 = vpop.permute.xlu1 %1351  ;;  %v2968_v61 = vpop.permute.xlu0 %1349 }
 0x232   : > { %v2970_v44 = vpop.permute.xlu1 %1355  ;;  %v2972_v12 = vpop.permute.xlu0 %1353 }
 0x236   : > { %v2974_v21 = vpop.permute.xlu1 %1359  ;;  %v2976_v59 = vpop.permute.xlu0 %1357 }
 0x23a   : > { %v2978_v57 = vpop.permute.xlu1 %1363  ;;  %v2980_v36 = vpop.permute.xlu0 %1361 }
 0x23b   : > { %3249 = vst [vmem:[#allocation33_spill] sm:$0xff] %v2978_v57  ;;  %3250 = vst [vmem:[#allocation34_spill] sm:$0xff] %v2980_v36 }
 0x23e   : > { %v1304_v20 = vpop.permute.xlu1 %1303  ;;  %v1302_v4 = vpop.permute.xlu0 %1301 }
 0x23f   : > { %v1382_v29 = vsel %vm1140_vm0, %v1366_v45, %v1304_v20  ;;  %v1381_v53 = vsel %vm1140_vm0, %v1365_v7, %v1302_v4  ;;  %v1399_v45 = vmul.f32 %v2786_v15, %v2558_v26  ;;  %v1372_v4 = vsub.f32 0.0, %v1348_v41 }
 0x240   : > { %v1414_v55 = vmul.f32 %v1382_v29, %v2769_v8  ;;  %v1413_v36 = vmul.f32 %v1381_v53, %v2772_v9 }
 0x242   : > { %v1430_v57 = vadd.f32 %v1414_v55, %v1398_v11  ;;  %v1429_v2 = vadd.f32 %v1413_v36, %v1397_v63  ;;  %v1308_v22 = vpop.permute.xlu1 %1307  ;;  %v1306_v18 = vpop.permute.xlu0 %1305  ;;  %v1371_v63 = vsub.f32 0.0, %v1346_v39 }
 0x243   : > { %v1384_v7 = vsel %vm1140_vm0, %v1368_v13, %v1308_v22  ;;  %v1383_v8 = vsel %vm1140_vm0, %v1367_v35, %v1306_v18  ;;  %v1402_v22 = vmul.f32 %v2805_v62, %v2582_v38  ;;  %v1401_v18 = vmul.f32 %v2808_v10, %v2574_v34 }
 0x244   : > { %v2004_v9 = vpack.c.bf16 %v1430_v57, %v1430_v57  ;;  %v2003_v53 = vpack.c.bf16 %v1429_v2, %v1429_v2  ;;  %v1416_v29 = vmul.f32 %v1384_v7, %v2791_v47  ;;  %v1415_v55 = vmul.f32 %v1383_v8, %v2794_v51 }
 0x245   : > { %v1404_v35 = vmul.f32 %v2831_v28, %v2598_v46  ;;  %v1374_v8 = vsub.f32 0.0, %v2966_v60  ;;  %v1373_v28 = vsub.f32 0.0, %v2968_v61 }
 0x246   : > { %1510 = vst [vmem:[%s2603_s15 + $0xc] sm:$0xf] %v2004_v9  ;;  %1509 = vst [vmem:[%s2603_s15 + $0x4] sm:$0xf] %v2003_v53  ;;  %v1432_v14 = vadd.f32 %v1416_v29, %v1400_v3  ;;  %v1431_v15 = vadd.f32 %v1415_v55, %v1399_v45  ;;  %v1312_v36 = vpop.permute.xlu1 %1311  ;;  %v1310_v20 = vpop.permute.xlu0 %1309  ;;  %v1403_v3 = vmul.f32 %v2834_v24, %v2590_v42 }
 0x247   : > { %v1386_v47 = vsel %vm1140_vm0, %v1370_v5, %v1312_v36  ;;  %v1385_v51 = vsel %vm1140_vm0, %v1369_v37, %v1310_v20  ;;  %v1406_v29 = vmul.f32 %v2857_v6, %v2552_v23  ;;  %v1375_v6 = vsub.f32 0.0, %v2972_v12 }
 0x248   : > { %v2006_v33 = vpack.c.bf16 %v1432_v14, %v1432_v14  ;;  %v2005_v0 = vpack.c.bf16 %v1431_v15, %v1431_v15  ;;  %v1418_v57 = vmul.f32 %v1386_v47, %v2813_v43  ;;  %v1417_v11 = vmul.f32 %v1385_v51, %v2816_v50  ;;  %v3251_v47 = vld [vmem:[#allocation13_spill] sm:$0xff] }
 0x249   : > { %v1376_v15 = vsub.f32 0.0, %v2970_v44  ;;  %v1408_v20 = vmul.f32 %v2883_v16, %v2568_v31  ;;  %v1377_v16 = vsub.f32 0.0, %v2976_v59 }
 0x24a   : > { %1512 = vst [vmem:[%s2603_s15 + $0x1c] sm:$0xf] %v2006_v33  ;;  %1511 = vst [vmem:[%s2603_s15 + $0x14] sm:$0xf] %v2005_v0  ;;  %v1434_v62 = vadd.f32 %v1418_v57, %v1402_v22  ;;  %v1433_v10 = vadd.f32 %v1417_v11, %v1401_v18  ;;  %v1316_v13 = vpop.permute.xlu1 %1315  ;;  %v1314_v2 = vpop.permute.xlu0 %1313  ;;  %v1378_v57 = vsub.f32 0.0, %v2974_v21 }
 0x24b   : > { %v1388_v43 = vsel %vm1140_vm0, %v1372_v4, %v1316_v13  ;;  %v1387_v41 = vsel %vm1140_vm0, %v1371_v63, %v1314_v2  ;;  %v3252_v63 = vld [vmem:[#allocation21_spill] sm:$0xff]  ;;  %v3253_v13 = vld [vmem:[#allocation18_spill] sm:$0xff] }
 0x24c   : > { %v2008_v50 = vpack.c.bf16 %v1434_v62, %v1434_v62  ;;  %v2007_v39 = vpack.c.bf16 %v1433_v10, %v1433_v10  ;;  %v1420_v45 = vmul.f32 %v1388_v43, %v2839_v52  ;;  %v1419_v7 = vmul.f32 %v1387_v41, %v2842_v32  ;;  %v3255_v41 = vld [vmem:[#allocation33_spill] sm:$0xff] }
 0x24d   : > { %v1405_v52 = vmul.f32 %v2860_v49, %v2544_v19  ;;  %v1410_v62 = vmul.f32 %v2909_v27, %v3252_v63 }
 0x24e   : > { %1514 = vst [vmem:[%s2603_s15 + $0x2c] sm:$0xf] %v2008_v50  ;;  %1513 = vst [vmem:[%s2603_s15 + $0x24] sm:$0xf] %v2007_v39  ;;  %v1436_v24 = vadd.f32 %v1420_v45, %v1404_v35  ;;  %v1435_v9 = vadd.f32 %v1419_v7, %v1403_v3  ;;  %v1320_v53 = vpop.permute.xlu1 %1319  ;;  %v1318_v55 = vpop.permute.xlu0 %1317  ;;  %v3254_v35 = vld [vmem:[#allocation28_spill] sm:$0xff]  ;;  %v1380_v50 = vsub.f32 0.0, %v3255_v41 }
 0x24f   : > { %v1390_v32 = vsel %vm1140_vm0, %v1374_v8, %v1320_v53  ;;  %v1389_v60 = vsel %vm1140_vm0, %v1373_v28, %v1318_v55  ;;  %v3256_v39 = vld [vmem:[#allocation34_spill] sm:$0xff]  ;;  %v3257_v28 = vld [vmem:[#allocation27_spill] sm:$0xff] }
 0x250   : > { %v2010_v61 = vpack.c.bf16 %v1436_v24, %v1436_v24  ;;  %v2009_v5 = vpack.c.bf16 %v1435_v9, %v1435_v9  ;;  %v1422_v37 = vmul.f32 %v1390_v32, %v2865_v54  ;;  %v1421_v14 = vmul.f32 %v1389_v60, %v2868_v40  ;;  %v3258_v24 = vld [vmem:[#allocation29_spill] sm:$0xff] }
 0x251   : > { %v1407_v54 = vmul.f32 %v2886_v48, %v3251_v47  ;;  %v1379_v27 = vsub.f32 0.0, %v3256_v39  ;;  %v1412_v9 = vmul.f32 %v3258_v24, %v3257_v28 }
 0x252   : > { %1516 = vst [vmem:[%s2603_s15 + $0x3c] sm:$0xf] %v2010_v61  ;;  %1515 = vst [vmem:[%s2603_s15 + $0x34] sm:$0xf] %v2009_v5  ;;  %v1438_v49 = vadd.f32 %v1422_v37, %v1406_v29  ;;  %v1437_v36 = vadd.f32 %v1421_v14, %v1405_v52  ;;  %v1324_v22 = vpop.permute.xlu1 %1323  ;;  %v1322_v18 = vpop.permute.xlu0 %1321  ;;  %v3260_v29 = vld [vmem:[#allocation30_spill] sm:$0xff]  ;;  %v3261_v61 = vld [vmem:[#allocation31_spill] sm:$0xff] }
 0x253   : > { %v1392_v40 = vsel %vm1140_vm0, %v1376_v15, %v1324_v22  ;;  %v1391_v44 = vsel %vm1140_vm0, %v1375_v6, %v1322_v18  ;;  %v3262_v37 = vld [vmem:[#allocation32_spill] sm:$0xff] }
 0x254   : > { %v2012_v12 = vpack.c.bf16 %v1438_v49, %v1438_v49  ;;  %v2011_v51 = vpack.c.bf16 %v1437_v36, %v1437_v36  ;;  %v1424_v33 = vmul.f32 %v1392_v40, %v2891_v56  ;;  %v1423_v0 = vmul.f32 %v1391_v44, %v2894_v17 }
 0x255   : > { %v1409_v56 = vmul.f32 %v3254_v35, %v3253_v13 }
 0x256   : > { %1518 = vst [vmem:[%s2603_s15 + $0x4c] sm:$0xf] %v2012_v12  ;;  %1517 = vst [vmem:[%s2603_s15 + $0x44] sm:$0xf] %v2011_v51  ;;  %v1440_v48 = vadd.f32 %v1424_v33, %v1408_v20  ;;  %v1439_v11 = vadd.f32 %v1423_v0, %v1407_v54  ;;  %v1328_v4 = vpop.permute.xlu1 %1327  ;;  %v1326_v10 = vpop.permute.xlu0 %1325 }
 0x257   : > { %v1394_v17 = vsel %vm1140_vm0, %v1378_v57, %v1328_v4  ;;  %v1393_v21 = vsel %vm1140_vm0, %v1377_v16, %v1326_v10 }
 0x258   : > { %v2014_v59 = vpack.c.bf16 %v1440_v48, %v1440_v48  ;;  %v2013_v2 = vpack.c.bf16 %v1439_v11, %v1439_v11  ;;  %v1426_v3 = vmul.f32 %v1394_v17, %v2917_v58  ;;  %v1425_v43 = vmul.f32 %v1393_v21, %v2920_v25  ;;  %v3259_v58 = vld [vmem:[#allocation24_spill] sm:$0xff] }
 0x259   : > { %v1411_v25 = vmul.f32 %v3260_v29, %v3259_v58 }
 0x25a   : > { %1520 = vst [vmem:[%s2603_s15 + $0x5c] sm:$0xf] %v2014_v59  ;;  %1519 = vst [vmem:[%s2603_s15 + $0x54] sm:$0xf] %v2013_v2  ;;  %v1442_v45 = vadd.f32 %v1426_v3, %v1410_v62  ;;  %v1441_v7 = vadd.f32 %v1425_v43, %v1409_v56  ;;  %v1332_v8 = vpop.permute.xlu1 %1331  ;;  %v1330_v53 = vpop.permute.xlu0 %1329 }
 0x25b   : > { %v1396_v55 = vsel %vm1140_vm0, %v1380_v50, %v1332_v8  ;;  %v1395_v52 = vsel %vm1140_vm0, %v1379_v27, %v1330_v53 }
 0x25c   : > { %v2016_v32 = vpack.c.bf16 %v1442_v45, %v1442_v45  ;;  %v2015_v60 = vpack.c.bf16 %v1441_v7, %v1441_v7  ;;  %v1428_v5 = vmul.f32 %v1396_v55, %v3261_v61  ;;  %v1427_v14 = vmul.f32 %v1395_v52, %v3262_v37 }
 0x25e   : > { %1522 = vst [vmem:[%s2603_s15 + $0x6c] sm:$0xf] %v2016_v32  ;;  %1521 = vst [vmem:[%s2603_s15 + $0x64] sm:$0xf] %v2015_v60  ;;  %v1444_v15 = vadd.f32 %v1428_v5, %v1412_v9  ;;  %v1443_v6 = vadd.f32 %v1427_v14, %v1411_v25 }
 0x260   : > { %v2018_v49 = vpack.c.bf16 %v1444_v15, %v1444_v15  ;;  %v2017_v36 = vpack.c.bf16 %v1443_v6, %v1443_v6 }
 0x262   : > { %1524 = vst [vmem:[%s2603_s15 + $0x7c] sm:$0xf] %v2018_v49  ;;  %1523 = vst [vmem:[%s2603_s15 + $0x74] sm:$0xf] %v2017_v36 }
 0x263 PF: > { %1527 = sbr.rel (%p2534_p3) target bundleno = 623 (0x26f), region = 90  ;;  %v3263_v1 = vld [vmem:[#allocation5_spill] sm:$0xff] (!%p2534_p3)  ;;  %v3264_v22 = vld [vmem:[#allocation7_spill] sm:$0xff] (!%p2534_p3)  ;;  %v3265_v18 = vld [vmem:[#allocation8_spill] sm:$0xff] (!%p2534_p3) }
 0x264   : > { %v2019_v20 = vpack.c.bf16 (!%p2534_p3), %v3264_v22, %v3263_v1  ;;  %v3266_v47 = vld [vmem:[#allocation10_spill] sm:$0xff] (!%p2534_p3)  ;;  %v3267_v40 = vld [vmem:[#allocation11_spill] sm:$0xff] (!%p2534_p3)  ;;  %v3269_v33 = vld [vmem:[#allocation16_spill] sm:$0xff] (!%p2534_p3) }
 0x265   : > { %v2020_v54 = vpack.c.bf16 (!%p2534_p3), %v3266_v47, %v3265_v18  ;;  %v2021_v44 = vpack.c.bf16 (!%p2534_p3), %v2558_v26, %v3267_v40  ;;  %v3268_v12 = vld [vmem:[#allocation14_spill] sm:$0xff] (!%p2534_p3)  ;;  %v2023_v0 = vpack.c.bf16 (!%p2534_p3), %v2574_v34, %v3269_v33  ;;  %v3270_v57 = vld [vmem:[#allocation19_spill] sm:$0xff] (!%p2534_p3)  ;;  %v3274_v34 = vld [vmem:[#allocation9_spill] sm:$0xff] (!%p2534_p3) }
 0x266   : > { %v2022_v51 = vpack.c.bf16 (!%p2534_p3), %v2566_v30, %v3268_v12  ;;  %v2024_v16 = vpack.c.bf16 (!%p2534_p3), %v2582_v38, %v3270_v57  ;;  %v3271_v48 = vld [vmem:[#allocation22_spill] sm:$0xff] (!%p2534_p3)  ;;  %1624 = vst [vmem:[%s2603_s15] sm:$0xff] (!%p2534_p3), %v2019_v20  ;;  %v2028_v38 = vpack.c.bf16 (!%p2534_p3), %v2552_v23, %v3274_v34  ;;  %v3275_v62 = vld [vmem:[#allocation12_spill] sm:$0xff] (!%p2534_p3)  ;;  %v3278_v35 = vld [vmem:[#allocation17_spill] sm:$0xff] (!%p2534_p3) }
 0x267   : > { %v2025_v11 = vpack.c.bf16 (!%p2534_p3), %v2590_v42, %v3271_v48  ;;  %1625 = vst [vmem:[%s2603_s15 + $0x8] sm:$0xff] (!%p2534_p3), %v2020_v54  ;;  %1626 = vst [vmem:[%s2603_s15 + $0x10] sm:$0xff] (!%p2534_p3), %v2021_v44  ;;  %v3273_v26 = vld [vmem:[#allocation6_spill] sm:$0xff] (!%p2534_p3)  ;;  %v3276_v42 = vld [vmem:[#allocation13_spill] sm:$0xff] (!%p2534_p3) }
 0x268   : > { %v3272_v4 = vld [vmem:[#allocation25_spill] sm:$0xff] (!%p2534_p3)  ;;  %1627 = vst [vmem:[%s2603_s15 + $0x18] sm:$0xff] (!%p2534_p3), %v2022_v51  ;;  %v2027_v30 = vpack.c.bf16 (!%p2534_p3), %v2544_v19, %v3273_v26  ;;  %v2029_v10 = vpack.c.bf16 (!%p2534_p3), %v3276_v42, %v3275_v62  ;;  %1628 = vst [vmem:[%s2603_s15 + $0x20] sm:$0xff] (!%p2534_p3), %v2023_v0  ;;  %v3279_v56 = vld [vmem:[#allocation18_spill] sm:$0xff] (!%p2534_p3) }
 0x269   : > { %v2026_v63 = vpack.c.bf16 (!%p2534_p3), %v2598_v46, %v3272_v4  ;;  %v3277_v46 = vld [vmem:[#allocation15_spill] sm:$0xff] (!%p2534_p3)  ;;  %1629 = vst [vmem:[%s2603_s15 + $0x28] sm:$0xff] (!%p2534_p3), %v2024_v16  ;;  %1630 = vst [vmem:[%s2603_s15 + $0x30] sm:$0xff] (!%p2534_p3), %v2025_v11  ;;  %v2031_v19 = vpack.c.bf16 (!%p2534_p3), %v3279_v56, %v3278_v35  ;;  %v3280_v17 = vld [vmem:[#allocation20_spill] sm:$0xff] (!%p2534_p3) }
 0x26a   : > { %v2030_v13 = vpack.c.bf16 %v2568_v31, %v3277_v46  ;;  %v3281_v21 = vld [vmem:[#allocation21_spill] sm:$0xff]  ;;  %v3282_v23 = vld [vmem:[#allocation23_spill] sm:$0xff]  ;;  %v3283_v2 = vld [vmem:[#allocation24_spill] sm:$0xff]  ;;  %1632 = vst [vmem:[%s2603_s15 + $0x40] sm:$0xff] %v2027_v30 }
 0x26b   : > { %1631 = vst [vmem:[%s2603_s15 + $0x38] sm:$0xff] %v2026_v63  ;;  %v2032_v59 = vpack.c.bf16 %v3281_v21, %v3280_v17  ;;  %v2033_v3 = vpack.c.bf16 %v3283_v2, %v3282_v23  ;;  %v3284_v43 = vld [vmem:[#allocation26_spill] sm:$0xff]  ;;  %v3285_v41 = vld [vmem:[#allocation27_spill] sm:$0xff]  ;;  %1633 = vst [vmem:[%s2603_s15 + $0x48] sm:$0xff] %v2028_v38 }
 0x26c   : > { %v2034_v50 = vpack.c.bf16 %v3285_v41, %v3284_v43  ;;  %1634 = vst [vmem:[%s2603_s15 + $0x50] sm:$0xff] %v2029_v10  ;;  %1635 = vst [vmem:[%s2603_s15 + $0x58] sm:$0xff] %v2030_v13 }
 0x26d   : > { %1636 = vst [vmem:[%s2603_s15 + $0x60] sm:$0xff] %v2031_v19  ;;  %1637 = vst [vmem:[%s2603_s15 + $0x68] sm:$0xff] %v2032_v59 }
 0x26e   : > { %1638 = vst [vmem:[%s2603_s15 + $0x70] sm:$0xff] %v2033_v3  ;;  %1639 = vst [vmem:[%s2603_s15 + $0x78] sm:$0xff] %v2034_v50 }
 0x26f PF: > { %1646 = sbr.rel (!%p2380_p9) target bundleno = 638 (0x27e), region = 94  ;;  %s1980_s10 = sshll.u32 (%p2380_p9), %s2268_s19, 1 }
 0x270   : > { %s2067_s11 = smul.u32 (%p2380_p9), 96, %s2272_s20 }
 0x272   : > { %v1710_v31 = vld [vmem:[%s2603_s15] sm:$0xff] (%p2380_p9)  ;;  %s1650_s7 = sadd.s32 (%p2380_p9), %s2067_s11, %s1980_s10  ;;  %v1724_v24 = vld [vmem:[%s2603_s15 + $0x38] sm:$0xff] (%p2380_p9)  ;;  %v1728_v53 = vld [vmem:[%s2603_s15 + $0x48] sm:$0xff] (%p2380_p9) }
 0x273   : > { %v1712_v39 = vld [vmem:[%s2603_s15 + $0x8] sm:$0xff] (%p2380_p9)  ;;  %v1714_v27 = vld [vmem:[%s2603_s15 + $0x10] sm:$0xff] (%p2380_p9)  ;;  %s1982_s12 = sshll.u32 (%p2380_p9), %s1650_s7, 2  ;;  %v1732_v29 = vld [vmem:[%s2603_s15 + $0x58] sm:$0xff] (%p2380_p9) }
 0x274   : > { %v1716_v45 = vld [vmem:[%s2603_s15 + $0x18] sm:$0xff] (%p2380_p9)  ;;  %v1718_v7 = vld [vmem:[%s2603_s15 + $0x20] sm:$0xff] (%p2380_p9)  ;;  %v1730_v58 = vld [vmem:[%s2603_s15 + $0x50] sm:$0xff] (%p2380_p9)  ;;  %s1652_s20 = scalar_lea.vmem (%p2380_p9), %s3190_s4, %s1982_s12 }
 0x275   : > { %v1720_v8 = vld [vmem:[%s2603_s15 + $0x28] sm:$0xff] (%p2380_p9)  ;;  %v1722_v28 = vld [vmem:[%s2603_s15 + $0x30] sm:$0xff] (%p2380_p9)  ;;  %v1734_v25 = vld [vmem:[%s2603_s15 + $0x60] sm:$0xff] (%p2380_p9)  ;;  %1711 = vst [vmem:[%s1652_s20] sm:$0xff] (%p2380_p9), %v1710_v31 }
 0x276   : > { %v1726_v9 = vld [vmem:[%s2603_s15 + $0x40] sm:$0xff]  ;;  %v1736_v55 = vld [vmem:[%s2603_s15 + $0x68] sm:$0xff]  ;;  %v1738_v52 = vld [vmem:[%s2603_s15 + $0x70] sm:$0xff]  ;;  %1713 = vst [vmem:[%s1652_s20 + $0x18] sm:$0xff] %v1712_v39 }
 0x277   : > { %1715 = vst [vmem:[%s1652_s20 + $0x30] sm:$0xff] %v1714_v27  ;;  %1717 = vst [vmem:[%s1652_s20 + $0x48] sm:$0xff] %v1716_v45  ;;  %v1740_v32 = vld [vmem:[%s2603_s15 + $0x78] sm:$0xff] }
 0x278   : > { %1719 = vst [vmem:[%s1652_s20 + $0x60] sm:$0xff] %v1718_v7  ;;  %1721 = vst [vmem:[%s1652_s20 + $0x78] sm:$0xff] %v1720_v8 }
 0x279   : > { %1723 = vst [vmem:[%s1652_s20 + $0x90] sm:$0xff] %v1722_v28  ;;  %1725 = vst [vmem:[%s1652_s20 + $0xa8] sm:$0xff] %v1724_v24 }
 0x27a   : > { %1727 = vst [vmem:[%s1652_s20 + $0xc0] sm:$0xff] %v1726_v9  ;;  %1729 = vst [vmem:[%s1652_s20 + $0xd8] sm:$0xff] %v1728_v53 }
 0x27b   : > { %1731 = vst [vmem:[%s1652_s20 + $0xf0] sm:$0xff] %v1730_v58  ;;  %1733 = vst [vmem:[%s1652_s20 + $0x108] sm:$0xff] %v1732_v29 }
 0x27c   : > { %1735 = vst [vmem:[%s1652_s20 + $0x120] sm:$0xff] %v1734_v25  ;;  %1737 = vst [vmem:[%s1652_s20 + $0x138] sm:$0xff] %v1736_v55 }
 0x27d   : > { %1739 = vst [vmem:[%s1652_s20 + $0x150] sm:$0xff] %v1738_v52  ;;  %1741 = vst [vmem:[%s1652_s20 + $0x168] sm:$0xff] %v1740_v32 }
 0x27e PF: > { %s14_s23 = sadd.s32 1, %s2284_s23   ;;  %s3286_s15 = smov %s2256_s16 }
 0x27f   : > { %p11_p4 = scmp.ge.s32.totalorder %s14_s23, 8   ;;  %s3287_s16 = smov %s2385_s8 }
 0x280   : > { %s3288_s17 = smov %s2264_s18  ;;  %s3289_s18 = smov %s2374_s30 }
 0x281   : > { %s3290_s19 = smov %s2276_s21  ;;  %s3291_s20 = smov %s2280_s22 }
 0x282   : > { %s3292_s21 = smov %s3295_s25  ;;  %s3293_s22 = smov %s3299_s26 }
 0x283   :  { %13 = sbr.rel (!%p11_p4) target bundleno = 5 (0x5), region = 172 }

// kernel: flash_gptj_attention_forward.4
= control target key start
LH: loop header
LB: loop body
LE: loop exit
PB: predicated region body
PF: predicated region fallthrough
CT: control target
= control target key end

     0   :  { %s8117_s0 = inlined_call_operand.vmem [shape: s32[3], index: 0, kind: input, shape index: {}]   ;;  %s8118_s2 = inlined_call_operand.vmem [shape: bf16[256,768], index: 2, kind: input, shape index: {}, may-alias: {2,3}]   ;;  %s8119_s3 = inlined_call_operand.vmem [shape: bf16[256,768], index: 3, kind: input, shape index: {}, may-alias: {2,3}]   ;;  %s8120_s4 = inlined_call_operand.vmem [shape: bf16[256,256], index: 4, kind: output, shape index: {}]   ;;  %s8121_s1 = inlined_call_operand.vmem [shape: s32[3], index: 1, kind: input, shape index: {}]  }
   0x1   :  { %s9_s17 = sshll.u32 %s8117_s0, 4  ;;  %s13_s20 = sshll.u32 %s8121_s1, 4  ;;  %s10_s17 = int_to_ptr.vmem [resolvable:$true] %s9_s17  ;;  %s14_s20 = int_to_ptr.vmem [resolvable:$true] %s13_s20 }
   0x2   :  { %s5703_s21 = scalar_lea.vmem %s10_s17, 16  ;;  %p5708_p1 = scmp.lt.s32.totalorder %s10_s17, %s10_s17 }
   0x3   :  { %p5704_p0 = scmp.ne.s32.totalorder %s10_s17, %s5703_s21  ;;  %p5709_p2 = scmp.lt.s32.totalorder %s5703_s21, %s5703_s21 }
   0x5   :  { %p5710_p3 = por %p5709_p2, %p5708_p1 }
   0x7   :  { %p5711_p4 = pnand %p5710_p3, %p5704_p0 }
   0x9   :  { %5714 = shalt.err (!%p5711_p4)  }
   0xa   :  { %s5769_s22 = smov [#allocation6]   ;;  %s5715_s23 = scalar_lea.vmem %s14_s20, 16 }
   0xb   :  { %12 = dma.vmem_to_smem %s10_s17, 16, %s5769_s22, [#allocation5] }
   0xc   :  { %p5716_p5 = scmp.ne.s32.totalorder %s14_s20, %s5715_s23  ;;  %p5720_p6 = scmp.lt.s32.totalorder %s14_s20, %s14_s20 }
   0xd   :  { %p5721_p7 = scmp.lt.s32.totalorder %s5715_s23, %s5715_s23 }
   0xf   :  { %p5722_p8 = por %p5721_p7, %p5720_p6 }
  0x11   :  { %p5723_p9 = pnand %p5722_p8, %p5716_p5 }
  0x13   :  { %5726 = shalt.err (!%p5723_p9)  }
  0x14   :  { %s5770_s0 = smov [#allocation7]  }
  0x15   :  { %16 = dma.vmem_to_smem %s14_s20, 16, %s5770_s0, [#allocation5] }
  0x16   :  { %5747 = dma.done.wait [#allocation5], 32 }
  0x17   :  { %5748 = vsyncadd [#allocation5], 4294967264 }
  0x18   :  { %18 = sfence }
  0x19   :  { %s5806_s1 = smov 0   ;;  %s5808_s24 = smov 0  }
  0x1a   :  { %s5810_s25 = smov 0   ;;  %s5812_s26 = smov 0  }
  0x1b   :  { %s5814_s27 = smov 0  }
  0x1c LB: > { %s5832_s28 = sadd.s32 4294967295, %s5767_s27   ;;  %s5835_s29 = sadd.s32 1, %s5767_s27   ;;  %s5767_s27 = sphi %s5814_s27, %s8357_s27   ;;  %s5763_s26 = sphi %s5812_s26, %s8356_s26   ;;  %s5759_s25 = sphi %s5810_s25, %s8355_s25   ;;  %s5755_s24 = sphi %s5808_s24, %s8354_s24   ;;  %s5751_s1 = sphi %s5806_s1, %s8353_s1  }
  0x1d   : > { %s28_s30 = sld [smem:[#allocation7 + %s5767_s27]]  ;;  %p40_p10 = scmp.ne.s32.totalorder %s5763_s26, %s5759_s25 }
  0x1e   : > { %s29_s5 = sld [smem:[#allocation7 + %s5835_s29]]  ;;  %p41_p11 = scmp.eq.s32.totalorder %s5767_s27, 0 }
  0x1f   : > { %s56_s6 = sld [smem:[#allocation6 + %s5767_s27]]  ;;  %p68_p13 = scmp.ne.s32.totalorder %s5755_s24, %s5751_s1 }
  0x20   : > { %s57_s7 = sld [smem:[#allocation6 + %s5835_s29]]  ;;  %p42_p12 = por %p41_p11, %p40_p10 }
  0x21   : > { %s33_s8 = sadd.s32 1, %s5763_s26  ;;  %p5847_p0 = por %p68_p13, %p41_p11 }
  0x22   : > { %s61_s13 = sadd.s32 1, %s5755_s24  ;;  %p4657_p3 = scmp.ge.s32.totalorder %s5767_s27, 3 }
  0x24   : > { %s30_s9 = ssub.s32 %s28_s30, %s29_s5  ;;  %122 = sbr.rel (%p4657_p3) target bundleno = 87 (0x57), region = 16 }
  0x25   : > { %p31_p1 = scmp.eq.s32.totalorder %s30_s9, 0 }
  0x26   : > { %s58_s12 = ssub.s32 %s56_s6, %s57_s7 }
  0x27   : > { %s5852_s11 = scalar_select %p31_p1, %s5763_s26, %s33_s8  }
  0x28   : > { %p59_p2 = scmp.eq.s32.totalorder %s58_s12, 0 }
  0x2a   : > { %s5856_s14 = scalar_select %p59_p2, %s5755_s24, %s61_s13  }
  0x2b   : > { %125 = sbr.rel (!%p42_p12) target bundleno = 69 (0x45), region = 20  ;;  %s130_s15 = sld [smem:[#allocation7 + %s5767_s27]] (%p42_p12) }
  0x2c   : > { %s127_s16 = sand.u32 (%p42_p12), 1, %s5763_s26  }
  0x2d   : > { %s4658_s17 = sshll.u32 (%p42_p12), %s127_s16, 8 }
  0x2e   : > { %s5869_s22 = scalar_lea.vmem (%p42_p12), [#allocation8], %s4658_s17 }
  0x31   : > { %s5236_s18 = smul.u32 (%p42_p12), 384, %s130_s15 }
  0x33   : > { %s5864_s21 = scalar_lea.vmem %s8118_s2, %s5236_s18 }
  0x34   : > { %v147_v0 = vld [vmem:[%s5864_s21] sm:$0xff]  ;;  %v149_v1 = vld [vmem:[%s5864_s21 + $0x8] sm:$0xff]  ;;  %v151_v2 = vld [vmem:[%s5864_s21 + $0x18] sm:$0xff] }
  0x35   : > { %148 = vst [vmem:[%s5869_s22] sm:$0xff] %v147_v0  ;;  %150 = vst [vmem:[%s5869_s22 + $0x8] sm:$0xff] %v149_v1  ;;  %v153_v3 = vld [vmem:[%s5864_s21 + $0x20] sm:$0xff]  ;;  %v155_v4 = vld [vmem:[%s5864_s21 + $0x30] sm:$0xff] }
  0x36   : > { %152 = vst [vmem:[%s5869_s22 + $0x10] sm:$0xff] %v151_v2  ;;  %v157_v5 = vld [vmem:[%s5864_s21 + $0x38] sm:$0xff]  ;;  %154 = vst [vmem:[%s5869_s22 + $0x18] sm:$0xff] %v153_v3  ;;  %v159_v6 = vld [vmem:[%s5864_s21 + $0x48] sm:$0xff] }
  0x37   : > { %156 = vst [vmem:[%s5869_s22 + $0x20] sm:$0xff] %v155_v4  ;;  %158 = vst [vmem:[%s5869_s22 + $0x28] sm:$0xff] %v157_v5  ;;  %v161_v7 = vld [vmem:[%s5864_s21 + $0x50] sm:$0xff]  ;;  %v163_v8 = vld [vmem:[%s5864_s21 + $0x60] sm:$0xff] }
  0x38   : > { %160 = vst [vmem:[%s5869_s22 + $0x30] sm:$0xff] %v159_v6  ;;  %162 = vst [vmem:[%s5869_s22 + $0x38] sm:$0xff] %v161_v7  ;;  %v165_v9 = vld [vmem:[%s5864_s21 + $0x68] sm:$0xff]  ;;  %v167_v10 = vld [vmem:[%s5864_s21 + $0x78] sm:$0xff] }
  0x39   : > { %164 = vst [vmem:[%s5869_s22 + $0x40] sm:$0xff] %v163_v8  ;;  %v169_v11 = vld [vmem:[%s5864_s21 + $0x80] sm:$0xff]  ;;  %166 = vst [vmem:[%s5869_s22 + $0x48] sm:$0xff] %v165_v9  ;;  %v171_v12 = vld [vmem:[%s5864_s21 + $0x90] sm:$0xff] }
  0x3a   : > { %168 = vst [vmem:[%s5869_s22 + $0x50] sm:$0xff] %v167_v10  ;;  %170 = vst [vmem:[%s5869_s22 + $0x58] sm:$0xff] %v169_v11  ;;  %v173_v13 = vld [vmem:[%s5864_s21 + $0x98] sm:$0xff]  ;;  %v175_v14 = vld [vmem:[%s5864_s21 + $0xa8] sm:$0xff] }
  0x3b   : > { %172 = vst [vmem:[%s5869_s22 + $0x60] sm:$0xff] %v171_v12  ;;  %174 = vst [vmem:[%s5869_s22 + $0x68] sm:$0xff] %v173_v13  ;;  %v177_v15 = vld [vmem:[%s5864_s21 + $0xb0] sm:$0xff]  ;;  %v179_v16 = vld [vmem:[%s5864_s21 + $0xc0] sm:$0xff] }
  0x3c   : > { %176 = vst [vmem:[%s5869_s22 + $0x70] sm:$0xff] %v175_v14  ;;  %v181_v17 = vld [vmem:[%s5864_s21 + $0xc8] sm:$0xff]  ;;  %178 = vst [vmem:[%s5869_s22 + $0x78] sm:$0xff] %v177_v15  ;;  %v183_v18 = vld [vmem:[%s5864_s21 + $0xd8] sm:$0xff] }
  0x3d   : > { %180 = vst [vmem:[%s5869_s22 + $0x80] sm:$0xff] %v179_v16  ;;  %182 = vst [vmem:[%s5869_s22 + $0x88] sm:$0xff] %v181_v17  ;;  %v185_v19 = vld [vmem:[%s5864_s21 + $0xe0] sm:$0xff]  ;;  %v187_v20 = vld [vmem:[%s5864_s21 + $0xf0] sm:$0xff] }
  0x3e   : > { %184 = vst [vmem:[%s5869_s22 + $0x90] sm:$0xff] %v183_v18  ;;  %186 = vst [vmem:[%s5869_s22 + $0x98] sm:$0xff] %v185_v19  ;;  %v189_v21 = vld [vmem:[%s5864_s21 + $0xf8] sm:$0xff]  ;;  %v191_v22 = vld [vmem:[%s5864_s21 + $0x108] sm:$0xff] }
  0x3f   : > { %188 = vst [vmem:[%s5869_s22 + $0xa0] sm:$0xff] %v187_v20  ;;  %v193_v23 = vld [vmem:[%s5864_s21 + $0x110] sm:$0xff]  ;;  %190 = vst [vmem:[%s5869_s22 + $0xa8] sm:$0xff] %v189_v21  ;;  %v195_v24 = vld [vmem:[%s5864_s21 + $0x120] sm:$0xff] }
  0x40   : > { %192 = vst [vmem:[%s5869_s22 + $0xb0] sm:$0xff] %v191_v22  ;;  %194 = vst [vmem:[%s5869_s22 + $0xb8] sm:$0xff] %v193_v23  ;;  %v197_v25 = vld [vmem:[%s5864_s21 + $0x128] sm:$0xff]  ;;  %v199_v26 = vld [vmem:[%s5864_s21 + $0x138] sm:$0xff] }
  0x41   : > { %196 = vst [vmem:[%s5869_s22 + $0xc0] sm:$0xff] %v195_v24  ;;  %198 = vst [vmem:[%s5869_s22 + $0xc8] sm:$0xff] %v197_v25  ;;  %v201_v27 = vld [vmem:[%s5864_s21 + $0x140] sm:$0xff]  ;;  %v203_v28 = vld [vmem:[%s5864_s21 + $0x150] sm:$0xff] }
  0x42   : > { %200 = vst [vmem:[%s5869_s22 + $0xd0] sm:$0xff] %v199_v26  ;;  %v205_v29 = vld [vmem:[%s5864_s21 + $0x158] sm:$0xff]  ;;  %202 = vst [vmem:[%s5869_s22 + $0xd8] sm:$0xff] %v201_v27  ;;  %v207_v30 = vld [vmem:[%s5864_s21 + $0x168] sm:$0xff] }
  0x43   : > { %204 = vst [vmem:[%s5869_s22 + $0xe0] sm:$0xff] %v203_v28  ;;  %206 = vst [vmem:[%s5869_s22 + $0xe8] sm:$0xff] %v205_v29  ;;  %v209_v31 = vld [vmem:[%s5864_s21 + $0x170] sm:$0xff] }
  0x44   : > { %208 = vst [vmem:[%s5869_s22 + $0xf0] sm:$0xff] %v207_v30  ;;  %210 = vst [vmem:[%s5869_s22 + $0xf8] sm:$0xff] %v209_v31 }
  0x45 PF: > { %216 = sbr.rel (!%p5847_p0) target bundleno = 87 (0x57), region = 43  ;;  %s221_s23 = sld [smem:[#allocation6 + %s5767_s27]] (%p5847_p0) }
  0x46   : > { %s218_s0 = sand.u32 (%p5847_p0), 1, %s5755_s24  }
  0x47   : > { %s4662_s30 = sshll.u32 (%p5847_p0), %s218_s0, 7 }
  0x48   : > { %s220_s9 = scalar_lea.vmem (%p5847_p0), [#allocation9], %s4662_s30 }
  0x4b   : > { %s4663_s5 = smul.u32 (%p5847_p0), 384, %s221_s23 }
  0x4d   : > { %s5939_s8 = scalar_lea.vmem %s8119_s3, %s4663_s5 }
  0x4e   : > { %v4664_v32 = vld [vmem:[%s5939_s8 + $0x10] sm:$0xff]  ;;  %v4665_v33 = vld [vmem:[%s5939_s8 + $0x28] sm:$0xff]  ;;  %v4666_v34 = vld [vmem:[%s5939_s8 + $0x40] sm:$0xff] }
  0x4f   : > { %285 = vst [vmem:[%s220_s9] sm:$0xff] %v4664_v32  ;;  %287 = vst [vmem:[%s220_s9 + $0x8] sm:$0xff] %v4665_v33  ;;  %v4667_v35 = vld [vmem:[%s5939_s8 + $0x58] sm:$0xff]  ;;  %v4668_v36 = vld [vmem:[%s5939_s8 + $0x70] sm:$0xff] }
  0x50   : > { %289 = vst [vmem:[%s220_s9 + $0x10] sm:$0xff] %v4666_v34  ;;  %v4669_v37 = vld [vmem:[%s5939_s8 + $0x88] sm:$0xff]  ;;  %291 = vst [vmem:[%s220_s9 + $0x18] sm:$0xff] %v4667_v35  ;;  %v4670_v38 = vld [vmem:[%s5939_s8 + $0xa0] sm:$0xff] }
  0x51   : > { %293 = vst [vmem:[%s220_s9 + $0x20] sm:$0xff] %v4668_v36  ;;  %295 = vst [vmem:[%s220_s9 + $0x28] sm:$0xff] %v4669_v37  ;;  %v4671_v39 = vld [vmem:[%s5939_s8 + $0xb8] sm:$0xff]  ;;  %v4672_v40 = vld [vmem:[%s5939_s8 + $0xd0] sm:$0xff] }
  0x52   : > { %297 = vst [vmem:[%s220_s9 + $0x30] sm:$0xff] %v4670_v38  ;;  %299 = vst [vmem:[%s220_s9 + $0x38] sm:$0xff] %v4671_v39  ;;  %v4673_v41 = vld [vmem:[%s5939_s8 + $0xe8] sm:$0xff]  ;;  %v4674_v42 = vld [vmem:[%s5939_s8 + $0x100] sm:$0xff] }
  0x53   : > { %301 = vst [vmem:[%s220_s9 + $0x40] sm:$0xff] %v4672_v40  ;;  %v4675_v43 = vld [vmem:[%s5939_s8 + $0x118] sm:$0xff]  ;;  %303 = vst [vmem:[%s220_s9 + $0x48] sm:$0xff] %v4673_v41  ;;  %v4676_v44 = vld [vmem:[%s5939_s8 + $0x130] sm:$0xff] }
  0x54   : > { %305 = vst [vmem:[%s220_s9 + $0x50] sm:$0xff] %v4674_v42  ;;  %307 = vst [vmem:[%s220_s9 + $0x58] sm:$0xff] %v4675_v43  ;;  %v4677_v45 = vld [vmem:[%s5939_s8 + $0x148] sm:$0xff]  ;;  %v4678_v46 = vld [vmem:[%s5939_s8 + $0x160] sm:$0xff] }
  0x55   : > { %309 = vst [vmem:[%s220_s9 + $0x60] sm:$0xff] %v4676_v44  ;;  %311 = vst [vmem:[%s220_s9 + $0x68] sm:$0xff] %v4677_v45  ;;  %v4679_v47 = vld [vmem:[%s5939_s8 + $0x178] sm:$0xff] }
  0x56   : > { %313 = vst [vmem:[%s220_s9 + $0x70] sm:$0xff] %v4678_v46  ;;  %315 = vst [vmem:[%s220_s9 + $0x78] sm:$0xff] %v4679_v47 }
  0x57 PF: > { %p4680_p4 = scmp.ge.s32.totalorder %s5767_s27, 1  ;;  %p320_p5 = scmp.lt.s32.totalorder %s5767_s27, 4 }
  0x59   : > { %p321_p6 = pnand %p4680_p4, %p320_p5 }
  0x5a   : > { %s327_s10 = sand.u32 (!%p321_p6), 1, %s5759_s25   ;;  %s334_s12 = sand.u32 (!%p321_p6), 1, %s5751_s1  }
  0x5b   : > { %324 = sbr.rel (%p321_p6) target bundleno = 3042 (0xbe2), region = 81  ;;  %s4681_s13 = sshll.u32 (!%p321_p6), %s327_s10, 8 }
  0x5c   : > { %s4682_s15 = sshll.u32 (!%p321_p6), %s334_s12, 7  ;;  %s365_s16 = sld [smem:[#allocation6 + %s5832_s28]] (!%p321_p6) }
  0x5d   : > { %s5963_s17 = sld [smem:[#allocation6 + %s5832_s28]] (!%p321_p6)  ;;  %s5973_s23 = scalar_lea.vmem (!%p321_p6), [#allocation8], %s4681_s13 }
  0x5e   : > { %s5966_s18 = sld [smem:[#allocation7 + %s5832_s28]] (!%p321_p6)  ;;  %s5975_s25 = scalar_lea.vmem (!%p321_p6), [#allocation9], %s4682_s15 }
  0x62   : > { %s4683_s19 = sshll.u32 %s365_s16, 4 }
  0x63   : > { %p367_p7 = scmp.lt.s32.totalorder %s4683_s19, 31 }
  0x64   : > { %p4686_p8 = scmp.ne.s32.totalorder %s5966_s18, 0 }
  0x65   : > { %s8359_s19 = smov (!%p367_p7, %s4683_s19), 31  ;;  %vm382_vm0 = vcmask (!%p4686_p8), 7168   ;;  %v5771_v48 = vmov (!%p4686_p8), -inf   ;;  %v5772_v49 = vmov (!%p4686_p8), 0.0  }
  0x66   : > { %s4819_s27 = sshll.u32 %s8359_s19, 3  ;;  %381 = sbr.rel (%p4686_p8) target bundleno = 150 (0x96), region = 93  ;;  %383 = vst.msk [vmem:[#allocation2] sm:$0xff] (!%p4686_p8), %vm382_vm0, %v5771_v48  ;;  %384 = vst.msk [vmem:[#allocation2 + $0x8] sm:$0xff] (!%p4686_p8), %vm382_vm0, %v5771_v48 }
  0x67   : > { %s5971_s22 = scalar_lea.vmem %s8120_s4, %s4819_s27  ;;  %385 = vst.msk [vmem:[#allocation2 + $0x10] sm:$0xff] (!%p4686_p8), %vm382_vm0, %v5771_v48  ;;  %386 = vst.msk [vmem:[#allocation2 + $0x18] sm:$0xff] (!%p4686_p8), %vm382_vm0, %v5771_v48 }
  0x68   : > { %387 = vst.msk [vmem:[#allocation2 + $0x20] sm:$0xff] (!%p4686_p8), %vm382_vm0, %v5771_v48  ;;  %388 = vst.msk [vmem:[#allocation2 + $0x28] sm:$0xff] (!%p4686_p8), %vm382_vm0, %v5771_v48 }
  0x69   : > { %389 = vst.msk [vmem:[#allocation2 + $0x30] sm:$0xff] (!%p4686_p8), %vm382_vm0, %v5771_v48  ;;  %390 = vst.msk [vmem:[#allocation2 + $0x38] sm:$0xff] (!%p4686_p8), %vm382_vm0, %v5771_v48 }
  0x6a   : > { %391 = vst.msk [vmem:[#allocation2 + $0x40] sm:$0xff] (!%p4686_p8), %vm382_vm0, %v5771_v48  ;;  %392 = vst.msk [vmem:[#allocation2 + $0x48] sm:$0xff] (!%p4686_p8), %vm382_vm0, %v5771_v48 }
  0x6b   : > { %393 = vst.msk [vmem:[#allocation2 + $0x50] sm:$0xff] (!%p4686_p8), %vm382_vm0, %v5771_v48  ;;  %394 = vst.msk [vmem:[#allocation2 + $0x58] sm:$0xff] (!%p4686_p8), %vm382_vm0, %v5771_v48 }
  0x6c   : > { %395 = vst.msk [vmem:[#allocation2 + $0x60] sm:$0xff] (!%p4686_p8), %vm382_vm0, %v5771_v48  ;;  %396 = vst.msk [vmem:[#allocation2 + $0x68] sm:$0xff] (!%p4686_p8), %vm382_vm0, %v5771_v48 }
  0x6d   : > { %397 = vst.msk [vmem:[#allocation2 + $0x70] sm:$0xff] %vm382_vm0, %v5771_v48  ;;  %398 = vst.msk [vmem:[#allocation2 + $0x78] sm:$0xff] %vm382_vm0, %v5771_v48 }
  0x6e   : > { %399 = vst.msk [vmem:[#allocation2 + $0x80] sm:$0xff] %vm382_vm0, %v5771_v48  ;;  %400 = vst.msk [vmem:[#allocation2 + $0x88] sm:$0xff] %vm382_vm0, %v5771_v48 }
  0x6f   : > { %401 = vst.msk [vmem:[#allocation2 + $0x90] sm:$0xff] %vm382_vm0, %v5771_v48  ;;  %402 = vst.msk [vmem:[#allocation2 + $0x98] sm:$0xff] %vm382_vm0, %v5771_v48 }
  0x70   : > { %403 = vst.msk [vmem:[#allocation2 + $0xa0] sm:$0xff] %vm382_vm0, %v5771_v48  ;;  %404 = vst.msk [vmem:[#allocation2 + $0xa8] sm:$0xff] %vm382_vm0, %v5771_v48 }
  0x71   : > { %405 = vst.msk [vmem:[#allocation2 + $0xb0] sm:$0xff] %vm382_vm0, %v5771_v48  ;;  %406 = vst.msk [vmem:[#allocation2 + $0xb8] sm:$0xff] %vm382_vm0, %v5771_v48 }
  0x72   : > { %407 = vst.msk [vmem:[#allocation2 + $0xc0] sm:$0xff] %vm382_vm0, %v5771_v48  ;;  %408 = vst.msk [vmem:[#allocation2 + $0xc8] sm:$0xff] %vm382_vm0, %v5771_v48 }
  0x73   : > { %409 = vst.msk [vmem:[#allocation2 + $0xd0] sm:$0xff] %vm382_vm0, %v5771_v48  ;;  %410 = vst.msk [vmem:[#allocation2 + $0xd8] sm:$0xff] %vm382_vm0, %v5771_v48 }
  0x74   : > { %411 = vst.msk [vmem:[#allocation2 + $0xe0] sm:$0xff] %vm382_vm0, %v5771_v48  ;;  %412 = vst.msk [vmem:[#allocation2 + $0xe8] sm:$0xff] %vm382_vm0, %v5771_v48 }
  0x75   : > { %413 = vst.msk [vmem:[#allocation2 + $0xf0] sm:$0xff] %vm382_vm0, %v5771_v48  ;;  %414 = vst.msk [vmem:[#allocation2 + $0xf8] sm:$0xff] %vm382_vm0, %v5771_v48 }
  0x76   : > { %415 = vst.msk [vmem:[#allocation3] sm:$0xff] %vm382_vm0, %v5772_v49  ;;  %416 = vst.msk [vmem:[#allocation3 + $0x8] sm:$0xff] %vm382_vm0, %v5772_v49 }
  0x77   : > { %417 = vst.msk [vmem:[#allocation3 + $0x10] sm:$0xff] %vm382_vm0, %v5772_v49  ;;  %418 = vst.msk [vmem:[#allocation3 + $0x18] sm:$0xff] %vm382_vm0, %v5772_v49 }
  0x78   : > { %419 = vst.msk [vmem:[#allocation3 + $0x20] sm:$0xff] %vm382_vm0, %v5772_v49  ;;  %420 = vst.msk [vmem:[#allocation3 + $0x28] sm:$0xff] %vm382_vm0, %v5772_v49 }
  0x79   : > { %421 = vst.msk [vmem:[#allocation3 + $0x30] sm:$0xff] %vm382_vm0, %v5772_v49  ;;  %422 = vst.msk [vmem:[#allocation3 + $0x38] sm:$0xff] %vm382_vm0, %v5772_v49 }
  0x7a   : > { %423 = vst.msk [vmem:[#allocation3 + $0x40] sm:$0xff] %vm382_vm0, %v5772_v49  ;;  %424 = vst.msk [vmem:[#allocation3 + $0x48] sm:$0xff] %vm382_vm0, %v5772_v49 }
  0x7b   : > { %425 = vst.msk [vmem:[#allocation3 + $0x50] sm:$0xff] %vm382_vm0, %v5772_v49  ;;  %426 = vst.msk [vmem:[#allocation3 + $0x58] sm:$0xff] %vm382_vm0, %v5772_v49 }
  0x7c   : > { %427 = vst.msk [vmem:[#allocation3 + $0x60] sm:$0xff] %vm382_vm0, %v5772_v49  ;;  %428 = vst.msk [vmem:[#allocation3 + $0x68] sm:$0xff] %vm382_vm0, %v5772_v49 }
  0x7d   : > { %429 = vst.msk [vmem:[#allocation3 + $0x70] sm:$0xff] %vm382_vm0, %v5772_v49  ;;  %430 = vst.msk [vmem:[#allocation3 + $0x78] sm:$0xff] %vm382_vm0, %v5772_v49 }
  0x7e   : > { %431 = vst.msk [vmem:[#allocation3 + $0x80] sm:$0xff] %vm382_vm0, %v5772_v49  ;;  %432 = vst.msk [vmem:[#allocation3 + $0x88] sm:$0xff] %vm382_vm0, %v5772_v49 }
  0x7f   : > { %433 = vst.msk [vmem:[#allocation3 + $0x90] sm:$0xff] %vm382_vm0, %v5772_v49  ;;  %434 = vst.msk [vmem:[#allocation3 + $0x98] sm:$0xff] %vm382_vm0, %v5772_v49 }
  0x80   : > { %435 = vst.msk [vmem:[#allocation3 + $0xa0] sm:$0xff] %vm382_vm0, %v5772_v49  ;;  %436 = vst.msk [vmem:[#allocation3 + $0xa8] sm:$0xff] %vm382_vm0, %v5772_v49 }
  0x81   : > { %437 = vst.msk [vmem:[#allocation3 + $0xb0] sm:$0xff] %vm382_vm0, %v5772_v49  ;;  %438 = vst.msk [vmem:[#allocation3 + $0xb8] sm:$0xff] %vm382_vm0, %v5772_v49 }
  0x82   : > { %439 = vst.msk [vmem:[#allocation3 + $0xc0] sm:$0xff] %vm382_vm0, %v5772_v49  ;;  %440 = vst.msk [vmem:[#allocation3 + $0xc8] sm:$0xff] %vm382_vm0, %v5772_v49 }
  0x83   : > { %441 = vst.msk [vmem:[#allocation3 + $0xd0] sm:$0xff] %vm382_vm0, %v5772_v49  ;;  %442 = vst.msk [vmem:[#allocation3 + $0xd8] sm:$0xff] %vm382_vm0, %v5772_v49 }
  0x84   : > { %443 = vst.msk [vmem:[#allocation3 + $0xe0] sm:$0xff] %vm382_vm0, %v5772_v49  ;;  %444 = vst.msk [vmem:[#allocation3 + $0xe8] sm:$0xff] %vm382_vm0, %v5772_v49 }
  0x85   : > { %445 = vst.msk [vmem:[#allocation3 + $0xf0] sm:$0xff] %vm382_vm0, %v5772_v49  ;;  %446 = vst.msk [vmem:[#allocation3 + $0xf8] sm:$0xff] %vm382_vm0, %v5772_v49 }
  0x86   : > { %447 = vst [vmem:[#allocation4] sm:$0xff] %v5772_v49  ;;  %448 = vst [vmem:[#allocation4 + $0x8] sm:$0xff] %v5772_v49 }
  0x87   : > { %449 = vst [vmem:[#allocation4 + $0x10] sm:$0xff] %v5772_v49  ;;  %450 = vst [vmem:[#allocation4 + $0x18] sm:$0xff] %v5772_v49 }
  0x88   : > { %451 = vst [vmem:[#allocation4 + $0x20] sm:$0xff] %v5772_v49  ;;  %452 = vst [vmem:[#allocation4 + $0x28] sm:$0xff] %v5772_v49 }
  0x89   : > { %453 = vst [vmem:[#allocation4 + $0x30] sm:$0xff] %v5772_v49  ;;  %454 = vst [vmem:[#allocation4 + $0x38] sm:$0xff] %v5772_v49 }
  0x8a   : > { %455 = vst [vmem:[#allocation4 + $0x40] sm:$0xff] %v5772_v49  ;;  %456 = vst [vmem:[#allocation4 + $0x48] sm:$0xff] %v5772_v49 }
  0x8b   : > { %457 = vst [vmem:[#allocation4 + $0x50] sm:$0xff] %v5772_v49  ;;  %458 = vst [vmem:[#allocation4 + $0x58] sm:$0xff] %v5772_v49 }
  0x8c   : > { %459 = vst [vmem:[#allocation4 + $0x60] sm:$0xff] %v5772_v49  ;;  %460 = vst [vmem:[#allocation4 + $0x68] sm:$0xff] %v5772_v49 }
  0x8d   : > { %461 = vst [vmem:[#allocation4 + $0x70] sm:$0xff] %v5772_v49  ;;  %462 = vst [vmem:[#allocation4 + $0x78] sm:$0xff] %v5772_v49 }
  0x8e   : > { %463 = vst [vmem:[#allocation4 + $0x80] sm:$0xff] %v5772_v49  ;;  %464 = vst [vmem:[#allocation4 + $0x88] sm:$0xff] %v5772_v49 }
  0x8f   : > { %465 = vst [vmem:[#allocation4 + $0x90] sm:$0xff] %v5772_v49  ;;  %466 = vst [vmem:[#allocation4 + $0x98] sm:$0xff] %v5772_v49 }
  0x90   : > { %467 = vst [vmem:[#allocation4 + $0xa0] sm:$0xff] %v5772_v49  ;;  %468 = vst [vmem:[#allocation4 + $0xa8] sm:$0xff] %v5772_v49 }
  0x91   : > { %469 = vst [vmem:[#allocation4 + $0xb0] sm:$0xff] %v5772_v49  ;;  %470 = vst [vmem:[#allocation4 + $0xb8] sm:$0xff] %v5772_v49 }
  0x92   : > { %471 = vst [vmem:[#allocation4 + $0xc0] sm:$0xff] %v5772_v49  ;;  %472 = vst [vmem:[#allocation4 + $0xc8] sm:$0xff] %v5772_v49 }
  0x93   : > { %473 = vst [vmem:[#allocation4 + $0xd0] sm:$0xff] %v5772_v49  ;;  %474 = vst [vmem:[#allocation4 + $0xd8] sm:$0xff] %v5772_v49 }
  0x94   : > { %475 = vst [vmem:[#allocation4 + $0xe0] sm:$0xff] %v5772_v49  ;;  %476 = vst [vmem:[#allocation4 + $0xe8] sm:$0xff] %v5772_v49 }
  0x95   : > { %477 = vst [vmem:[#allocation4 + $0xf0] sm:$0xff] %v5772_v49  ;;  %478 = vst [vmem:[#allocation4 + $0xf8] sm:$0xff] %v5772_v49 }
  0x96 PF: > { %p4687_p9 = scmp.eq.s32.totalorder %s5966_s18, %s5963_s17 }
  0x98   : > { %482 = sbr.rel (%p4687_p9) target bundleno = 1555 (0x613), region = 97 }
  0x9f   : > { %v5285_v50 = vld [vmem:[%s5973_s23] ss:$16 sps:$4 sm:$0xff]   ;;  %v5773_v11 = vmov 0   ;;  %v5301_v19 = vld [vmem:[%s5973_s23 + $0x8] ss:$16 sps:$4 sm:$0xff]   ;;  %vm1028_vm1 = vcmask 7168  }
  0xa0   : > { %v5286_v51 = vld [vmem:[%s5973_s23 + $0x20] ss:$16 sps:$4 sm:$0xff]   ;;  %4980 = vmatprep.subr.bf16.mxu0 %v5285_v50  ;;  %5284 = vset.pattern.permute.xlu1 %v5773_v11  ;;  %v5302_v20 = vld [vmem:[%s5973_s23 + $0x28] ss:$16 sps:$4 sm:$0xff]  }
  0xa1   : > { %4981 = vmatpush3.bf16.xpose.msra.mxu0 %v5285_v50  ;;  %v5287_v52 = vld [vmem:[%s5973_s23 + $0x40] ss:$16 sps:$4 sm:$0xff]   ;;  %5283 = vset.pattern.permute.xlu0 %v5773_v11  ;;  %v5303_v21 = vld [vmem:[%s5973_s23 + $0x48] ss:$16 sps:$4 sm:$0xff]  }
  0xa2   : > { %4982 = vmatprep.subr.bf16.mxu0 %v5286_v51  ;;  %v5293_v53 = vld [vmem:[%s5975_s25] ss:$8 sps:$4 sm:$0xff]   ;;  %v5294_v59 = vld [vmem:[%s5975_s25 + $0x10] ss:$8 sps:$4 sm:$0xff]   ;;  %5012 = vmatprep.subr.bf16.mxu1 %v5301_v19 }
  0xa3   : > { %4996 = vmatprep.mubr.bf16.mxu0 %v5293_v53  ;;  %v5288_v54 = vld [vmem:[%s5973_s23 + $0x60] ss:$16 sps:$4 sm:$0xff]   ;;  %5013 = vmatpush3.bf16.msra.mxu1 %v5301_v19  ;;  %v5304_v27 = vld [vmem:[%s5973_s23 + $0x68] ss:$16 sps:$4 sm:$0xff]  }
  0xa4   : > { %v5289_v55 = vld [vmem:[%s5973_s23 + $0x80] ss:$16 sps:$4 sm:$0xff]   ;;  %5014 = vmatprep.subr.bf16.mxu1 %v5302_v20  ;;  %v6186_v29 = vld [vmem:[#allocation2 + $0x18] sm:$0xff]  ;;  %v6193_v31 = vld [vmem:[#allocation2 + $0x8] sm:$0xff] }
  0xa5   : > { %v5290_v56 = vld [vmem:[%s5973_s23 + $0xa0] ss:$16 sps:$4 sm:$0xff]   ;;  %v5305_v36 = vld [vmem:[%s5973_s23 + $0x88] ss:$16 sps:$4 sm:$0xff]  }
  0xa6   : > { %v5291_v57 = vld [vmem:[%s5973_s23 + $0xc0] ss:$16 sps:$4 sm:$0xff]   ;;  %v6218_v41 = vld [vmem:[#allocation2 + $0x38] sm:$0xff]  ;;  %v6234_v49 = vld [vmem:[#allocation2 + $0x28] sm:$0xff] }
  0xa7   : > { %v5292_v58 = vld [vmem:[%s5973_s23 + $0xe0] ss:$16 sps:$4 sm:$0xff]   ;;  %5015 = vmatpush3.bf16.msra.mxu1 %v5302_v20  ;;  %v5306_v43 = vld [vmem:[%s5973_s23 + $0xa8] ss:$16 sps:$4 sm:$0xff]  }
  0xa8   : > { %v5295_v60 = vld [vmem:[%s5975_s25 + $0x20] ss:$8 sps:$4 sm:$0xff]   ;;  %v5296_v61 = vld [vmem:[%s5975_s25 + $0x30] ss:$8 sps:$4 sm:$0xff]   ;;  %5016 = vmatprep.subr.bf16.mxu1 %v5303_v21 }
  0xa9   : > { %4983 = vmatpush3.bf16.xpose.msra.mxu0 %v5286_v51  ;;  %v5297_v62 = vld [vmem:[%s5975_s25 + $0x40] ss:$8 sps:$4 sm:$0xff]   ;;  %v5298_v63 = vld [vmem:[%s5975_s25 + $0x50] ss:$8 sps:$4 sm:$0xff]  }
  0xaa   : > { %4984 = vmatprep.subr.bf16.mxu0 %v5287_v52  ;;  %v5299_v0 = vld [vmem:[%s5975_s25 + $0x60] ss:$8 sps:$4 sm:$0xff]   ;;  %v5300_v1 = vld [vmem:[%s5975_s25 + $0x70] ss:$8 sps:$4 sm:$0xff]  }
  0xab   : > { %5017 = vmatpush3.bf16.msra.mxu1 %v5303_v21  ;;  %v6175_v22 = vld [vmem:[#allocation2 + $0x10] sm:$0xff]  ;;  %v6177_v23 = vld [vmem:[#allocation2] sm:$0xff]  ;;  %v6270_v11 = vld [vmem:[#allocation2 + $0x48] sm:$0xff] }
  0xac   : > { %5018 = vmatprep.subr.bf16.mxu1 %v5304_v27  ;;  %v6211_v39 = vld [vmem:[#allocation2 + $0x30] sm:$0xff]  ;;  %v6227_v47 = vld [vmem:[#allocation2 + $0x20] sm:$0xff] }
  0xaf   : > { %5019 = vmatpush3.bf16.msra.mxu1 %v5304_v27 }
  0xb0   : > { %5020 = vmatprep.subr.bf16.mxu1 %v5305_v36 }
  0xb1   : > { %4985 = vmatpush3.bf16.xpose.msra.mxu0 %v5287_v52  ;;  %v5307_v52 = vld [vmem:[%s5973_s23 + $0xc8] ss:$16 sps:$4 sm:$0xff]  }
  0xb2   : > { %4986 = vmatprep.subr.bf16.mxu0 %v5288_v54 }
  0xb3   : > { %5021 = vmatpush3.bf16.msra.mxu1 %v5305_v36 }
  0xb4   : > { %5022 = vmatprep.subr.bf16.mxu1 %v5306_v43 }
  0xb7   : > { %5023 = vmatpush3.bf16.msra.mxu1 %v5306_v43 }
  0xb8   : > { %5024 = vmatprep.subr.bf16.mxu1 %v5307_v52 }
  0xb9   : > { %4987 = vmatpush3.bf16.xpose.msra.mxu0 %v5288_v54 }
  0xba   : > { %4988 = vmatprep.subr.bf16.mxu0 %v5289_v55 }
  0xbb   : > { %5025 = vmatpush3.bf16.msra.mxu1 %v5307_v52  ;;  %v6304_v52 = vld [vmem:[%s5973_s23 + $0x4] ss:$16 sps:$4 sm:$0xff]  }
  0xc1   : > { %4989 = vmatpush3.bf16.xpose.msra.mxu0 %v5289_v55 }
  0xc2   : > { %4990 = vmatprep.subr.bf16.mxu0 %v5290_v56 }
  0xc9   : > { %4991 = vmatpush3.bf16.xpose.msra.mxu0 %v5290_v56  ;;  %v6247_v56 = vld [vmem:[#allocation2 + $0x50] sm:$0xff] }
  0xca   : > { %4992 = vmatprep.subr.bf16.mxu0 %v5291_v57 }
  0xd1   : > { %4993 = vmatpush3.bf16.xpose.msra.mxu0 %v5291_v57 }
  0xd2   : > { %4994 = vmatprep.subr.bf16.mxu0 %v5292_v58 }
  0xd9   : > { %4995 = vmatpush3.bf16.xpose.msra.mxu0 %v5292_v58  ;;  %v6254_v58 = vld [vmem:[#allocation2 + $0x58] sm:$0xff] }
  0xe0   : > { %4997 = vmatmul.mubr.bf16.vlgmr.msra.gmra.mrb[0].mxu0 %v5294_v59 }
  0xe1   : > { %5000 = vmatprep.mubr.bf16.mxu0 %v5295_v60 }
  0xe8   : > { %5001 = vmatmul.mubr.bf16.gmra.mrb[4].mxu0 %v5296_v61  ;;  %v5308_v61 = vld [vmem:[%s5973_s23 + $0xe8] ss:$16 sps:$4 sm:$0xff]  }
  0xe9   : > { %5004 = vmatprep.mubr.bf16.mxu0 %v5297_v62  ;;  %5026 = vmatprep.subr.bf16.mxu1 %v5308_v61 }
  0xea   : > { %5027 = vmatpush3.bf16.msra.mxu1 %v5308_v61  ;;  %v6312_v61 = vld [vmem:[#allocation2 + $0x68] sm:$0xff] }
  0xeb   : > { %5044 = vmatprep.subr.bf16.mxu1 %v6304_v52 }
  0xf0   : > { %5005 = vmatmul.mubr.bf16.gmra.mrb[8].mxu0 %v5298_v63 }
  0xf1   : > { %5008 = vmatprep.mubr.bf16.mxu0 %v5299_v0 }
  0xf8   : > { %5009 = vmatmul.mubr.bf16.gmra.mrb[12].mxu0 %v5300_v1  ;;  %v6267_v1 = vld [vmem:[#allocation2 + $0x40] sm:$0xff] }
 0x1b3   : > { %v6124_v2 = vpop.f32.mrb[0].mxu0 }
 0x1b4   : > { %728 = vmax.xlane.f32.xlu1 %v6124_v2  ;;  %v6127_v3 = vpop.f32.mrb[1].mxu0 }
 0x1b5   : > { %724 = vmax.xlane.f32.xlu0 %v6127_v3  ;;  %v6130_v4 = vpop.f32.mrb[2].mxu0 }
 0x1b6   : > { %v6132_v5 = vpop.f32.mrb[3].mxu0 }
 0x1b8   : > { %730 = vmax.xlane.f32.xlu1 %v6130_v4 }
 0x1b9   : > { %726 = vmax.xlane.f32.xlu0 %v6132_v5 }
 0x1bb   : > { %v6136_v6 = vpop.f32.mrb[4].mxu0 }
 0x1bc   : > { %v6138_v7 = vpop.f32.mrb[5].mxu0 }
 0x1bd   : > { %v6140_v8 = vpop.f32.mrb[6].mxu0  ;;  %736 = vmax.xlane.f32.xlu0 %v6136_v6 }
 0x1be   : > { %738 = vmax.xlane.f32.xlu1 %v6140_v8  ;;  %v6144_v9 = vpop.f32.mrb[7].mxu0 }
 0x1c1   : > { %732 = vmax.xlane.f32.xlu0 %v6138_v7 }
 0x1c2   : > { %734 = vmax.xlane.f32.xlu1 %v6144_v9 }
 0x1c3   : > { %v6148_v10 = vpop.f32.mrb[8].mxu0 }
 0x1c4   : > { %v6150_v12 = vpop.f32.mrb[9].mxu0 }
 0x1c5   : > { %v6152_v13 = vpop.f32.mrb[10].mxu0  ;;  %744 = vmax.xlane.f32.xlu0 %v6148_v10 }
 0x1c6   : > { %746 = vmax.xlane.f32.xlu1 %v6152_v13  ;;  %v6156_v14 = vpop.f32.mrb[11].mxu0 }
 0x1c9   : > { %740 = vmax.xlane.f32.xlu0 %v6150_v12 }
 0x1ca   : > { %742 = vmax.xlane.f32.xlu1 %v6156_v14 }
 0x1cb   : > { %v6160_v15 = vpop.f32.mrb[12].mxu0 }
 0x1cc   : > { %v6162_v16 = vpop.f32.mrb[13].mxu0 }
 0x1cd   : > { %v6164_v17 = vpop.f32.mrb[14].mxu0  ;;  %752 = vmax.xlane.f32.xlu0 %v6160_v15 }
 0x1ce   : > { %754 = vmax.xlane.f32.xlu1 %v6164_v17  ;;  %v6168_v18 = vpop.f32.mrb[15].mxu0 }
 0x1d1   : > { %748 = vmax.xlane.f32.xlu0 %v6162_v16 }
 0x1d2   : > { %750 = vmax.xlane.f32.xlu1 %v6168_v18 }
 0x241   : > { %v729_v24 = vpop.xlane.xlu1 %728 }
 0x242   : > { %v6180_v25 = vmax.f32 %v6175_v22, %v729_v24  ;;  %v725_v26 = vpop.xlane.xlu0 %724 }
 0x243   : > { %v6184_v28 = vmax.f32 %v6177_v23, %v725_v26 }
 0x244   : > { %1360 = vst.msk [vmem:[#allocation2 + $0x10] sm:$0xff] %vm1028_vm1, %v6180_v25  ;;  %832 = vperm.xlu1 %5284, %v6180_v25  }
 0x245   : > { %1358 = vst.msk [vmem:[#allocation2] sm:$0xff] %vm1028_vm1, %v6184_v28  ;;  %v731_v33 = vpop.xlane.xlu1 %730  ;;  %822 = vperm.xlu0 %5283, %v6184_v28  }
 0x246   : > { %v6201_v34 = vmax.f32 %v6186_v29, %v731_v33  ;;  %v727_v35 = vpop.xlane.xlu0 %726  ;;  %v6286_v33 = vld [vmem:[#allocation2 + $0x70] sm:$0xff] }
 0x247   : > { %v6205_v37 = vmax.f32 %v6193_v31, %v727_v35  ;;  %v6289_v35 = vld [vmem:[#allocation2 + $0x78] sm:$0xff] }
 0x248   : > { %1361 = vst.msk [vmem:[#allocation2 + $0x18] sm:$0xff] %vm1028_vm1, %v6201_v34 }
 0x249   : > { %1359 = vst.msk [vmem:[#allocation2 + $0x8] sm:$0xff] %vm1028_vm1, %v6205_v37  ;;  %827 = vperm.xlu1 %5284, %v6205_v37  }
 0x24a   : > { %v737_v42 = vpop.xlane.xlu0 %736 }
 0x24b   : > { %v739_v44 = vpop.xlane.xlu1 %738  ;;  %v6222_v45 = vmax.f32 %v6211_v39, %v737_v42 }
 0x24c   : > { %v6225_v46 = vmax.f32 %v6218_v41, %v739_v44 }
 0x24d   : > { %837 = vperm.xlu1 %5284, %v6201_v34   ;;  %1364 = vst.msk [vmem:[#allocation2 + $0x30] sm:$0xff] %vm1028_vm1, %v6222_v45 }
 0x24e   : > { %1365 = vst.msk [vmem:[#allocation2 + $0x38] sm:$0xff] %vm1028_vm1, %v6225_v46  ;;  %v733_v51 = vpop.xlane.xlu0 %732 }
 0x24f   : > { %v735_v53 = vpop.xlane.xlu1 %734  ;;  %v6242_v54 = vmax.f32 %v6227_v47, %v733_v51 }
 0x250   : > { %v6245_v55 = vmax.f32 %v6234_v49, %v735_v53 }
 0x251   : > { %852 = vperm.xlu1 %5284, %v6222_v45   ;;  %1362 = vst.msk [vmem:[#allocation2 + $0x20] sm:$0xff] %vm1028_vm1, %v6242_v54 }
 0x252   : > { %1363 = vst.msk [vmem:[#allocation2 + $0x28] sm:$0xff] %vm1028_vm1, %v6245_v55  ;;  %v745_v60 = vpop.xlane.xlu0 %744 }
 0x253   : > { %v747_v62 = vpop.xlane.xlu1 %746  ;;  %v6262_v63 = vmax.f32 %v6247_v56, %v745_v60  ;;  %v6309_v60 = vld [vmem:[#allocation2 + $0x60] sm:$0xff] }
 0x254   : > { %v6265_v0 = vmax.f32 %v6254_v58, %v747_v62 }
 0x255   : > { %842 = vperm.xlu1 %5284, %v6242_v54   ;;  %1368 = vst.msk [vmem:[#allocation2 + $0x50] sm:$0xff] %vm1028_vm1, %v6262_v63 }
 0x256   : > { %1369 = vst.msk [vmem:[#allocation2 + $0x58] sm:$0xff] %vm1028_vm1, %v6265_v0  ;;  %v741_v21 = vpop.xlane.xlu0 %740 }
 0x257   : > { %v743_v24 = vpop.xlane.xlu1 %742  ;;  %v6281_v26 = vmax.f32 %v6267_v1, %v741_v21 }
 0x258   : > { %v6284_v27 = vmax.f32 %v6270_v11, %v743_v24 }
 0x259   : > { %847 = vperm.xlu1 %5284, %v6245_v55   ;;  %1366 = vst.msk [vmem:[#allocation2 + $0x40] sm:$0xff] %vm1028_vm1, %v6281_v26 }
 0x25a   : > { %1367 = vst.msk [vmem:[#allocation2 + $0x48] sm:$0xff] %vm1028_vm1, %v6284_v27  ;;  %867 = vperm.xlu0 %5283, %v6284_v27   ;;  %v753_v43 = vpop.xlane.xlu0 %752 }
 0x25b   : > { %v755_v44 = vpop.xlane.xlu1 %754  ;;  %v6301_v51 = vmax.f32 %v6286_v33, %v753_v43 }
 0x25c   : > { %v6307_v53 = vmax.f32 %v6289_v35, %v755_v44 }
 0x25d   : > { %857 = vperm.xlu1 %5284, %v6225_v46   ;;  %1372 = vst.msk [vmem:[#allocation2 + $0x70] sm:$0xff] %vm1028_vm1, %v6301_v51 }
 0x25e   : > { %1373 = vst.msk [vmem:[#allocation2 + $0x78] sm:$0xff] %vm1028_vm1, %v6307_v53  ;;  %877 = vperm.xlu0 %5283, %v6265_v0   ;;  %v749_v24 = vpop.xlane.xlu0 %748 }
 0x25f   : > { %v751_v43 = vpop.xlane.xlu1 %750  ;;  %v6325_v44 = vmax.f32 %v6309_v60, %v749_v24 }
 0x260   : > { %v6328_v62 = vmax.f32 %v6312_v61, %v751_v43 }
 0x261   : > { %862 = vperm.xlu1 %5284, %v6281_v26   ;;  %1370 = vst.msk [vmem:[#allocation2 + $0x60] sm:$0xff] %vm1028_vm1, %v6325_v44 }
 0x262   : > { %1371 = vst.msk [vmem:[#allocation2 + $0x68] sm:$0xff] %vm1028_vm1, %v6328_v62  ;;  %887 = vperm.xlu0 %5283, %v6328_v62  }
 0x265   : > { %872 = vperm.xlu1 %5284, %v6262_v63  }
 0x266   : > { %897 = vperm.xlu0 %5283, %v6307_v53  }
 0x269   : > { %882 = vperm.xlu1 %5284, %v6325_v44  }
 0x26d   : > { %892 = vperm.xlu1 %5284, %v6301_v51  }
 0x2c3   : > { %v833_v24 = vpop.permute.xlu1 %832 }
 0x2c4   : > { %v823_v43 = vpop.permute.xlu0 %822  ;;  %v902_v20 = vsub.f32 %v6124_v2, %v833_v24 }
 0x2c5   : > { %v900_v19 = vsub.f32 %v6127_v3, %v823_v43 }
 0x2c6   : > { %v920_v48 = vmul.f32 1.442695, %v902_v20 }
 0x2c7   : > { %v916_v21 = vmul.f32 1.442695, %v900_v19 }
 0x2c8   : > { %v828_v36 = vpop.permute.xlu1 %827 }
 0x2c9   : > { %v901_v42 = vsub.f32 %v6132_v5, %v828_v36  ;;  %5333 = vpow2.f32 %v916_v21 }
 0x2cb   : > { %v918_v50 = vmul.f32 1.442695, %v901_v42 }
 0x2cc   : > { %v838_v57 = vpop.permute.xlu1 %837 }
 0x2cd   : > { %5335 = vpow2.f32 %v918_v50  ;;  %v903_v59 = vsub.f32 %v6130_v4, %v838_v57 }
 0x2ce   : > { %5337 = vpow2.f32 %v920_v48 }
 0x2cf   : > { %v922_v30 = vmul.f32 1.442695, %v903_v59 }
 0x2d0   : > { %v853_v38 = vpop.permute.xlu1 %852 }
 0x2d1   : > { %5339 = vpow2.f32 %v922_v30  ;;  %v906_v5 = vsub.f32 %v6136_v6, %v853_v38  ;;  %v5310_v38 = vld [vmem:[%s5973_s23 + $0x24] ss:$16 sps:$4 sm:$0xff]  }
 0x2d3   : > { %v6349_v43 = vpop.eup %5333 }
 0x2d4   : > { %v843_v32 = vpop.permute.xlu1 %842 }
 0x2d5   : > { %v904_v3 = vsub.f32 %v6138_v7, %v843_v32  ;;  %v928_v32 = vmul.f32 1.442695, %v906_v5 }
 0x2d7   : > { %v6351_v2 = vpop.eup %5335  ;;  %v924_v19 = vmul.f32 1.442695, %v904_v3 }
 0x2d8   : > { %v848_v20 = vpop.permute.xlu1 %847  ;;  %v1061_v50 = vpack.c.bf16 %v6351_v2, %v6349_v43  ;;  %v6357_v57 = vpop.eup %5337 }
 0x2d9   : > { %v905_v4 = vsub.f32 %v6144_v9, %v848_v20  ;;  %v868_v48 = vpop.permute.xlu0 %867  ;;  %5341 = vpow2.f32 %v924_v19 }
 0x2da   : > { %5028 = vmatprep.mubr.bf16.mxu1 %v1061_v50  ;;  %v909_v59 = vsub.f32 %v6156_v14, %v868_v48  ;;  %v5311_v48 = vld [vmem:[%s5973_s23 + $0x44] ss:$16 sps:$4 sm:$0xff]  }
 0x2db   : > { %v6359_v30 = vpop.eup %5339  ;;  %v926_v7 = vmul.f32 1.442695, %v905_v4 }
 0x2dc   : > { %v858_v36 = vpop.permute.xlu1 %857  ;;  %v1062_v6 = vpack.c.bf16 %v6359_v30, %v6357_v57  ;;  %v934_v24 = vmul.f32 1.442695, %v909_v59 }
 0x2dd   : > { %5343 = vpow2.f32 %v926_v7  ;;  %v907_v42 = vsub.f32 %v6140_v8, %v858_v36  ;;  %v878_v9 = vpop.permute.xlu0 %877 }
 0x2de   : > { %5029 = vmatmul.mubr.bf16.vlgmr.msra.gmra.mrb[0].mxu1 %v1062_v6  ;;  %5345 = vpow2.f32 %v928_v32  ;;  %v911_v3 = vsub.f32 %v6152_v13, %v878_v9 }
 0x2df   : > { %v930_v21 = vmul.f32 1.442695, %v907_v42  ;;  %5045 = vmatpush3.bf16.xpose.msra.mxu1 %v6304_v52 }
 0x2e0   : > { %v863_v5 = vpop.permute.xlu1 %862  ;;  %5046 = vmatprep.subr.bf16.mxu1 %v5310_v38  ;;  %v938_v50 = vmul.f32 1.442695, %v911_v3  ;;  %v5312_v3 = vld [vmem:[%s5973_s23 + $0x64] ss:$16 sps:$4 sm:$0xff]  }
 0x2e1   : > { %5347 = vpow2.f32 %v930_v21  ;;  %v908_v14 = vsub.f32 %v6150_v12, %v863_v5  ;;  %v888_v19 = vpop.permute.xlu0 %887 }
 0x2e2   : > { %5349 = vpow2.f32 %v934_v24  ;;  %v913_v8 = vsub.f32 %v6168_v18, %v888_v19 }
 0x2e3   : > { %v932_v20 = vmul.f32 1.442695, %v908_v14  ;;  %v6372_v32 = vpop.eup %5341 }
 0x2e4   : > { %v873_v4 = vpop.permute.xlu1 %872  ;;  %v942_v12 = vmul.f32 1.442695, %v913_v8 }
 0x2e5   : > { %5351 = vpow2.f32 %v932_v20  ;;  %v910_v52 = vsub.f32 %v6148_v10, %v873_v4  ;;  %v898_v7 = vpop.permute.xlu0 %897  ;;  %v5313_v4 = vld [vmem:[%s5973_s23 + $0x84] ss:$16 sps:$4 sm:$0xff]  }
 0x2e6   : > { %5353 = vpow2.f32 %v938_v50  ;;  %v915_v36 = vsub.f32 %v6164_v17, %v898_v7 }
 0x2e7   : > { %v6374_v13 = vpop.eup %5343  ;;  %v936_v59 = vmul.f32 1.442695, %v910_v52  ;;  %5047 = vmatpush3.bf16.xpose.msra.mxu1 %v5310_v38 }
 0x2e8   : > { %v883_v6 = vpop.permute.xlu1 %882  ;;  %v1063_v18 = vpack.c.bf16 %v6374_v13, %v6372_v32  ;;  %5048 = vmatprep.subr.bf16.mxu1 %v5311_v48  ;;  %v6380_v42 = vpop.eup %5345  ;;  %v946_v38 = vmul.f32 1.442695, %v915_v36  ;;  %v5317_v36 = vld [vmem:[%s5975_s25 + $0x4] ss:$8 sps:$4 sm:$0xff]  }
 0x2e9   : > { %5355 = vpow2.f32 %v936_v59  ;;  %v912_v10 = vsub.f32 %v6162_v16, %v883_v6 }
 0x2ea   : > { %5032 = vmatprep.mubr.bf16.mxu1 %v1063_v18  ;;  %5357 = vpow2.f32 %v942_v12  ;;  %v5314_v18 = vld [vmem:[%s5973_s23 + $0xa4] ss:$16 sps:$4 sm:$0xff]  }
 0x2eb   : > { %v6382_v9 = vpop.eup %5347  ;;  %v940_v21 = vmul.f32 1.442695, %v912_v10  ;;  %v5315_v10 = vld [vmem:[%s5973_s23 + $0xc4] ss:$16 sps:$4 sm:$0xff]  }
 0x2ec   : > { %v893_v24 = vpop.permute.xlu1 %892  ;;  %v1064_v17 = vpack.c.bf16 %v6382_v9, %v6380_v42  ;;  %v6388_v14 = vpop.eup %5349 }
 0x2ed   : > { %5359 = vpow2.f32 %v940_v21  ;;  %v914_v5 = vsub.f32 %v6160_v15, %v893_v24  ;;  %v5316_v21 = vld [vmem:[%s5973_s23 + $0xe4] ss:$16 sps:$4 sm:$0xff]  }
 0x2ee   : > { %5033 = vmatmul.mubr.bf16.gmra.mrb[4].mxu1 %v1064_v17  ;;  %5361 = vpow2.f32 %v946_v38  ;;  %v5318_v38 = vld [vmem:[%s5975_s25 + $0x14] ss:$8 sps:$4 sm:$0xff]   ;;  %v5319_v24 = vld [vmem:[%s5975_s25 + $0x24] ss:$8 sps:$4 sm:$0xff]  }
 0x2ef   : > { %v6390_v16 = vpop.eup %5351  ;;  %v944_v19 = vmul.f32 1.442695, %v914_v5  ;;  %5049 = vmatpush3.bf16.xpose.msra.mxu1 %v5311_v48  ;;  %v5320_v17 = vld [vmem:[%s5975_s25 + $0x34] ss:$8 sps:$4 sm:$0xff]  }
 0x2f0   : > { %v1065_v20 = vpack.c.bf16 %v6388_v14, %v6390_v16  ;;  %5050 = vmatprep.subr.bf16.mxu1 %v5312_v3  ;;  %v6394_v50 = vpop.eup %5353  ;;  %v5322_v5 = vld [vmem:[%s5975_s25 + $0x54] ss:$8 sps:$4 sm:$0xff]  }
 0x2f1   : > { %5363 = vpow2.f32 %v944_v19  ;;  %v5323_v19 = vld [vmem:[%s5975_s25 + $0x64] ss:$8 sps:$4 sm:$0xff]  }
 0x2f2   : > { %5036 = vmatprep.mubr.bf16.mxu1 %v1065_v20  ;;  %v5324_v20 = vld [vmem:[%s5975_s25 + $0x74] ss:$8 sps:$4 sm:$0xff]  }
 0x2f3   : > { %v6396_v8 = vpop.eup %5355 }
 0x2f4   : > { %v1066_v15 = vpack.c.bf16 %v6394_v50, %v6396_v8  ;;  %v6401_v52 = vpop.eup %5357 }
 0x2f6   : > { %5037 = vmatmul.mubr.bf16.gmra.mrb[8].mxu1 %v1066_v15 }
 0x2f7   : > { %v6403_v48 = vpop.eup %5359  ;;  %5051 = vmatpush3.bf16.xpose.msra.mxu1 %v5312_v3  ;;  %v5321_v3 = vld [vmem:[%s5975_s25 + $0x44] ss:$8 sps:$4 sm:$0xff]  }
 0x2f8   : > { %v1067_v7 = vpack.c.bf16 %v6401_v52, %v6403_v48  ;;  %5052 = vmatprep.subr.bf16.mxu1 %v5313_v4  ;;  %v6407_v59 = vpop.eup %5361 }
 0x2fa   : > { %5040 = vmatprep.mubr.bf16.mxu1 %v1067_v7 }
 0x2fb   : > { %v6409_v12 = vpop.eup %5363 }
 0x2fc   : > { %v1068_v6 = vpack.c.bf16 %v6407_v59, %v6409_v12 }
 0x2fe   : > { %5041 = vmatmul.mubr.bf16.gmra.mrb[12].mxu1 %v1068_v6 }
 0x2ff   : > { %5053 = vmatpush3.bf16.xpose.msra.mxu1 %v5313_v4  ;;  %5060 = vmatprep.mubr.bf16.mxu1 %v5317_v36 }
 0x300   : > { %5054 = vmatprep.subr.bf16.mxu1 %v5314_v18 }
 0x307   : > { %5055 = vmatpush3.bf16.xpose.msra.mxu1 %v5314_v18 }
 0x308   : > { %5056 = vmatprep.subr.bf16.mxu1 %v5315_v10 }
 0x30f   : > { %5057 = vmatpush3.bf16.xpose.msra.mxu1 %v5315_v10 }
 0x310   : > { %5058 = vmatprep.subr.bf16.mxu1 %v5316_v21 }
 0x317   : > { %5059 = vmatpush3.bf16.xpose.msra.mxu1 %v5316_v21 }
 0x31e   : > { %5061 = vmatmul.mubr.bf16.vlgmr.msra.gmra.mrb[16].mxu1 %v5318_v38 }
 0x31f   : > { %5064 = vmatprep.mubr.bf16.mxu1 %v5319_v24 }
 0x326   : > { %5065 = vmatmul.mubr.bf16.gmra.mrb[20].mxu1 %v5320_v17 }
 0x327   : > { %5068 = vmatprep.mubr.bf16.mxu1 %v5321_v3 }
 0x32e   : > { %5069 = vmatmul.mubr.bf16.gmra.mrb[24].mxu1 %v5322_v5 }
 0x32f   : > { %5072 = vmatprep.mubr.bf16.mxu1 %v5323_v19 }
 0x336   : > { %5073 = vmatmul.mubr.bf16.gmra.mrb[28].mxu1 %v5324_v20 }
 0x3b1   : > { %v6424_v15 = vpop.f32.mrb[0].mxu1 }
 0x3b2   : > { %8172 = vst [vmem:[#allocation11_spill] sm:$0xff] %v6424_v15  ;;  %v6426_v4 = vpop.f32.mrb[1].mxu1 }
 0x3b3   : > { %8173 = vst [vmem:[#allocation12_spill] sm:$0xff] %v6426_v4  ;;  %v6428_v7 = vpop.f32.mrb[2].mxu1 }
 0x3b4   : > { %8174 = vst [vmem:[#allocation13_spill] sm:$0xff] %v6428_v7  ;;  %v6430_v36 = vpop.f32.mrb[3].mxu1 }
 0x3b5   : > { %8175 = vst [vmem:[#allocation14_spill] sm:$0xff] %v6430_v36 }
 0x3c1   : > { %v6432_v6 = vpop.f32.mrb[4].mxu1 }
 0x3c2   : > { %8176 = vst [vmem:[#allocation15_spill] sm:$0xff] %v6432_v6  ;;  %v6434_v18 = vpop.f32.mrb[5].mxu1 }
 0x3c3   : > { %8177 = vst [vmem:[#allocation16_spill] sm:$0xff] %v6434_v18  ;;  %v6436_v10 = vpop.f32.mrb[6].mxu1 }
 0x3c4   : > { %8178 = vst [vmem:[#allocation17_spill] sm:$0xff] %v6436_v10  ;;  %v6438_v21 = vpop.f32.mrb[7].mxu1 }
 0x3c5   : > { %8179 = vst [vmem:[#allocation18_spill] sm:$0xff] %v6438_v21 }
 0x3c9   : > { %v6440_v38 = vpop.f32.mrb[8].mxu1 }
 0x3ca   : > { %8180 = vst [vmem:[#allocation19_spill] sm:$0xff] %v6440_v38  ;;  %v6442_v24 = vpop.f32.mrb[9].mxu1 }
 0x3cb   : > { %8181 = vst [vmem:[#allocation20_spill] sm:$0xff] %v6442_v24  ;;  %v6444_v17 = vpop.f32.mrb[10].mxu1 }
 0x3cc   : > { %8182 = vst [vmem:[#allocation21_spill] sm:$0xff] %v6444_v17  ;;  %v6446_v3 = vpop.f32.mrb[11].mxu1 }
 0x3cd   : > { %8183 = vst [vmem:[#allocation22_spill] sm:$0xff] %v6446_v3 }
 0x3d1   : > { %v6448_v5 = vpop.f32.mrb[12].mxu1 }
 0x3d2   : > { %8184 = vst [vmem:[#allocation23_spill] sm:$0xff] %v6448_v5  ;;  %v6450_v19 = vpop.f32.mrb[13].mxu1 }
 0x3d3   : > { %8185 = vst [vmem:[#allocation24_spill] sm:$0xff] %v6450_v19  ;;  %v6452_v20 = vpop.f32.mrb[14].mxu1 }
 0x3d4   : > { %8186 = vst [vmem:[#allocation25_spill] sm:$0xff] %v6452_v20  ;;  %v6454_v40 = vpop.f32.mrb[15].mxu1 }
 0x3d5   : > { %8187 = vst [vmem:[#allocation26_spill] sm:$0xff] %v6454_v40 }
 0x3f1   : > { %v6456_v6 = vpop.f32.mrb[16].mxu1 }
 0x3f2   : > { %8188 = vst [vmem:[#allocation27_spill] sm:$0xff] %v6456_v6  ;;  %v6458_v18 = vpop.f32.mrb[17].mxu1 }
 0x3f3   : > { %8189 = vst [vmem:[#allocation28_spill] sm:$0xff] %v6458_v18  ;;  %1616 = vmax.xlane.f32.xlu1 %v6458_v18  ;;  %v6461_v38 = vpop.f32.mrb[18].mxu1 }
 0x3f4   : > { %8190 = vst [vmem:[#allocation29_spill] sm:$0xff] %v6461_v38  ;;  %v6463_v24 = vpop.f32.mrb[19].mxu1 }
 0x3f5   : > { %8191 = vst [vmem:[#allocation30_spill] sm:$0xff] %v6463_v24  ;;  %1618 = vmax.xlane.f32.xlu0 %v6463_v24  ;;  %v6597_v24 = vld [vmem:[#allocation2 + $0xc0] sm:$0xff] }
 0x3f6   : > { %8209 = vst [vmem:[#allocation46_spill] sm:$0xff] %v6597_v24 }
 0x3f7   : > { %1622 = vmax.xlane.f32.xlu1 %v6461_v38  ;;  %v6588_v38 = vld [vmem:[#allocation2 + $0xd8] sm:$0xff] }
 0x3f8   : > { %8207 = vst [vmem:[#allocation45_spill] sm:$0xff] %v6588_v38 }
 0x3f9   : > { %1620 = vmax.xlane.f32.xlu0 %v6456_v6  ;;  %v6468_v5 = vpop.f32.mrb[20].mxu1  ;;  %v8211_v6 = vsub.f32 %v6186_v29, %v6201_v34  ;;  %v6624_v29 = vld [vmem:[#allocation2 + $0xd0] sm:$0xff] }
 0x3fa   : > { %8192 = vst [vmem:[#allocation31_spill] sm:$0xff] %v6468_v5  ;;  %v6470_v19 = vpop.f32.mrb[21].mxu1  ;;  %8215 = vst [vmem:[#allocation50_spill] sm:$0xff] %v6624_v29 }
 0x3fb   : > { %8193 = vst [vmem:[#allocation32_spill] sm:$0xff] %v6470_v19  ;;  %v6472_v20 = vpop.f32.mrb[22].mxu1 }
 0x3fc   : > { %8194 = vst [vmem:[#allocation33_spill] sm:$0xff] %v6472_v20  ;;  %1630 = vmax.xlane.f32.xlu1 %v6472_v20  ;;  %v6475_v40 = vpop.f32.mrb[23].mxu1  ;;  %v6551_v20 = vld [vmem:[#allocation2 + $0xb8] sm:$0xff] }
 0x3fd   : > { %8195 = vst [vmem:[#allocation34_spill] sm:$0xff] %v6475_v40  ;;  %1624 = vmax.xlane.f32.xlu0 %v6470_v19 }
 0x400   : > { %1626 = vmax.xlane.f32.xlu1 %v6475_v40 }
 0x401   : > { %1628 = vmax.xlane.f32.xlu0 %v6468_v5  ;;  %v6480_v17 = vpop.f32.mrb[24].mxu1 }
 0x402   : > { %8196 = vst [vmem:[#allocation35_spill] sm:$0xff] %v6480_v17  ;;  %v6482_v3 = vpop.f32.mrb[25].mxu1 }
 0x403   : > { %8197 = vst [vmem:[#allocation36_spill] sm:$0xff] %v6482_v3  ;;  %v6484_v10 = vpop.f32.mrb[26].mxu1 }
 0x404   : > { %8198 = vst [vmem:[#allocation37_spill] sm:$0xff] %v6484_v10  ;;  %1638 = vmax.xlane.f32.xlu1 %v6484_v10  ;;  %v6487_v15 = vpop.f32.mrb[27].mxu1 }
 0x405   : > { %8199 = vst [vmem:[#allocation38_spill] sm:$0xff] %v6487_v15  ;;  %1632 = vmax.xlane.f32.xlu0 %v6482_v3  ;;  %v5328_v3 = vld [vmem:[%s5973_s23 + $0x6c] ss:$16 sps:$4 sm:$0xff]  }
 0x408   : > { %1634 = vmax.xlane.f32.xlu1 %v6487_v15 }
 0x409   : > { %1636 = vmax.xlane.f32.xlu0 %v6480_v17  ;;  %v6492_v21 = vpop.f32.mrb[28].mxu1  ;;  %v6573_v17 = vld [vmem:[#allocation2 + $0xb0] sm:$0xff] }
 0x40a   : > { %8200 = vst [vmem:[#allocation39_spill] sm:$0xff] %v6492_v21  ;;  %v6494_v36 = vpop.f32.mrb[29].mxu1  ;;  %8205 = vst [vmem:[#allocation43_spill] sm:$0xff] %v6573_v17 }
 0x40b   : > { %8201 = vst [vmem:[#allocation40_spill] sm:$0xff] %v6494_v36  ;;  %v6496_v7 = vpop.f32.mrb[30].mxu1 }
 0x40c   : > { %8202 = vst [vmem:[#allocation41_spill] sm:$0xff] %v6496_v7  ;;  %982 = vadd.xlane.f32.xlu1 %v6351_v2  ;;  %v6499_v4 = vpop.f32.mrb[31].mxu1  ;;  %v5325_v2 = vld [vmem:[%s5973_s23 + $0xc] ss:$16 sps:$4 sm:$0xff]  }
 0x40d   : > { %8203 = vst [vmem:[#allocation42_spill] sm:$0xff] %v6499_v4  ;;  %1640 = vmax.xlane.f32.xlu0 %v6494_v36  ;;  %v6512_v36 = vld [vmem:[#allocation2 + $0x80] sm:$0xff]  ;;  %5076 = vmatprep.subr.bf16.mxu0 %v5325_v2 }
 0x40e   : > { %5077 = vmatpush3.bf16.msra.mxu0 %v5325_v2  ;;  %v5327_v2 = vld [vmem:[%s5973_s23 + $0x4c] ss:$16 sps:$4 sm:$0xff]  }
 0x410   : > { %1646 = vmax.xlane.f32.xlu1 %v6496_v7 }
 0x411   : > { %1644 = vmax.xlane.f32.xlu0 %v6492_v21  ;;  %v6520_v21 = vld [vmem:[#allocation2 + $0x98] sm:$0xff] }
 0x414   : > { %1642 = vmax.xlane.f32.xlu1 %v6499_v4  ;;  %v6514_v4 = vld [vmem:[#allocation2 + $0x88] sm:$0xff] }
 0x415   : > { %980 = vadd.xlane.f32.xlu0 %v6349_v43  ;;  %v5326_v43 = vld [vmem:[%s5973_s23 + $0x2c] ss:$16 sps:$4 sm:$0xff]  }
 0x416   : > { %5078 = vmatprep.subr.bf16.mxu0 %v5326_v43 }
 0x417   : > { %5079 = vmatpush3.bf16.msra.mxu0 %v5326_v43  ;;  %v8204_v43 = vsub.f32 %v6193_v31, %v6205_v37 }
 0x418   : > { %986 = vadd.xlane.f32.xlu1 %v6359_v30  ;;  %5080 = vmatprep.subr.bf16.mxu0 %v5327_v2 }
 0x419   : > { %984 = vadd.xlane.f32.xlu0 %v6357_v57  ;;  %v790_v15 = vmul.f32 1.442695, %v8204_v43  ;;  %v6567_v43 = vld [vmem:[#allocation2 + $0xa8] sm:$0xff] }
 0x41b   : > { %5081 = vmatpush3.bf16.msra.mxu0 %v5327_v2  ;;  %5365 = vpow2.f32 %v790_v15 }
 0x41c   : > { %990 = vadd.xlane.f32.xlu1 %v6374_v13  ;;  %5082 = vmatprep.subr.bf16.mxu0 %v5328_v3 }
 0x41d   : > { %988 = vadd.xlane.f32.xlu0 %v6372_v32 }
 0x41f   : > { %5083 = vmatpush3.bf16.msra.mxu0 %v5328_v3  ;;  %v5329_v3 = vld [vmem:[%s5973_s23 + $0x8c] ss:$16 sps:$4 sm:$0xff]  }
 0x420   : > { %5084 = vmatprep.subr.bf16.mxu0 %v5329_v3 }
 0x421   : > { %992 = vadd.xlane.f32.xlu0 %v6380_v42 }
 0x423   : > { %5085 = vmatpush3.bf16.msra.mxu0 %v5329_v3  ;;  %v794_v3 = vmul.f32 1.442695, %v8211_v6 }
 0x425   : > { %v6626_v34 = vpop.eup %5365 }
 0x480   : > { %v1617_v7 = vpop.xlane.xlu1 %1616 }
 0x481   : > { %v6518_v30 = vmax.f32 %v6512_v36, %v1617_v7  ;;  %v6530_v7 = vld [vmem:[#allocation2 + $0x90] sm:$0xff] }
 0x482   : > { %v1619_v57 = vpop.xlane.xlu0 %1618 }
 0x483   : > { %2250 = vst.msk [vmem:[#allocation2 + $0x80] sm:$0xff] %vm1028_vm1, %v6518_v30  ;;  %v6527_v13 = vmax.f32 %v6514_v4, %v1619_v57  ;;  %1714 = vperm.xlu1 %5284, %v6518_v30  }
 0x484   : > { %v1623_v42 = vpop.xlane.xlu1 %1622 }
 0x485   : > { %2251 = vst.msk [vmem:[#allocation2 + $0x88] sm:$0xff] %vm1028_vm1, %v6527_v13  ;;  %v6538_v32 = vmax.f32 %v6520_v21, %v1623_v42  ;;  %1719 = vperm.xlu0 %5283, %v6527_v13   ;;  %v6553_v42 = vld [vmem:[#allocation2 + $0xa0] sm:$0xff] }
 0x486   : > { %v1621_v57 = vpop.xlane.xlu0 %1620 }
 0x487   : > { %2253 = vst.msk [vmem:[#allocation2 + $0x98] sm:$0xff] %vm1028_vm1, %v6538_v32  ;;  %v6549_v10 = vmax.f32 %v6530_v7, %v1621_v57 }
 0x489   : > { %2252 = vst.msk [vmem:[#allocation2 + $0x90] sm:$0xff] %vm1028_vm1, %v6549_v10  ;;  %v1631_v31 = vpop.xlane.xlu1 %1630  ;;  %1724 = vperm.xlu1 %5284, %v6549_v10  }
 0x48a   : > { %v6562_v37 = vmax.f32 %v6551_v20, %v1631_v31  ;;  %v1625_v57 = vpop.xlane.xlu0 %1624  ;;  %v8208_v31 = vsub.f32 %v6177_v23, %v6184_v28  ;;  %v5330_v23 = vld [vmem:[%s5973_s23 + $0xac] ss:$16 sps:$4 sm:$0xff]  }
 0x48b   : > { %v6565_v2 = vmax.f32 %v6553_v42, %v1625_v57  ;;  %5086 = vmatprep.subr.bf16.mxu0 %v5330_v23 }
 0x48c   : > { %2257 = vst.msk [vmem:[#allocation2 + $0xb8] sm:$0xff] %vm1028_vm1, %v6562_v37  ;;  %v788_v19 = vmul.f32 1.442695, %v8208_v31  ;;  %5087 = vmatpush3.bf16.msra.mxu0 %v5330_v23  ;;  %v8217_v23 = vsub.f32 %v6234_v49, %v6245_v55  ;;  %v6652_v49 = vld [vmem:[#allocation2 + $0xe0] sm:$0xff]  ;;  %v951_v55 = vld [vmem:[#allocation3 + $0x18] sm:$0xff] }
 0x48d   : > { %2254 = vst.msk [vmem:[#allocation2 + $0xa0] sm:$0xff] %vm1028_vm1, %v6565_v2  ;;  %v1627_v15 = vpop.xlane.xlu1 %1626  ;;  %1734 = vperm.xlu0 %5283, %v6565_v2   ;;  %1729 = vperm.xlu1 %5284, %v6538_v32   ;;  %8220 = vst [vmem:[#allocation53_spill] sm:$0xff] %v6652_v49 }
 0x48e   : > { %v6583_v57 = vmax.f32 %v6567_v43, %v1627_v15  ;;  %v1629_v40 = vpop.xlane.xlu0 %1628  ;;  %5367 = vpow2.f32 %v788_v19  ;;  %v798_v6 = vmul.f32 1.442695, %v8217_v23 }
 0x48f   : > { %v6586_v5 = vmax.f32 %v6573_v17, %v1629_v40  ;;  %v6615_v40 = vld [vmem:[#allocation2 + $0xc8] sm:$0xff]  ;;  %5369 = vpow2.f32 %v794_v3 }
 0x490   : > { %2255 = vst.msk [vmem:[#allocation2 + $0xa8] sm:$0xff] %vm1028_vm1, %v6583_v57  ;;  %8213 = vst [vmem:[#allocation49_spill] sm:$0xff] %v6615_v40 }
 0x491   : > { %8206 = vst [vmem:[#allocation44_spill] sm:$0xff] %v6586_v5  ;;  %2256 = vst.msk [vmem:[#allocation2 + $0xb0] sm:$0xff] %vm1028_vm1, %v6586_v5  ;;  %v1639_v15 = vpop.xlane.xlu1 %1638  ;;  %1744 = vperm.xlu0 %5283, %v6586_v5   ;;  %1739 = vperm.xlu1 %5284, %v6583_v57   ;;  %v8214_v5 = vsub.f32 %v6175_v22, %v6180_v25  ;;  %v949_v25 = vld [vmem:[#allocation3 + $0x8] sm:$0xff] }
 0x492   : > { %v6607_v28 = vmax.f32 %v6588_v38, %v1639_v15  ;;  %v1633_v31 = vpop.xlane.xlu0 %1632  ;;  %v965_v3 = vmul.f32 %v6626_v34, %v949_v25  ;;  %v954_v38 = vld [vmem:[#allocation3 + $0x30] sm:$0xff] }
 0x493   : > { %v6613_v18 = vmax.f32 %v6597_v24, %v1633_v31  ;;  %v792_v17 = vmul.f32 1.442695, %v8214_v5  ;;  %v5331_v5 = vld [vmem:[%s5973_s23 + $0xcc] ss:$16 sps:$4 sm:$0xff]  }
 0x494   : > { %8210 = vst [vmem:[#allocation47_spill] sm:$0xff] %v6607_v28  ;;  %2261 = vst.msk [vmem:[#allocation2 + $0xd8] sm:$0xff] %vm1028_vm1, %v6607_v28  ;;  %5088 = vmatprep.subr.bf16.mxu0 %v5331_v5 }
 0x495   : > { %8212 = vst [vmem:[#allocation48_spill] sm:$0xff] %v6613_v18  ;;  %2258 = vst.msk [vmem:[#allocation2 + $0xc0] sm:$0xff] %vm1028_vm1, %v6613_v18  ;;  %v1635_v22 = vpop.xlane.xlu1 %1634  ;;  %1754 = vperm.xlu0 %5283, %v6613_v18   ;;  %1749 = vperm.xlu1 %5284, %v6562_v37   ;;  %5371 = vpow2.f32 %v792_v17  ;;  %v8219_v18 = vsub.f32 %v6227_v47, %v6242_v54  ;;  %v5332_v47 = vld [vmem:[%s5973_s23 + $0xec] ss:$16 sps:$4 sm:$0xff]  }
 0x496   : > { %v6636_v19 = vmax.f32 %v6615_v40, %v1635_v22  ;;  %v1637_v31 = vpop.xlane.xlu0 %1636  ;;  %5089 = vmatpush3.bf16.msra.mxu0 %v5331_v5  ;;  %5373 = vpow2.f32 %v798_v6  ;;  %v8223_v5 = vsub.f32 %v6211_v39, %v6222_v45  ;;  %v6670_v22 = vld [vmem:[#allocation2 + $0xf0] sm:$0xff]  ;;  %v953_v40 = vld [vmem:[#allocation3 + $0x28] sm:$0xff] }
 0x497   : > { %v6642_v15 = vmax.f32 %v6624_v29, %v1637_v31  ;;  %v796_v24 = vmul.f32 1.442695, %v8219_v18  ;;  %v6664_v31 = vld [vmem:[#allocation2 + $0xf8] sm:$0xff]  ;;  %5090 = vmatprep.subr.bf16.mxu0 %v5332_v47  ;;  %8224 = vst [vmem:[#allocation56_spill] sm:$0xff] %v6670_v22 }
 0x498   : > { %8216 = vst [vmem:[#allocation51_spill] sm:$0xff] %v6636_v19  ;;  %2259 = vst.msk [vmem:[#allocation2 + $0xc8] sm:$0xff] %vm1028_vm1, %v6636_v19  ;;  %v800_v23 = vmul.f32 1.442695, %v8223_v5 }
 0x499   : > { %8218 = vst [vmem:[#allocation52_spill] sm:$0xff] %v6642_v15  ;;  %2260 = vst.msk [vmem:[#allocation2 + $0xd0] sm:$0xff] %vm1028_vm1, %v6642_v15  ;;  %v983_v17 = vpop.xlane.xlu1 %982  ;;  %1764 = vperm.xlu0 %5283, %v6642_v15   ;;  %1759 = vperm.xlu1 %5284, %v6636_v19   ;;  %5375 = vpow2.f32 %v796_v24  ;;  %v948_v24 = vld [vmem:[#allocation3] sm:$0xff] }
 0x49a   : > { %v1013_v54 = vadd.f32 %v983_v17, %v965_v3  ;;  %v1641_v18 = vpop.xlane.xlu0 %1640  ;;  %8222 = vst [vmem:[#allocation55_spill] sm:$0xff] %v6664_v31  ;;  %5091 = vmatpush3.bf16.msra.mxu0 %v5332_v47  ;;  %v5368_v17 = vpop.eup %5367  ;;  %v6684_v47 = vld [vmem:[#allocation2 + $0xe8] sm:$0xff]  ;;  %5377 = vpow2.f32 %v800_v23 }
 0x49b   : > { %v6662_v25 = vmax.f32 %v6652_v49, %v1641_v18  ;;  %8226 = vst [vmem:[#allocation58_spill] sm:$0xff] %v6684_v47  ;;  %v5370_v5 = vpop.eup %5369 }
 0x49c   : > { %1030 = vst.msk [vmem:[#allocation3 + $0x8] sm:$0xff] %vm1028_vm1, %v1013_v54  ;;  %v967_v3 = vmul.f32 %v5370_v5, %v951_v55 }
 0x49d   : > { %8221 = vst [vmem:[#allocation54_spill] sm:$0xff] %v6662_v25  ;;  %2262 = vst.msk [vmem:[#allocation2 + $0xe0] sm:$0xff] %vm1028_vm1, %v6662_v25  ;;  %1774 = vperm.xlu0 %5283, %v6662_v25   ;;  %v1647_v6 = vpop.xlane.xlu1 %1646  ;;  %1769 = vperm.xlu1 %5284, %v6607_v28   ;;  %v952_v28 = vld [vmem:[#allocation3 + $0x20] sm:$0xff] }
 0x49e   : > { %v6679_v39 = vmax.f32 %v6664_v31, %v1647_v6  ;;  %v1645_v45 = vpop.xlane.xlu0 %1644  ;;  %v950_v31 = vld [vmem:[#allocation3 + $0x10] sm:$0xff] }
 0x49f   : > { %v6682_v54 = vmax.f32 %v6670_v22, %v1645_v45  ;;  %v964_v45 = vmul.f32 %v5368_v17, %v948_v24  ;;  %v5372_v25 = vpop.eup %5371 }
 0x4a0   : > { %2265 = vst.msk [vmem:[#allocation2 + $0xf8] sm:$0xff] %vm1028_vm1, %v6679_v39  ;;  %v966_v22 = vmul.f32 %v5372_v25, %v950_v31 }
 0x4a1   : > { %8225 = vst [vmem:[#allocation57_spill] sm:$0xff] %v6682_v54  ;;  %2264 = vst.msk [vmem:[#allocation2 + $0xf0] sm:$0xff] %vm1028_vm1, %v6682_v54  ;;  %1784 = vperm.xlu0 %5283, %v6682_v54   ;;  %v1643_v6 = vpop.xlane.xlu1 %1642  ;;  %v5374_v54 = vpop.eup %5373 }
 0x4a2   : > { %v6696_v23 = vmax.f32 %v6684_v47, %v1643_v6  ;;  %v981_v18 = vpop.xlane.xlu0 %980 }
 0x4a3   : > { %v1012_v49 = vadd.f32 %v981_v18, %v964_v45  ;;  %v5376_v6 = vpop.eup %5375  ;;  %v969_v45 = vmul.f32 %v5374_v54, %v953_v40  ;;  %v8240_v40 = vsub.f32 %v6530_v7, %v6549_v10  ;;  %v8243_v7 = vsub.f32 %v6551_v20, %v6562_v37  ;;  %v8249_v20 = vld [vmem:[#allocation45_spill] sm:$0xff]  ;;  %v8250_v37 = vld [vmem:[#allocation47_spill] sm:$0xff] }
 0x4a4   : > { %8227 = vst [vmem:[#allocation59_spill] sm:$0xff] %v6696_v23  ;;  %2263 = vst.msk [vmem:[#allocation2 + $0xe8] sm:$0xff] %vm1028_vm1, %v6696_v23  ;;  %1779 = vperm.xlu1 %5284, %v6696_v23   ;;  %v968_v55 = vmul.f32 %v5376_v6, %v952_v28  ;;  %v5378_v23 = vpop.eup %5377 }
 0x4a5   : > { %1029 = vst.msk [vmem:[#allocation3] sm:$0xff] %vm1028_vm1, %v1012_v49  ;;  %v987_v24 = vpop.xlane.xlu1 %986  ;;  %v1684_v28 = vmul.f32 1.442695, %v8240_v40 }
 0x4a6   : > { %v1015_v15 = vadd.f32 %v987_v24, %v967_v3  ;;  %v985_v29 = vpop.xlane.xlu0 %984  ;;  %v970_v3 = vmul.f32 %v5378_v23, %v954_v38  ;;  %v8228_v38 = vsub.f32 %v6218_v41, %v6225_v46  ;;  %v8232_v41 = vsub.f32 %v6247_v56, %v6262_v63 }
 0x4a7   : > { %v1014_v18 = vadd.f32 %v985_v29, %v966_v22  ;;  %v8235_v56 = vsub.f32 %v6289_v35, %v6307_v53  ;;  %v8238_v53 = vsub.f32 %v6514_v4, %v6527_v13  ;;  %v8241_v4 = vsub.f32 %v6567_v43, %v6583_v57  ;;  %v8244_v43 = vld [vmem:[#allocation28_spill] sm:$0xff] }
 0x4a8   : > { %1032 = vst.msk [vmem:[#allocation3 + $0x18] sm:$0xff] %vm1028_vm1, %v1015_v15  ;;  %1789 = vperm.xlu1 %5284, %v6679_v39   ;;  %v808_v46 = vmul.f32 1.442695, %v8232_v41  ;;  %v8242_v15 = vsub.f32 %v6553_v42, %v6565_v2  ;;  %v8246_v42 = vld [vmem:[#allocation43_spill] sm:$0xff]  ;;  %v8247_v2 = vld [vmem:[#allocation44_spill] sm:$0xff] }
 0x4a9   : > { %1031 = vst.msk [vmem:[#allocation3 + $0x10] sm:$0xff] %vm1028_vm1, %v1014_v18  ;;  %v991_v19 = vpop.xlane.xlu1 %990  ;;  %v818_v63 = vmul.f32 1.442695, %v8235_v56  ;;  %v1690_v13 = vmul.f32 1.442695, %v8241_v4  ;;  %v8248_v24 = vsub.f32 %v8246_v42, %v8247_v2  ;;  %v8251_v18 = vsub.f32 %v8249_v20, %v8250_v37 }
 0x4aa   : > { %v1017_v47 = vadd.f32 %v991_v19, %v969_v45  ;;  %v989_v49 = vpop.xlane.xlu0 %988  ;;  %v1694_v19 = vmul.f32 1.442695, %v8243_v7 }
 0x4ab   : > { %v1016_v31 = vadd.f32 %v989_v49, %v968_v55  ;;  %v1702_v45 = vmul.f32 1.442695, %v8251_v18 }
 0x4ac   : > { %1034 = vst.msk [vmem:[#allocation3 + $0x28] sm:$0xff] %vm1028_vm1, %v1017_v47 }
 0x4ad   : > { %1033 = vst.msk [vmem:[#allocation3 + $0x20] sm:$0xff] %vm1028_vm1, %v1016_v31 }
 0x4ae   : > { %v993_v29 = vpop.xlane.xlu0 %992 }
 0x4af   : > { %v1018_v22 = vadd.f32 %v993_v29, %v970_v3  ;;  %v8252_v29 = vld [vmem:[#allocation27_spill] sm:$0xff] }
 0x4b1   : > { %1035 = vst.msk [vmem:[#allocation3 + $0x30] sm:$0xff] %vm1028_vm1, %v1018_v22 }
 0x4c0   : > { %994 = vadd.xlane.f32.xlu0 %v6382_v9  ;;  %v802_v9 = vmul.f32 1.442695, %v8228_v38  ;;  %v8253_v38 = vld [vmem:[#allocation50_spill] sm:$0xff] }
 0x4c2   : > { %5379 = vpow2.f32 %v802_v9  ;;  %v8254_v9 = vld [vmem:[#allocation52_spill] sm:$0xff] }
 0x4c4   : > { %998 = vadd.xlane.f32.xlu0 %v6388_v14  ;;  %v8229_v14 = vsub.f32 %v6270_v11, %v6284_v27  ;;  %v8233_v11 = vsub.f32 %v6312_v61, %v6328_v62  ;;  %v8236_v61 = vsub.f32 %v6286_v33, %v6301_v51  ;;  %v1682_v33 = vmul.f32 1.442695, %v8238_v53 }
 0x4c5   : > { %v8239_v51 = vsub.f32 %v6520_v21, %v6538_v32 }
 0x4c6   : > { %v814_v27 = vmul.f32 1.442695, %v8233_v11  ;;  %v816_v62 = vmul.f32 1.442695, %v8236_v61  ;;  %v8260_v11 = vld [vmem:[#allocation48_spill] sm:$0xff] }
 0x4c8   : > { %1000 = vadd.xlane.f32.xlu0 %v6396_v8  ;;  %v806_v8 = vmul.f32 1.442695, %v8229_v14  ;;  %v8255_v14 = vsub.f32 %v8253_v38, %v8254_v9 }
 0x4ca   : > { %5381 = vpow2.f32 %v806_v8  ;;  %v1700_v8 = vmul.f32 1.442695, %v8255_v14 }
 0x4cc   : > { %1004 = vadd.xlane.f32.xlu0 %v6403_v48  ;;  %996 = vadd.xlane.f32.xlu1 %v6390_v16  ;;  %v8230_v16 = vsub.f32 %v6267_v1, %v6281_v26  ;;  %v6738_v1 = vpop.eup %5379 }
 0x4d0   : > { %1008 = vadd.xlane.f32.xlu0 %v6409_v12  ;;  %1002 = vadd.xlane.f32.xlu1 %v6394_v50  ;;  %v804_v50 = vmul.f32 1.442695, %v8230_v16  ;;  %v1686_v12 = vmul.f32 1.442695, %v8239_v51  ;;  %v8256_v16 = vld [vmem:[#allocation49_spill] sm:$0xff]  ;;  %v8265_v51 = vld [vmem:[#allocation59_spill] sm:$0xff] }
 0x4d2   : > { %5383 = vpow2.f32 %v804_v50  ;;  %v8257_v50 = vld [vmem:[#allocation51_spill] sm:$0xff] }
 0x4d4   : > { %1006 = vadd.xlane.f32.xlu1 %v6401_v52  ;;  %v8231_v52 = vsub.f32 %v6254_v58, %v6265_v0  ;;  %v8234_v58 = vsub.f32 %v6309_v60, %v6325_v44  ;;  %v6747_v26 = vpop.eup %5381  ;;  %v8237_v60 = vsub.f32 %v6512_v36, %v6518_v30 }
 0x4d6   : > { %v810_v48 = vmul.f32 1.442695, %v8231_v52  ;;  %v812_v0 = vmul.f32 1.442695, %v8234_v58  ;;  %v1680_v44 = vmul.f32 1.442695, %v8237_v60  ;;  %v8258_v52 = vsub.f32 %v8256_v16, %v8257_v50 }
 0x4d8   : > { %1010 = vadd.xlane.f32.xlu1 %v6407_v59  ;;  %5385 = vpow2.f32 %v810_v48  ;;  %v1698_v48 = vmul.f32 1.442695, %v8258_v52 }
 0x4d9   : > { %5387 = vpow2.f32 %v808_v46  ;;  %v8259_v46 = vld [vmem:[#allocation46_spill] sm:$0xff] }
 0x4da   : > { %5389 = vpow2.f32 %v814_v27  ;;  %v8261_v27 = vsub.f32 %v8259_v46, %v8260_v11  ;;  %v8275_v11 = vld [vmem:[#allocation38_spill] sm:$0xff] }
 0x4db   : > { %5391 = vpow2.f32 %v812_v0 }
 0x4dc   : > { %5393 = vpow2.f32 %v818_v63  ;;  %v6756_v59 = vpop.eup %5383  ;;  %v1696_v58 = vmul.f32 1.442695, %v8261_v27 }
 0x4dd   : > { %5395 = vpow2.f32 %v816_v62  ;;  %v8262_v62 = vld [vmem:[#allocation32_spill] sm:$0xff] }
 0x4de   : > { %5397 = vpow2.f32 %v1680_v44  ;;  %v8263_v44 = vld [vmem:[#allocation29_spill] sm:$0xff] }
 0x4df   : > { %5399 = vpow2.f32 %v1682_v33  ;;  %v8264_v33 = vld [vmem:[#allocation58_spill] sm:$0xff] }
 0x4e0   : > { %5401 = vpow2.f32 %v1686_v12  ;;  %v8266_v12 = vsub.f32 %v8264_v33, %v8265_v51  ;;  %v8276_v33 = vld [vmem:[#allocation37_spill] sm:$0xff] }
 0x4e1   : > { %5403 = vpow2.f32 %v1684_v28 }
 0x4e2   : > { %v6758_v35 = vpop.eup %5385  ;;  %5405 = vpow2.f32 %v1690_v13  ;;  %v1706_v40 = vmul.f32 1.442695, %v8266_v12  ;;  %v8267_v13 = vld [vmem:[#allocation53_spill] sm:$0xff] }
 0x4e3   : > { %v6768_v36 = vpop.eup %5387 }
 0x4e4   : > { %v6770_v30 = vpop.eup %5389 }
 0x4e5   : > { %v6780_v21 = vpop.eup %5391 }
 0x4e6   : > { %1232 = vperm.xlu0 %5283, %v5368_v17   ;;  %v6782_v32 = vpop.eup %5393 }
 0x4e9   : > { %1237 = vperm.xlu1 %5284, %v6626_v34   ;;  %v1688_v34 = vmul.f32 1.442695, %v8242_v15  ;;  %v8268_v15 = vld [vmem:[#allocation54_spill] sm:$0xff] }
 0x4ea   : > { %1247 = vperm.xlu0 %5283, %v5370_v5   ;;  %v8245_v5 = vld [vmem:[#allocation30_spill] sm:$0xff] }
 0x4eb   : > { %5407 = vpow2.f32 %v1688_v34  ;;  %v8269_v34 = vsub.f32 %v8267_v13, %v8268_v15  ;;  %v8277_v13 = vld [vmem:[#allocation40_spill] sm:$0xff] }
 0x4ec   : > { %5409 = vpow2.f32 %v1694_v19 }
 0x4ed   : > { %1242 = vperm.xlu1 %5284, %v5372_v25   ;;  %v6793_v25 = vpop.eup %5395 }
 0x4ee   : > { %1257 = vperm.xlu0 %5283, %v5374_v54   ;;  %v6795_v54 = vpop.eup %5397 }
 0x4ef   : > { %v6806_v49 = vpop.eup %5399 }
 0x4f0   : > { %v6808_v3 = vpop.eup %5401 }
 0x4f1   : > { %1252 = vperm.xlu1 %5284, %v5376_v6   ;;  %v1692_v6 = vmul.f32 1.442695, %v8248_v24  ;;  %v6819_v41 = vpop.eup %5403 }
 0x4f2   : > { %1267 = vperm.xlu0 %5283, %v6738_v1   ;;  %v6824_v63 = vpop.eup %5405 }
 0x4f5   : > { %1262 = vperm.xlu1 %5284, %v5378_v23   ;;  %v6833_v4 = vpop.eup %5407 }
 0x4f6   : > { %1277 = vperm.xlu0 %5283, %v6747_v26  }
 0x4f9   : > { %1272 = vperm.xlu1 %5284, %v6756_v59  }
 0x4fa   : > { %1287 = vperm.xlu0 %5283, %v6758_v35  }
 0x4fd   : > { %1282 = vperm.xlu1 %5284, %v6768_v36  }
 0x4fe   : > { %1297 = vperm.xlu0 %5283, %v6770_v30  }
 0x501   : > { %1292 = vperm.xlu1 %5284, %v6780_v21  }
 0x502   : > { %1307 = vperm.xlu0 %5283, %v6782_v32   ;;  %v1715_v10 = vpop.permute.xlu1 %1714 }
 0x503   : > { %v1792_v57 = vsub.f32 %v8244_v43, %v1715_v10  ;;  %v1704_v10 = vmul.f32 1.442695, %v8269_v34  ;;  %v6838_v43 = vpop.eup %5409 }
 0x504   : > { %v1720_v17 = vpop.permute.xlu0 %1719 }
 0x505   : > { %v1808_v47 = vmul.f32 1.442695, %v1792_v57  ;;  %v1793_v23 = vsub.f32 %v8245_v5, %v1720_v17  ;;  %1302 = vperm.xlu1 %5284, %v6793_v25   ;;  %v8270_v17 = vld [vmem:[#allocation31_spill] sm:$0xff]  ;;  %v8271_v5 = vld [vmem:[#allocation34_spill] sm:$0xff] }
 0x506   : > { %2124 = vperm.xlu0 %5283, %v6795_v54  }
 0x507   : > { %v1810_v55 = vmul.f32 1.442695, %v1793_v23  ;;  %5411 = vpow2.f32 %v1808_v47 }
 0x508   : > { %v1725_v31 = vpop.permute.xlu1 %1724 }
 0x509   : > { %5413 = vpow2.f32 %v1810_v55  ;;  %v1794_v22 = vsub.f32 %v8252_v29, %v1725_v31  ;;  %2129 = vperm.xlu1 %5284, %v6806_v49   ;;  %v8272_v31 = vld [vmem:[#allocation36_spill] sm:$0xff] }
 0x50a   : > { %5415 = vpow2.f32 %v1692_v6  ;;  %2139 = vperm.xlu0 %5283, %v6808_v3  }
 0x50b   : > { %5417 = vpow2.f32 %v1702_v45  ;;  %v1812_v61 = vmul.f32 1.442695, %v1794_v22  ;;  %v8273_v22 = vld [vmem:[#allocation33_spill] sm:$0xff] }
 0x50c   : > { %v1735_v0 = vpop.permute.xlu0 %1734  ;;  %v1730_v56 = vpop.permute.xlu1 %1729  ;;  %5419 = vpow2.f32 %v1700_v8 }
 0x50d   : > { %v1796_v60 = vsub.f32 %v8262_v62, %v1735_v0  ;;  %v1795_v53 = vsub.f32 %v8263_v44, %v1730_v56  ;;  %2134 = vperm.xlu1 %5284, %v6819_v41   ;;  %5421 = vpow2.f32 %v1698_v48  ;;  %v8274_v48 = vld [vmem:[#allocation35_spill] sm:$0xff] }
 0x50e   : > { %2149 = vperm.xlu0 %5283, %v6824_v63   ;;  %5423 = vpow2.f32 %v1696_v58 }
 0x50f   : > { %v1814_v28 = vmul.f32 1.442695, %v1795_v53  ;;  %5425 = vpow2.f32 %v1812_v61  ;;  %v1816_v57 = vmul.f32 1.442695, %v1796_v60 }
 0x510   : > { %v1745_v7 = vpop.permute.xlu0 %1744  ;;  %v1740_v19 = vpop.permute.xlu1 %1739 }
 0x511   : > { %v1798_v47 = vsub.f32 %v8270_v17, %v1745_v7  ;;  %v1797_v23 = vsub.f32 %v8271_v5, %v1740_v19  ;;  %2144 = vperm.xlu1 %5284, %v6833_v4   ;;  %v6843_v42 = vpop.eup %5411  ;;  %5427 = vpow2.f32 %v1814_v28 }
 0x512   : > { %2159 = vperm.xlu0 %5283, %v6838_v43   ;;  %5429 = vpow2.f32 %v1706_v40 }
 0x513   : > { %v6846_v2 = vpop.eup %5413  ;;  %v1818_v24 = vmul.f32 1.442695, %v1797_v23  ;;  %5431 = vpow2.f32 %v1704_v10  ;;  %v1820_v55 = vmul.f32 1.442695, %v1798_v47  ;;  %v8278_v47 = vld [vmem:[#allocation39_spill] sm:$0xff] }
 0x514   : > { %v6848_v6 = vpop.eup %5415  ;;  %v1755_v20 = vpop.permute.xlu0 %1754  ;;  %v1953_v18 = vpack.c.bf16 %v6846_v2, %v6843_v42  ;;  %5433 = vpow2.f32 %v1816_v57 }
 0x515   : > { %v1750_v37 = vpop.permute.xlu1 %1749  ;;  %v6852_v45 = vpop.eup %5417  ;;  %v1800_v29 = vsub.f32 %v8272_v31, %v1755_v20  ;;  %2154 = vperm.xlu1 %5284, %v6848_v6   ;;  %5435 = vpow2.f32 %v1818_v24  ;;  %v8279_v20 = vld [vmem:[#allocation42_spill] sm:$0xff] }
 0x516   : > { %v1799_v38 = vsub.f32 %v8273_v22, %v1750_v37  ;;  %2179 = vperm.xlu0 %5283, %v6852_v45   ;;  %5092 = vmatprep.mubr.bf16.mxu0 %v1953_v18  ;;  %v6858_v14 = vpop.eup %5419  ;;  %5437 = vpow2.f32 %v1820_v55 }
 0x517   : > { %v6860_v50 = vpop.eup %5421  ;;  %v1824_v52 = vmul.f32 1.442695, %v1800_v29 }
 0x518   : > { %v1822_v9 = vmul.f32 1.442695, %v1799_v38  ;;  %v1765_v8 = vpop.permute.xlu0 %1764  ;;  %v6865_v58 = vpop.eup %5423 }
 0x519   : > { %v1760_v16 = vpop.permute.xlu1 %1759  ;;  %v1802_v46 = vsub.f32 %v8274_v48, %v1765_v8  ;;  %2174 = vperm.xlu1 %5284, %v6858_v14   ;;  %v5426_v0 = vpop.eup %5425 }
 0x51a   : > { %v1801_v27 = vsub.f32 %v8275_v11, %v1760_v16  ;;  %5439 = vpow2.f32 %v1822_v9  ;;  %2169 = vperm.xlu0 %5283, %v6860_v50   ;;  %v8280_v9 = vld [vmem:[#allocation41_spill] sm:$0xff] }
 0x51b   : > { %v5428_v61 = vpop.eup %5427  ;;  %5441 = vpow2.f32 %v1824_v52  ;;  %v1828_v53 = vmul.f32 1.442695, %v1802_v46 }
 0x51c   : > { %v1826_v56 = vmul.f32 1.442695, %v1801_v27  ;;  %v1775_v62 = vpop.permute.xlu0 %1774  ;;  %v6868_v44 = vpop.eup %5429  ;;  %v1954_v12 = vpack.c.bf16 %v5428_v61, %v5426_v0 }
 0x51d   : > { %v1770_v60 = vpop.permute.xlu1 %1769  ;;  %2164 = vperm.xlu1 %5284, %v6865_v58   ;;  %v6872_v40 = vpop.eup %5431  ;;  %v1804_v15 = vsub.f32 %v8277_v13, %v1775_v62 }
 0x51e   : > { %v1803_v51 = vsub.f32 %v8276_v33, %v1770_v60  ;;  %5443 = vpow2.f32 %v1826_v56  ;;  %2189 = vperm.xlu0 %5283, %v6868_v44   ;;  %v5434_v28 = vpop.eup %5433  ;;  %5093 = vmatmul.mubr.bf16.vlgmr.msra.gmra.mrb[16].mxu0 %v1954_v12 }
 0x51f   : > { %v5436_v10 = vpop.eup %5435  ;;  %5445 = vpow2.f32 %v1828_v53  ;;  %v1832_v17 = vmul.f32 1.442695, %v1804_v15  ;;  %v957_v15 = vld [vmem:[#allocation3 + $0x48] sm:$0xff] }
 0x520   : > { %v1830_v34 = vmul.f32 1.442695, %v1803_v51  ;;  %v1785_v7 = vpop.permute.xlu0 %1784  ;;  %v1955_v19 = vpack.c.bf16 %v5436_v10, %v5434_v28  ;;  %v5438_v57 = vpop.eup %5437  ;;  %v955_v51 = vld [vmem:[#allocation3 + $0x38] sm:$0xff] }
 0x521   : > { %2184 = vperm.xlu1 %5284, %v6872_v40   ;;  %v1806_v5 = vsub.f32 %v8278_v47, %v1785_v7  ;;  %v971_v12 = vmul.f32 %v6738_v1, %v955_v51  ;;  %v973_v7 = vmul.f32 %v6747_v26, %v957_v15  ;;  %v960_v1 = vld [vmem:[#allocation3 + $0x60] sm:$0xff] }
 0x522   : > { %5447 = vpow2.f32 %v1830_v34  ;;  %5096 = vmatprep.mubr.bf16.mxu0 %v1955_v19  ;;  %v956_v19 = vld [vmem:[#allocation3 + $0x40] sm:$0xff] }
 0x523   : > { %v1780_v23 = vpop.permute.xlu1 %1779  ;;  %5449 = vpow2.f32 %v1832_v17  ;;  %v1836_v29 = vmul.f32 1.442695, %v1806_v5  ;;  %v976_v17 = vmul.f32 %v6780_v21, %v960_v1  ;;  %v972_v26 = vmul.f32 %v6756_v59, %v956_v19  ;;  %v962_v5 = vld [vmem:[#allocation3 + $0x70] sm:$0xff]  ;;  %v961_v59 = vld [vmem:[#allocation3 + $0x68] sm:$0xff] }
 0x524   : > { %v5440_v24 = vpop.eup %5439  ;;  %v1805_v37 = vsub.f32 %v8279_v20, %v1780_v23  ;;  %v959_v23 = vld [vmem:[#allocation3 + $0x58] sm:$0xff]  ;;  %v978_v20 = vmul.f32 %v6793_v25, %v962_v5 }
 0x525   : > { %v1956_v18 = vpack.c.bf16 %v5440_v24, %v5438_v57  ;;  %v5442_v31 = vpop.eup %5441 }
 0x526   : > { %v1834_v55 = vmul.f32 1.442695, %v1805_v37  ;;  %v975_v37 = vmul.f32 %v6758_v35, %v959_v23  ;;  %v8290_v23 = vld [vmem:[#allocation11_spill] sm:$0xff] }
 0x527   : > { %5097 = vmatmul.mubr.bf16.gmra.mrb[20].mxu0 %v1956_v18  ;;  %v1790_v22 = vpop.permute.xlu1 %1789 }
 0x528   : > { %v5444_v38 = vpop.eup %5443  ;;  %5451 = vpow2.f32 %v1834_v55  ;;  %v1807_v8 = vsub.f32 %v8280_v9, %v1790_v22  ;;  %v977_v9 = vmul.f32 %v6770_v30, %v961_v59  ;;  %v1217_v30 = vld [vmem:[#allocation4 + $0x30] sm:$0xff] }
 0x529   : > { %v1957_v16 = vpack.c.bf16 %v5444_v38, %v5442_v31  ;;  %v5446_v48 = vpop.eup %5445  ;;  %5453 = vpow2.f32 %v1836_v29  ;;  %v8281_v29 = vld [vmem:[#allocation55_spill] sm:$0xff]  ;;  %v1223_v59 = vld [vmem:[#allocation4 + $0x90] sm:$0xff] }
 0x52a   : > { %v1838_v52 = vmul.f32 1.442695, %v1807_v8  ;;  %v8282_v22 = vsub.f32 %v8281_v29, %v6679_v39  ;;  %v963_v8 = vld [vmem:[#allocation3 + $0x78] sm:$0xff] }
 0x52b   : > { %5100 = vmatprep.mubr.bf16.mxu0 %v1957_v16  ;;  %v8283_v16 = vld [vmem:[#allocation56_spill] sm:$0xff]  ;;  %v979_v39 = vmul.f32 %v6782_v32, %v963_v8 }
 0x52c   : > { %v5448_v46 = vpop.eup %5447  ;;  %5455 = vpow2.f32 %v1838_v52  ;;  %v8284_v52 = vld [vmem:[#allocation57_spill] sm:$0xff] }
 0x52d   : > { %v1958_v11 = vpack.c.bf16 %v5448_v46, %v5446_v48  ;;  %v5450_v27 = vpop.eup %5449 }
 0x52f   : > { %5101 = vmatmul.mubr.bf16.gmra.mrb[24].mxu0 %v1958_v11  ;;  %v1214_v11 = vld [vmem:[#allocation4] sm:$0xff] }
 0x532   : > { %v5452_v56 = vpop.eup %5451 }
 0x533   : > { %v1959_v62 = vpack.c.bf16 %v5452_v56, %v5450_v27  ;;  %v5454_v60 = vpop.eup %5453 }
 0x535   : > { %5104 = vmatprep.mubr.bf16.mxu0 %v1959_v62 }
 0x536   : > { %v5456_v53 = vpop.eup %5455 }
 0x537   : > { %v1960_v33 = vpack.c.bf16 %v5456_v53, %v5454_v60 }
 0x539   : > { %5105 = vmatmul.mubr.bf16.gmra.mrb[28].mxu0 %v1960_v33  ;;  %v8286_v33 = vld [vmem:[#allocation12_spill] sm:$0xff] }
 0x53d   : > { %1877 = vadd.xlane.f32.xlu0 %v5426_v0 }
 0x541   : > { %1875 = vadd.xlane.f32.xlu0 %v6846_v2  ;;  %v958_v2 = vld [vmem:[#allocation3 + $0x50] sm:$0xff] }
 0x545   : > { %1873 = vadd.xlane.f32.xlu1 %v6843_v42  ;;  %1885 = vadd.xlane.f32.xlu0 %v5438_v57 }
 0x549   : > { %1881 = vadd.xlane.f32.xlu0 %v5434_v28  ;;  %1879 = vadd.xlane.f32.xlu1 %v5428_v61  ;;  %v974_v61 = vmul.f32 %v6768_v36, %v958_v2  ;;  %v8287_v2 = vld [vmem:[#allocation13_spill] sm:$0xff] }
 0x54d   : > { %v995_v13 = vpop.xlane.xlu0 %994  ;;  %1893 = vadd.xlane.f32.xlu0 %v5446_v48  ;;  %1887 = vadd.xlane.f32.xlu1 %v5440_v24  ;;  %v8285_v48 = vsub.f32 %v8283_v16, %v8284_v52  ;;  %v1225_v16 = vld [vmem:[#allocation4 + $0xb0] sm:$0xff]  ;;  %v1222_v52 = vld [vmem:[#allocation4 + $0x80] sm:$0xff] }
 0x54e   : > { %v1019_v34 = vadd.f32 %v995_v13, %v971_v12 }
 0x550   : > { %1036 = vst.msk [vmem:[#allocation3 + $0x38] sm:$0xff] %vm1028_vm1, %v1019_v34 }
 0x551   : > { %v999_v0 = vpop.xlane.xlu0 %998  ;;  %1889 = vadd.xlane.f32.xlu0 %v5442_v31  ;;  %1883 = vadd.xlane.f32.xlu1 %v5436_v10 }
 0x552   : > { %v1021_v42 = vadd.f32 %v999_v0, %v973_v7  ;;  %v1219_v7 = vld [vmem:[#allocation4 + $0x50] sm:$0xff]  ;;  %v1216_v0 = vld [vmem:[#allocation4 + $0x20] sm:$0xff] }
 0x554   : > { %1038 = vst.msk [vmem:[#allocation3 + $0x48] sm:$0xff] %vm1028_vm1, %v1021_v42  ;;  %v8288_v42 = vld [vmem:[#allocation14_spill] sm:$0xff] }
 0x555   : > { %v1001_v28 = vpop.xlane.xlu0 %1000  ;;  %1901 = vadd.xlane.f32.xlu0 %v5454_v60  ;;  %1895 = vadd.xlane.f32.xlu1 %v5448_v46  ;;  %v1708_v46 = vmul.f32 1.442695, %v8285_v48  ;;  %v8293_v48 = vld [vmem:[#allocation22_spill] sm:$0xff] }
 0x556   : > { %v1022_v57 = vadd.f32 %v1001_v28, %v974_v61 }
 0x558   : > { %1039 = vst.msk [vmem:[#allocation3 + $0x50] sm:$0xff] %vm1028_vm1, %v1022_v57 }
 0x559   : > { %v1005_v47 = vpop.xlane.xlu0 %1004  ;;  %1897 = vadd.xlane.f32.xlu0 %v5450_v27  ;;  %1891 = vadd.xlane.f32.xlu1 %v5444_v38  ;;  %v997_v10 = vpop.xlane.xlu1 %996  ;;  %v1710_v38 = vmul.f32 1.442695, %v8282_v22  ;;  %v8292_v22 = vld [vmem:[#allocation16_spill] sm:$0xff] }
 0x55a   : > { %v1024_v24 = vadd.f32 %v1005_v47, %v976_v17  ;;  %v1020_v36 = vadd.f32 %v997_v10, %v972_v26  ;;  %v1221_v26 = vld [vmem:[#allocation4 + $0x70] sm:$0xff]  ;;  %v1218_v47 = vld [vmem:[#allocation4 + $0x40] sm:$0xff]  ;;  %v8289_v10 = vld [vmem:[#allocation18_spill] sm:$0xff] }
 0x55b   : > { %5457 = vpow2.f32 %v1710_v38 }
 0x55c   : > { %1041 = vst.msk [vmem:[#allocation3 + $0x60] sm:$0xff] %vm1028_vm1, %v1024_v24  ;;  %1037 = vst.msk [vmem:[#allocation3 + $0x40] sm:$0xff] %vm1028_vm1, %v1020_v36  ;;  %5459 = vpow2.f32 %v1708_v46 }
 0x55d   : > { %v1009_v18 = vpop.xlane.xlu0 %1008  ;;  %1903 = vadd.xlane.f32.xlu1 %v5456_v53  ;;  %v1003_v21 = vpop.xlane.xlu1 %1002 }
 0x55e   : > { %v1026_v55 = vadd.f32 %v1009_v18, %v978_v20  ;;  %v1023_v31 = vadd.f32 %v1003_v21, %v975_v37 }
 0x560   : > { %1043 = vst.msk [vmem:[#allocation3 + $0x70] sm:$0xff] %vm1028_vm1, %v1026_v55  ;;  %1040 = vst.msk [vmem:[#allocation3 + $0x58] sm:$0xff] %vm1028_vm1, %v1023_v31  ;;  %v1220_v55 = vld [vmem:[#allocation4 + $0x60] sm:$0xff]  ;;  %v8291_v31 = vld [vmem:[#allocation17_spill] sm:$0xff] }
 0x561   : > { %1899 = vadd.xlane.f32.xlu1 %v5452_v56  ;;  %v1007_v25 = vpop.xlane.xlu1 %1006  ;;  %v1215_v56 = vld [vmem:[#allocation4 + $0x10] sm:$0xff] }
 0x562   : > { %v1025_v35 = vadd.f32 %v1007_v25, %v977_v9 }
 0x564   : > { %1042 = vst.msk [vmem:[#allocation3 + $0x68] sm:$0xff] %vm1028_vm1, %v1025_v35 }
 0x565   : > { %v1233_v27 = vpop.permute.xlu0 %1232  ;;  %v1011_v62 = vpop.xlane.xlu1 %1010 }
 0x566   : > { %v1310_v60 = vmul.f32 %v1233_v27, %v1214_v11  ;;  %v1027_v53 = vadd.f32 %v1011_v62, %v979_v39  ;;  %v6909_v19 = vpop.eup %5457  ;;  %v8294_v11 = vld [vmem:[#allocation15_spill] sm:$0xff] }
 0x567   : > { %v6914_v36 = vpop.eup %5459 }
 0x568   : > { %v1326_v51 = vadd.f32 %v1310_v60, %v8286_v33  ;;  %1044 = vst.msk [vmem:[#allocation3 + $0x78] sm:$0xff] %vm1028_vm1, %v1027_v53  ;;  %v8295_v33 = vld [vmem:[#allocation21_spill] sm:$0xff] }
 0x569   : > { %v1248_v12 = vpop.permute.xlu0 %1247  ;;  %v1238_v13 = vpop.permute.xlu1 %1237 }
 0x56a   : > { %1342 = vst [vmem:[#allocation4] sm:$0xff] %v1326_v51  ;;  %v1313_v15 = vmul.f32 %v1248_v12, %v1217_v30  ;;  %v1311_v34 = vmul.f32 %v1238_v13, %v1215_v56  ;;  %v1227_v30 = vld [vmem:[#allocation4 + $0xd0] sm:$0xff]  ;;  %v1224_v56 = vld [vmem:[#allocation4 + $0xa0] sm:$0xff]  ;;  %v8296_v12 = vld [vmem:[#allocation20_spill] sm:$0xff] }
 0x56c   : > { %v1329_v32 = vadd.f32 %v8287_v2, %v1313_v15  ;;  %v1327_v61 = vadd.f32 %v1311_v34, %v8288_v42  ;;  %v1229_v2 = vld [vmem:[#allocation4 + $0xf0] sm:$0xff]  ;;  %v8297_v42 = vld [vmem:[#allocation26_spill] sm:$0xff] }
 0x56d   : > { %v1258_v28 = vpop.permute.xlu0 %1257  ;;  %v1243_v1 = vpop.permute.xlu1 %1242 }
 0x56e   : > { %1345 = vst [vmem:[#allocation4 + $0x30] sm:$0xff] %v1329_v32  ;;  %1343 = vst [vmem:[#allocation4 + $0x10] sm:$0xff] %v1327_v61  ;;  %v1315_v57 = vmul.f32 %v1258_v28, %v1219_v7  ;;  %v1312_v17 = vmul.f32 %v1243_v1, %v1216_v0  ;;  %v1226_v32 = vld [vmem:[#allocation4 + $0xc0] sm:$0xff] }
 0x56f   : > { %2199 = vperm.xlu0 %5283, %v6909_v19   ;;  %v8298_v28 = vld [vmem:[#allocation19_spill] sm:$0xff] }
 0x570   : > { %v1331_v5 = vadd.f32 %v1315_v57, %v8289_v10  ;;  %v1328_v24 = vadd.f32 %v8290_v23, %v1312_v17  ;;  %v1228_v10 = vld [vmem:[#allocation4 + $0xe0] sm:$0xff] }
 0x571   : > { %v1268_v20 = vpop.permute.xlu0 %1267  ;;  %v1253_v37 = vpop.permute.xlu1 %1252 }
 0x572   : > { %1347 = vst [vmem:[#allocation4 + $0x50] sm:$0xff] %v1331_v5  ;;  %1344 = vst [vmem:[#allocation4 + $0x20] sm:$0xff] %v1328_v24  ;;  %v1317_v18 = vmul.f32 %v1268_v20, %v1221_v26  ;;  %v1314_v21 = vmul.f32 %v1253_v37, %v1218_v47  ;;  %2194 = vperm.xlu1 %5284, %v6914_v36   ;;  %v8299_v5 = vld [vmem:[#allocation25_spill] sm:$0xff]  ;;  %v8300_v24 = vld [vmem:[#allocation24_spill] sm:$0xff] }
 0x574   : > { %v1333_v29 = vadd.f32 %v8291_v31, %v1317_v18  ;;  %v1330_v38 = vadd.f32 %v1314_v21, %v8292_v22  ;;  %v8301_v21 = vld [vmem:[#allocation23_spill] sm:$0xff] }
 0x575   : > { %v1278_v9 = vpop.permute.xlu0 %1277  ;;  %v1263_v25 = vpop.permute.xlu1 %1262 }
 0x576   : > { %1349 = vst [vmem:[#allocation4 + $0x70] sm:$0xff] %v1333_v29  ;;  %1346 = vst [vmem:[#allocation4 + $0x40] sm:$0xff] %v1330_v38  ;;  %v1319_v8 = vmul.f32 %v1278_v9, %v1223_v59  ;;  %v1316_v35 = vmul.f32 %v1263_v25, %v1220_v55 }
 0x578   : > { %v1335_v46 = vadd.f32 %v1319_v8, %v8293_v48  ;;  %v1332_v39 = vadd.f32 %v8294_v11, %v1316_v35 }
 0x579   : > { %v1288_v27 = vpop.permute.xlu0 %1287  ;;  %v1273_v62 = vpop.permute.xlu1 %1272 }
 0x57a   : > { %1351 = vst [vmem:[#allocation4 + $0x90] sm:$0xff] %v1335_v46  ;;  %1348 = vst [vmem:[#allocation4 + $0x60] sm:$0xff] %v1332_v39  ;;  %v1321_v60 = vmul.f32 %v1288_v27, %v1225_v16  ;;  %v1318_v53 = vmul.f32 %v1273_v62, %v1222_v52  ;;  %v1843_v46 = vld [vmem:[#allocation3 + $0x90] sm:$0xff]  ;;  %v1842_v62 = vld [vmem:[#allocation3 + $0x88] sm:$0xff] }
 0x57b   : > { %v1859_v39 = vmul.f32 %v6819_v41, %v1843_v46 }
 0x57c   : > { %v1337_v51 = vadd.f32 %v8295_v33, %v1321_v60  ;;  %v1334_v13 = vadd.f32 %v1318_v53, %v8296_v12  ;;  %v1858_v53 = vmul.f32 %v6806_v49, %v1842_v62  ;;  %v1847_v33 = vld [vmem:[#allocation3 + $0xb0] sm:$0xff] }
 0x57d   : > { %v1298_v15 = vpop.permute.xlu0 %1297  ;;  %v1283_v34 = vpop.permute.xlu1 %1282 }
 0x57e   : > { %1353 = vst [vmem:[#allocation4 + $0xb0] sm:$0xff] %v1337_v51  ;;  %1350 = vst [vmem:[#allocation4 + $0x80] sm:$0xff] %v1334_v13  ;;  %v1323_v7 = vmul.f32 %v1298_v15, %v1227_v30  ;;  %v1320_v0 = vmul.f32 %v1283_v34, %v1224_v56  ;;  %v1841_v51 = vld [vmem:[#allocation3 + $0x80] sm:$0xff]  ;;  %v1863_v13 = vmul.f32 %v6848_v6, %v1847_v33  ;;  %v1848_v6 = vld [vmem:[#allocation3 + $0xb8] sm:$0xff] }
 0x57f   : > { %v1857_v15 = vmul.f32 %v6795_v54, %v1841_v51 }
 0x580   : > { %v1339_v61 = vadd.f32 %v1323_v7, %v8297_v42  ;;  %v1336_v1 = vadd.f32 %v8298_v28, %v1320_v0  ;;  %v1845_v7 = vld [vmem:[#allocation3 + $0xa0] sm:$0xff]  ;;  %v1844_v0 = vld [vmem:[#allocation3 + $0x98] sm:$0xff] }
 0x581   : > { %v1308_v57 = vpop.permute.xlu0 %1307  ;;  %v1293_v17 = vpop.permute.xlu1 %1292  ;;  %v1861_v49 = vmul.f32 %v6833_v4, %v1845_v7  ;;  %v1860_v42 = vmul.f32 %v6808_v3, %v1844_v0  ;;  %v1846_v4 = vld [vmem:[#allocation3 + $0xa8] sm:$0xff] }
 0x582   : > { %1355 = vst [vmem:[#allocation4 + $0xd0] sm:$0xff] %v1339_v61  ;;  %1352 = vst [vmem:[#allocation4 + $0xa0] sm:$0xff] %v1336_v1  ;;  %v1325_v26 = vmul.f32 %v1308_v57, %v1229_v2  ;;  %v1322_v47 = vmul.f32 %v1293_v17, %v1226_v32  ;;  %v1851_v1 = vld [vmem:[#allocation3 + $0xd0] sm:$0xff]  ;;  %v2108_v0 = vld [vmem:[#allocation4 + $0x28] sm:$0xff] }
 0x583   : > { %v1867_v17 = vmul.f32 %v6858_v14, %v1851_v1  ;;  %v1852_v14 = vld [vmem:[#allocation3 + $0xd8] sm:$0xff] }
 0x584   : > { %v1341_v23 = vadd.f32 %v8299_v5, %v1325_v26  ;;  %v1338_v20 = vadd.f32 %v1322_v47, %v8300_v24  ;;  %v1864_v26 = vmul.f32 %v6838_v43, %v1848_v6  ;;  %v1849_v5 = vld [vmem:[#allocation3 + $0xc0] sm:$0xff] }
 0x585   : > { %v1303_v37 = vpop.permute.xlu1 %1302  ;;  %v6928_v55 = vpop.permute.xlu0 %2124  ;;  %v1865_v24 = vmul.f32 %v6865_v58, %v1849_v5  ;;  %v1850_v58 = vld [vmem:[#allocation3 + $0xc8] sm:$0xff] }
 0x586   : > { %1357 = vst [vmem:[#allocation4 + $0xf0] sm:$0xff] %v1341_v23  ;;  %1354 = vst [vmem:[#allocation4 + $0xc0] sm:$0xff] %v1338_v20  ;;  %v1324_v18 = vmul.f32 %v1303_v37, %v1228_v10  ;;  %v1862_v20 = vmul.f32 %v6824_v63, %v1846_v4  ;;  %v1866_v33 = vmul.f32 %v6860_v50, %v1850_v58  ;;  %v2113_v4 = vld [vmem:[#allocation4 + $0x78] sm:$0xff] }
 0x588   : > { %v1340_v59 = vadd.f32 %v8301_v21, %v1324_v18  ;;  %v1855_v21 = vld [vmem:[#allocation3 + $0xf0] sm:$0xff] }
 0x589   : > { %v6930_v31 = vpop.permute.xlu0 %2139  ;;  %v6932_v29 = vpop.permute.xlu1 %2129  ;;  %v1871_v46 = vmul.f32 %v6914_v36, %v1855_v21 }
 0x58a   : > { %1356 = vst [vmem:[#allocation4 + $0xe0] sm:$0xff] %v1340_v59 }
 0x58d   : > { %v6934_v22 = vpop.permute.xlu0 %2149  ;;  %v6936_v38 = vpop.permute.xlu1 %2134 }
 0x591   : > { %v6938_v9 = vpop.permute.xlu0 %2159  ;;  %v6940_v25 = vpop.permute.xlu1 %2144 }
 0x595   : > { %v6942_v8 = vpop.permute.xlu0 %2179  ;;  %v6944_v35 = vpop.permute.xlu1 %2154 }
 0x599   : > { %v6946_v16 = vpop.permute.xlu0 %2169  ;;  %v6948_v52 = vpop.permute.xlu1 %2174 }
 0x59d   : > { %v6950_v48 = vpop.permute.xlu0 %2189  ;;  %v6952_v11 = vpop.permute.xlu1 %2164 }
 0x5a1   : > { %v6957_v30 = vpop.permute.xlu1 %2184 }
 0x5ca   : > { %v1878_v27 = vpop.xlane.xlu0 %1877 }
 0x5cb   : > { %v1907_v60 = vadd.f32 %v1878_v27, %v1859_v39  ;;  %v1868_v39 = vmul.f32 %v6852_v45, %v1852_v14 }
 0x5cd   : > { %1923 = vst.msk [vmem:[#allocation3 + $0x90] sm:$0xff] %vm1028_vm1, %v1907_v60  ;;  %v1853_v60 = vld [vmem:[#allocation3 + $0xe0] sm:$0xff] }
 0x5ce   : > { %v1876_v56 = vpop.xlane.xlu0 %1875 }
 0x5cf   : > { %v1906_v12 = vadd.f32 %v1876_v56, %v1858_v53  ;;  %v1869_v56 = vmul.f32 %v6872_v40, %v1853_v60 }
 0x5d1   : > { %1922 = vst.msk [vmem:[#allocation3 + $0x88] sm:$0xff] %vm1028_vm1, %v1906_v12 }
 0x5d2   : > { %v1886_v41 = vpop.xlane.xlu0 %1885  ;;  %v1874_v34 = vpop.xlane.xlu1 %1873 }
 0x5d3   : > { %v1911_v2 = vadd.f32 %v1886_v41, %v1863_v13  ;;  %v1905_v32 = vadd.f32 %v1874_v34, %v1857_v15  ;;  %v1856_v13 = vld [vmem:[#allocation3 + $0xf8] sm:$0xff]  ;;  %v1854_v34 = vld [vmem:[#allocation3 + $0xe8] sm:$0xff] }
 0x5d4   : > { %v1872_v45 = vmul.f32 %v6909_v19, %v1856_v13  ;;  %v1870_v40 = vmul.f32 %v6868_v44, %v1854_v34  ;;  %v2120_v13 = vld [vmem:[#allocation4 + $0xe8] sm:$0xff] }
 0x5d5   : > { %1927 = vst.msk [vmem:[#allocation3 + $0xb0] sm:$0xff] %vm1028_vm1, %v1911_v2  ;;  %1921 = vst.msk [vmem:[#allocation3 + $0x80] sm:$0xff] %vm1028_vm1, %v1905_v32  ;;  %v2106_v2 = vld [vmem:[#allocation4 + $0x8] sm:$0xff] }
 0x5d6   : > { %v1882_v61 = vpop.xlane.xlu0 %1881  ;;  %v1880_v28 = vpop.xlane.xlu1 %1879 }
 0x5d7   : > { %v1909_v57 = vadd.f32 %v1882_v61, %v1861_v49  ;;  %v1908_v54 = vadd.f32 %v1880_v28, %v1860_v42  ;;  %v2109_v49 = vld [vmem:[#allocation4 + $0x38] sm:$0xff]  ;;  %v2204_v61 = vmul.f32 %v6936_v38, %v2108_v0  ;;  %v2202_v28 = vmul.f32 %v6928_v55, %v2106_v2  ;;  %v2110_v38 = vld [vmem:[#allocation4 + $0x48] sm:$0xff] }
 0x5d8   : > { %v2107_v42 = vld [vmem:[#allocation4 + $0x18] sm:$0xff]  ;;  %v2205_v1 = vmul.f32 %v6930_v31, %v2109_v49  ;;  %v2206_v31 = vmul.f32 %v6940_v25, %v2110_v38 }
 0x5d9   : > { %1925 = vst.msk [vmem:[#allocation3 + $0xa0] sm:$0xff] %vm1028_vm1, %v1909_v57  ;;  %1924 = vst.msk [vmem:[#allocation3 + $0x98] sm:$0xff] %vm1028_vm1, %v1908_v54  ;;  %v2203_v54 = vmul.f32 %v6932_v29, %v2107_v42  ;;  %v2111_v55 = vld [vmem:[#allocation4 + $0x58] sm:$0xff]  ;;  %v2209_v29 = vmul.f32 %v6938_v9, %v2113_v4 }
 0x5da   : > { %v1894_v47 = vpop.xlane.xlu0 %1893  ;;  %v1888_v10 = vpop.xlane.xlu1 %1887  ;;  %v2115_v25 = vld [vmem:[#allocation4 + $0x98] sm:$0xff] }
 0x5db   : > { %v1915_v23 = vadd.f32 %v1894_v47, %v1867_v17  ;;  %v1912_v3 = vadd.f32 %v1888_v10, %v1864_v26  ;;  %v2112_v10 = vld [vmem:[#allocation4 + $0x68] sm:$0xff] }
 0x5dd   : > { %1931 = vst.msk [vmem:[#allocation3 + $0xd0] sm:$0xff] %vm1028_vm1, %v1915_v23  ;;  %1928 = vst.msk [vmem:[#allocation3 + $0xb8] sm:$0xff] %vm1028_vm1, %v1912_v3  ;;  %v2208_v23 = vmul.f32 %v6944_v35, %v2112_v10  ;;  %v2117_v35 = vld [vmem:[#allocation4 + $0xb8] sm:$0xff] }
 0x5de   : > { %v1890_v37 = vpop.xlane.xlu0 %1889  ;;  %v1884_v18 = vpop.xlane.xlu1 %1883 }
 0x5df   : > { %v1913_v59 = vadd.f32 %v1890_v37, %v1865_v24  ;;  %v1910_v43 = vadd.f32 %v1884_v18, %v1862_v20  ;;  %v2207_v37 = vmul.f32 %v6934_v22, %v2111_v55  ;;  %v2213_v22 = vmul.f32 %v6942_v8, %v2117_v35 }
 0x5e1   : > { %1929 = vst.msk [vmem:[#allocation3 + $0xc0] sm:$0xff] %vm1028_vm1, %v1913_v59  ;;  %1926 = vst.msk [vmem:[#allocation3 + $0xa8] sm:$0xff] %vm1028_vm1, %v1910_v43  ;;  %v2116_v43 = vld [vmem:[#allocation4 + $0xa8] sm:$0xff] }
 0x5e2   : > { %v1902_v27 = vpop.xlane.xlu0 %1901  ;;  %v1896_v62 = vpop.xlane.xlu1 %1895 }
 0x5e3   : > { %v1919_v53 = vadd.f32 %v1902_v27, %v1871_v46  ;;  %v1916_v63 = vadd.f32 %v1896_v62, %v1868_v39  ;;  %v2114_v39 = vld [vmem:[#allocation4 + $0x88] sm:$0xff]  ;;  %v2212_v27 = vmul.f32 %v6948_v52, %v2116_v43 }
 0x5e4   : > { %v2210_v9 = vmul.f32 %v6952_v11, %v2114_v39  ;;  %v2118_v52 = vld [vmem:[#allocation4 + $0xc8] sm:$0xff]  ;;  %v2121_v11 = vld [vmem:[#allocation4 + $0xf8] sm:$0xff] }
 0x5e5   : > { %1935 = vst.msk [vmem:[#allocation3 + $0xf0] sm:$0xff] %vm1028_vm1, %v1919_v53  ;;  %1932 = vst.msk [vmem:[#allocation3 + $0xd8] sm:$0xff] %vm1028_vm1, %v1916_v63  ;;  %v2211_v53 = vmul.f32 %v6946_v16, %v2115_v25 }
 0x5e6   : > { %v1898_v51 = vpop.xlane.xlu0 %1897  ;;  %v1892_v12 = vpop.xlane.xlu1 %1891 }
 0x5e7   : > { %v1917_v36 = vadd.f32 %v1898_v51, %v1869_v56  ;;  %v1914_v15 = vadd.f32 %v1892_v12, %v1866_v33 }
 0x5e9   : > { %1933 = vst.msk [vmem:[#allocation3 + $0xe0] sm:$0xff] %vm1028_vm1, %v1917_v36  ;;  %1930 = vst.msk [vmem:[#allocation3 + $0xc8] sm:$0xff] %vm1028_vm1, %v1914_v15 }
 0x5ea   : > { %v1904_v41 = vpop.xlane.xlu1 %1903 }
 0x5eb   : > { %v1920_v7 = vadd.f32 %v1904_v41, %v1872_v45  ;;  %v2119_v45 = vld [vmem:[#allocation4 + $0xd8] sm:$0xff]  ;;  %v2214_v41 = vmul.f32 %v6957_v30, %v2118_v52 }
 0x5ec   : > { %v2215_v0 = vmul.f32 %v6950_v48, %v2119_v45 }
 0x5ed   : > { %1936 = vst.msk [vmem:[#allocation3 + $0xf8] sm:$0xff] %vm1028_vm1, %v1920_v7 }
 0x5ee   : > { %v1900_v50 = vpop.xlane.xlu1 %1899  ;;  %v2200_v15 = vpop.permute.xlu0 %2199 }
 0x5ef   : > { %v1918_v32 = vadd.f32 %v1900_v50, %v1870_v40  ;;  %v2217_v16 = vmul.f32 %v2200_v15, %v2121_v11 }
 0x5f1   : > { %1934 = vst.msk [vmem:[#allocation3 + $0xe8] sm:$0xff] %vm1028_vm1, %v1918_v32  ;;  %v5094_v19 = vpop.f32.mrb[16].mxu0 }
 0x5f2   : > { %v2220_v6 = vadd.f32 %v5094_v19, %v2204_v61  ;;  %v2043_v57 = vpop.f32.mrb[17].mxu0  ;;  %v2195_v36 = vpop.permute.xlu1 %2194 }
 0x5f3   : > { %v2218_v44 = vadd.f32 %v2202_v28, %v2043_v57  ;;  %v5095_v17 = vpop.f32.mrb[18].mxu0  ;;  %v2216_v8 = vmul.f32 %v2195_v36, %v2120_v13 }
 0x5f4   : > { %2236 = vst [vmem:[#allocation4 + $0x28] sm:$0xff] %v2220_v6  ;;  %v2221_v26 = vadd.f32 %v5095_v17, %v2205_v1  ;;  %v2046_v47 = vpop.f32.mrb[19].mxu0 }
 0x5f5   : > { %2234 = vst [vmem:[#allocation4 + $0x8] sm:$0xff] %v2218_v44  ;;  %v2219_v5 = vadd.f32 %v2203_v54, %v2046_v47 }
 0x5f6   : > { %2237 = vst [vmem:[#allocation4 + $0x38] sm:$0xff] %v2221_v26 }
 0x5f7   : > { %2235 = vst [vmem:[#allocation4 + $0x18] sm:$0xff] %v2219_v5 }
 0x5fa   : > { %v5098_v3 = vpop.f32.mrb[20].mxu0 }
 0x5fb   : > { %v2224_v24 = vadd.f32 %v5098_v3, %v2208_v23  ;;  %v2059_v20 = vpop.f32.mrb[21].mxu0 }
 0x5fc   : > { %v2222_v18 = vadd.f32 %v2206_v31, %v2059_v20  ;;  %v5099_v21 = vpop.f32.mrb[22].mxu0 }
 0x5fd   : > { %2240 = vst [vmem:[#allocation4 + $0x68] sm:$0xff] %v2224_v24  ;;  %v2225_v14 = vadd.f32 %v5099_v21, %v2209_v29  ;;  %v2062_v59 = vpop.f32.mrb[23].mxu0 }
 0x5fe   : > { %2238 = vst [vmem:[#allocation4 + $0x48] sm:$0xff] %v2222_v18  ;;  %v2223_v46 = vadd.f32 %v2207_v37, %v2062_v59 }
 0x5ff   : > { %2241 = vst [vmem:[#allocation4 + $0x78] sm:$0xff] %v2225_v14 }
 0x600   : > { %2239 = vst [vmem:[#allocation4 + $0x58] sm:$0xff] %v2223_v46 }
 0x602   : > { %v5102_v62 = vpop.f32.mrb[24].mxu0 }
 0x603   : > { %v2228_v60 = vadd.f32 %v5102_v62, %v2212_v27  ;;  %v2075_v58 = vpop.f32.mrb[25].mxu0 }
 0x604   : > { %v2226_v63 = vadd.f32 %v2210_v9, %v2075_v58  ;;  %v5103_v56 = vpop.f32.mrb[26].mxu0 }
 0x605   : > { %2244 = vst [vmem:[#allocation4 + $0xa8] sm:$0xff] %v2228_v60  ;;  %v2229_v33 = vadd.f32 %v5103_v56, %v2213_v22  ;;  %v2078_v51 = vpop.f32.mrb[27].mxu0 }
 0x606   : > { %2242 = vst [vmem:[#allocation4 + $0x88] sm:$0xff] %v2226_v63  ;;  %v2227_v12 = vadd.f32 %v2211_v53, %v2078_v51 }
 0x607   : > { %2245 = vst [vmem:[#allocation4 + $0xb8] sm:$0xff] %v2229_v33 }
 0x608   : > { %2243 = vst [vmem:[#allocation4 + $0x98] sm:$0xff] %v2227_v12 }
 0x60c   : > { %v5106_v34 = vpop.f32.mrb[28].mxu0 }
 0x60d   : > { %v2232_v7 = vadd.f32 %v5106_v34, %v2216_v8  ;;  %v2091_v40 = vpop.f32.mrb[29].mxu0 }
 0x60e   : > { %v2230_v50 = vadd.f32 %v2214_v41, %v2091_v40  ;;  %v5107_v2 = vpop.f32.mrb[30].mxu0 }
 0x60f   : > { %2248 = vst [vmem:[#allocation4 + $0xe8] sm:$0xff] %v2232_v7  ;;  %v2233_v32 = vadd.f32 %v5107_v2, %v2217_v16  ;;  %v2094_v49 = vpop.f32.mrb[31].mxu0 }
 0x610   : > { %2246 = vst [vmem:[#allocation4 + $0xc8] sm:$0xff] %v2230_v50  ;;  %v2231_v42 = vadd.f32 %v2215_v0, %v2094_v49 }
 0x611   : > { %2249 = vst [vmem:[#allocation4 + $0xf8] sm:$0xff] %v2233_v32 }
 0x612   : > { %2247 = vst [vmem:[#allocation4 + $0xd8] sm:$0xff] %v2231_v42 }
 0x613 PF: > { %p4736_p10 = scmp.ne.s32.totalorder %s5966_s18, %s5963_s17 }
 0x615   : > { %2268 = sbr.rel (%p4736_p10) target bundleno = 3042 (0xbe2), region = 101 }
 0x61c   : > { %v5463_v48 = vld [vmem:[%s5973_s23] ss:$16 sps:$4 sm:$0xff]   ;;  %v2269_v4 = vlaneseq  ;;  %v5774_v11 = vmov 0  }
 0x61d   : > { %v5464_v30 = vld [vmem:[%s5973_s23 + $0x20] ss:$16 sps:$4 sm:$0xff]   ;;  %5108 = vmatprep.subr.bf16.mxu0 %v5463_v48  ;;  %5462 = vset.pattern.permute.xlu1 %v5774_v11 }
 0x61e   : > { %5109 = vmatpush3.bf16.xpose.msra.mxu0 %v5463_v48  ;;  %v5465_v61 = vld [vmem:[%s5973_s23 + $0x40] ss:$16 sps:$4 sm:$0xff]   ;;  %v7020_v55 = vshrl.u32 %v2269_v4, 7  ;;  %v7025_v31 = vand.u32 127, %v2269_v4  ;;  %5461 = vset.pattern.permute.xlu0 %v5774_v11 }
 0x61f   : > { %5110 = vmatprep.subr.bf16.mxu0 %v5464_v30  ;;  %v5471_v28 = vld [vmem:[%s5975_s25] ss:$8 sps:$4 sm:$0xff]   ;;  %v5472_v44 = vld [vmem:[%s5975_s25 + $0x10] ss:$8 sps:$4 sm:$0xff]  }
 0x620   : > { %5124 = vmatprep.mubr.bf16.mxu0 %v5471_v28  ;;  %v5466_v19 = vld [vmem:[%s5973_s23 + $0x60] ss:$16 sps:$4 sm:$0xff]   ;;  %v7023_v23 = vadd.s32 16, %v7020_v55  ;;  %v7030_v3 = vadd.s32 24, %v7020_v55  ;;  %vm2288_vm3 = vcmp.le.s32.totalorder %v7025_v31, %v7020_v55  ;;  %v7035_v29 = vadd.s32 8, %v7020_v55 }
 0x621   : > { %v5467_v1 = vld [vmem:[%s5973_s23 + $0x80] ss:$16 sps:$4 sm:$0xff]   ;;  %v7051_v14 = vadd.s32 48, %v7020_v55  ;;  %v7057_v43 = vadd.s32 56, %v7020_v55  ;;  %v7065_v39 = vadd.s32 32, %v7020_v55  ;;  %v7076_v25 = vadd.s32 40, %v7020_v55 }
 0x622   : > { %v5468_v6 = vld [vmem:[%s5973_s23 + $0xa0] ss:$16 sps:$4 sm:$0xff]   ;;  %vm2290_vm2 = vcmp.le.s32.totalorder %v7025_v31, %v7023_v23  ;;  %vm2291_vm4 = vcmp.le.s32.totalorder %v7025_v31, %v7030_v3  ;;  %vm2289_vm5 = vcmp.le.s32.totalorder %v7025_v31, %v7035_v29  ;;  %v7091_v60 = vadd.s32 80, %v7020_v55  ;;  %v5479_v28 = vld [vmem:[%s5973_s23 + $0x8] ss:$16 sps:$4 sm:$0xff]  }
 0x623   : > { %v5469_v57 = vld [vmem:[%s5973_s23 + $0xc0] ss:$16 sps:$4 sm:$0xff]   ;;  %8302 = vst [vmem:[#allocation60_spill] sm:$0xff] %v7057_v43  ;;  %8303 = vst [vmem:[#allocation61_spill] sm:$0xff] %v7065_v39  ;;  %vm2294_vm6 = vcmp.le.s32.totalorder %v7025_v31, %v7051_v14  ;;  %vm2295_vm7 = vcmp.le.s32.totalorder %v7025_v31, %v7057_v43  ;;  %vm2292_vm8 = vcmp.le.s32.totalorder %v7025_v31, %v7065_v39  ;;  %v7106_v56 = vadd.s32 88, %v7020_v55 }
 0x624   : > { %v5470_v54 = vld [vmem:[%s5973_s23 + $0xe0] ss:$16 sps:$4 sm:$0xff]   ;;  %8304 = vst [vmem:[#allocation62_spill] sm:$0xff] %v7076_v25  ;;  %vm2293_vm9 = vcmp.le.s32.totalorder %v7025_v31, %v7076_v25  ;;  %8305 = vst [vmem:[#allocation63_spill] sm:$0xff] %v7091_v60  ;;  %v7114_v51 = vadd.s32 64, %v7020_v55  ;;  %v7117_v12 = vadd.s32 72, %v7020_v55  ;;  %vm2298_vm10 = vcmp.le.s32.totalorder %v7025_v31, %v7091_v60  ;;  %5140 = vmatprep.subr.bf16.mxu1 %v5479_v28 }
 0x625   : > { %v5473_v17 = vld [vmem:[%s5975_s25 + $0x20] ss:$8 sps:$4 sm:$0xff]   ;;  %v5474_v26 = vld [vmem:[%s5975_s25 + $0x30] ss:$8 sps:$4 sm:$0xff]   ;;  %8306 = vst [vmem:[#allocation64_spill] sm:$0xff] %v7106_v56  ;;  %vm2299_vm11 = vcmp.le.s32.totalorder %v7025_v31, %v7106_v56  ;;  %v7135_v45 = vadd.s32 112, %v7020_v55  ;;  %5141 = vmatpush3.bf16.msra.mxu1 %v5479_v28 }
 0x626   : > { %5111 = vmatpush3.bf16.xpose.msra.mxu0 %v5464_v30  ;;  %v5475_v47 = vld [vmem:[%s5975_s25 + $0x40] ss:$8 sps:$4 sm:$0xff]   ;;  %v5476_v10 = vld [vmem:[%s5975_s25 + $0x50] ss:$8 sps:$4 sm:$0xff]   ;;  %8307 = vst [vmem:[#allocation65_spill] sm:$0xff] %v7114_v51  ;;  %8308 = vst [vmem:[#allocation66_spill] sm:$0xff] %v7117_v12  ;;  %vm2296_vm12 = vcmp.le.s32.totalorder %v7025_v31, %v7114_v51  ;;  %vm2297_vm13 = vcmp.le.s32.totalorder %v7025_v31, %v7117_v12 }
 0x627   : > { %5112 = vmatprep.subr.bf16.mxu0 %v5465_v61  ;;  %v5477_v5 = vld [vmem:[%s5975_s25 + $0x60] ss:$8 sps:$4 sm:$0xff]   ;;  %v5478_v38 = vld [vmem:[%s5975_s25 + $0x70] ss:$8 sps:$4 sm:$0xff]   ;;  %8309 = vst [vmem:[#allocation67_spill] sm:$0xff] %v7135_v45  ;;  %v7145_v34 = vadd.s32 120, %v7020_v55  ;;  %vm2302_vm14 = vcmp.le.s32.totalorder %v7025_v31, %v7135_v45 }
 0x628   : > { %v7158_v40 = vadd.s32 96, %v7020_v55  ;;  %v7161_v0 = vadd.s32 104, %v7020_v55  ;;  %v7244_v11 = vld [vmem:[#allocation2 + $0x20] sm:$0xff]  ;;  %v7671_v3 = vld [vmem:[#allocation2 + $0xb0] sm:$0xff]  ;;  %v5506_v14 = vld [vmem:[%s5973_s23 + $0x6c] ss:$16 sps:$4 sm:$0xff]  }
 0x629   : > { %8310 = vst [vmem:[#allocation68_spill] sm:$0xff] %v7145_v34  ;;  %vm2303_vm15 = vcmp.le.s32.totalorder %v7025_v31, %v7145_v34  ;;  %v7331_v34 = vld [vmem:[#allocation2 + $0x68] sm:$0xff] }
 0x62a   : > { %8311 = vst [vmem:[#allocation69_spill] sm:$0xff] %v7158_v40  ;;  %8312 = vst [vmem:[#allocation70_spill] sm:$0xff] %v7161_v0  ;;  %vm2300_vm0 = vcmp.le.s32.totalorder %v7025_v31, %v7158_v40  ;;  %vm8155_vm1 = vcmp.le.s32.totalorder %v7025_v31, %v7161_v0 }
 0x62e   : > { %5113 = vmatpush3.bf16.xpose.msra.mxu0 %v5465_v61 }
 0x62f   : > { %5114 = vmatprep.subr.bf16.mxu0 %v5466_v19 }
 0x636   : > { %5115 = vmatpush3.bf16.xpose.msra.mxu0 %v5466_v19  ;;  %v5480_v19 = vld [vmem:[%s5973_s23 + $0x28] ss:$16 sps:$4 sm:$0xff]  }
 0x637   : > { %5116 = vmatprep.subr.bf16.mxu0 %v5467_v1  ;;  %5142 = vmatprep.subr.bf16.mxu1 %v5480_v19 }
 0x638   : > { %5143 = vmatpush3.bf16.msra.mxu1 %v5480_v19 }
 0x63e   : > { %5117 = vmatpush3.bf16.xpose.msra.mxu0 %v5467_v1  ;;  %v5481_v1 = vld [vmem:[%s5973_s23 + $0x48] ss:$16 sps:$4 sm:$0xff]  }
 0x63f   : > { %5118 = vmatprep.subr.bf16.mxu0 %v5468_v6  ;;  %5144 = vmatprep.subr.bf16.mxu1 %v5481_v1 }
 0x640   : > { %5145 = vmatpush3.bf16.msra.mxu1 %v5481_v1  ;;  %v7264_v1 = vld [vmem:[#allocation2 + $0x50] sm:$0xff] }
 0x646   : > { %5119 = vmatpush3.bf16.xpose.msra.mxu0 %v5468_v6  ;;  %v7200_v6 = vld [vmem:[#allocation2 + $0x10] sm:$0xff] }
 0x647   : > { %5120 = vmatprep.subr.bf16.mxu0 %v5469_v57 }
 0x64e   : > { %5121 = vmatpush3.bf16.xpose.msra.mxu0 %v5469_v57  ;;  %v7202_v57 = vld [vmem:[#allocation2] sm:$0xff] }
 0x64f   : > { %5122 = vmatprep.subr.bf16.mxu0 %v5470_v54 }
 0x656   : > { %5123 = vmatpush3.bf16.xpose.msra.mxu0 %v5470_v54 }
 0x65d   : > { %5125 = vmatmul.mubr.bf16.vlgmr.msra.gmra.mrb[0].mxu0 %v5472_v44 }
 0x65e   : > { %5128 = vmatprep.mubr.bf16.mxu0 %v5473_v17 }
 0x665   : > { %5129 = vmatmul.mubr.bf16.gmra.mrb[4].mxu0 %v5474_v26  ;;  %v5482_v26 = vld [vmem:[%s5973_s23 + $0x68] ss:$16 sps:$4 sm:$0xff]  }
 0x666   : > { %5132 = vmatprep.mubr.bf16.mxu0 %v5475_v47  ;;  %5146 = vmatprep.subr.bf16.mxu1 %v5482_v26 }
 0x667   : > { %5147 = vmatpush3.bf16.msra.mxu1 %v5482_v26 }
 0x66d   : > { %5133 = vmatmul.mubr.bf16.gmra.mrb[8].mxu0 %v5476_v10  ;;  %v7211_v10 = vld [vmem:[#allocation2 + $0x18] sm:$0xff] }
 0x66e   : > { %5136 = vmatprep.mubr.bf16.mxu0 %v5477_v5  ;;  %v7216_v5 = vld [vmem:[#allocation2 + $0x8] sm:$0xff] }
 0x675   : > { %5137 = vmatmul.mubr.bf16.gmra.mrb[12].mxu0 %v5478_v38 }
 0x730   : > { %v5126_v24 = vpop.f32.mrb[0].mxu0 }
 0x731   : > { %v2466_v20 = vpop.f32.mrb[1].mxu0  ;;  %v7040_v37 = vsel %vm2290_vm2, %v5126_v24, -1e+30 }
 0x732   : > { %v5127_v18 = vpop.f32.mrb[2].mxu0  ;;  %2565 = vmax.xlane.f32.xlu1 %v7040_v37  ;;  %v7046_v21 = vsel %vm2288_vm3, %v2466_v20, -1e+30  ;;  %v5483_v20 = vld [vmem:[%s5973_s23 + $0x88] ss:$16 sps:$4 sm:$0xff]  }
 0x733   : > { %v2469_v59 = vpop.f32.mrb[3].mxu0  ;;  %2561 = vmax.xlane.f32.xlu0 %v7046_v21  ;;  %v7062_v46 = vsel %vm2291_vm4, %v5127_v18, -1e+30  ;;  %5148 = vmatprep.subr.bf16.mxu1 %v5483_v20 }
 0x734   : > { %v7071_v35 = vsel %vm2289_vm5, %v2469_v59, -1e+30  ;;  %v7230_v59 = vld [vmem:[#allocation2 + $0x30] sm:$0xff]  ;;  %5149 = vmatpush3.bf16.msra.mxu1 %v5483_v20 }
 0x736   : > { %2567 = vmax.xlane.f32.xlu1 %v7062_v46 }
 0x737   : > { %2563 = vmax.xlane.f32.xlu0 %v7071_v35 }
 0x738   : > { %v5130_v27 = vpop.f32.mrb[4].mxu0 }
 0x739   : > { %v2482_v9 = vpop.f32.mrb[5].mxu0  ;;  %v7084_v62 = vsel %vm2294_vm6, %v5130_v27, -1e+30  ;;  %v7235_v27 = vld [vmem:[#allocation2 + $0x38] sm:$0xff] }
 0x73a   : > { %v5131_v22 = vpop.f32.mrb[6].mxu0  ;;  %v7103_v63 = vsel %vm2292_vm8, %v2482_v9, -1e+30 }
 0x73b   : > { %v7096_v58 = vsel %vm2295_vm7, %v5131_v22, -1e+30  ;;  %v2485_v53 = vpop.f32.mrb[7].mxu0  ;;  %2573 = vmax.xlane.f32.xlu0 %v7084_v62  ;;  %v5484_v22 = vld [vmem:[%s5973_s23 + $0xa8] ss:$16 sps:$4 sm:$0xff]  }
 0x73c   : > { %2575 = vmax.xlane.f32.xlu1 %v7096_v58  ;;  %v7111_v33 = vsel %vm2293_vm9, %v2485_v53, -1e+30  ;;  %5150 = vmatprep.subr.bf16.mxu1 %v5484_v22 }
 0x73d   : > { %5151 = vmatpush3.bf16.msra.mxu1 %v5484_v22  ;;  %v7282_v22 = vld [vmem:[#allocation2 + $0x40] sm:$0xff] }
 0x73f   : > { %2569 = vmax.xlane.f32.xlu0 %v7103_v63 }
 0x740   : > { %v5134_v13 = vpop.f32.mrb[8].mxu0  ;;  %2571 = vmax.xlane.f32.xlu1 %v7111_v33 }
 0x741   : > { %v2498_v36 = vpop.f32.mrb[9].mxu0  ;;  %v7128_v52 = vsel %vm2298_vm10, %v5134_v13, -1e+30 }
 0x742   : > { %v5135_v15 = vpop.f32.mrb[10].mxu0  ;;  %v7150_v16 = vsel %vm2296_vm12, %v2498_v36, -1e+30 }
 0x743   : > { %v7140_v8 = vsel %vm2299_vm11, %v5135_v15, -1e+30  ;;  %v2501_v41 = vpop.f32.mrb[11].mxu0  ;;  %2581 = vmax.xlane.f32.xlu0 %v7128_v52 }
 0x744   : > { %2583 = vmax.xlane.f32.xlu1 %v7140_v8  ;;  %v7155_v7 = vsel %vm2297_vm13, %v2501_v41, -1e+30  ;;  %v7251_v41 = vld [vmem:[#allocation2 + $0x28] sm:$0xff] }
 0x747   : > { %2577 = vmax.xlane.f32.xlu0 %v7150_v16 }
 0x748   : > { %v5138_v50 = vpop.f32.mrb[12].mxu0  ;;  %2579 = vmax.xlane.f32.xlu1 %v7155_v7 }
 0x749   : > { %v2514_v2 = vpop.f32.mrb[13].mxu0  ;;  %v7172_v32 = vsel %vm2302_vm14, %v5138_v50, -1e+30  ;;  %v7303_v50 = vld [vmem:[#allocation2 + $0x70] sm:$0xff] }
 0x74a   : > { %v5139_v49 = vpop.f32.mrb[14].mxu0  ;;  %v7188_v30 = vsel %vm2300_vm0, %v2514_v2, -1e+30 }
 0x74b   : > { %v7181_v42 = vsel %vm2303_vm15, %v5139_v49, -1e+30  ;;  %v2517_v48 = vpop.f32.mrb[15].mxu0  ;;  %2589 = vmax.xlane.f32.xlu0 %v7172_v32  ;;  %v5485_v49 = vld [vmem:[%s5973_s23 + $0xc8] ss:$16 sps:$4 sm:$0xff]  }
 0x74c   : > { %2591 = vmax.xlane.f32.xlu1 %v7181_v42  ;;  %v7193_v61 = vsel %vm8155_vm1, %v2517_v48, -1e+30  ;;  %vm2865_vm1 = vcmask 7168   ;;  %5152 = vmatprep.subr.bf16.mxu1 %v5485_v49 }
 0x74d   : > { %5153 = vmatpush3.bf16.msra.mxu1 %v5485_v49  ;;  %v7323_v49 = vld [vmem:[%s5973_s23 + $0x4] ss:$16 sps:$4 sm:$0xff]  }
 0x74f   : > { %2585 = vmax.xlane.f32.xlu0 %v7188_v30 }
 0x750   : > { %2587 = vmax.xlane.f32.xlu1 %v7193_v61 }
 0x7bf   : > { %v2566_v54 = vpop.xlane.xlu1 %2565 }
 0x7c0   : > { %v7205_v44 = vmax.f32 %v7200_v6, %v2566_v54  ;;  %v2562_v17 = vpop.xlane.xlu0 %2561  ;;  %v7269_v54 = vld [vmem:[#allocation2 + $0x58] sm:$0xff] }
 0x7c1   : > { %v7209_v47 = vmax.f32 %v7202_v57, %v2562_v17 }
 0x7c2   : > { %3197 = vst.msk [vmem:[#allocation2 + $0x10] sm:$0xff] %vm2865_vm1, %v7205_v44  ;;  %2669 = vperm.xlu1 %5462, %v7205_v44  }
 0x7c3   : > { %3195 = vst.msk [vmem:[#allocation2] sm:$0xff] %vm2865_vm1, %v7209_v47  ;;  %v2568_v38 = vpop.xlane.xlu1 %2567  ;;  %2659 = vperm.xlu0 %5461, %v7209_v47  }
 0x7c4   : > { %v7222_v4 = vmax.f32 %v7211_v10, %v2568_v38  ;;  %v2564_v24 = vpop.xlane.xlu0 %2563  ;;  %v5486_v38 = vld [vmem:[%s5973_s23 + $0xe8] ss:$16 sps:$4 sm:$0xff]  }
 0x7c5   : > { %v7226_v18 = vmax.f32 %v7216_v5, %v2564_v24  ;;  %5154 = vmatprep.subr.bf16.mxu1 %v5486_v38 }
 0x7c6   : > { %3198 = vst.msk [vmem:[#allocation2 + $0x18] sm:$0xff] %vm2865_vm1, %v7222_v4  ;;  %5155 = vmatpush3.bf16.msra.mxu1 %v5486_v38  ;;  %v7306_v38 = vld [vmem:[#allocation2 + $0x78] sm:$0xff] }
 0x7c7   : > { %3196 = vst.msk [vmem:[#allocation2 + $0x8] sm:$0xff] %vm2865_vm1, %v7226_v18  ;;  %2664 = vperm.xlu1 %5462, %v7226_v18   ;;  %5172 = vmatprep.subr.bf16.mxu1 %v7323_v49 }
 0x7c8   : > { %v2574_v9 = vpop.xlane.xlu0 %2573 }
 0x7c9   : > { %v2576_v53 = vpop.xlane.xlu1 %2575  ;;  %v7239_v13 = vmax.f32 %v7230_v59, %v2574_v9 }
 0x7ca   : > { %v7242_v36 = vmax.f32 %v7235_v27, %v2576_v53  ;;  %v7285_v53 = vld [vmem:[#allocation2 + $0x48] sm:$0xff] }
 0x7cb   : > { %2674 = vperm.xlu1 %5462, %v7222_v4   ;;  %3201 = vst.msk [vmem:[#allocation2 + $0x30] sm:$0xff] %vm2865_vm1, %v7239_v13 }
 0x7cc   : > { %3202 = vst.msk [vmem:[#allocation2 + $0x38] sm:$0xff] %vm2865_vm1, %v7242_v36  ;;  %v2570_v2 = vpop.xlane.xlu0 %2569 }
 0x7cd   : > { %v2572_v48 = vpop.xlane.xlu1 %2571  ;;  %v7259_v28 = vmax.f32 %v7244_v11, %v2570_v2 }
 0x7ce   : > { %v7262_v19 = vmax.f32 %v7251_v41, %v2572_v48 }
 0x7cf   : > { %2689 = vperm.xlu1 %5462, %v7239_v13   ;;  %3199 = vst.msk [vmem:[#allocation2 + $0x20] sm:$0xff] %vm2865_vm1, %v7259_v28 }
 0x7d0   : > { %3200 = vst.msk [vmem:[#allocation2 + $0x28] sm:$0xff] %vm2865_vm1, %v7262_v19  ;;  %v2582_v26 = vpop.xlane.xlu0 %2581 }
 0x7d1   : > { %v2584_v24 = vpop.xlane.xlu1 %2583  ;;  %v7277_v20 = vmax.f32 %v7264_v1, %v2582_v26  ;;  %v2609_v26 = vsub.f32 %v7202_v57, %v7209_v47  ;;  %v7328_v57 = vld [vmem:[#allocation2 + $0x60] sm:$0xff] }
 0x7d2   : > { %v7280_v9 = vmax.f32 %v7269_v54, %v2584_v24 }
 0x7d3   : > { %2679 = vperm.xlu1 %5462, %v7259_v28   ;;  %3205 = vst.msk [vmem:[#allocation2 + $0x50] sm:$0xff] %vm2865_vm1, %v7277_v20 }
 0x7d4   : > { %3206 = vst.msk [vmem:[#allocation2 + $0x58] sm:$0xff] %vm2865_vm1, %v7280_v9  ;;  %v2578_v48 = vpop.xlane.xlu0 %2577 }
 0x7d5   : > { %v2580_v24 = vpop.xlane.xlu1 %2579  ;;  %v7298_v17 = vmax.f32 %v7282_v22, %v2578_v48  ;;  %v2625_v48 = vmul.f32 1.442695, %v2609_v26 }
 0x7d6   : > { %v7301_v2 = vmax.f32 %v7285_v53, %v2580_v24  ;;  %v2612_v24 = vsub.f32 %v7211_v10, %v7222_v4  ;;  %v2610_v10 = vsub.f32 %v7216_v5, %v7226_v18  ;;  %v2611_v18 = vsub.f32 %v7200_v6, %v7205_v44 }
 0x7d7   : > { %2684 = vperm.xlu1 %5462, %v7262_v19   ;;  %3203 = vst.msk [vmem:[#allocation2 + $0x40] sm:$0xff] %vm2865_vm1, %v7298_v17  ;;  %5511 = vpow2.f32 %v2625_v48 }
 0x7d8   : > { %3204 = vst.msk [vmem:[#allocation2 + $0x48] sm:$0xff] %vm2865_vm1, %v7301_v2  ;;  %2704 = vperm.xlu0 %5461, %v7301_v2   ;;  %v2590_v47 = vpop.xlane.xlu0 %2589  ;;  %v2627_v48 = vmul.f32 1.442695, %v2610_v10 }
 0x7d9   : > { %v2592_v15 = vpop.xlane.xlu1 %2591  ;;  %v7320_v0 = vmax.f32 %v7303_v50, %v2590_v47  ;;  %v2631_v47 = vmul.f32 1.442695, %v2612_v24 }
 0x7da   : > { %v7326_v40 = vmax.f32 %v7306_v38, %v2592_v15 }
 0x7db   : > { %2694 = vperm.xlu1 %5462, %v7242_v36   ;;  %3209 = vst.msk [vmem:[#allocation2 + $0x70] sm:$0xff] %vm2865_vm1, %v7320_v0  ;;  %5513 = vpow2.f32 %v2631_v47 }
 0x7dc   : > { %3210 = vst.msk [vmem:[#allocation2 + $0x78] sm:$0xff] %vm2865_vm1, %v7326_v40  ;;  %2714 = vperm.xlu0 %5461, %v7280_v9   ;;  %v2586_v15 = vpop.xlane.xlu0 %2585  ;;  %5515 = vpow2.f32 %v2627_v48 }
 0x7dd   : > { %v2588_v26 = vpop.xlane.xlu1 %2587  ;;  %v7346_v45 = vmax.f32 %v7328_v57, %v2586_v15  ;;  %v2613_v15 = vsub.f32 %v7244_v11, %v7259_v28 }
 0x7de   : > { %v7349_v12 = vmax.f32 %v7331_v34, %v2588_v26  ;;  %v2629_v26 = vmul.f32 1.442695, %v2611_v18 }
 0x7df   : > { %2699 = vperm.xlu1 %5462, %v7298_v17   ;;  %3207 = vst.msk [vmem:[#allocation2 + $0x60] sm:$0xff] %vm2865_vm1, %v7346_v45  ;;  %v2633_v44 = vmul.f32 1.442695, %v2613_v15 }
 0x7e0   : > { %3208 = vst.msk [vmem:[#allocation2 + $0x68] sm:$0xff] %vm2865_vm1, %v7349_v12  ;;  %2724 = vperm.xlu0 %5461, %v7349_v12   ;;  %5517 = vpow2.f32 %v2629_v26 }
 0x7e1   : > { %v7367_v6 = vpop.eup %5511  ;;  %5519 = vpow2.f32 %v2633_v44 }
 0x7e3   : > { %2709 = vperm.xlu1 %5462, %v7277_v20  }
 0x7e4   : > { %2734 = vperm.xlu0 %5461, %v7326_v40  }
 0x7e5   : > { %v7371_v10 = vpop.eup %5513 }
 0x7e6   : > { %v7375_v47 = vpop.eup %5515 }
 0x7e7   : > { %2719 = vperm.xlu1 %5462, %v7346_v45  }
 0x7e8   : > { %3069 = vperm.xlu0 %5461, %v7367_v6  }
 0x7ea   : > { %v7378_v11 = vpop.eup %5517 }
 0x7eb   : > { %2729 = vperm.xlu1 %5462, %v7320_v0   ;;  %v7381_v28 = vpop.eup %5519 }
 0x7ec   : > { %3084 = vperm.xlu0 %5461, %v7371_v10  }
 0x7ef   : > { %3074 = vperm.xlu1 %5462, %v7375_v47  }
 0x7f3   : > { %3079 = vperm.xlu1 %5462, %v7378_v11  }
 0x7f7   : > { %3089 = vperm.xlu1 %5462, %v7381_v28  }
 0x841   : > { %v2670_v18 = vpop.permute.xlu1 %2669 }
 0x842   : > { %v2739_v48 = vsub.f32 %v7040_v37, %v2670_v18  ;;  %v2660_v26 = vpop.permute.xlu0 %2659 }
 0x843   : > { %v2737_v15 = vsub.f32 %v7046_v21, %v2660_v26 }
 0x844   : > { %v2757_v44 = vmul.f32 1.442695, %v2739_v48 }
 0x845   : > { %v2753_v24 = vmul.f32 1.442695, %v2737_v15  ;;  %v5488_v15 = vld [vmem:[%s5973_s23 + $0x24] ss:$16 sps:$4 sm:$0xff]  }
 0x846   : > { %5521 = vpow2.f32 %v2757_v44  ;;  %v2665_v5 = vpop.permute.xlu1 %2664 }
 0x847   : > { %5523 = vpow2.f32 %v2753_v24  ;;  %v2738_v4 = vsub.f32 %v7071_v35, %v2665_v5 }
 0x849   : > { %v2755_v51 = vmul.f32 1.442695, %v2738_v4 }
 0x84a   : > { %v2675_v56 = vpop.permute.xlu1 %2674 }
 0x84b   : > { %5525 = vpow2.f32 %v2755_v51  ;;  %v2740_v60 = vsub.f32 %v7062_v46, %v2675_v56 }
 0x84d   : > { %v2759_v25 = vmul.f32 1.442695, %v2740_v60 }
 0x84e   : > { %v2690_v39 = vpop.permute.xlu1 %2689 }
 0x84f   : > { %5527 = vpow2.f32 %v2759_v25  ;;  %v2743_v37 = vsub.f32 %v7084_v62, %v2690_v39 }
 0x850   : > { %v5522_v18 = vpop.eup %5521 }
 0x851   : > { %v5524_v43 = vpop.eup %5523  ;;  %v2765_v21 = vmul.f32 1.442695, %v2743_v37  ;;  %2821 = vadd.xlane.f32.xlu0 %v5522_v18 }
 0x852   : > { %v2680_v48 = vpop.permute.xlu1 %2679  ;;  %2817 = vadd.xlane.f32.xlu1 %v5524_v43 }
 0x853   : > { %5529 = vpow2.f32 %v2765_v21  ;;  %v2741_v24 = vsub.f32 %v7103_v63, %v2680_v48 }
 0x855   : > { %v5526_v35 = vpop.eup %5525  ;;  %v2761_v4 = vmul.f32 1.442695, %v2741_v24 }
 0x856   : > { %2819 = vadd.xlane.f32.xlu0 %v5526_v35  ;;  %v2685_v51 = vpop.permute.xlu1 %2684  ;;  %v2898_v46 = vpack.c.bf16 %v5526_v35, %v5524_v43 }
 0x857   : > { %5531 = vpow2.f32 %v2761_v4  ;;  %v2742_v25 = vsub.f32 %v7111_v33, %v2685_v51  ;;  %v2705_v60 = vpop.permute.xlu0 %2704 }
 0x858   : > { %5156 = vmatprep.mubr.bf16.mxu1 %v2898_v46  ;;  %v2746_v56 = vsub.f32 %v7155_v7, %v2705_v60 }
 0x859   : > { %v5528_v39 = vpop.eup %5527  ;;  %v2763_v62 = vmul.f32 1.442695, %v2742_v25 }
 0x85a   : > { %v2695_v5 = vpop.permute.xlu1 %2694  ;;  %2823 = vadd.xlane.f32.xlu1 %v5528_v39  ;;  %v2899_v26 = vpack.c.bf16 %v5528_v39, %v5522_v18  ;;  %v2771_v33 = vmul.f32 1.442695, %v2746_v56 }
 0x85b   : > { %5533 = vpow2.f32 %v2763_v62  ;;  %v2744_v63 = vsub.f32 %v7096_v58, %v2695_v5  ;;  %v2715_v44 = vpop.permute.xlu0 %2714 }
 0x85c   : > { %5157 = vmatmul.mubr.bf16.vlgmr.msra.gmra.mrb[0].mxu1 %v2899_v26  ;;  %v2748_v21 = vsub.f32 %v7140_v8, %v2715_v44 }
 0x85d   : > { %v5530_v37 = vpop.eup %5529  ;;  %v2767_v43 = vmul.f32 1.442695, %v2744_v63  ;;  %5173 = vmatpush3.bf16.xpose.msra.mxu1 %v7323_v49  ;;  %v5489_v49 = vld [vmem:[%s5973_s23 + $0x44] ss:$16 sps:$4 sm:$0xff]  }
 0x85e   : > { %2829 = vadd.xlane.f32.xlu0 %v5530_v37  ;;  %v2700_v48 = vpop.permute.xlu1 %2699  ;;  %5174 = vmatprep.subr.bf16.mxu1 %v5488_v15  ;;  %v2775_v58 = vmul.f32 1.442695, %v2748_v21 }
 0x85f   : > { %5535 = vpow2.f32 %v2767_v43  ;;  %v2745_v7 = vsub.f32 %v7150_v16, %v2700_v48  ;;  %v2725_v18 = vpop.permute.xlu0 %2724 }
 0x860   : > { %5537 = vpow2.f32 %v2771_v33  ;;  %v2750_v4 = vsub.f32 %v7193_v61, %v2725_v18  ;;  %v5491_v18 = vld [vmem:[%s5973_s23 + $0x84] ss:$16 sps:$4 sm:$0xff]  }
 0x861   : > { %v5532_v24 = vpop.eup %5531  ;;  %v2769_v35 = vmul.f32 1.442695, %v2745_v7 }
 0x862   : > { %2825 = vadd.xlane.f32.xlu0 %v5532_v24  ;;  %v2710_v51 = vpop.permute.xlu1 %2709  ;;  %v2779_v16 = vmul.f32 1.442695, %v2750_v4 }
 0x863   : > { %5539 = vpow2.f32 %v2769_v35  ;;  %v2747_v46 = vsub.f32 %v7128_v52, %v2710_v51  ;;  %v2735_v8 = vpop.permute.xlu0 %2734  ;;  %v5495_v51 = vld [vmem:[%s5975_s25 + $0x4] ss:$8 sps:$4 sm:$0xff]  }
 0x864   : > { %5541 = vpow2.f32 %v2775_v58  ;;  %v2752_v39 = vsub.f32 %v7181_v42, %v2735_v8  ;;  %v5493_v8 = vld [vmem:[%s5973_s23 + $0xc4] ss:$16 sps:$4 sm:$0xff]  }
 0x865   : > { %v5534_v25 = vpop.eup %5533  ;;  %v2773_v60 = vmul.f32 1.442695, %v2747_v46  ;;  %5175 = vmatpush3.bf16.xpose.msra.mxu1 %v5488_v15  ;;  %v5490_v15 = vld [vmem:[%s5973_s23 + $0x64] ss:$16 sps:$4 sm:$0xff]  }
 0x866   : > { %v2720_v62 = vpop.permute.xlu1 %2719  ;;  %v2900_v56 = vpack.c.bf16 %v5534_v25, %v5532_v24  ;;  %5176 = vmatprep.subr.bf16.mxu1 %v5489_v49  ;;  %v2783_v52 = vmul.f32 1.442695, %v2752_v39  ;;  %v5492_v46 = vld [vmem:[%s5973_s23 + $0xa4] ss:$16 sps:$4 sm:$0xff]  }
 0x867   : > { %5543 = vpow2.f32 %v2773_v60  ;;  %v2749_v61 = vsub.f32 %v7188_v30, %v2720_v62  ;;  %v5496_v60 = vld [vmem:[%s5975_s25 + $0x14] ss:$8 sps:$4 sm:$0xff]   ;;  %v5499_v62 = vld [vmem:[%s5975_s25 + $0x44] ss:$8 sps:$4 sm:$0xff]  }
 0x868   : > { %5160 = vmatprep.mubr.bf16.mxu1 %v2900_v56  ;;  %5545 = vpow2.f32 %v2779_v16  ;;  %v5497_v16 = vld [vmem:[%s5975_s25 + $0x24] ss:$8 sps:$4 sm:$0xff]   ;;  %v5498_v39 = vld [vmem:[%s5975_s25 + $0x34] ss:$8 sps:$4 sm:$0xff]  }
 0x869   : > { %v5536_v5 = vpop.eup %5535  ;;  %v2777_v26 = vmul.f32 1.442695, %v2749_v61  ;;  %v5500_v56 = vld [vmem:[%s5975_s25 + $0x54] ss:$8 sps:$4 sm:$0xff]   ;;  %v5501_v61 = vld [vmem:[%s5975_s25 + $0x64] ss:$8 sps:$4 sm:$0xff]  }
 0x86a   : > { %v2730_v63 = vpop.permute.xlu1 %2729  ;;  %2831 = vadd.xlane.f32.xlu1 %v5536_v5  ;;  %v2901_v44 = vpack.c.bf16 %v5536_v5, %v5530_v37  ;;  %v5538_v33 = vpop.eup %5537  ;;  %v5502_v5 = vld [vmem:[%s5975_s25 + $0x74] ss:$8 sps:$4 sm:$0xff]  }
 0x86b   : > { %5547 = vpow2.f32 %v2777_v26  ;;  %v2751_v43 = vsub.f32 %v7172_v32, %v2730_v63 }
 0x86c   : > { %5161 = vmatmul.mubr.bf16.gmra.mrb[4].mxu1 %v2901_v44  ;;  %5549 = vpow2.f32 %v2783_v52  ;;  %v7418_v52 = vpop.permute.xlu0 %3069  ;;  %v8313_v44 = vsub.f32 %v7230_v59, %v7239_v13 }
 0x86d   : > { %v5540_v42 = vpop.eup %5539  ;;  %v2781_v21 = vmul.f32 1.442695, %v2751_v43  ;;  %5177 = vmatpush3.bf16.xpose.msra.mxu1 %v5489_v49 }
 0x86e   : > { %2827 = vadd.xlane.f32.xlu1 %v5534_v25  ;;  %v2902_v30 = vpack.c.bf16 %v5538_v33, %v5540_v42  ;;  %5178 = vmatprep.subr.bf16.mxu1 %v5490_v15  ;;  %v5542_v48 = vpop.eup %5541  ;;  %v5494_v25 = vld [vmem:[%s5973_s23 + $0xe4] ss:$16 sps:$4 sm:$0xff]   ;;  %v7416_v26 = vpop.permute.xlu1 %3074 }
 0x86f   : > { %5551 = vpow2.f32 %v2781_v21  ;;  %v2785_v21 = vld [vmem:[#allocation3] sm:$0xff] }
 0x870   : > { %5164 = vmatprep.mubr.bf16.mxu1 %v2902_v30  ;;  %v7425_v43 = vpop.permute.xlu0 %3084 }
 0x871   : > { %v5544_v7 = vpop.eup %5543 }
 0x872   : > { %2837 = vadd.xlane.f32.xlu0 %v5544_v7  ;;  %2839 = vadd.xlane.f32.xlu1 %v5542_v48  ;;  %v2903_v37 = vpack.c.bf16 %v5542_v48, %v5544_v7  ;;  %v5546_v32 = vpop.eup %5545  ;;  %v7420_v63 = vpop.permute.xlu1 %3079  ;;  %v2801_v7 = vmul.f32 %v7367_v6, %v2785_v21 }
 0x874   : > { %5165 = vmatmul.mubr.bf16.gmra.mrb[8].mxu1 %v2903_v37 }
 0x875   : > { %v5548_v24 = vpop.eup %5547  ;;  %5179 = vmatpush3.bf16.xpose.msra.mxu1 %v5490_v15  ;;  %v2637_v15 = vmul.f32 1.442695, %v8313_v44 }
 0x876   : > { %2833 = vadd.xlane.f32.xlu0 %v5540_v42  ;;  %2835 = vadd.xlane.f32.xlu1 %v5538_v33  ;;  %v2904_v35 = vpack.c.bf16 %v5546_v32, %v5548_v24  ;;  %v5550_v58 = vpop.eup %5549  ;;  %v2787_v33 = vld [vmem:[#allocation3 + $0x10] sm:$0xff]  ;;  %v7427_v42 = vpop.permute.xlu1 %3089 }
 0x877   : > { %5180 = vmatprep.subr.bf16.mxu1 %v5491_v18  ;;  %5553 = vpow2.f32 %v2637_v15  ;;  %v2803_v30 = vmul.f32 %v7378_v11, %v2787_v33 }
 0x878   : > { %5168 = vmatprep.mubr.bf16.mxu1 %v2904_v35  ;;  %v2788_v35 = vld [vmem:[#allocation3 + $0x18] sm:$0xff] }
 0x879   : > { %v5552_v4 = vpop.eup %5551  ;;  %v2804_v6 = vmul.f32 %v7371_v10, %v2788_v35 }
 0x87a   : > { %2845 = vadd.xlane.f32.xlu0 %v5552_v4  ;;  %2847 = vadd.xlane.f32.xlu1 %v5550_v58  ;;  %v2905_v49 = vpack.c.bf16 %v5550_v58, %v5552_v4  ;;  %v8314_v4 = vsub.f32 %v7235_v27, %v7242_v36  ;;  %v2789_v36 = vld [vmem:[#allocation3 + $0x20] sm:$0xff] }
 0x87c   : > { %5169 = vmatmul.mubr.bf16.gmra.mrb[12].mxu1 %v2905_v49  ;;  %v2639_v11 = vmul.f32 1.442695, %v8314_v4  ;;  %v2793_v4 = vld [vmem:[#allocation3 + $0x40] sm:$0xff] }
 0x87d   : > { %5181 = vmatpush3.bf16.xpose.msra.mxu1 %v5491_v18  ;;  %5188 = vmatprep.mubr.bf16.mxu1 %v5495_v51 }
 0x87e   : > { %2841 = vadd.xlane.f32.xlu0 %v5548_v24  ;;  %2843 = vadd.xlane.f32.xlu1 %v5546_v32  ;;  %v2786_v32 = vld [vmem:[#allocation3 + $0x8] sm:$0xff]  ;;  %5555 = vpow2.f32 %v2639_v11 }
 0x87f   : > { %5182 = vmatprep.subr.bf16.mxu1 %v5492_v46  ;;  %v2802_v59 = vmul.f32 %v7375_v47, %v2786_v32  ;;  %v8315_v47 = vsub.f32 %v7251_v41, %v7262_v19  ;;  %v2805_v41 = vmul.f32 %v7381_v28, %v2789_v36  ;;  %v8320_v28 = vsub.f32 %v7303_v50, %v7320_v0  ;;  %v2796_v32 = vld [vmem:[#allocation3 + $0x58] sm:$0xff]  ;;  %v2799_v36 = vld [vmem:[#allocation3 + $0x70] sm:$0xff] }
 0x880   : > { %v8323_v0 = vsub.f32 %v7331_v34, %v7349_v12 }
 0x881   : > { %v7439_v51 = vpop.eup %5553  ;;  %v2653_v15 = vmul.f32 1.442695, %v8320_v28 }
 0x882   : > { %v2651_v50 = vmul.f32 1.442695, %v8323_v0 }
 0x885   : > { %5183 = vmatpush3.bf16.xpose.msra.mxu1 %v5492_v46  ;;  %v2791_v46 = vld [vmem:[#allocation3 + $0x30] sm:$0xff] }
 0x886   : > { %5184 = vmatprep.subr.bf16.mxu1 %v5493_v8 }
 0x88d   : > { %5185 = vmatpush3.bf16.xpose.msra.mxu1 %v5493_v8 }
 0x88e   : > { %5186 = vmatprep.subr.bf16.mxu1 %v5494_v25 }
 0x895   : > { %5187 = vmatpush3.bf16.xpose.msra.mxu1 %v5494_v25  ;;  %v2635_v25 = vmul.f32 1.442695, %v8315_v47 }
 0x897   : > { %5557 = vpow2.f32 %v2635_v25 }
 0x89c   : > { %5189 = vmatmul.mubr.bf16.vlgmr.msra.gmra.mrb[16].mxu1 %v5496_v60  ;;  %v2807_v60 = vmul.f32 %v7439_v51, %v2791_v46 }
 0x89d   : > { %5192 = vmatprep.mubr.bf16.mxu1 %v5497_v16  ;;  %v8316_v16 = vsub.f32 %v7264_v1, %v7277_v20  ;;  %v8319_v1 = vsub.f32 %v7285_v53, %v7301_v2  ;;  %v2790_v2 = vld [vmem:[#allocation3 + $0x28] sm:$0xff] }
 0x89f   : > { %v2645_v10 = vmul.f32 1.442695, %v8316_v16  ;;  %v2643_v20 = vmul.f32 1.442695, %v8319_v1 }
 0x8a1   : > { %5559 = vpow2.f32 %v2645_v10 }
 0x8a4   : > { %5193 = vmatmul.mubr.bf16.gmra.mrb[20].mxu1 %v5498_v39 }
 0x8a5   : > { %5196 = vmatprep.mubr.bf16.mxu1 %v5499_v62  ;;  %v8317_v62 = vsub.f32 %v7269_v54, %v7280_v9  ;;  %v7461_v54 = vpop.eup %5555  ;;  %v2792_v9 = vld [vmem:[#allocation3 + $0x38] sm:$0xff] }
 0x8a6   : > { %v2808_v33 = vmul.f32 %v7461_v54, %v2792_v9  ;;  %v7470_v21 = vpop.eup %5557 }
 0x8ac   : > { %5197 = vmatmul.mubr.bf16.gmra.mrb[24].mxu1 %v5500_v56  ;;  %v2647_v56 = vmul.f32 1.442695, %v8317_v62 }
 0x8ad   : > { %5200 = vmatprep.mubr.bf16.mxu1 %v5501_v61  ;;  %v8318_v61 = vsub.f32 %v7282_v22, %v7298_v17  ;;  %v8321_v17 = vsub.f32 %v7306_v38, %v7326_v40  ;;  %v2806_v40 = vmul.f32 %v7470_v21, %v2790_v2  ;;  %v3051_v2 = vld [vmem:[#allocation4] sm:$0xff] }
 0x8ae   : > { %5561 = vpow2.f32 %v2647_v56  ;;  %v3147_v0 = vmul.f32 %v7418_v52, %v3051_v2 }
 0x8af   : > { %v2655_v22 = vmul.f32 1.442695, %v8321_v17 }
 0x8b4   : > { %5201 = vmatmul.mubr.bf16.gmra.mrb[28].mxu1 %v5502_v5  ;;  %v2641_v5 = vmul.f32 1.442695, %v8318_v61 }
 0x8b6   : > { %5563 = vpow2.f32 %v2641_v5  ;;  %v2798_v5 = vld [vmem:[#allocation3 + $0x68] sm:$0xff] }
 0x8b7   : > { %5565 = vpow2.f32 %v2643_v20 }
 0x8b8   : > { %5567 = vpow2.f32 %v2653_v15 }
 0x8b9   : > { %5569 = vpow2.f32 %v2655_v22 }
 0x8de   : > { %v2822_v48 = vpop.xlane.xlu0 %2821 }
 0x8df   : > { %v2851_v37 = vadd.f32 %v2822_v48, %v2803_v30  ;;  %v2818_v18 = vpop.xlane.xlu1 %2817  ;;  %v8322_v30 = vsub.f32 %v7328_v57, %v7346_v45 }
 0x8e0   : > { %v2849_v24 = vadd.f32 %v2818_v18, %v2801_v7 }
 0x8e1   : > { %2868 = vst.msk [vmem:[#allocation3 + $0x10] sm:$0xff] %vm2865_vm1, %v2851_v37  ;;  %v2649_v48 = vmul.f32 1.442695, %v8322_v30  ;;  %v7478_v37 = vpop.eup %5559  ;;  %v3054_v30 = vld [vmem:[#allocation4 + $0x30] sm:$0xff] }
 0x8e2   : > { %2866 = vst.msk [vmem:[#allocation3] sm:$0xff] %vm2865_vm1, %v2849_v24  ;;  %v7482_v38 = vpop.eup %5561  ;;  %v2795_v24 = vld [vmem:[#allocation3 + $0x50] sm:$0xff] }
 0x8e3   : > { %v2820_v13 = vpop.xlane.xlu0 %2819  ;;  %5571 = vpow2.f32 %v2649_v48  ;;  %v7484_v57 = vpop.eup %5563  ;;  %v2812_v12 = vmul.f32 %v7482_v38, %v2796_v32  ;;  %v2811_v34 = vmul.f32 %v7478_v37, %v2795_v24  ;;  %v3052_v48 = vld [vmem:[#allocation4 + $0x10] sm:$0xff] }
 0x8e4   : > { %v2850_v58 = vadd.f32 %v2820_v13, %v2802_v59  ;;  %5573 = vpow2.f32 %v2651_v50  ;;  %v7489_v59 = vpop.eup %5565  ;;  %v3148_v24 = vmul.f32 %v7416_v26, %v3052_v48 }
 0x8e6   : > { %2867 = vst.msk [vmem:[#allocation3 + $0x8] sm:$0xff] %vm2865_vm1, %v2850_v58  ;;  %v2794_v58 = vld [vmem:[#allocation3 + $0x48] sm:$0xff] }
 0x8e7   : > { %v2824_v49 = vpop.xlane.xlu1 %2823  ;;  %v2810_v46 = vmul.f32 %v7489_v59, %v2794_v58  ;;  %v3055_v58 = vld [vmem:[#allocation4 + $0x40] sm:$0xff] }
 0x8e8   : > { %v2852_v8 = vadd.f32 %v2824_v49, %v2804_v6  ;;  %v7491_v49 = vpop.eup %5567 }
 0x8e9   : > { %v7497_v47 = vpop.eup %5569  ;;  %v2815_v56 = vmul.f32 %v7491_v49, %v2799_v36 }
 0x8ea   : > { %2869 = vst.msk [vmem:[#allocation3 + $0x18] sm:$0xff] %vm2865_vm1, %v2852_v8  ;;  %v2809_v8 = vmul.f32 %v7484_v57, %v2793_v4 }
 0x8eb   : > { %v2830_v27 = vpop.xlane.xlu0 %2829 }
 0x8ec   : > { %v2855_v39 = vadd.f32 %v2830_v27, %v2807_v60  ;;  %v2800_v27 = vld [vmem:[#allocation3 + $0x78] sm:$0xff] }
 0x8ed   : > { %v2816_v62 = vmul.f32 %v7497_v47, %v2800_v27 }
 0x8ee   : > { %2872 = vst.msk [vmem:[#allocation3 + $0x30] sm:$0xff] %vm2865_vm1, %v2855_v39  ;;  %v7499_v39 = vpop.eup %5571 }
 0x8ef   : > { %v2826_v19 = vpop.xlane.xlu0 %2825 }
 0x8f0   : > { %v2853_v44 = vadd.f32 %v2826_v19, %v2805_v41  ;;  %v7505_v41 = vpop.eup %5573 }
 0x8f1   : > { %v2814_v9 = vmul.f32 %v7505_v41, %v2798_v5 }
 0x8f2   : > { %2870 = vst.msk [vmem:[#allocation3 + $0x20] sm:$0xff] %vm2865_vm1, %v2853_v44  ;;  %v2797_v44 = vld [vmem:[#allocation3 + $0x60] sm:$0xff] }
 0x8f3   : > { %v2813_v28 = vmul.f32 %v7499_v39, %v2797_v44 }
 0x8f7   : > { %v2832_v53 = vpop.xlane.xlu1 %2831 }
 0x8f8   : > { %v2856_v7 = vadd.f32 %v2832_v53, %v2808_v33  ;;  %v3053_v53 = vld [vmem:[#allocation4 + $0x20] sm:$0xff] }
 0x8fa   : > { %2873 = vst.msk [vmem:[#allocation3 + $0x38] sm:$0xff] %vm2865_vm1, %v2856_v7  ;;  %v3149_v7 = vmul.f32 %v7420_v63, %v3053_v53  ;;  %v3151_v63 = vmul.f32 %v7427_v42, %v3055_v58 }
 0x8fb   : > { %v2828_v18 = vpop.xlane.xlu1 %2827 }
 0x8fc   : > { %v2854_v45 = vadd.f32 %v2828_v18, %v2806_v40  ;;  %v3150_v40 = vmul.f32 %v7425_v43, %v3054_v30 }
 0x8fe   : > { %2871 = vst.msk [vmem:[#allocation3 + $0x28] sm:$0xff] %vm2865_vm1, %v2854_v45 }
 0x8ff   : > { %v2840_v13 = vpop.xlane.xlu1 %2839  ;;  %v2838_v35 = vpop.xlane.xlu0 %2837 }
 0x900   : > { %v2860_v11 = vadd.f32 %v2840_v13, %v2812_v12  ;;  %v2859_v6 = vadd.f32 %v2838_v35, %v2811_v34 }
 0x902   : > { %2877 = vst.msk [vmem:[#allocation3 + $0x58] sm:$0xff] %vm2865_vm1, %v2860_v11  ;;  %2876 = vst.msk [vmem:[#allocation3 + $0x50] sm:$0xff] %vm2865_vm1, %v2859_v6 }
 0x903   : > { %v2836_v25 = vpop.xlane.xlu1 %2835  ;;  %v2834_v60 = vpop.xlane.xlu0 %2833 }
 0x904   : > { %v2858_v16 = vadd.f32 %v2836_v25, %v2810_v46  ;;  %v2857_v10 = vadd.f32 %v2834_v60, %v2809_v8 }
 0x906   : > { %2875 = vst.msk [vmem:[#allocation3 + $0x48] sm:$0xff] %vm2865_vm1, %v2858_v16  ;;  %2874 = vst.msk [vmem:[#allocation3 + $0x40] sm:$0xff] %vm2865_vm1, %v2857_v10 }
 0x907   : > { %v2848_v19 = vpop.xlane.xlu1 %2847  ;;  %v2846_v61 = vpop.xlane.xlu0 %2845 }
 0x908   : > { %v2864_v1 = vadd.f32 %v2848_v19, %v2816_v62  ;;  %v2863_v20 = vadd.f32 %v2846_v61, %v2815_v56 }
 0x90a   : > { %2881 = vst.msk [vmem:[#allocation3 + $0x78] sm:$0xff] %vm2865_vm1, %v2864_v1  ;;  %2880 = vst.msk [vmem:[#allocation3 + $0x70] sm:$0xff] %vm2865_vm1, %v2863_v20 }
 0x90b   : > { %v2844_v15 = vpop.xlane.xlu1 %2843  ;;  %v2842_v17 = vpop.xlane.xlu0 %2841 }
 0x90c   : > { %v2862_v22 = vadd.f32 %v2844_v15, %v2814_v9  ;;  %v2861_v33 = vadd.f32 %v2842_v17, %v2813_v28 }
 0x90e   : > { %2879 = vst.msk [vmem:[#allocation3 + $0x68] sm:$0xff] %vm2865_vm1, %v2862_v22  ;;  %2878 = vst.msk [vmem:[#allocation3 + $0x60] sm:$0xff] %vm2865_vm1, %v2861_v33 }
 0x92f   : > { %v5158_v50 = vpop.f32.mrb[0].mxu1 }
 0x930   : > { %v3165_v18 = vadd.f32 %v5158_v50, %v3149_v7  ;;  %v2988_v32 = vpop.f32.mrb[1].mxu1  ;;  %v5507_v7 = vld [vmem:[%s5973_s23 + $0x8c] ss:$16 sps:$4 sm:$0xff]  }
 0x931   : > { %v3163_v45 = vadd.f32 %v3147_v0, %v2988_v32  ;;  %v5159_v12 = vpop.f32.mrb[2].mxu1 }
 0x932   : > { %3181 = vst [vmem:[#allocation4 + $0x20] sm:$0xff] %v3165_v18  ;;  %v3166_v34 = vadd.f32 %v5159_v12, %v3150_v40  ;;  %v2991_v13 = vpop.f32.mrb[3].mxu1 }
 0x933   : > { %3179 = vst [vmem:[#allocation4] sm:$0xff] %v3163_v45  ;;  %v3164_v35 = vadd.f32 %v3148_v24, %v2991_v13 }
 0x934   : > { %3182 = vst [vmem:[#allocation4 + $0x30] sm:$0xff] %v3166_v34 }
 0x935   : > { %3180 = vst [vmem:[#allocation4 + $0x10] sm:$0xff] %v3164_v35 }
 0x93f   : > { %v7518_v52 = vpop.f32.mrb[4].mxu1 }
 0x940   : > { %v3004_v4 = vpop.f32.mrb[5].mxu1 }
 0x941   : > { %v3167_v43 = vadd.f32 %v3151_v63, %v3004_v4  ;;  %v7520_v11 = vpop.f32.mrb[6].mxu1 }
 0x942   : > { %v7522_v6 = vpop.f32.mrb[7].mxu1 }
 0x943   : > { %3183 = vst [vmem:[#allocation4 + $0x40] sm:$0xff] %v3167_v43 }
 0x947   : > { %v7524_v26 = vpop.f32.mrb[8].mxu1 }
 0x948   : > { %v7526_v46 = vpop.f32.mrb[9].mxu1 }
 0x949   : > { %v7528_v8 = vpop.f32.mrb[10].mxu1 }
 0x94a   : > { %v7530_v25 = vpop.f32.mrb[11].mxu1 }
 0x94f   : > { %v7532_v60 = vpop.f32.mrb[12].mxu1 }
 0x950   : > { %8324 = vst [vmem:[#allocation71_spill] sm:$0xff] %v7532_v60  ;;  %v7534_v42 = vpop.f32.mrb[13].mxu1 }
 0x951   : > { %8325 = vst [vmem:[#allocation72_spill] sm:$0xff] %v7534_v42  ;;  %v7536_v27 = vpop.f32.mrb[14].mxu1  ;;  %v3056_v42 = vld [vmem:[#allocation4 + $0x50] sm:$0xff] }
 0x952   : > { %8326 = vst [vmem:[#allocation73_spill] sm:$0xff] %v7536_v27  ;;  %v7538_v36 = vpop.f32.mrb[15].mxu1 }
 0x953   : > { %8327 = vst [vmem:[#allocation74_spill] sm:$0xff] %v7538_v36 }
 0x96f   : > { %v5190_v16 = vpop.f32.mrb[16].mxu1 }
 0x970   : > { %v3373_v10 = vpop.f32.mrb[17].mxu1  ;;  %v7543_v62 = vsel %vm2290_vm2, %v5190_v16, -1e+30  ;;  %v8340_v16 = vld [vmem:[#allocation70_spill] sm:$0xff] }
 0x971   : > { %3473 = vmax.xlane.f32.xlu0 %v7543_v62  ;;  %v5191_v56 = vpop.f32.mrb[18].mxu1  ;;  %v7549_v19 = vsel %vm2288_vm3, %v3373_v10, -1e+30  ;;  %vm8341_vm2 = vcmp.le.s32.totalorder %v7025_v31, %v8340_v16  ;;  %v5503_v31 = vld [vmem:[%s5973_s23 + $0xc] ss:$16 sps:$4 sm:$0xff]  }
 0x972   : > { %3469 = vmax.xlane.f32.xlu1 %v7549_v19  ;;  %v3376_v61 = vpop.f32.mrb[19].mxu1  ;;  %v7561_v23 = vsel %vm2291_vm4, %v5191_v56, -1e+30  ;;  %v5504_v56 = vld [vmem:[%s5973_s23 + $0x2c] ss:$16 sps:$4 sm:$0xff]   ;;  %5204 = vmatprep.subr.bf16.mxu0 %v5503_v31 }
 0x973   : > { %v7555_v5 = vsel %vm2289_vm5, %v3376_v61, -1e+30  ;;  %5205 = vmatpush3.bf16.msra.mxu0 %v5503_v31  ;;  %v5505_v61 = vld [vmem:[%s5973_s23 + $0x4c] ss:$16 sps:$4 sm:$0xff]  }
 0x974   : > { %5206 = vmatprep.subr.bf16.mxu0 %v5504_v56  ;;  %v7710_v16 = vld [vmem:[#allocation2 + $0xd8] sm:$0xff] }
 0x975   : > { %3471 = vmax.xlane.f32.xlu0 %v7555_v5 }
 0x976   : > { %3475 = vmax.xlane.f32.xlu1 %v7561_v23 }
 0x977   : > { %v5194_v55 = vpop.f32.mrb[20].mxu1  ;;  %5207 = vmatpush3.bf16.msra.mxu0 %v5504_v56 }
 0x978   : > { %v3389_v44 = vpop.f32.mrb[21].mxu1  ;;  %v7567_v1 = vsel %vm2294_vm6, %v5194_v55, -1e+30  ;;  %v7660_v55 = vld [vmem:[#allocation2 + $0x98] sm:$0xff]  ;;  %5208 = vmatprep.subr.bf16.mxu0 %v5505_v61 }
 0x979   : > { %3481 = vmax.xlane.f32.xlu0 %v7567_v1  ;;  %v5195_v29 = vpop.f32.mrb[22].mxu1  ;;  %v7579_v15 = vsel %vm2292_vm8, %v3389_v44, -1e+30 }
 0x97a   : > { %v3392_v20 = vpop.f32.mrb[23].mxu1  ;;  %v7573_v28 = vsel %vm2295_vm7, %v5195_v29, -1e+30 }
 0x97b   : > { %3483 = vmax.xlane.f32.xlu1 %v7573_v28  ;;  %v7585_v17 = vsel %vm2293_vm9, %v3392_v20, -1e+30  ;;  %5209 = vmatpush3.bf16.msra.mxu0 %v5505_v61 }
 0x97c   : > { %5210 = vmatprep.subr.bf16.mxu0 %v5506_v14 }
 0x97d   : > { %3477 = vmax.xlane.f32.xlu0 %v7579_v15 }
 0x97f   : > { %3479 = vmax.xlane.f32.xlu1 %v7585_v17  ;;  %v5198_v22 = vpop.f32.mrb[24].mxu1  ;;  %5211 = vmatpush3.bf16.msra.mxu0 %v5506_v14 }
 0x980   : > { %v3405_v33 = vpop.f32.mrb[25].mxu1  ;;  %v7591_v2 = vsel %vm2298_vm10, %v5198_v22, -1e+30  ;;  %5212 = vmatprep.subr.bf16.mxu0 %v5507_v7 }
 0x981   : > { %3489 = vmax.xlane.f32.xlu0 %v7591_v2  ;;  %v5199_v30 = vpop.f32.mrb[26].mxu1  ;;  %v7603_v40 = vsel %vm2296_vm12, %v3405_v33, -1e+30  ;;  %v7680_v33 = vld [vmem:[#allocation2 + $0xb8] sm:$0xff] }
 0x982   : > { %v3408_v48 = vpop.f32.mrb[27].mxu1  ;;  %v7597_v0 = vsel %vm2299_vm11, %v5199_v30, -1e+30 }
 0x983   : > { %3491 = vmax.xlane.f32.xlu1 %v7597_v0  ;;  %v7609_v32 = vsel %vm2297_vm13, %v3408_v48, -1e+30  ;;  %v7685_v48 = vld [vmem:[#allocation2 + $0xa0] sm:$0xff]  ;;  %5213 = vmatpush3.bf16.msra.mxu0 %v5507_v7  ;;  %v5510_v7 = vld [vmem:[%s5973_s23 + $0xec] ss:$16 sps:$4 sm:$0xff]  }
 0x985   : > { %3485 = vmax.xlane.f32.xlu0 %v7603_v40 }
 0x987   : > { %3487 = vmax.xlane.f32.xlu1 %v7609_v32  ;;  %v5202_v24 = vpop.f32.mrb[28].mxu1 }
 0x988   : > { %v3421_v45 = vpop.f32.mrb[29].mxu1  ;;  %v7615_v34 = vsel %vm2302_vm14, %v5202_v24, -1e+30  ;;  %v7694_v24 = vld [vmem:[#allocation2 + $0xa8] sm:$0xff] }
 0x989   : > { %8336 = vst [vmem:[#allocation60_spill] sm:$0xff] %v7615_v34  ;;  %3497 = vmax.xlane.f32.xlu0 %v7615_v34  ;;  %v5203_v13 = vpop.f32.mrb[30].mxu1  ;;  %v7627_v43 = vsel %vm2300_vm0, %v3421_v45, -1e+30 }
 0x98a   : > { %v3424_v35 = vpop.f32.mrb[31].mxu1  ;;  %v7621_v63 = vsel %vm2303_vm15, %v5203_v13, -1e+30  ;;  %v7701_v13 = vld [vmem:[#allocation2 + $0xd0] sm:$0xff] }
 0x98b   : > { %8338 = vst [vmem:[#allocation61_spill] sm:$0xff] %v7621_v63  ;;  %3499 = vmax.xlane.f32.xlu1 %v7621_v63  ;;  %v7633_v10 = vsel %vm8341_vm2, %v3424_v35, -1e+30  ;;  %v5508_v35 = vld [vmem:[%s5973_s23 + $0xac] ss:$16 sps:$4 sm:$0xff]  }
 0x98c   : > { %8342 = vst [vmem:[#allocation62_spill] sm:$0xff] %v7633_v10  ;;  %5214 = vmatprep.subr.bf16.mxu0 %v5508_v35 }
 0x98d   : > { %3493 = vmax.xlane.f32.xlu0 %v7627_v43  ;;  %5215 = vmatpush3.bf16.msra.mxu0 %v5508_v35  ;;  %v7744_v35 = vld [vmem:[#allocation2 + $0xf8] sm:$0xff] }
 0x98e   : > { %8343 = vst [vmem:[#allocation63_spill] sm:$0xff] %v7744_v35 }
 0x98f   : > { %3495 = vmax.xlane.f32.xlu1 %v7633_v10 }
 0x9a0   : > { %3099 = vperm.xlu1 %5462, %v7439_v51   ;;  %v7645_v51 = vld [vmem:[#allocation2 + $0x90] sm:$0xff] }
 0x9a3   : > { %3094 = vperm.xlu0 %5461, %v7470_v21   ;;  %v7647_v21 = vld [vmem:[#allocation2 + $0x80] sm:$0xff] }
 0x9a4   : > { %3109 = vperm.xlu1 %5462, %v7484_v57  }
 0x9a7   : > { %3104 = vperm.xlu0 %5461, %v7461_v54  }
 0x9a8   : > { %3124 = vperm.xlu1 %5462, %v7482_v38  }
 0x9ab   : > { %3114 = vperm.xlu0 %5461, %v7489_v59  }
 0x9af   : > { %3119 = vperm.xlu0 %5461, %v7478_v37   ;;  %v7655_v37 = vld [vmem:[#allocation2 + $0x88] sm:$0xff] }
 0x9fe   : > { %v3474_v57 = vpop.xlane.xlu0 %3473 }
 0x9ff   : > { %v7650_v54 = vmax.f32 %v7645_v51, %v3474_v57  ;;  %v3470_v38 = vpop.xlane.xlu1 %3469  ;;  %v7718_v57 = vld [vmem:[#allocation2 + $0xc0] sm:$0xff] }
 0xa00   : > { %v7653_v59 = vmax.f32 %v7647_v21, %v3470_v38  ;;  %v5509_v38 = vld [vmem:[%s5973_s23 + $0xcc] ss:$16 sps:$4 sm:$0xff]  }
 0xa01   : > { %4105 = vst.msk [vmem:[#allocation2 + $0x90] sm:$0xff] %vm2865_vm1, %v7650_v54  ;;  %5216 = vmatprep.subr.bf16.mxu0 %v5509_v38 }
 0xa02   : > { %4103 = vst.msk [vmem:[#allocation2 + $0x80] sm:$0xff] %vm2865_vm1, %v7653_v59  ;;  %3567 = vperm.xlu1 %5462, %v7653_v59   ;;  %v3472_v44 = vpop.xlane.xlu0 %3471  ;;  %5217 = vmatpush3.bf16.msra.mxu0 %v5509_v38  ;;  %v7752_v38 = vld [vmem:[#allocation2 + $0xe0] sm:$0xff] }
 0xa03   : > { %v7666_v29 = vmax.f32 %v7655_v37, %v3472_v44  ;;  %v3476_v20 = vpop.xlane.xlu1 %3475  ;;  %5218 = vmatprep.subr.bf16.mxu0 %v5510_v7 }
 0xa04   : > { %v7669_v9 = vmax.f32 %v7660_v55, %v3476_v20  ;;  %v7727_v20 = vld [vmem:[#allocation2 + $0xc8] sm:$0xff] }
 0xa05   : > { %4104 = vst.msk [vmem:[#allocation2 + $0x88] sm:$0xff] %vm2865_vm1, %v7666_v29  ;;  %3572 = vperm.xlu0 %5461, %v7666_v29  }
 0xa06   : > { %4106 = vst.msk [vmem:[#allocation2 + $0x98] sm:$0xff] %vm2865_vm1, %v7669_v9  ;;  %3577 = vperm.xlu1 %5462, %v7650_v54   ;;  %v3482_v22 = vpop.xlane.xlu0 %3481  ;;  %5219 = vmatpush3.bf16.msra.mxu0 %v5510_v7 }
 0xa07   : > { %v7683_v53 = vmax.f32 %v7671_v3, %v3482_v22 }
 0xa08   : > { %v3484_v30 = vpop.xlane.xlu1 %3483 }
 0xa09   : > { %4109 = vst.msk [vmem:[#allocation2 + $0xb0] sm:$0xff] %vm2865_vm1, %v7683_v53  ;;  %v7691_v50 = vmax.f32 %v7680_v33, %v3484_v30  ;;  %3582 = vperm.xlu0 %5461, %v7669_v9   ;;  %v7735_v30 = vld [vmem:[#allocation2 + $0xf0] sm:$0xff] }
 0xa0a   : > { %v3478_v18 = vpop.xlane.xlu0 %3477 }
 0xa0b   : > { %4110 = vst.msk [vmem:[#allocation2 + $0xb8] sm:$0xff] %vm2865_vm1, %v7691_v50  ;;  %v7699_v45 = vmax.f32 %v7685_v48, %v3478_v18 }
 0xa0c   : > { %v3480_v12 = vpop.xlane.xlu1 %3479 }
 0xa0d   : > { %4107 = vst.msk [vmem:[#allocation2 + $0xa0] sm:$0xff] %vm2865_vm1, %v7699_v45  ;;  %v7707_v58 = vmax.f32 %v7694_v24, %v3480_v12  ;;  %3587 = vperm.xlu1 %5462, %v7699_v45  }
 0xa0e   : > { %v3490_v4 = vpop.xlane.xlu0 %3489 }
 0xa0f   : > { %4108 = vst.msk [vmem:[#allocation2 + $0xa8] sm:$0xff] %vm2865_vm1, %v7707_v58  ;;  %v7715_v31 = vmax.f32 %v7701_v13, %v3490_v4  ;;  %3592 = vperm.xlu0 %5461, %v7707_v58  }
 0xa10   : > { %v3492_v56 = vpop.xlane.xlu1 %3491 }
 0xa11   : > { %4113 = vst.msk [vmem:[#allocation2 + $0xd0] sm:$0xff] %vm2865_vm1, %v7715_v31  ;;  %v7724_v61 = vmax.f32 %v7710_v16, %v3492_v56  ;;  %3597 = vperm.xlu1 %5462, %v7683_v53  }
 0xa12   : > { %v3486_v44 = vpop.xlane.xlu0 %3485 }
 0xa13   : > { %4114 = vst.msk [vmem:[#allocation2 + $0xd8] sm:$0xff] %vm2865_vm1, %v7724_v61  ;;  %v7732_v14 = vmax.f32 %v7718_v57, %v3486_v44  ;;  %3602 = vperm.xlu0 %5461, %v7691_v50  }
 0xa14   : > { %v3488_v22 = vpop.xlane.xlu1 %3487 }
 0xa15   : > { %4111 = vst.msk [vmem:[#allocation2 + $0xc0] sm:$0xff] %vm2865_vm1, %v7732_v14  ;;  %v7741_v18 = vmax.f32 %v7727_v20, %v3488_v22  ;;  %3607 = vperm.xlu1 %5462, %v7732_v14   ;;  %v3518_v22 = vsub.f32 %v7655_v37, %v7666_v29  ;;  %v3519_v29 = vsub.f32 %v7645_v51, %v7650_v54 }
 0xa16   : > { %v3498_v12 = vpop.xlane.xlu0 %3497  ;;  %v3521_v51 = vsub.f32 %v7685_v48, %v7699_v45 }
 0xa17   : > { %4112 = vst.msk [vmem:[#allocation2 + $0xc8] sm:$0xff] %vm2865_vm1, %v7741_v18  ;;  %v7749_v4 = vmax.f32 %v7735_v30, %v3498_v12  ;;  %3612 = vperm.xlu0 %5461, %v7741_v18   ;;  %v7762_v12 = vld [vmem:[#allocation2 + $0xe8] sm:$0xff]  ;;  %v3535_v7 = vmul.f32 1.442695, %v3518_v22  ;;  %v3537_v63 = vmul.f32 1.442695, %v3519_v29 }
 0xa18   : > { %v3500_v56 = vpop.xlane.xlu1 %3499  ;;  %v3059_v22 = vld [vmem:[#allocation4 + $0x80] sm:$0xff]  ;;  %v3062_v29 = vld [vmem:[#allocation4 + $0xb0] sm:$0xff] }
 0xa19   : > { %4117 = vst.msk [vmem:[#allocation2 + $0xf0] sm:$0xff] %vm2865_vm1, %v7749_v4  ;;  %v7757_v44 = vmax.f32 %v7744_v35, %v3500_v56  ;;  %3617 = vperm.xlu1 %5462, %v7715_v31   ;;  %v3517_v56 = vsub.f32 %v7647_v21, %v7653_v59  ;;  %v3520_v59 = vsub.f32 %v7660_v55, %v7669_v9  ;;  %5575 = vpow2.f32 %v3535_v7 }
 0xa1a   : > { %v3494_v27 = vpop.xlane.xlu0 %3493  ;;  %v3522_v9 = vsub.f32 %v7694_v24, %v7707_v58 }
 0xa1b   : > { %4118 = vst.msk [vmem:[#allocation2 + $0xf8] sm:$0xff] %vm2865_vm1, %v7757_v44  ;;  %v7769_v60 = vmax.f32 %v7752_v38, %v3494_v27  ;;  %3622 = vperm.xlu0 %5461, %v7724_v61   ;;  %v3057_v27 = vld [vmem:[#allocation4 + $0x60] sm:$0xff]  ;;  %v3533_v21 = vmul.f32 1.442695, %v3517_v56  ;;  %v3539_v55 = vmul.f32 1.442695, %v3520_v59 }
 0xa1c   : > { %v3496_v36 = vpop.xlane.xlu1 %3495  ;;  %v3058_v56 = vld [vmem:[#allocation4 + $0x70] sm:$0xff]  ;;  %v3061_v59 = vld [vmem:[#allocation4 + $0xa0] sm:$0xff] }
 0xa1d   : > { %4115 = vst.msk [vmem:[#allocation2 + $0xe0] sm:$0xff] %vm2865_vm1, %v7769_v60  ;;  %v7777_v37 = vmax.f32 %v7762_v12, %v3496_v36  ;;  %3627 = vperm.xlu1 %5462, %v7769_v60   ;;  %5577 = vpow2.f32 %v3533_v21 }
 0xa1e   : > { %5579 = vpow2.f32 %v3537_v63 }
 0xa1f   : > { %4116 = vst.msk [vmem:[#allocation2 + $0xe8] sm:$0xff] %vm2865_vm1, %v7777_v37  ;;  %3632 = vperm.xlu0 %5461, %v7777_v37   ;;  %5581 = vpow2.f32 %v3539_v55 }
 0xa20   : > { %v3100_v35 = vpop.permute.xlu1 %3099 }
 0xa21   : > { %v3153_v36 = vmul.f32 %v3100_v35, %v3057_v27  ;;  %3637 = vperm.xlu1 %5462, %v7749_v4  }
 0xa22   : > { %v3095_v54 = vpop.permute.xlu0 %3094 }
 0xa23   : > { %v7791_v34 = vadd.f32 %v7518_v52, %v3153_v36  ;;  %v3152_v10 = vmul.f32 %v3095_v54, %v3056_v42  ;;  %3642 = vperm.xlu0 %5461, %v7757_v44   ;;  %v3523_v52 = vsub.f32 %v7671_v3, %v7683_v53  ;;  %v3541_v42 = vmul.f32 1.442695, %v3521_v51  ;;  %v7822_v21 = vpop.eup %5575 }
 0xa24   : > { %v3110_v35 = vpop.permute.xlu1 %3109 }
 0xa25   : > { %3185 = vst [vmem:[#allocation4 + $0x60] sm:$0xff] %v7791_v34  ;;  %v7798_v7 = vadd.f32 %v3152_v10, %v7522_v6  ;;  %v3155_v48 = vmul.f32 %v3110_v35, %v3059_v22  ;;  %3129 = vperm.xlu1 %5462, %v7499_v39   ;;  %v3524_v6 = vsub.f32 %v7680_v33, %v7691_v50  ;;  %v3543_v39 = vmul.f32 1.442695, %v3522_v9  ;;  %v3060_v10 = vld [vmem:[#allocation4 + $0x90] sm:$0xff] }
 0xa26   : > { %v3105_v45 = vpop.permute.xlu0 %3104  ;;  %5583 = vpow2.f32 %v3541_v42 }
 0xa27   : > { %3184 = vst [vmem:[#allocation4 + $0x50] sm:$0xff] %v7798_v7  ;;  %v7805_v24 = vadd.f32 %v3155_v48, %v7526_v46  ;;  %v3154_v58 = vmul.f32 %v3105_v45, %v3058_v56  ;;  %3134 = vperm.xlu0 %5461, %v7505_v41   ;;  %v3545_v46 = vmul.f32 1.442695, %v3523_v52  ;;  %v3527_v41 = vsub.f32 %v7701_v13, %v7715_v31 }
 0xa28   : > { %v3125_v63 = vpop.permute.xlu1 %3124  ;;  %5585 = vpow2.f32 %v3543_v39 }
 0xa29   : > { %3187 = vst [vmem:[#allocation4 + $0x80] sm:$0xff] %v7805_v24  ;;  %v7812_v3 = vadd.f32 %v7520_v11, %v3154_v58  ;;  %v3158_v53 = vmul.f32 %v3125_v63, %v3062_v29  ;;  %3139 = vperm.xlu1 %5462, %v7491_v49   ;;  %v3547_v11 = vmul.f32 1.442695, %v3524_v6  ;;  %v3528_v49 = vsub.f32 %v7710_v16, %v7724_v61 }
 0xa2a   : > { %v3115_v27 = vpop.permute.xlu0 %3114  ;;  %5587 = vpow2.f32 %v3545_v46  ;;  %v3553_v31 = vmul.f32 1.442695, %v3527_v41  ;;  %v3526_v61 = vsub.f32 %v7727_v20, %v7741_v18 }
 0xa2b   : > { %3186 = vst [vmem:[#allocation4 + $0x70] sm:$0xff] %v7812_v3  ;;  %v7819_v33 = vadd.f32 %v7528_v8, %v3158_v53  ;;  %v3156_v50 = vmul.f32 %v3115_v27, %v3060_v10  ;;  %3144 = vperm.xlu0 %5461, %v7497_v47   ;;  %v7831_v8 = vpop.eup %5577  ;;  %v3525_v47 = vsub.f32 %v7718_v57, %v7732_v14  ;;  %5589 = vpow2.f32 %v3547_v11 }
 0xa2c   : > { %v7837_v16 = vpop.eup %5579  ;;  %5591 = vpow2.f32 %v3553_v31  ;;  %v3531_v14 = vsub.f32 %v7735_v30, %v7749_v4  ;;  %v3551_v20 = vmul.f32 1.442695, %v3526_v61  ;;  %v3529_v30 = vsub.f32 %v7752_v38, %v7769_v60 }
 0xa2d   : > { %3190 = vst [vmem:[#allocation4 + $0xb0] sm:$0xff] %v7819_v33  ;;  %v7828_v13 = vadd.f32 %v3156_v50, %v7530_v25  ;;  %3982 = vperm.xlu1 %5462, %v7822_v21   ;;  %v3555_v25 = vmul.f32 1.442695, %v3528_v49  ;;  %v7845_v22 = vpop.eup %5581  ;;  %v3549_v57 = vmul.f32 1.442695, %v3525_v47 }
 0xa2e   : > { %v3120_v36 = vpop.permute.xlu0 %3119  ;;  %v3561_v9 = vmul.f32 1.442695, %v3531_v14 }
 0xa2f   : > { %3188 = vst [vmem:[#allocation4 + $0x90] sm:$0xff] %v7828_v13  ;;  %v3157_v51 = vmul.f32 %v3120_v36, %v3061_v59  ;;  %3977 = vperm.xlu0 %5461, %v7831_v8   ;;  %5593 = vpow2.f32 %v3555_v25 }
 0xa30   : > { %v7851_v55 = vpop.eup %5583  ;;  %5595 = vpow2.f32 %v3549_v57 }
 0xa31   : > { %v7842_v54 = vadd.f32 %v7524_v26, %v3157_v51  ;;  %3987 = vperm.xlu1 %5462, %v7837_v16   ;;  %v3530_v26 = vsub.f32 %v7762_v12, %v7777_v37  ;;  %5597 = vpow2.f32 %v3551_v20  ;;  %v3557_v12 = vmul.f32 1.442695, %v3529_v30 }
 0xa32   : > { %v7856_v18 = vpop.eup %5585  ;;  %5599 = vpow2.f32 %v3561_v9 }
 0xa33   : > { %3189 = vst [vmem:[#allocation4 + $0xa0] sm:$0xff] %v7842_v54  ;;  %3992 = vperm.xlu0 %5461, %v7845_v22   ;;  %v3559_v35 = vmul.f32 1.442695, %v3530_v26 }
 0xa34   : > { %v7861_v4 = vpop.eup %5587 }
 0xa35   : > { %3997 = vperm.xlu1 %5462, %v7851_v55   ;;  %v7864_v56 = vpop.eup %5589  ;;  %5601 = vpow2.f32 %v3559_v35 }
 0xa36   : > { %v7867_v37 = vpop.eup %5591  ;;  %5603 = vpow2.f32 %v3557_v12 }
 0xa37   : > { %4002 = vperm.xlu0 %5461, %v7856_v18  }
 0xa39   : > { %4007 = vperm.xlu1 %5462, %v7861_v4   ;;  %v7870_v60 = vpop.eup %5593 }
 0xa3a   : > { %v7873_v38 = vpop.eup %5595 }
 0xa3b   : > { %4012 = vperm.xlu0 %5461, %v7864_v56   ;;  %v7876_v48 = vpop.eup %5597 }
 0xa3c   : > { %v7879_v52 = vpop.eup %5599 }
 0xa3d   : > { %4027 = vperm.xlu1 %5462, %v7867_v37  }
 0xa3f   : > { %4032 = vperm.xlu0 %5461, %v7870_v60   ;;  %v7882_v42 = vpop.eup %5601 }
 0xa40   : > { %v7885_v45 = vpop.eup %5603 }
 0xa41   : > { %4017 = vperm.xlu1 %5462, %v7873_v38  }
 0xa43   : > { %4022 = vperm.xlu0 %5461, %v7876_v48  }
 0xa45   : > { %4047 = vperm.xlu1 %5462, %v7879_v52  }
 0xa47   : > { %4042 = vperm.xlu0 %5461, %v7882_v42  }
 0xa49   : > { %4037 = vperm.xlu1 %5462, %v7885_v45  }
 0xa81   : > { %v3568_v29 = vpop.permute.xlu1 %3567 }
 0xa82   : > { %v3645_v58 = vsub.f32 %v7549_v19, %v3568_v29 }
 0xa84   : > { %v3661_v6 = vmul.f32 1.442695, %v3645_v58  ;;  %v3573_v39 = vpop.permute.xlu0 %3572 }
 0xa85   : > { %v3646_v63 = vsub.f32 %v7555_v5, %v3573_v39  ;;  %v3578_v10 = vpop.permute.xlu1 %3577 }
 0xa86   : > { %5605 = vpow2.f32 %v3661_v6  ;;  %v3647_v53 = vsub.f32 %v7543_v62, %v3578_v10 }
 0xa87   : > { %v3663_v46 = vmul.f32 1.442695, %v3646_v63 }
 0xa88   : > { %v3665_v41 = vmul.f32 1.442695, %v3647_v53  ;;  %v3583_v27 = vpop.permute.xlu0 %3582 }
 0xa89   : > { %5607 = vpow2.f32 %v3663_v46  ;;  %v3648_v50 = vsub.f32 %v7561_v23, %v3583_v27 }
 0xa8a   : > { %5609 = vpow2.f32 %v3665_v41 }
 0xa8b   : > { %v3667_v11 = vmul.f32 1.442695, %v3648_v50 }
 0xa8c   : > { %v3588_v49 = vpop.permute.xlu1 %3587 }
 0xa8d   : > { %5611 = vpow2.f32 %v3667_v11  ;;  %v3649_v19 = vsub.f32 %v7579_v15, %v3588_v49  ;;  %v8344_v11 = vld [vmem:[#allocation62_spill] sm:$0xff] }
 0xa8e   : > { %v3593_v59 = vpop.permute.xlu0 %3592 }
 0xa8f   : > { %v3669_v31 = vmul.f32 1.442695, %v3649_v19  ;;  %v3650_v5 = vsub.f32 %v7585_v17, %v3593_v59 }
 0xa90   : > { %v5606_v47 = vpop.eup %5605  ;;  %v3598_v36 = vpop.permute.xlu1 %3597 }
 0xa91   : > { %v3671_v51 = vmul.f32 1.442695, %v3650_v5  ;;  %v3651_v62 = vsub.f32 %v7567_v1, %v3598_v36  ;;  %3726 = vadd.xlane.f32.xlu1 %v5606_v47  ;;  %5613 = vpow2.f32 %v3669_v31  ;;  %v3063_v36 = vld [vmem:[#allocation4 + $0xc0] sm:$0xff] }
 0xa92   : > { %v3603_v25 = vpop.permute.xlu0 %3602 }
 0xa93   : > { %v5608_v61 = vpop.eup %5607  ;;  %5615 = vpow2.f32 %v3671_v51  ;;  %v3673_v23 = vmul.f32 1.442695, %v3651_v62  ;;  %v3652_v57 = vsub.f32 %v7573_v28, %v3603_v25  ;;  %v8346_v62 = vld [vmem:[#allocation61_spill] sm:$0xff] }
 0xa94   : > { %v5610_v14 = vpop.eup %5609  ;;  %v3608_v20 = vpop.permute.xlu1 %3607  ;;  %v3806_v15 = vpack.c.bf16 %v5608_v61, %v5606_v47 }
 0xa95   : > { %5617 = vpow2.f32 %v3673_v23  ;;  %v3675_v26 = vmul.f32 1.442695, %v3652_v57  ;;  %v3653_v17 = vsub.f32 %v7603_v40, %v3608_v20  ;;  %3730 = vadd.xlane.f32.xlu0 %v5610_v14  ;;  %v3064_v57 = vld [vmem:[#allocation4 + $0xd0] sm:$0xff] }
 0xa96   : > { %5220 = vmatprep.mubr.bf16.mxu0 %v3806_v15  ;;  %v3613_v9 = vpop.permute.xlu0 %3612 }
 0xa97   : > { %v5612_v30 = vpop.eup %5611  ;;  %5619 = vpow2.f32 %v3675_v26  ;;  %v3677_v1 = vmul.f32 1.442695, %v3653_v17  ;;  %v3654_v35 = vsub.f32 %v7609_v32, %v3613_v9  ;;  %v3065_v17 = vld [vmem:[#allocation4 + $0xe0] sm:$0xff] }
 0xa98   : > { %v3618_v12 = vpop.permute.xlu1 %3617  ;;  %3732 = vadd.xlane.f32.xlu1 %v5612_v30  ;;  %v3807_v29 = vpack.c.bf16 %v5612_v30, %v5610_v14 }
 0xa99   : > { %v3679_v58 = vmul.f32 1.442695, %v3654_v35  ;;  %v3655_v28 = vsub.f32 %v7591_v2, %v3618_v12  ;;  %3728 = vadd.xlane.f32.xlu0 %v5608_v61  ;;  %5621 = vpow2.f32 %v3677_v1  ;;  %v8347_v1 = vld [vmem:[#allocation72_spill] sm:$0xff] }
 0xa9a   : > { %5221 = vmatmul.mubr.bf16.vlgmr.msra.gmra.mrb[16].mxu0 %v3807_v29  ;;  %v3623_v6 = vpop.permute.xlu0 %3622 }
 0xa9b   : > { %5623 = vpow2.f32 %v3679_v58  ;;  %v3681_v40 = vmul.f32 1.442695, %v3655_v28  ;;  %v3656_v39 = vsub.f32 %v7597_v0, %v3623_v6  ;;  %v5614_v63 = vpop.eup %5613  ;;  %v8345_v0 = vld [vmem:[#allocation60_spill] sm:$0xff]  ;;  %v3066_v58 = vld [vmem:[#allocation4 + $0xf0] sm:$0xff] }
 0xa9c   : > { %v3628_v10 = vpop.permute.xlu1 %3627  ;;  %v8348_v6 = vld [vmem:[#allocation74_spill] sm:$0xff] }
 0xa9d   : > { %v5616_v53 = vpop.eup %5615  ;;  %5625 = vpow2.f32 %v3681_v40  ;;  %v3683_v46 = vmul.f32 1.442695, %v3656_v39  ;;  %v3657_v32 = vsub.f32 %v7627_v43, %v3628_v10 }
 0xa9e   : > { %v3633_v41 = vpop.permute.xlu0 %3632  ;;  %v3808_v27 = vpack.c.bf16 %v5616_v53, %v5614_v63 }
 0xa9f   : > { %v5618_v50 = vpop.eup %5617  ;;  %5627 = vpow2.f32 %v3683_v46  ;;  %v3685_v2 = vmul.f32 1.442695, %v3657_v32  ;;  %v3658_v49 = vsub.f32 %v8344_v11, %v3633_v41 }
 0xaa0   : > { %v3638_v19 = vpop.permute.xlu1 %3637  ;;  %3738 = vadd.xlane.f32.xlu0 %v5618_v50  ;;  %5224 = vmatprep.mubr.bf16.mxu0 %v3808_v27 }
 0xaa1   : > { %v5620_v59 = vpop.eup %5619  ;;  %v3687_v31 = vmul.f32 1.442695, %v3658_v49  ;;  %v3659_v5 = vsub.f32 %v8345_v0, %v3638_v19  ;;  %5629 = vpow2.f32 %v3685_v2  ;;  %v8351_v0 = vld [vmem:[#allocation63_spill] sm:$0xff] }
 0xaa2   : > { %3740 = vadd.xlane.f32.xlu1 %v5620_v59  ;;  %v3643_v47 = vpop.permute.xlu0 %3642  ;;  %v3809_v51 = vpack.c.bf16 %v5620_v59, %v5618_v50  ;;  %v8350_v50 = vld [vmem:[#allocation73_spill] sm:$0xff] }
 0xaa3   : > { %5631 = vpow2.f32 %v3687_v31  ;;  %v3689_v43 = vmul.f32 1.442695, %v3659_v5  ;;  %v3660_v25 = vsub.f32 %v8346_v62, %v3643_v47  ;;  %v5622_v61 = vpop.eup %5621  ;;  %v4119_v31 = vld [vmem:[#allocation3] sm:$0xff]  ;;  %v8352_v5 = vsub.f32 %v8351_v0, %v7757_v44  ;;  %v4122_v62 = vld [vmem:[#allocation3 + $0x18] sm:$0xff] }
 0xaa4   : > { %v3130_v23 = vpop.permute.xlu1 %3129  ;;  %3734 = vadd.xlane.f32.xlu0 %v5614_v63  ;;  %5225 = vmatmul.mubr.bf16.gmra.mrb[20].mxu0 %v3809_v51  ;;  %v4120_v51 = vld [vmem:[#allocation3 + $0x8] sm:$0xff] }
 0xaa5   : > { %v5624_v14 = vpop.eup %5623  ;;  %5633 = vpow2.f32 %v3689_v43  ;;  %v3691_v20 = vmul.f32 1.442695, %v3660_v25  ;;  %v3159_v15 = vmul.f32 %v3130_v23, %v3063_v36  ;;  %v3563_v47 = vmul.f32 1.442695, %v8352_v5  ;;  %v4121_v36 = vld [vmem:[#allocation3 + $0x10] sm:$0xff]  ;;  %v4123_v43 = vld [vmem:[#allocation3 + $0x20] sm:$0xff] }
 0xaa6   : > { %3736 = vadd.xlane.f32.xlu1 %v5616_v53  ;;  %v3135_v26 = vpop.permute.xlu0 %3134  ;;  %v3810_v9 = vpack.c.bf16 %v5624_v14, %v5622_v61  ;;  %v8349_v53 = vld [vmem:[#allocation71_spill] sm:$0xff]  ;;  %v4125_v25 = vld [vmem:[#allocation3 + $0x30] sm:$0xff]  ;;  %v4124_v23 = vld [vmem:[#allocation3 + $0x28] sm:$0xff] }
 0xaa7   : > { %v5626_v30 = vpop.eup %5625  ;;  %5635 = vpow2.f32 %v3691_v20  ;;  %v7905_v35 = vadd.f32 %v3159_v15, %v8347_v1  ;;  %v3160_v12 = vmul.f32 %v3135_v26, %v3064_v57  ;;  %v4126_v20 = vld [vmem:[#allocation3 + $0x38] sm:$0xff]  ;;  %v4129_v26 = vld [vmem:[#allocation3 + $0x50] sm:$0xff]  ;;  %v4131_v1 = vld [vmem:[#allocation3 + $0x60] sm:$0xff] }
 0xaa8   : > { %v3140_v29 = vpop.permute.xlu1 %3139  ;;  %3746 = vadd.xlane.f32.xlu0 %v5626_v30  ;;  %5228 = vmatprep.mubr.bf16.mxu0 %v3810_v9  ;;  %5637 = vrcp.f32 %v4119_v31  ;;  %v4128_v9 = vld [vmem:[#allocation3 + $0x48] sm:$0xff] }
 0xaa9   : > { %v5628_v28 = vpop.eup %5627  ;;  %3191 = vst [vmem:[#allocation4 + $0xc0] sm:$0xff] %v7905_v35  ;;  %v7909_v40 = vadd.f32 %v3160_v12, %v8348_v6  ;;  %v3161_v39 = vmul.f32 %v3140_v29, %v3065_v17  ;;  %5639 = vpow2.f32 %v3563_v47  ;;  %v4130_v29 = vld [vmem:[#allocation3 + $0x58] sm:$0xff] }
 0xaaa   : > { %3748 = vadd.xlane.f32.xlu1 %v5628_v28  ;;  %v3145_v63 = vpop.permute.xlu0 %3144  ;;  %v3811_v10 = vpack.c.bf16 %v5628_v28, %v5626_v30  ;;  %5641 = vrcp.f32 %v4121_v36  ;;  %v4133_v28 = vld [vmem:[#allocation3 + $0x70] sm:$0xff] }
 0xaab   : > { %3192 = vst [vmem:[#allocation4 + $0xd0] sm:$0xff] %v7909_v40  ;;  %v7913_v46 = vadd.f32 %v8349_v53, %v3161_v39  ;;  %v3162_v32 = vmul.f32 %v3145_v63, %v3066_v58  ;;  %v5630_v41 = vpop.eup %5629  ;;  %5643 = vrcp.f32 %v4120_v51  ;;  %v4132_v39 = vld [vmem:[#allocation3 + $0x68] sm:$0xff]  ;;  %v4134_v53 = vld [vmem:[#allocation3 + $0x78] sm:$0xff] }
 0xaac   : > { %3742 = vadd.xlane.f32.xlu0 %v5622_v61  ;;  %5229 = vmatmul.mubr.bf16.gmra.mrb[24].mxu0 %v3811_v10  ;;  %5645 = vrcp.f32 %v4123_v43 }
 0xaad   : > { %v5632_v27 = vpop.eup %5631  ;;  %3193 = vst [vmem:[#allocation4 + $0xe0] sm:$0xff] %v7913_v46  ;;  %v7917_v2 = vadd.f32 %v8350_v50, %v3162_v32  ;;  %5647 = vrcp.f32 %v4122_v62 }
 0xaae   : > { %3744 = vadd.xlane.f32.xlu1 %v5624_v14  ;;  %v3812_v11 = vpack.c.bf16 %v5632_v27, %v5630_v41  ;;  %5649 = vrcp.f32 %v4125_v25  ;;  %v4127_v14 = vld [vmem:[#allocation3 + $0x40] sm:$0xff]  ;;  %v7930_v31 = vpop.permute.xlu0 %3977 }
 0xaaf   : > { %v5634_v49 = vpop.eup %5633  ;;  %3194 = vst [vmem:[#allocation4 + $0xf0] sm:$0xff] %v7917_v2  ;;  %5651 = vrcp.f32 %v4124_v23 }
 0xab0   : > { %3754 = vadd.xlane.f32.xlu0 %v5634_v49  ;;  %5232 = vmatprep.mubr.bf16.mxu0 %v3812_v11  ;;  %5653 = vrcp.f32 %v4127_v14 }
 0xab1   : > { %v5636_v19 = vpop.eup %5635  ;;  %5655 = vrcp.f32 %v4126_v20 }
 0xab2   : > { %3756 = vadd.xlane.f32.xlu1 %v5636_v19  ;;  %v3813_v59 = vpack.c.bf16 %v5636_v19, %v5634_v49  ;;  %v5638_v61 = vpop.eup %5637  ;;  %5657 = vrcp.f32 %v4129_v26  ;;  %v7926_v19 = vpop.permute.xlu1 %3982 }
 0xab3   : > { %v7923_v57 = vpop.eup %5639  ;;  %5659 = vrcp.f32 %v4128_v9  ;;  %v7934_v5 = vpop.permute.xlu0 %3992 }
 0xab4   : > { %3750 = vadd.xlane.f32.xlu0 %v5630_v41  ;;  %5233 = vmatmul.mubr.bf16.gmra.mrb[28].mxu0 %v3813_v59  ;;  %v5642_v44 = vpop.eup %5641  ;;  %5661 = vrcp.f32 %v4131_v1  ;;  %v3697_v1 = vld [vmem:[#allocation3 + $0x98] sm:$0xff] }
 0xab5   : > { %v5644_v15 = vpop.eup %5643  ;;  %5663 = vrcp.f32 %v4130_v29  ;;  %v3695_v29 = vld [vmem:[#allocation3 + $0x88] sm:$0xff] }
 0xab6   : > { %3752 = vadd.xlane.f32.xlu1 %v5632_v27  ;;  %v5646_v17 = vpop.eup %5645  ;;  %5665 = vrcp.f32 %v4133_v28  ;;  %v7928_v59 = vpop.permute.xlu1 %3987  ;;  %v3713_v28 = vmul.f32 %v7845_v22, %v3697_v1  ;;  %v3698_v22 = vld [vmem:[#allocation3 + $0xa0] sm:$0xff] }
 0xab7   : > { %v5648_v30 = vpop.eup %5647  ;;  %5667 = vrcp.f32 %v4132_v39  ;;  %v7938_v36 = vpop.permute.xlu0 %4002 }
 0xab8   : > { %v5650_v12 = vpop.eup %5649  ;;  %5669 = vrcp.f32 %v4134_v53  ;;  %v3700_v53 = vld [vmem:[#allocation3 + $0xb0] sm:$0xff] }
 0xab9   : > { %v5652_v58 = vpop.eup %5651 }
 0xaba   : > { %v5654_v6 = vpop.eup %5653  ;;  %v7932_v0 = vpop.permute.xlu1 %3997 }
 0xabb   : > { %v5656_v63 = vpop.eup %5655  ;;  %v7942_v43 = vpop.permute.xlu0 %4012 }
 0xabc   : > { %v5658_v10 = vpop.eup %5657 }
 0xabd   : > { %v5660_v32 = vpop.eup %5659 }
 0xabe   : > { %v5662_v41 = vpop.eup %5661  ;;  %v7936_v47 = vpop.permute.xlu1 %4007 }
 0xabf   : > { %v5664_v27 = vpop.eup %5663  ;;  %v7946_v25 = vpop.permute.xlu0 %4032 }
 0xac0   : > { %v5666_v50 = vpop.eup %5665 }
 0xac1   : > { %v5668_v11 = vpop.eup %5667 }
 0xac2   : > { %v5670_v49 = vpop.eup %5669  ;;  %v7940_v51 = vpop.permute.xlu1 %4027 }
 0xac3   : > { %v7950_v23 = vpop.permute.xlu0 %4022 }
 0xac6   : > { %v7944_v62 = vpop.permute.xlu1 %4017 }
 0xac7   : > { %4169 = vperm.xlu1 %5462, %v5638_v61  }
 0xaca   : > { %4052 = vperm.xlu0 %5461, %v7923_v57   ;;  %v7948_v61 = vpop.permute.xlu1 %4047 }
 0xacb   : > { %4179 = vperm.xlu1 %5462, %v5642_v44   ;;  %v3694_v44 = vld [vmem:[#allocation3 + $0x80] sm:$0xff] }
 0xacc   : > { %v3710_v20 = vmul.f32 %v7831_v8, %v3694_v44  ;;  %v3711_v8 = vmul.f32 %v7822_v21, %v3695_v29 }
 0xace   : > { %4174 = vperm.xlu0 %5461, %v5644_v15   ;;  %v7952_v14 = vpop.permute.xlu1 %4037  ;;  %v7955_v15 = vpop.permute.xlu0 %4042 }
 0xacf   : > { %4189 = vperm.xlu1 %5462, %v5646_v17   ;;  %v3696_v17 = vld [vmem:[#allocation3 + $0x90] sm:$0xff] }
 0xad2   : > { %4184 = vperm.xlu0 %5461, %v5648_v30   ;;  %v3712_v30 = vmul.f32 %v7837_v16, %v3696_v17  ;;  %v3701_v16 = vld [vmem:[#allocation3 + $0xb8] sm:$0xff]  ;;  %v3714_v17 = vmul.f32 %v7851_v55, %v3698_v22 }
 0xad3   : > { %4199 = vperm.xlu1 %5462, %v5650_v12  }
 0xad6   : > { %4194 = vperm.xlu0 %5461, %v5652_v58  }
 0xad7   : > { %4209 = vperm.xlu1 %5462, %v5654_v6  }
 0xada   : > { %4204 = vperm.xlu0 %5461, %v5656_v63  }
 0xadb   : > { %4219 = vperm.xlu1 %5462, %v5658_v10  }
 0xade   : > { %4214 = vperm.xlu0 %5461, %v5660_v32  }
 0xadf   : > { %4229 = vperm.xlu1 %5462, %v5662_v41   ;;  %v3716_v41 = vmul.f32 %v7861_v4, %v3700_v53  ;;  %v3704_v4 = vld [vmem:[#allocation3 + $0xd0] sm:$0xff] }
 0xae2   : > { %4224 = vperm.xlu0 %5461, %v5664_v27  }
 0xae3   : > { %4239 = vperm.xlu1 %5462, %v5666_v50  }
 0xae6   : > { %4234 = vperm.xlu0 %5461, %v5668_v11  }
 0xaea   : > { %4244 = vperm.xlu0 %5461, %v5670_v49   ;;  %v3717_v49 = vmul.f32 %v7864_v56, %v3701_v16  ;;  %v3705_v56 = vld [vmem:[#allocation3 + $0xd8] sm:$0xff]  ;;  %v3703_v16 = vld [vmem:[#allocation3 + $0xc8] sm:$0xff] }
 0xb1e   : > { %v3727_v26 = vpop.xlane.xlu1 %3726 }
 0xb1f   : > { %v3758_v9 = vadd.f32 %v3727_v26, %v3710_v20  ;;  %v3699_v20 = vld [vmem:[#allocation3 + $0xa8] sm:$0xff] }
 0xb21   : > { %3774 = vst.msk [vmem:[#allocation3 + $0x80] sm:$0xff] %vm2865_vm1, %v3758_v9 }
 0xb22   : > { %v3731_v12 = vpop.xlane.xlu0 %3730 }
 0xb23   : > { %v3760_v58 = vadd.f32 %v3731_v12, %v3712_v30  ;;  %v3715_v12 = vmul.f32 %v7856_v18, %v3699_v20 }
 0xb25   : > { %3776 = vst.msk [vmem:[#allocation3 + $0x90] sm:$0xff] %vm2865_vm1, %v3760_v58  ;;  %v3733_v6 = vpop.xlane.xlu1 %3732 }
 0xb26   : > { %v3761_v39 = vadd.f32 %v3733_v6, %v3713_v28  ;;  %v3729_v63 = vpop.xlane.xlu0 %3728  ;;  %v3720_v28 = vmul.f32 %v7867_v37, %v3704_v4 }
 0xb27   : > { %v3759_v10 = vadd.f32 %v3729_v63, %v3711_v8  ;;  %v3702_v8 = vld [vmem:[#allocation3 + $0xc0] sm:$0xff] }
 0xb28   : > { %3777 = vst.msk [vmem:[#allocation3 + $0x98] sm:$0xff] %vm2865_vm1, %v3761_v39  ;;  %v4343_v50 = vld [vmem:[#allocation3 + $0x80] sm:$0xff]  ;;  %v3721_v39 = vmul.f32 %v7870_v60, %v3705_v56  ;;  %v3719_v60 = vmul.f32 %v7876_v48, %v3703_v16 }
 0xb29   : > { %3775 = vst.msk [vmem:[#allocation3 + $0x88] sm:$0xff] %vm2865_vm1, %v3759_v10  ;;  %v4151_v16 = vld [vmem:[#allocation4] sm:$0xff] }
 0xb2c   : > { %v4345_v32 = vld [vmem:[#allocation3 + $0x90] sm:$0xff] }
 0xb2d   : > { %5671 = vrcp.f32 %v4345_v32  ;;  %v3739_v27 = vpop.xlane.xlu0 %3738  ;;  %v3718_v32 = vmul.f32 %v7873_v38, %v3702_v8 }
 0xb2e   : > { %v3764_v11 = vadd.f32 %v3739_v27, %v3716_v41  ;;  %v3708_v27 = vld [vmem:[#allocation3 + $0xf0] sm:$0xff] }
 0xb2f   : > { %v4346_v21 = vld [vmem:[#allocation3 + $0x98] sm:$0xff]  ;;  %v3741_v44 = vpop.xlane.xlu1 %3740  ;;  %v3724_v38 = vmul.f32 %v7879_v52, %v3708_v27 }
 0xb30   : > { %5673 = vrcp.f32 %v4346_v21  ;;  %3780 = vst.msk [vmem:[#allocation3 + $0xb0] sm:$0xff] %vm2865_vm1, %v3764_v11  ;;  %v3765_v26 = vadd.f32 %v3741_v44, %v3717_v49  ;;  %v4344_v9 = vld [vmem:[#allocation3 + $0x88] sm:$0xff]  ;;  %v3709_v44 = vld [vmem:[#allocation3 + $0xf8] sm:$0xff] }
 0xb31   : > { %5675 = vrcp.f32 %v4343_v50  ;;  %v3735_v30 = vpop.xlane.xlu0 %3734  ;;  %v3725_v4 = vmul.f32 %v7923_v57, %v3709_v44 }
 0xb32   : > { %3781 = vst.msk [vmem:[#allocation3 + $0xb8] sm:$0xff] %vm2865_vm1, %v3765_v26  ;;  %v3762_v1 = vadd.f32 %v3735_v30, %v3714_v17  ;;  %5677 = vrcp.f32 %v4344_v9  ;;  %v3706_v9 = vld [vmem:[#allocation3 + $0xe0] sm:$0xff] }
 0xb33   : > { %v3737_v29 = vpop.xlane.xlu1 %3736  ;;  %v3722_v52 = vmul.f32 %v7885_v45, %v3706_v9 }
 0xb34   : > { %3778 = vst.msk [vmem:[#allocation3 + $0xa0] sm:$0xff] %vm2865_vm1, %v3762_v1  ;;  %v3763_v58 = vadd.f32 %v3737_v29, %v3715_v12  ;;  %v3707_v29 = vld [vmem:[#allocation3 + $0xe8] sm:$0xff] }
 0xb35   : > { %v3747_v6 = vpop.xlane.xlu0 %3746 }
 0xb36   : > { %3779 = vst.msk [vmem:[#allocation3 + $0xa8] sm:$0xff] %vm2865_vm1, %v3763_v58  ;;  %v3768_v55 = vadd.f32 %v3747_v6, %v3720_v28 }
 0xb37   : > { %v5672_v63 = vpop.eup %5671  ;;  %v4349_v10 = vld [vmem:[#allocation3 + $0xb0] sm:$0xff]  ;;  %v3749_v53 = vpop.xlane.xlu1 %3748 }
 0xb38   : > { %5679 = vrcp.f32 %v4349_v10  ;;  %3784 = vst.msk [vmem:[#allocation3 + $0xd0] sm:$0xff] %vm2865_vm1, %v3768_v55  ;;  %v3769_v18 = vadd.f32 %v3749_v53, %v3721_v39  ;;  %4403 = vperm.xlu1 %5462, %v5672_v63   ;;  %v3723_v55 = vmul.f32 %v7882_v42, %v3707_v29 }
 0xb39   : > { %v4350_v41 = vld [vmem:[#allocation3 + $0xb8] sm:$0xff]  ;;  %v3743_v37 = vpop.xlane.xlu0 %3742 }
 0xb3a   : > { %v5674_v22 = vpop.eup %5673  ;;  %5681 = vrcp.f32 %v4350_v41  ;;  %3785 = vst.msk [vmem:[#allocation3 + $0xd8] sm:$0xff] %vm2865_vm1, %v3769_v18  ;;  %v3766_v50 = vadd.f32 %v3743_v37, %v3718_v32 }
 0xb3b   : > { %v5676_v11 = vpop.eup %5675  ;;  %v4347_v49 = vld [vmem:[#allocation3 + $0xa0] sm:$0xff]  ;;  %4408 = vperm.xlu0 %5461, %v5674_v22   ;;  %v3745_v21 = vpop.xlane.xlu1 %3744 }
 0xb3c   : > { %5683 = vrcp.f32 %v4347_v49  ;;  %3782 = vst.msk [vmem:[#allocation3 + $0xc0] sm:$0xff] %vm2865_vm1, %v3766_v50  ;;  %v3767_v20 = vadd.f32 %v3745_v21, %v3719_v60  ;;  %4393 = vperm.xlu1 %5462, %v5676_v11   ;;  %v5678_v30 = vpop.eup %5677  ;;  %v4153_v50 = vld [vmem:[#allocation4 + $0x20] sm:$0xff] }
 0xb3d   : > { %v4348_v26 = vld [vmem:[#allocation3 + $0xa8] sm:$0xff]  ;;  %v3755_v17 = vpop.xlane.xlu0 %3754 }
 0xb3e   : > { %5685 = vrcp.f32 %v4348_v26  ;;  %3783 = vst.msk [vmem:[#allocation3 + $0xc8] sm:$0xff] %vm2865_vm1, %v3767_v20  ;;  %v3772_v48 = vadd.f32 %v3755_v17, %v3724_v38  ;;  %v4152_v20 = vld [vmem:[#allocation4 + $0x10] sm:$0xff] }
 0xb3f   : > { %v4353_v1 = vld [vmem:[#allocation3 + $0xd0] sm:$0xff]  ;;  %v3757_v12 = vpop.xlane.xlu1 %3756  ;;  %4398 = vperm.xlu0 %5461, %v5678_v30  }
 0xb40   : > { %5687 = vrcp.f32 %v4353_v1  ;;  %3788 = vst.msk [vmem:[#allocation3 + $0xf0] sm:$0xff] %vm2865_vm1, %v3772_v48  ;;  %v3773_v56 = vadd.f32 %v3757_v12, %v3725_v4  ;;  %v4155_v48 = vld [vmem:[#allocation4 + $0x40] sm:$0xff] }
 0xb41   : > { %v4354_v58 = vld [vmem:[#allocation3 + $0xd8] sm:$0xff]  ;;  %v3751_v28 = vpop.xlane.xlu0 %3750 }
 0xb42   : > { %v5680_v6 = vpop.eup %5679  ;;  %5689 = vrcp.f32 %v4354_v58  ;;  %3789 = vst.msk [vmem:[#allocation3 + $0xf8] sm:$0xff] %vm2865_vm1, %v3773_v56  ;;  %v3770_v8 = vadd.f32 %v3751_v28, %v3722_v52  ;;  %v4154_v56 = vld [vmem:[#allocation4 + $0x30] sm:$0xff] }
 0xb43   : > { %v4351_v57 = vld [vmem:[#allocation3 + $0xc0] sm:$0xff]  ;;  %v3753_v39 = vpop.xlane.xlu1 %3752  ;;  %4423 = vperm.xlu1 %5462, %v5680_v6  }
 0xb44   : > { %v5682_v63 = vpop.eup %5681  ;;  %5691 = vrcp.f32 %v4351_v57  ;;  %3786 = vst.msk [vmem:[#allocation3 + $0xe0] sm:$0xff] %vm2865_vm1, %v3770_v8  ;;  %v3771_v10 = vadd.f32 %v3753_v39, %v3723_v55 }
 0xb45   : > { %v4352_v53 = vld [vmem:[#allocation3 + $0xc8] sm:$0xff]  ;;  %4428 = vperm.xlu0 %5461, %v5682_v63  }
 0xb46   : > { %v5684_v45 = vpop.eup %5683  ;;  %5693 = vrcp.f32 %v4352_v53  ;;  %3787 = vst.msk [vmem:[#allocation3 + $0xe8] sm:$0xff] %vm2865_vm1, %v3771_v10 }
 0xb47   : > { %v4170_v18 = vpop.permute.xlu1 %4169  ;;  %4413 = vperm.xlu1 %5462, %v5684_v45   ;;  %v4357_v21 = vld [vmem:[#allocation3 + $0xf0] sm:$0xff] }
 0xb48   : > { %v5686_v32 = vpop.eup %5685  ;;  %v4247_v42 = vmul.f32 %v4170_v18, %v4151_v16 }
 0xb49   : > { %4418 = vperm.xlu0 %5461, %v5686_v32   ;;  %v7988_v41 = vpop.permute.xlu0 %4052  ;;  %v4358_v30 = vld [vmem:[#allocation3 + $0xf8] sm:$0xff] }
 0xb4a   : > { %v5688_v37 = vpop.eup %5687  ;;  %v4820_v27 = vpack.c.bf16 %v4247_v42, %v4247_v42 }
 0xb4b   : > { %v4355_v22 = vld [vmem:[#allocation3 + $0xe0] sm:$0xff]  ;;  %v4180_v60 = vpop.permute.xlu1 %4179  ;;  %4443 = vperm.xlu1 %5462, %v5688_v37  }
 0xb4c   : > { %v5690_v11 = vpop.eup %5689  ;;  %5695 = vrcp.f32 %v4355_v22  ;;  %4327 = vst [vmem:[%s5971_s22] sm:$0xf] %v4820_v27  ;;  %v4249_v49 = vmul.f32 %v4180_v60, %v4153_v50 }
 0xb4d   : > { %v4356_v44 = vld [vmem:[#allocation3 + $0xe8] sm:$0xff]  ;;  %4448 = vperm.xlu0 %5461, %v5690_v11   ;;  %v4175_v38 = vpop.permute.xlu0 %4174 }
 0xb4e   : > { %v5692_v26 = vpop.eup %5691  ;;  %5697 = vrcp.f32 %v4356_v44  ;;  %v4822_v17 = vpack.c.bf16 %v4249_v49, %v4249_v49  ;;  %v4248_v9 = vmul.f32 %v4175_v38, %v4152_v20 }
 0xb4f   : > { %v4190_v4 = vpop.permute.xlu1 %4189  ;;  %4433 = vperm.xlu1 %5462, %v5692_v26   ;;  %5699 = vrcp.f32 %v4357_v21 }
 0xb50   : > { %v5694_v1 = vpop.eup %5693  ;;  %4329 = vst [vmem:[%s5971_s22 + $0x10] sm:$0xf] %v4822_v17  ;;  %v4821_v12 = vpack.c.bf16 %v4248_v9, %v4248_v9  ;;  %v4251_v29 = vmul.f32 %v4190_v4, %v4155_v48  ;;  %5701 = vrcp.f32 %v4358_v30 }
 0xb51   : > { %4438 = vperm.xlu0 %5461, %v5694_v1   ;;  %v4185_v52 = vpop.permute.xlu0 %4184  ;;  %v3959_v1 = vld [vmem:[#allocation4 + $0x8] sm:$0xff] }
 0xb52   : > { %4328 = vst [vmem:[%s5971_s22 + $0x8] sm:$0xf] %v4821_v12  ;;  %v4824_v58 = vpack.c.bf16 %v4251_v29, %v4251_v29  ;;  %v4250_v28 = vmul.f32 %v4185_v52, %v4154_v56  ;;  %v3960_v29 = vld [vmem:[#allocation4 + $0x18] sm:$0xff] }
 0xb53   : > { %v4200_v6 = vpop.permute.xlu1 %4199 }
 0xb54   : > { %4331 = vst [vmem:[%s5971_s22 + $0x20] sm:$0xf] %v4824_v58  ;;  %v4823_v8 = vpack.c.bf16 %v4250_v28, %v4250_v28  ;;  %v4253_v55 = vmul.f32 %v4200_v6, %v7791_v34 }
 0xb55   : > { %v4195_v57 = vpop.permute.xlu0 %4194 }
 0xb56   : > { %v5696_v39 = vpop.eup %5695  ;;  %4330 = vst [vmem:[%s5971_s22 + $0x18] sm:$0xf] %v4823_v8  ;;  %v4826_v63 = vpack.c.bf16 %v4253_v55, %v4253_v55  ;;  %v4252_v10 = vmul.f32 %v4195_v57, %v7798_v7  ;;  %v4056_v8 = vmul.f32 %v7926_v19, %v3960_v29  ;;  %v3964_v19 = vld [vmem:[#allocation4 + $0x58] sm:$0xff] }
 0xb57   : > { %v4210_v53 = vpop.permute.xlu1 %4209  ;;  %4453 = vperm.xlu1 %5462, %v5696_v39   ;;  %v3963_v39 = vld [vmem:[#allocation4 + $0x48] sm:$0xff] }
 0xb58   : > { %v5698_v45 = vpop.eup %5697  ;;  %4333 = vst [vmem:[%s5971_s22 + $0x30] sm:$0xf] %v4826_v63  ;;  %v4825_v16 = vpack.c.bf16 %v4252_v10, %v4252_v10  ;;  %v4255_v18 = vmul.f32 %v4210_v53, %v7805_v24  ;;  %v3966_v63 = vld [vmem:[#allocation4 + $0x78] sm:$0xff]  ;;  %v4059_v53 = vmul.f32 %v7932_v0, %v3963_v39 }
 0xb59   : > { %4458 = vperm.xlu0 %5461, %v5698_v45   ;;  %v4205_v32 = vpop.permute.xlu0 %4204  ;;  %v5700_v42 = vpop.eup %5699 }
 0xb5a   : > { %4332 = vst [vmem:[%s5971_s22 + $0x28] sm:$0xf] %v4825_v16  ;;  %v4828_v34 = vpack.c.bf16 %v4255_v18, %v4255_v18  ;;  %v4254_v37 = vmul.f32 %v4205_v32, %v7812_v3  ;;  %v5702_v7 = vpop.eup %5701  ;;  %v4062_v16 = vmul.f32 %v7942_v43, %v3966_v63  ;;  %v3970_v43 = vld [vmem:[#allocation4 + $0xb8] sm:$0xff] }
 0xb5b   : > { %v4220_v27 = vpop.permute.xlu1 %4219  ;;  %4463 = vperm.xlu1 %5462, %v5700_v42   ;;  %v4060_v42 = vmul.f32 %v7938_v36, %v3964_v19 }
 0xb5c   : > { %4335 = vst [vmem:[%s5971_s22 + $0x40] sm:$0xf] %v4828_v34  ;;  %v4827_v22 = vpack.c.bf16 %v4254_v37, %v4254_v37  ;;  %v4257_v50 = vmul.f32 %v4220_v27, %v7842_v54 }
 0xb5d   : > { %4468 = vperm.xlu0 %5461, %v5702_v7   ;;  %v4215_v60 = vpop.permute.xlu0 %4214 }
 0xb5e   : > { %4334 = vst [vmem:[%s5971_s22 + $0x38] sm:$0xf] %v4827_v22  ;;  %v4830_v24 = vpack.c.bf16 %v4257_v50, %v4257_v50  ;;  %v4256_v11 = vmul.f32 %v4215_v60, %v7828_v13  ;;  %v3969_v22 = vld [vmem:[#allocation4 + $0xa8] sm:$0xff]  ;;  %v3968_v50 = vld [vmem:[#allocation4 + $0x98] sm:$0xff] }
 0xb5f   : > { %v4230_v49 = vpop.permute.xlu1 %4229  ;;  %v4065_v36 = vmul.f32 %v7940_v51, %v3969_v22 }
 0xb60   : > { %4337 = vst [vmem:[%s5971_s22 + $0x50] sm:$0xf] %v4830_v24  ;;  %v4829_v3 = vpack.c.bf16 %v4256_v11, %v4256_v11  ;;  %v4259_v21 = vmul.f32 %v4230_v49, %v7905_v35  ;;  %v3961_v35 = vld [vmem:[#allocation4 + $0x28] sm:$0xff]  ;;  %v4066_v11 = vmul.f32 %v7946_v25, %v3970_v43  ;;  %v3974_v25 = vld [vmem:[#allocation4 + $0xf8] sm:$0xff] }
 0xb61   : > { %v4225_v44 = vpop.permute.xlu0 %4224  ;;  %v4057_v56 = vmul.f32 %v7928_v59, %v3961_v35 }
 0xb62   : > { %4336 = vst [vmem:[%s5971_s22 + $0x48] sm:$0xf] %v4829_v3  ;;  %v4832_v20 = vpack.c.bf16 %v4259_v21, %v4259_v21  ;;  %v4258_v38 = vmul.f32 %v4225_v44, %v7819_v33  ;;  %v3962_v33 = vld [vmem:[#allocation4 + $0x38] sm:$0xff]  ;;  %v4064_v21 = vmul.f32 %v7950_v23, %v3968_v50 }
 0xb63   : > { %v4240_v54 = vpop.permute.xlu1 %4239  ;;  %v4058_v28 = vmul.f32 %v7934_v5, %v3962_v33  ;;  %v3965_v5 = vld [vmem:[#allocation4 + $0x68] sm:$0xff]  ;;  %v3972_v23 = vld [vmem:[#allocation4 + $0xd8] sm:$0xff] }
 0xb64   : > { %4339 = vst [vmem:[%s5971_s22 + $0x60] sm:$0xf] %v4832_v20  ;;  %v4831_v26 = vpack.c.bf16 %v4258_v38, %v4258_v38  ;;  %v4261_v17 = vmul.f32 %v4240_v54, %v7913_v46  ;;  %v4055_v46 = vmul.f32 %v7930_v31, %v3959_v1  ;;  %v4061_v10 = vmul.f32 %v7936_v47, %v3965_v5  ;;  %v3967_v47 = vld [vmem:[#allocation4 + $0x88] sm:$0xff] }
 0xb65   : > { %v4235_v9 = vpop.permute.xlu0 %4234  ;;  %v4063_v60 = vmul.f32 %v7944_v62, %v3967_v47  ;;  %v3971_v62 = vld [vmem:[#allocation4 + $0xc8] sm:$0xff] }
 0xb66   : > { %4338 = vst [vmem:[%s5971_s22 + $0x58] sm:$0xf] %v4831_v26  ;;  %v4834_v13 = vpack.c.bf16 %v4261_v17, %v4261_v17  ;;  %v4260_v30 = vmul.f32 %v4235_v9, %v7909_v40  ;;  %v3973_v26 = vld [vmem:[#allocation4 + $0xe8] sm:$0xff]  ;;  %v4067_v9 = vmul.f32 %v7952_v14, %v3971_v62 }
 0xb67   : > { %v4069_v17 = vmul.f32 %v7948_v61, %v3973_v26 }
 0xb68   : > { %4341 = vst [vmem:[%s5971_s22 + $0x70] sm:$0xf] %v4834_v13  ;;  %v4833_v48 = vpack.c.bf16 %v4260_v30, %v4260_v30  ;;  %v4070_v30 = vmul.f32 %v7988_v41, %v3974_v25 }
 0xb69   : > { %v4245_v4 = vpop.permute.xlu0 %4244 }
 0xb6a   : > { %4340 = vst [vmem:[%s5971_s22 + $0x68] sm:$0xf] %v4833_v48  ;;  %v4262_v12 = vmul.f32 %v4245_v4, %v7917_v2  ;;  %v4068_v4 = vmul.f32 %v7955_v15, %v3972_v23 }
 0xb6c   : > { %v4835_v52 = vpack.c.bf16 %v4262_v12, %v4262_v12 }
 0xb6d   : > { %v5222_v58 = vpop.f32.mrb[16].mxu0 }
 0xb6e   : > { %4342 = vst [vmem:[%s5971_s22 + $0x78] sm:$0xf] %v4835_v52  ;;  %v8020_v40 = vadd.f32 %v5222_v58, %v4057_v56  ;;  %v3896_v6 = vpop.f32.mrb[17].mxu0 }
 0xb6f   : > { %v8023_v55 = vadd.f32 %v4055_v46, %v3896_v6  ;;  %v5223_v57 = vpop.f32.mrb[18].mxu0 }
 0xb70   : > { %4089 = vst [vmem:[#allocation4 + $0x28] sm:$0xff] %v8020_v40  ;;  %v8026_v2 = vadd.f32 %v5223_v57, %v4058_v28  ;;  %v3899_v59 = vpop.f32.mrb[19].mxu0 }
 0xb71   : > { %4087 = vst [vmem:[#allocation4 + $0x8] sm:$0xff] %v8023_v55  ;;  %v8029_v31 = vadd.f32 %v4056_v8, %v3899_v59 }
 0xb72   : > { %4090 = vst [vmem:[#allocation4 + $0x38] sm:$0xff] %v8026_v2 }
 0xb73   : > { %4088 = vst [vmem:[#allocation4 + $0x18] sm:$0xff] %v8029_v31 }
 0xb77   : > { %v5226_v45 = vpop.f32.mrb[20].mxu0 }
 0xb78   : > { %v8036_v18 = vadd.f32 %v5226_v45, %v4061_v10  ;;  %v3912_v32 = vpop.f32.mrb[21].mxu0 }
 0xb79   : > { %v8039_v34 = vadd.f32 %v4059_v53, %v3912_v32  ;;  %v5227_v37 = vpop.f32.mrb[22].mxu0 }
 0xb7a   : > { %4093 = vst [vmem:[#allocation4 + $0x68] sm:$0xff] %v8036_v18  ;;  %v8042_v27 = vadd.f32 %v5227_v37, %v4062_v16  ;;  %v3915_v7 = vpop.f32.mrb[23].mxu0 }
 0xb7b   : > { %4091 = vst [vmem:[#allocation4 + $0x48] sm:$0xff] %v8039_v34  ;;  %v8045_v0 = vadd.f32 %v4060_v42, %v3915_v7 }
 0xb7c   : > { %4094 = vst [vmem:[#allocation4 + $0x78] sm:$0xff] %v8042_v27 }
 0xb7d   : > { %4092 = vst [vmem:[#allocation4 + $0x58] sm:$0xff] %v8045_v0 }
 0xb7f   : > { %v5230_v24 = vpop.f32.mrb[24].mxu0 }
 0xb80   : > { %v8052_v49 = vadd.f32 %v5230_v24, %v4065_v36  ;;  %v3928_v3 = vpop.f32.mrb[25].mxu0 }
 0xb81   : > { %v8055_v44 = vadd.f32 %v4063_v60, %v3928_v3  ;;  %v5231_v20 = vpop.f32.mrb[26].mxu0 }
 0xb82   : > { %4097 = vst [vmem:[#allocation4 + $0xa8] sm:$0xff] %v8052_v49  ;;  %v4082_v38 = vadd.f32 %v5231_v20, %v4066_v11  ;;  %v3931_v54 = vpop.f32.mrb[27].mxu0 }
 0xb83   : > { %4095 = vst [vmem:[#allocation4 + $0x88] sm:$0xff] %v8055_v44  ;;  %v8059_v51 = vadd.f32 %v4064_v21, %v3931_v54 }
 0xb84   : > { %4098 = vst [vmem:[#allocation4 + $0xb8] sm:$0xff] %v4082_v38 }
 0xb85   : > { %4096 = vst [vmem:[#allocation4 + $0x98] sm:$0xff] %v8059_v51 }
 0xb87   : > { %v5234_v13 = vpop.f32.mrb[28].mxu0 }
 0xb88   : > { %v8065_v48 = vadd.f32 %v5234_v13, %v4069_v17  ;;  %v3944_v35 = vpop.f32.mrb[29].mxu0 }
 0xb89   : > { %v4083_v1 = vadd.f32 %v4067_v9, %v3944_v35  ;;  %v5235_v12 = vpop.f32.mrb[30].mxu0 }
 0xb8a   : > { %4101 = vst [vmem:[#allocation4 + $0xe8] sm:$0xff] %v8065_v48  ;;  %v8069_v33 = vadd.f32 %v5235_v12, %v4070_v30  ;;  %v3947_v29 = vpop.f32.mrb[31].mxu0 }
 0xb8b   : > { %4099 = vst [vmem:[#allocation4 + $0xc8] sm:$0xff] %v4083_v1  ;;  %v4084_v61 = vadd.f32 %v4068_v4, %v3947_v29 }
 0xb8c   : > { %4102 = vst [vmem:[#allocation4 + $0xf8] sm:$0xff] %v8069_v33 }
 0xb8d   : > { %4100 = vst [vmem:[#allocation4 + $0xd8] sm:$0xff] %v4084_v61 }
 0xbb7   : > { %v4404_v14 = vpop.permute.xlu1 %4403 }
 0xbb8   : > { %v4473_v41 = vmul.f32 %v4404_v14, %v8020_v40 }
 0xbba   : > { %v4838_v15 = vpack.c.bf16 %v4473_v41, %v4473_v41  ;;  %v4409_v56 = vpop.permute.xlu0 %4408 }
 0xbbb   : > { %v4474_v52 = vmul.f32 %v4409_v56, %v8026_v2  ;;  %v4394_v46 = vpop.permute.xlu1 %4393 }
 0xbbc   : > { %4553 = vst [vmem:[%s5971_s22 + $0x14] sm:$0xf] %v4838_v15  ;;  %v4471_v58 = vmul.f32 %v4394_v46, %v8023_v55 }
 0xbbd   : > { %v4839_v28 = vpack.c.bf16 %v4474_v52, %v4474_v52 }
 0xbbe   : > { %v4836_v6 = vpack.c.bf16 %v4471_v58, %v4471_v58  ;;  %v4399_v8 = vpop.permute.xlu0 %4398 }
 0xbbf   : > { %4554 = vst [vmem:[%s5971_s22 + $0x1c] sm:$0xf] %v4839_v28  ;;  %v4472_v57 = vmul.f32 %v4399_v8, %v8029_v31 }
 0xbc0   : > { %4551 = vst [vmem:[%s5971_s22 + $0x4] sm:$0xf] %v4836_v6 }
 0xbc1   : > { %v4837_v59 = vpack.c.bf16 %v4472_v57, %v4472_v57 }
 0xbc2   : > { %v4424_v40 = vpop.permute.xlu1 %4423 }
 0xbc3   : > { %4552 = vst [vmem:[%s5971_s22 + $0xc] sm:$0xf] %v4837_v59  ;;  %v4477_v5 = vmul.f32 %v4424_v40, %v8036_v18 }
 0xbc4   : > { %v4429_v2 = vpop.permute.xlu0 %4428 }
 0xbc5   : > { %v4842_v39 = vpack.c.bf16 %v4477_v5, %v4477_v5  ;;  %v4478_v63 = vmul.f32 %v4429_v2, %v8042_v27 }
 0xbc6   : > { %v4414_v55 = vpop.permute.xlu1 %4413 }
 0xbc7   : > { %4557 = vst [vmem:[%s5971_s22 + $0x34] sm:$0xf] %v4842_v39  ;;  %v4843_v19 = vpack.c.bf16 %v4478_v63, %v4478_v63  ;;  %v4475_v10 = vmul.f32 %v4414_v55, %v8039_v34 }
 0xbc8   : > { %v4419_v53 = vpop.permute.xlu0 %4418 }
 0xbc9   : > { %4558 = vst [vmem:[%s5971_s22 + $0x3c] sm:$0xf] %v4843_v19  ;;  %v4840_v31 = vpack.c.bf16 %v4475_v10, %v4475_v10  ;;  %v4476_v45 = vmul.f32 %v4419_v53, %v8045_v0 }
 0xbca   : > { %v4444_v16 = vpop.permute.xlu1 %4443 }
 0xbcb   : > { %4555 = vst [vmem:[%s5971_s22 + $0x24] sm:$0xf] %v4840_v31  ;;  %v4841_v18 = vpack.c.bf16 %v4476_v45, %v4476_v45  ;;  %v4481_v32 = vmul.f32 %v4444_v16, %v8052_v49 }
 0xbcc   : > { %v4449_v42 = vpop.permute.xlu0 %4448 }
 0xbcd   : > { %4556 = vst [vmem:[%s5971_s22 + $0x2c] sm:$0xf] %v4841_v18  ;;  %v4846_v37 = vpack.c.bf16 %v4481_v32, %v4481_v32  ;;  %v4482_v27 = vmul.f32 %v4449_v42, %v4082_v38 }
 0xbce   : > { %v4434_v7 = vpop.permute.xlu1 %4433 }
 0xbcf   : > { %4561 = vst [vmem:[%s5971_s22 + $0x54] sm:$0xf] %v4846_v37  ;;  %v4847_v34 = vpack.c.bf16 %v4482_v27, %v4482_v27  ;;  %v4479_v22 = vmul.f32 %v4434_v7, %v8055_v44 }
 0xbd0   : > { %v4439_v47 = vpop.permute.xlu0 %4438 }
 0xbd1   : > { %4562 = vst [vmem:[%s5971_s22 + $0x5c] sm:$0xf] %v4847_v34  ;;  %v4844_v0 = vpack.c.bf16 %v4479_v22, %v4479_v22  ;;  %v4480_v43 = vmul.f32 %v4439_v47, %v8059_v51 }
 0xbd3   : > { %4559 = vst [vmem:[%s5971_s22 + $0x44] sm:$0xf] %v4844_v0  ;;  %v4845_v36 = vpack.c.bf16 %v4480_v43, %v4480_v43 }
 0xbd5   : > { %4560 = vst [vmem:[%s5971_s22 + $0x4c] sm:$0xf] %v4845_v36 }
 0xbd6   : > { %v4454_v50 = vpop.permute.xlu1 %4453 }
 0xbd7   : > { %v4483_v60 = vmul.f32 %v4454_v50, %v4083_v1 }
 0xbd8   : > { %v4459_v24 = vpop.permute.xlu0 %4458 }
 0xbd9   : > { %v4848_v11 = vpack.c.bf16 %v4483_v60, %v4483_v60  ;;  %v4484_v49 = vmul.f32 %v4459_v24, %v4084_v61 }
 0xbda   : > { %v4464_v3 = vpop.permute.xlu1 %4463 }
 0xbdb   : > { %4563 = vst [vmem:[%s5971_s22 + $0x64] sm:$0xf] %v4848_v11  ;;  %v4849_v21 = vpack.c.bf16 %v4484_v49, %v4484_v49  ;;  %v4485_v44 = vmul.f32 %v4464_v3, %v8065_v48 }
 0xbdc   : > { %v4469_v20 = vpop.permute.xlu0 %4468 }
 0xbdd   : > { %4564 = vst [vmem:[%s5971_s22 + $0x6c] sm:$0xf] %v4849_v21  ;;  %v4850_v38 = vpack.c.bf16 %v4485_v44, %v4485_v44  ;;  %v4486_v54 = vmul.f32 %v4469_v20, %v8069_v33 }
 0xbdf   : > { %4565 = vst [vmem:[%s5971_s22 + $0x74] sm:$0xf] %v4850_v38  ;;  %v4851_v26 = vpack.c.bf16 %v4486_v54, %v4486_v54 }
 0xbe1   : > { %4566 = vst [vmem:[%s5971_s22 + $0x7c] sm:$0xf] %v4851_v26 }
 0xbe2 PF: > { %p21_p11 = scmp.ge.s32.totalorder %s5835_s29, 5   ;;  %s8353_s1 = smov %s5755_s24 }
 0xbe3   : > { %s8354_s24 = smov %s5856_s14  ;;  %s8355_s25 = smov %s5763_s26 }
 0xbe4   : > { %s8356_s26 = smov %s5852_s11  ;;  %s8357_s27 = smov %s5835_s29 }
 0xbe5   :  { %23 = sbr.rel (!%p21_p11) target bundleno = 28 (0x1c), region = 148 }

</bundles_post_ra>
